<compile_context>
chip_gen: v7x
topology: tpu7x:2x2x1
jax: 0.10.0
libtpu: 0.0.40
codegen_flags: <defaults>
</compile_context>

<pallas_src>
import functools
import math

import jax
import jax.numpy as jnp
from jax.experimental import pallas as pl
from jax.experimental.pallas import tpu as pltpu

DTYPE = jnp.float32
NEG_INF = -1e16

# ----------------------------- small config ---------------------------------
B, T, S, D, H, DFF = 2, 8, 10, 32, 4, 64
NODE_VOCAB, EDGE_VOCAB, REM_VOCAB, MAX_POS = 20, 10, 8, 16
NUM_FATHER_LAYER, NUM_EDGE_LAYER, NUM_NODE_LAYER = 1, 1, 1


# ----------------------------- Pallas kernel ---------------------------------
def _decoder_block_kernel(*refs, heads, t, s, d, epilogue):
    """One fused pre-LN decoder block (+ optional fused head) per batch element.

    Packed inputs:
      act_ref  : (T+2S, D)  = [x | encoder_out | rem_emb]
      mask_ref : (T, 2T+S)  = [node_mask | ast_mask | enc_mask]  (additive)
    Weights are stacked per attention module: 0=seq, 1=ast, 2=enc, 3=rem.
    epilogue in {"none","father","edge","node"} selects the fused head whose
    output is appended to the hidden state in the single merged output slab.
    """
    f32 = jnp.float32
    it = iter(refs)
    act_ref = next(it)
    mask_ref = next(it)
    onehot_ref = next(it) if epilogue == "node" else None
    ln_g_ref = next(it); ln_b_ref = next(it)
    qkv_w_ref = next(it); qkv_b_ref = next(it)
    o_w_ref = next(it); o_b_ref = next(it)
    w1_ref = next(it); b1_ref = next(it)
    w2_ref = next(it); b2_ref = next(it)
    hw_ref = hb_ref = gw_ref = gb_ref = None
    if epilogue in ("father", "edge", "node"):
        hw_ref = next(it); hb_ref = next(it)
    if epilogue == "node":
        gw_ref = next(it); gb_ref = next(it)
    out_ref = next(it)

    slab = act_ref[...].astype(f32)
    x = slab[:t]                     # (T, D)
    enc = slab[t:t + s]              # (S, D)
    rem = slab[t + s:t + 2 * s]      # (S, D)
    masks = mask_ref[...].astype(f32)
    nmask = masks[:, :t]             # (T, T)
    amask = masks[:, t:2 * t]        # (T, T)
    emask = masks[:, 2 * t:2 * t + s]  # (T, S)

    dh = d // heads
    scale = 1.0 / math.sqrt(dh)

    def layernorm(h, i):
        mu = jnp.mean(h, axis=-1, keepdims=True)
        var = jnp.mean((h - mu) ** 2, axis=-1, keepdims=True)
        y = (h - mu) * jax.lax.rsqrt(var + 1e-5)
        return y * ln_g_ref[i] + ln_b_ref[i]

    def softmax_last(sc):
        sc = sc - jnp.max(sc, axis=-1, keepdims=True)
        e = jnp.exp(sc)
        return e * pl.reciprocal(jnp.sum(e, axis=-1, keepdims=True), approx=True)

    def split_heads(m):
        # (L, D) -> (H, L, dh): lane slices stacked along a new major axis.
        return jnp.stack([m[:, hh * dh:(hh + 1) * dh] for hh in range(heads)],
                         axis=0)

    def attention(h, kv_src, mask, i, self_attn, want_probs=False):
        wqkv = qkv_w_ref[i]              # (D, 3D)
        bqkv = qkv_b_ref[i]              # (1, 3D)
        if self_attn:
            qkv = jnp.dot(h, wqkv, preferred_element_type=f32) + bqkv
            q, k, v = qkv[:, :d], qkv[:, d:2 * d], qkv[:, 2 * d:]
        else:
            q = jnp.dot(h, wqkv[:, :d], preferred_element_type=f32) + bqkv[:, :d]
            kv = jnp.dot(kv_src, wqkv[:, d:], preferred_element_type=f32) + bqkv[:, d:]
            k, v = kv[:, :d], kv[:, d:]
        qh, kh, vh = split_heads(q), split_heads(k), split_heads(v)   # (H,*,dh)
        # one head-batched score matmul + one softmax + one context matmul
        sc = jnp.einsum("hqc,hkc->hqk", qh, kh, preferred_element_type=f32)
        p = softmax_last(sc * scale + mask[None, :, :])               # (H,T,K)
        ctx = jnp.einsum("hqk,hkc->hqc", p, vh, preferred_element_type=f32)
        ctx = jnp.concatenate([ctx[hh] for hh in range(heads)], axis=-1)  # (T,D)
        out = jnp.dot(ctx, o_w_ref[i], preferred_element_type=f32) + o_b_ref[i]
        if want_probs:
            return out, jnp.mean(p, axis=0)          # head-averaged (T, K)
        return out, None

    want_enc = epilogue == "node"
    # seq self-attention
    h = layernorm(x, 0)
    a, _ = attention(h, h, nmask, 0, self_attn=True)
    x = x + a
    # AST self-attention (edge-biased mask)
    h = layernorm(x, 1)
    a, _ = attention(h, h, amask, 1, self_attn=True)
    x = x + a
    # encoder cross-attention
    h = layernorm(x, 2)
    a, enc_p = attention(h, enc, emask, 2, self_attn=False, want_probs=want_enc)
    x = x + a
    # rem-tag cross-attention
    h = layernorm(x, 3)
    a, _ = attention(h, rem, emask, 3, self_attn=False)
    x = x + a
    # FFN
    h = layernorm(x, 4)
    ff = jnp.dot(h, w1_ref[...], preferred_element_type=f32) + b1_ref[...]
    ff = jnp.maximum(ff, 0.0)
    ff = jnp.dot(ff, w2_ref[...], preferred_element_type=f32) + b2_ref[...]
    x = x + ff

    if epilogue == "none":
        out_ref[...] = x.astype(out_ref.dtype)
        return

    if epilogue == "father":
        # pointer attention over previous positions (single head of width D)
        qk = jnp.dot(x, hw_ref[...], preferred_element_type=f32) + hb_ref[...]
        q, k = qk[:, :d], qk[:, d:]
        sc = jax.lax.dot_general(q, k, (((1,), (1,)), ((), ())),
                                 preferred_element_type=f32)
        extra = softmax_last(sc * (1.0 / math.sqrt(d)) + nmask)       # (T, T)
    elif epilogue == "edge":
        logits = jnp.dot(x, hw_ref[...], preferred_element_type=f32) + hb_ref[...]
        extra = softmax_last(logits)                                  # (T, E)
    else:  # "node": gated vocab distribution + encoder-copy pointer mix
        p_vocab = softmax_last(
            jnp.dot(x, hw_ref[...], preferred_element_type=f32) + hb_ref[...])
        z = jnp.dot(x, gw_ref[...], preferred_element_type=f32) + gb_ref[...]
        gate = 1.0 / (1.0 + jnp.exp(-z))                              # (T, 1)
        copy = jnp.dot(enc_p, onehot_ref[...].astype(f32),
                       preferred_element_type=f32)                    # (T, V)
        extra = gate * p_vocab + (1.0 - gate) * copy

    out_ref[...] = jnp.concatenate([x, extra], axis=-1).astype(out_ref.dtype)


# ----------------------------- kernel wrapper --------------------------------
def fused_decoder_block(p, x, enc, rem_h, node_mask, ast_mask, enc_mask, heads,
                        epilogue="none", head_weights=None, onehot_src=None):
    b, t, d = x.shape
    s = enc.shape[1]

    # pack the six tiny per-batch inputs into two lane/sublane-dense slabs
    act = jnp.concatenate([x.astype(DTYPE), enc.astype(DTYPE),
                           rem_h.astype(DTYPE)], axis=1)             # (B,T+2S,D)
    msk = jnp.concatenate([node_mask.astype(DTYPE), ast_mask.astype(DTYPE),
                           enc_mask.astype(DTYPE)], axis=-1)         # (B,T,2T+S)

    def per_batch(*dims):
        nd = len(dims)
        return pl.BlockSpec((None,) + dims, lambda i, _nd=nd: (i,) + (0,) * _nd)

    def shared(arr):
        nd = arr.ndim
        return pl.BlockSpec(arr.shape, lambda i, _nd=nd: (0,) * _nd)

    weights = [p["ln_g"], p["ln_b"], p["qkv_w"], p["qkv_b"], p["o_w"], p["o_b"],
               p["ffn_w1"], p["ffn_b1"], p["ffn_w2"], p["ffn_b2"]]

    extra_inputs = []
    in_specs = [per_batch(t + 2 * s, d), per_batch(t, 2 * t + s)]
    if epilogue == "node":
        extra_inputs.append(onehot_src.astype(DTYPE))
        in_specs.append(per_batch(s, onehot_src.shape[-1]))
    if epilogue != "none":
        weights = weights + list(head_weights)
    in_specs += [shared(w) for w in weights]

    if epilogue == "none":
        d_extra = 0
    elif epilogue == "father":
        d_extra = t
    else:  # "edge" / "node": width of the fused head
        d_extra = head_weights[0].shape[-1]

    kernel = functools.partial(_decoder_block_kernel, heads=heads, t=t, s=s,
                               d=d, epilogue=epilogue)
    res = pl.pallas_call(
        kernel,
        grid=(b,),
        in_specs=in_specs,
        out_specs=per_batch(t, d + d_extra),
        out_shape=jax.ShapeDtypeStruct((b, t, d + d_extra), DTYPE),
        compiler_params=pltpu.CompilerParams(dimension_semantics=("parallel",)),
    )(act, msk, *extra_inputs, *weights)

    if epilogue == "none":
        return res
    return res[:, :, :d], res[:, :, d:]


# ----------------------------- model glue (plain JAX) ------------------------
def l1_normalize(x, axis=-1, eps=1e-12):
    denom = jnp.maximum(jnp.sum(jnp.abs(x), axis=axis, keepdims=True), eps)
    return x / denom


def masked_select_pad(values, mask, tlen):
    # emulate: values.masked_select(mask).split(sizes) + zero-pad each row to tlen
    order = jnp.argsort(jnp.logical_not(mask), axis=-1, stable=True)
    gathered = jnp.take_along_axis(values, order, axis=-1)
    count = jnp.sum(mask.astype(jnp.int32), axis=-1, keepdims=True)
    pos = jnp.arange(tlen)[None, :]
    return jnp.where(pos < count, gathered, 0).astype(jnp.int32)


# ----------------------------- full forward ----------------------------------
def graph_transformer_decoder(params, encoder_out, inputs):
    nodes = inputs["target_nodes"][:, :-1]          # (B, T)
    edges = inputs["target_edges"]                  # (B, T, T)
    rem_tags = inputs["rem_tags"]                   # (B, S)
    b, t = nodes.shape
    s = encoder_out.shape[1]

    # TODO(synk): position_embedding(target_edges) definition not provided; use
    # tree depth (# of incoming edges per row) as the position index.
    depth = jnp.clip(jnp.sum((edges > 0).astype(jnp.int32), axis=-1), 0, MAX_POS - 1)
    nodes_h = params["node_emb"][nodes] + params["pos_emb"][depth]   # (B, T, D)

    # masks (additive, float) -- exactly the PyTorch mask semantics
    node_mask3 = (1.0 - (jnp.tril(
        jnp.broadcast_to(nodes[:, None, :], (b, t, t))) > 0).astype(DTYPE)) * NEG_INF
    edge_mask3 = (1.0 - (jnp.tril(edges) > 0).astype(DTYPE)) * NEG_INF
    enc_mask3 = jnp.broadcast_to(
        (1.0 - (inputs["nodes"][:, None, :] > 0).astype(DTYPE)) * NEG_INF, (b, t, s))

    rem_h = params["rem_emb"][rem_tags]             # (B, S, D)

    def ast_mask_for(p_blk):
        # per-block scalar bias table instead of materializing (B,T,T,D)
        bias_tab = params["edge_emb"] @ p_blk["edge_bias"]   # (EDGE_VOCAB,)
        return edge_mask3 + bias_tab[edges]

    # ---- father stack (father-predictor fused into the last block) ----
    fathers_h = nodes_h
    raw_father = None
    nf = len(params["father_blocks"])
    for li, p_blk in enumerate(params["father_blocks"]):
        last = li == nf - 1
        out = fused_decoder_block(
            p_blk, fathers_h, encoder_out, rem_h, node_mask3,
            ast_mask_for(p_blk), enc_mask3, H,
            epilogue="father" if last else "none",
            head_weights=(params["father_pred_w"], params["father_pred_b"])
            if last else None)
        if last:
            fathers_h, raw_father = out
        else:
            fathers_h = out

    soft_attention = l1_normalize(raw_father + 1e-32)
    # TODO(synk): GrammarChecker.check_valid_fathers not provided; identity mask.
    masked_attention = l1_normalize(soft_attention)

    valid = nodes > 0
    next_father_indices = masked_select_pad(inputs["target_out_fathers"], valid, t)

    # ---- edge stack (edge generator fused into the last block) ----
    edges_h = nodes_h + fathers_h
    out_edges = None
    ne = len(params["edge_blocks"])
    for li, p_blk in enumerate(params["edge_blocks"]):
        last = li == ne - 1
        idx = jnp.broadcast_to(next_father_indices[..., None].astype(jnp.int32),
                               edges_h.shape)
        x_in = edges_h + jnp.take_along_axis(edges_h, idx, axis=1)
        out = fused_decoder_block(
            p_blk, x_in, encoder_out, rem_h, node_mask3, ast_mask_for(p_blk),
            enc_mask3, H,
            epilogue="edge" if last else "none",
            head_weights=params["edge_gen"] if last else None)
        if last:
            edges_h, out_edges = out
        else:
            edges_h = out
    # TODO(synk): GrammarChecker.check_valid_edges not provided; identity mask.
    masked_out_edges = l1_normalize(out_edges)

    next_edge = masked_select_pad(inputs["target_out_edges"], valid, t)
    next_edge_embedding = params["edge_emb"][next_edge]

    # ---- node stack (node generator fused into the last block) ----
    nodes_h2 = nodes_h + edges_h
    onehot_src = jax.nn.one_hot(inputs["nodes"], NODE_VOCAB, dtype=DTYPE)  # (B,S,V)
    out_nodes_raw = None
    nn_ = len(params["node_blocks"])
    for li, p_blk in enumerate(params["node_blocks"]):
        last = li == nn_ - 1
        idx = jnp.broadcast_to(next_father_indices[..., None].astype(jnp.int32),
                               nodes_h2.shape)
        x_in = (nodes_h2 + jnp.take_along_axis(nodes_h2, idx, axis=1)
                + next_edge_embedding)
        out = fused_decoder_block(
            p_blk, x_in, encoder_out, rem_h, node_mask3, ast_mask_for(p_blk),
            enc_mask3, H,
            epilogue="node" if last else "none",
            head_weights=(params["node_gen_vocab"] + params["node_gen_gate"])
            if last else None,
            onehot_src=onehot_src if last else None)
        if last:
            nodes_h2, out_nodes_raw = out
        else:
            nodes_h2 = out

    out_nodes = l1_normalize(out_nodes_raw)
    return soft_attention, masked_attention, out_edges, masked_out_edges, out_nodes


# ----------------------------- parameter init ---------------------------------
def dense_init(key, din, dout, scale=0.02):
    w = jax.random.normal(key, (din, dout), DTYPE) * scale
    b = jnp.zeros((1, dout), DTYPE)     # 2-D bias: kernel-friendly shape
    return (w, b)


def block_init(key, d, dff):
    ks = jax.random.split(key, 5)
    sc = 0.02
    return {
        "ln_g": jnp.ones((5, 1, d), DTYPE),
        "ln_b": jnp.zeros((5, 1, d), DTYPE),
        # attention modules stacked: 0=seq, 1=ast, 2=enc, 3=rem; QKV fused [D, 3D]
        "qkv_w": jax.random.normal(ks[0], (4, d, 3 * d), DTYPE) * sc,
        "qkv_b": jnp.zeros((4, 1, 3 * d), DTYPE),
        "o_w": jax.random.normal(ks[1], (4, d, d), DTYPE) * sc,
        "o_b": jnp.zeros((4, 1, d), DTYPE),
        "ffn_w1": jax.random.normal(ks[2], (d, dff), DTYPE) * sc,
        "ffn_b1": jnp.zeros((1, dff), DTYPE),
        "ffn_w2": jax.random.normal(ks[3], (dff, d), DTYPE) * sc,
        "ffn_b2": jnp.zeros((1, d), DTYPE),
        "edge_bias": jax.random.normal(ks[4], (d,), DTYPE) * sc,
    }


def init_params(key):
    ks = jax.random.split(key, 11)
    return {
        "node_emb": jax.random.normal(ks[0], (NODE_VOCAB, D), DTYPE) * 0.02,
        "edge_emb": jax.random.normal(ks[1], (EDGE_VOCAB, D), DTYPE) * 0.02,
        "pos_emb": jax.random.normal(ks[2], (MAX_POS, D), DTYPE) * 0.02,
        "rem_emb": jax.random.normal(ks[3], (REM_VOCAB, D), DTYPE) * 0.02,
        "father_blocks": [block_init(k, D, DFF)
                          for k in jax.random.split(ks[4], NUM_FATHER_LAYER)],
        "edge_blocks": [block_init(k, D, DFF)
                        for k in jax.random.split(ks[5], NUM_EDGE_LAYER)],
        "node_blocks": [block_init(k, D, DFF)
                        for k in jax.random.split(ks[6], NUM_NODE_LAYER)],
        "father_pred_w": jax.random.normal(ks[7], (D, 2 * D), DTYPE) * 0.02,  # fused Q|K
        "father_pred_b": jnp.zeros((1, 2 * D), DTYPE),
        "edge_gen": dense_init(ks[8], D, EDGE_VOCAB),
        "node_gen_vocab": dense_init(ks[9], D, NODE_VOCAB),
        "node_gen_gate": dense_init(ks[10], D, 1),
    }


def make_inputs(key):
    ks = jax.random.split(key, 7)
    target_size = jnp.array([6, 4], dtype=jnp.int32)
    rnd_nodes = jax.random.randint(ks[0], (B, T + 1), 1, NODE_VOCAB)
    valid = jnp.arange(T + 1)[None, :] < target_size[:, None]
    target_nodes = jnp.where(valid, rnd_nodes, 0).astype(jnp.int32)
    target_edges = jax.random.randint(ks[1], (B, T, T), 0, EDGE_VOCAB).astype(jnp.int32)
    target_out_fathers = jax.random.randint(ks[2], (B, T), 0, T).astype(jnp.int32)
    target_out_edges = jax.random.randint(ks[3], (B, T), 0, EDGE_VOCAB).astype(jnp.int32)
    src_nodes = jax.random.randint(ks[4], (B, S), 0, NODE_VOCAB).astype(jnp.int32)
    rem_tags = jax.random.randint(ks[5], (B, S), 0, REM_VOCAB).astype(jnp.int32)
    encoder_out = jax.random.normal(ks[6], (B, S, D), DTYPE)
    inputs = {
        "target_nodes": target_nodes,
        "target_edges": target_edges,
        "target_out_fathers": target_out_fathers,
        "target_out_edges": target_out_edges,
        "target_size": target_size,
        "nodes": src_nodes,
        "rem_tags": rem_tags,
    }
    return encoder_out, inputs


if __name__ == "__main__":
    root = jax.random.PRNGKey(0)
    k_params, k_inputs = jax.random.split(root)
    params = init_params(k_params)
    encoder_out, inputs = make_inputs(k_inputs)

    fwd = jax.jit(graph_transformer_decoder)
    outs = fwd(params, encoder_out, inputs)
    jax.block_until_ready(outs)

    soft_attention, masked_attention, out_edges, masked_out_edges, out_nodes = outs
    assert soft_attention.shape == (B, T, T)
    assert masked_attention.shape == (B, T, T)
    assert out_edges.shape == (B, T, EDGE_VOCAB)
    assert masked_out_edges.shape == (B, T, EDGE_VOCAB)
    assert out_nodes.shape == (B, T, NODE_VOCAB)
    assert bool(jnp.all(jnp.isfinite(soft_attention)))
    assert bool(jnp.all(jnp.isfinite(out_edges)))
    assert bool(jnp.all(jnp.isfinite(out_nodes)))
    print("KERNEL_OK")
</pallas_src>

<mosaic_0001>
module attributes {stable_mosaic.version = 11 : i64} {
  func.func @_decoder_block_kernel(%arg0: i32, %arg1: memref<1x28x32xf32, #tpu.memory_space<vmem>>, %arg2: memref<1x8x26xf32, #tpu.memory_space<vmem>>, %arg3: memref<5x1x32xf32, #tpu.memory_space<vmem>>, %arg4: memref<5x1x32xf32, #tpu.memory_space<vmem>>, %arg5: memref<4x32x96xf32, #tpu.memory_space<vmem>>, %arg6: memref<4x1x96xf32, #tpu.memory_space<vmem>>, %arg7: memref<4x32x32xf32, #tpu.memory_space<vmem>>, %arg8: memref<4x1x32xf32, #tpu.memory_space<vmem>>, %arg9: memref<32x64xf32, #tpu.memory_space<vmem>>, %arg10: memref<1x64xf32, #tpu.memory_space<vmem>>, %arg11: memref<64x32xf32, #tpu.memory_space<vmem>>, %arg12: memref<1x32xf32, #tpu.memory_space<vmem>>, %arg13: memref<32x64xf32, #tpu.memory_space<vmem>>, %arg14: memref<1x64xf32, #tpu.memory_space<vmem>>, %arg15: memref<1x8x40xf32, #tpu.memory_space<vmem>>) attributes {dimension_semantics = [#tpu.dimension_semantics<parallel>], iteration_bounds = array<i64: 2>, scalar_prefetch = 0 : i64, scratch_operands = 0 : i64, tpu.core_type = #tpu.core_type<tc>, window_params = [{transform_indices = @transform_0, window_bounds = array<i64: 1, 28, 32>}, {transform_indices = @transform_1, window_bounds = array<i64: 1, 8, 26>}, {pipeline_mode = #tpu.pipeline_mode<synchronous>, transform_indices = @transform_2, window_bounds = array<i64: 5, 1, 32>}, {pipeline_mode = #tpu.pipeline_mode<synchronous>, transform_indices = @transform_3, window_bounds = array<i64: 5, 1, 32>}, {pipeline_mode = #tpu.pipeline_mode<synchronous>, transform_indices = @transform_4, window_bounds = array<i64: 4, 32, 96>}, {pipeline_mode = #tpu.pipeline_mode<synchronous>, transform_indices = @transform_5, window_bounds = array<i64: 4, 1, 96>}, {pipeline_mode = #tpu.pipeline_mode<synchronous>, transform_indices = @transform_6, window_bounds = array<i64: 4, 32, 32>}, {pipeline_mode = #tpu.pipeline_mode<synchronous>, transform_indices = @transform_7, window_bounds = array<i64: 4, 1, 32>}, {pipeline_mode = #tpu.pipeline_mode<synchronous>, transform_indices = @transform_8, window_bounds = array<i64: 32, 64>}, {pipeline_mode = #tpu.pipeline_mode<synchronous>, transform_indices = @transform_9, window_bounds = array<i64: 1, 64>}, {pipeline_mode = #tpu.pipeline_mode<synchronous>, transform_indices = @transform_10, window_bounds = array<i64: 64, 32>}, {pipeline_mode = #tpu.pipeline_mode<synchronous>, transform_indices = @transform_11, window_bounds = array<i64: 1, 32>}, {pipeline_mode = #tpu.pipeline_mode<synchronous>, transform_indices = @transform_12, window_bounds = array<i64: 32, 64>}, {pipeline_mode = #tpu.pipeline_mode<synchronous>, transform_indices = @transform_13, window_bounds = array<i64: 1, 64>}, {transform_indices = @transform_14, window_bounds = array<i64: 1, 8, 40>}]} {
    %c0 = arith.constant 0 : index
    %c0_0 = arith.constant 0 : index
    %c0_1 = arith.constant 0 : index
    %0 = vector.load %arg1[%c0, %c0_0, %c0_1] : memref<1x28x32xf32, #tpu.memory_space<vmem>>, vector<1x28x32xf32>
    %1 = vector.shape_cast %0 : vector<1x28x32xf32> to vector<28x32xf32>
    %2 = vector.extract_strided_slice %1 {offsets = [0, 0], sizes = [8, 32], strides = [1, 1]} : vector<28x32xf32> to vector<8x32xf32>
    %3 = vector.extract_strided_slice %1 {offsets = [8, 0], sizes = [10, 32], strides = [1, 1]} : vector<28x32xf32> to vector<10x32xf32>
    %4 = vector.extract_strided_slice %1 {offsets = [18, 0], sizes = [10, 32], strides = [1, 1]} : vector<28x32xf32> to vector<10x32xf32>
    %c0_2 = arith.constant 0 : index
    %c0_3 = arith.constant 0 : index
    %c0_4 = arith.constant 0 : index
    %5 = vector.load %arg2[%c0_2, %c0_3, %c0_4] : memref<1x8x26xf32, #tpu.memory_space<vmem>>, vector<1x8x26xf32>
    %6 = vector.shape_cast %5 : vector<1x8x26xf32> to vector<8x26xf32>
    %7 = vector.extract_strided_slice %6 {offsets = [0, 0], sizes = [8, 8], strides = [1, 1]} : vector<8x26xf32> to vector<8x8xf32>
    %8 = vector.extract_strided_slice %6 {offsets = [0, 8], sizes = [8, 8], strides = [1, 1]} : vector<8x26xf32> to vector<8x8xf32>
    %9 = vector.extract_strided_slice %6 {offsets = [0, 16], sizes = [8, 10], strides = [1, 1]} : vector<8x26xf32> to vector<8x10xf32>
    %cst = arith.constant dense<0.000000e+00> : vector<8xf32>
    %10 = vector.multi_reduction <add>, %2, %cst [1] : vector<8x32xf32> to vector<8xf32>
    %11 = vector.shape_cast %10 : vector<8xf32> to vector<8x1xf32>
    %cst_5 = arith.constant 3.200000e+01 : f32
    %12 = vector.broadcast %cst_5 : f32 to vector<8x1xf32>
    %13 = arith.divf %11, %12 : vector<8x1xf32>
    %14 = vector.broadcast %13 : vector<8x1xf32> to vector<8x32xf32>
    %15 = arith.subf %2, %14 : vector<8x32xf32>
    %16 = arith.mulf %15, %15 : vector<8x32xf32>
    %cst_6 = arith.constant dense<0.000000e+00> : vector<8xf32>
    %17 = vector.multi_reduction <add>, %16, %cst_6 [1] : vector<8x32xf32> to vector<8xf32>
    %18 = vector.shape_cast %17 : vector<8xf32> to vector<8x1xf32>
    %cst_7 = arith.constant 3.200000e+01 : f32
    %19 = vector.broadcast %cst_7 : f32 to vector<8x1xf32>
    %20 = arith.divf %18, %19 : vector<8x1xf32>
    %21 = vector.broadcast %13 : vector<8x1xf32> to vector<8x32xf32>
    %22 = arith.subf %2, %21 : vector<8x32xf32>
    %cst_8 = arith.constant 9.99999974E-6 : f32
    %23 = vector.broadcast %cst_8 : f32 to vector<8x1xf32>
    %24 = arith.addf %20, %23 : vector<8x1xf32>
    %25 = math.rsqrt %24 : vector<8x1xf32>
    %26 = vector.broadcast %25 : vector<8x1xf32> to vector<8x32xf32>
    %27 = arith.mulf %22, %26 : vector<8x32xf32>
    %c0_9 = arith.constant 0 : index
    %c0_10 = arith.constant 0 : index
    %c0_11 = arith.constant 0 : index
    %28 = vector.load %arg3[%c0_9, %c0_10, %c0_11] : memref<5x1x32xf32, #tpu.memory_space<vmem>>, vector<1x1x32xf32>
    %29 = vector.shape_cast %28 : vector<1x1x32xf32> to vector<1x32xf32>
    %30 = vector.broadcast %29 : vector<1x32xf32> to vector<8x32xf32>
    %31 = arith.mulf %27, %30 : vector<8x32xf32>
    %c0_12 = arith.constant 0 : index
    %c0_13 = arith.constant 0 : index
    %c0_14 = arith.constant 0 : index
    %32 = vector.load %arg4[%c0_12, %c0_13, %c0_14] : memref<5x1x32xf32, #tpu.memory_space<vmem>>, vector<1x1x32xf32>
    %33 = vector.shape_cast %32 : vector<1x1x32xf32> to vector<1x32xf32>
    %34 = vector.broadcast %33 : vector<1x32xf32> to vector<8x32xf32>
    %35 = arith.addf %31, %34 : vector<8x32xf32>
    %c0_15 = arith.constant 0 : index
    %c0_16 = arith.constant 0 : index
    %c0_17 = arith.constant 0 : index
    %36 = vector.load %arg5[%c0_15, %c0_16, %c0_17] : memref<4x32x96xf32, #tpu.memory_space<vmem>>, vector<1x32x96xf32>
    %37 = vector.shape_cast %36 : vector<1x32x96xf32> to vector<32x96xf32>
    %c0_18 = arith.constant 0 : index
    %c0_19 = arith.constant 0 : index
    %c0_20 = arith.constant 0 : index
    %38 = vector.load %arg6[%c0_18, %c0_19, %c0_20] : memref<4x1x96xf32, #tpu.memory_space<vmem>>, vector<1x1x96xf32>
    %39 = vector.shape_cast %38 : vector<1x1x96xf32> to vector<1x96xf32>
    %cst_21 = arith.constant dense<0.000000e+00> : vector<8x96xf32>
    %40 = tpu.matmul %35, %37, %cst_21 {dimension_numbers = #tpu.dot_dimension_numbers<[1], [0], [0], [1], [0, 0, 1, 1], [], []>} : vector<8x32xf32>, vector<32x96xf32>, vector<8x96xf32> -> vector<8x96xf32>
    %41 = vector.broadcast %39 : vector<1x96xf32> to vector<8x96xf32>
    %42 = arith.addf %40, %41 : vector<8x96xf32>
    %43 = vector.extract_strided_slice %42 {offsets = [0, 0], sizes = [8, 32], strides = [1, 1]} : vector<8x96xf32> to vector<8x32xf32>
    %44 = vector.extract_strided_slice %42 {offsets = [0, 32], sizes = [8, 32], strides = [1, 1]} : vector<8x96xf32> to vector<8x32xf32>
    %45 = vector.extract_strided_slice %42 {offsets = [0, 64], sizes = [8, 32], strides = [1, 1]} : vector<8x96xf32> to vector<8x32xf32>
    %46 = vector.extract_strided_slice %43 {offsets = [0, 0], sizes = [8, 8], strides = [1, 1]} : vector<8x32xf32> to vector<8x8xf32>
    %47 = vector.extract_strided_slice %43 {offsets = [0, 8], sizes = [8, 8], strides = [1, 1]} : vector<8x32xf32> to vector<8x8xf32>
    %48 = vector.extract_strided_slice %43 {offsets = [0, 16], sizes = [8, 8], strides = [1, 1]} : vector<8x32xf32> to vector<8x8xf32>
    %49 = vector.extract_strided_slice %43 {offsets = [0, 24], sizes = [8, 8], strides = [1, 1]} : vector<8x32xf32> to vector<8x8xf32>
    %50 = vector.shape_cast %46 : vector<8x8xf32> to vector<1x8x8xf32>
    %51 = vector.shape_cast %47 : vector<8x8xf32> to vector<1x8x8xf32>
    %52 = vector.shape_cast %48 : vector<8x8xf32> to vector<1x8x8xf32>
    %53 = vector.shape_cast %49 : vector<8x8xf32> to vector<1x8x8xf32>
    %54 = tpu.concatenate %50, %51, %52, %53 in 0 : vector<1x8x8xf32>, vector<1x8x8xf32>, vector<1x8x8xf32>, vector<1x8x8xf32> -> vector<4x8x8xf32>
    %55 = vector.extract_strided_slice %44 {offsets = [0, 0], sizes = [8, 8], strides = [1, 1]} : vector<8x32xf32> to vector<8x8xf32>
    %56 = vector.extract_strided_slice %44 {offsets = [0, 8], sizes = [8, 8], strides = [1, 1]} : vector<8x32xf32> to vector<8x8xf32>
    %57 = vector.extract_strided_slice %44 {offsets = [0, 16], sizes = [8, 8], strides = [1, 1]} : vector<8x32xf32> to vector<8x8xf32>
    %58 = vector.extract_strided_slice %44 {offsets = [0, 24], sizes = [8, 8], strides = [1, 1]} : vector<8x32xf32> to vector<8x8xf32>
    %59 = vector.shape_cast %55 : vector<8x8xf32> to vector<1x8x8xf32>
    %60 = vector.shape_cast %56 : vector<8x8xf32> to vector<1x8x8xf32>
    %61 = vector.shape_cast %57 : vector<8x8xf32> to vector<1x8x8xf32>
    %62 = vector.shape_cast %58 : vector<8x8xf32> to vector<1x8x8xf32>
    %63 = tpu.concatenate %59, %60, %61, %62 in 0 : vector<1x8x8xf32>, vector<1x8x8xf32>, vector<1x8x8xf32>, vector<1x8x8xf32> -> vector<4x8x8xf32>
    %64 = vector.extract_strided_slice %45 {offsets = [0, 0], sizes = [8, 8], strides = [1, 1]} : vector<8x32xf32> to vector<8x8xf32>
    %65 = vector.extract_strided_slice %45 {offsets = [0, 8], sizes = [8, 8], strides = [1, 1]} : vector<8x32xf32> to vector<8x8xf32>
    %66 = vector.extract_strided_slice %45 {offsets = [0, 16], sizes = [8, 8], strides = [1, 1]} : vector<8x32xf32> to vector<8x8xf32>
    %67 = vector.extract_strided_slice %45 {offsets = [0, 24], sizes = [8, 8], strides = [1, 1]} : vector<8x32xf32> to vector<8x8xf32>
    %68 = vector.shape_cast %64 : vector<8x8xf32> to vector<1x8x8xf32>
    %69 = vector.shape_cast %65 : vector<8x8xf32> to vector<1x8x8xf32>
    %70 = vector.shape_cast %66 : vector<8x8xf32> to vector<1x8x8xf32>
    %71 = vector.shape_cast %67 : vector<8x8xf32> to vector<1x8x8xf32>
    %72 = tpu.concatenate %68, %69, %70, %71 in 0 : vector<1x8x8xf32>, vector<1x8x8xf32>, vector<1x8x8xf32>, vector<1x8x8xf32> -> vector<4x8x8xf32>
    "tpu.trace_start"() <{level = 10 : i32, message = "hqc,hkc->hqk"}> : () -> ()
    %cst_22 = arith.constant dense<0.000000e+00> : vector<4x8x8xf32>
    %73 = tpu.matmul %54, %63, %cst_22 {dimension_numbers = #tpu.dot_dimension_numbers<[2], [2], [1], [1], [0, 0, 0, 1, 1, 1], [0], [0]>} : vector<4x8x8xf32>, vector<4x8x8xf32>, vector<4x8x8xf32> -> vector<4x8x8xf32>
    "tpu.trace_stop"() : () -> ()
    %cst_23 = arith.constant 0.353553385 : f32
    %74 = vector.broadcast %cst_23 : f32 to vector<4x8x8xf32>
    %75 = arith.mulf %73, %74 : vector<4x8x8xf32>
    %76 = vector.shape_cast %7 : vector<8x8xf32> to vector<1x8x8xf32>
    %77 = vector.broadcast %76 : vector<1x8x8xf32> to vector<4x8x8xf32>
    %78 = arith.addf %75, %77 : vector<4x8x8xf32>
    %cst_24 = arith.constant dense<0xFF800000> : vector<4x8xf32>
    %79 = vector.multi_reduction <maximumf>, %78, %cst_24 [2] : vector<4x8x8xf32> to vector<4x8xf32>
    %80 = vector.shape_cast %79 : vector<4x8xf32> to vector<4x8x1xf32>
    %81 = vector.broadcast %80 : vector<4x8x1xf32> to vector<4x8x8xf32>
    %82 = arith.subf %78, %81 : vector<4x8x8xf32>
    %83 = math.exp %82 : vector<4x8x8xf32>
    %cst_25 = arith.constant dense<0.000000e+00> : vector<4x8xf32>
    %84 = vector.multi_reduction <add>, %83, %cst_25 [2] : vector<4x8x8xf32> to vector<4x8xf32>
    %85 = vector.shape_cast %84 : vector<4x8xf32> to vector<4x8x1xf32>
    %86 = tpu.reciprocal %85 {approx = true} : vector<4x8x1xf32> -> vector<4x8x1xf32>
    %87 = vector.broadcast %86 : vector<4x8x1xf32> to vector<4x8x8xf32>
    %88 = arith.mulf %83, %87 : vector<4x8x8xf32>
    "tpu.trace_start"() <{level = 10 : i32, message = "hqk,hkc->hqc"}> : () -> ()
    %cst_26 = arith.constant dense<0.000000e+00> : vector<4x8x8xf32>
    %89 = tpu.matmul %88, %72, %cst_26 {dimension_numbers = #tpu.dot_dimension_numbers<[2], [1], [1], [2], [0, 0, 0, 1, 1, 2], [0], [0]>} : vector<4x8x8xf32>, vector<4x8x8xf32>, vector<4x8x8xf32> -> vector<4x8x8xf32>
    "tpu.trace_stop"() : () -> ()
    %90 = vector.extract_strided_slice %89 {offsets = [0, 0, 0], sizes = [1, 8, 8], strides = [1, 1, 1]} : vector<4x8x8xf32> to vector<1x8x8xf32>
    %91 = vector.shape_cast %90 : vector<1x8x8xf32> to vector<8x8xf32>
    %92 = vector.extract_strided_slice %89 {offsets = [1, 0, 0], sizes = [1, 8, 8], strides = [1, 1, 1]} : vector<4x8x8xf32> to vector<1x8x8xf32>
    %93 = vector.shape_cast %92 : vector<1x8x8xf32> to vector<8x8xf32>
    %94 = vector.extract_strided_slice %89 {offsets = [2, 0, 0], sizes = [1, 8, 8], strides = [1, 1, 1]} : vector<4x8x8xf32> to vector<1x8x8xf32>
    %95 = vector.shape_cast %94 : vector<1x8x8xf32> to vector<8x8xf32>
    %96 = vector.extract_strided_slice %89 {offsets = [3, 0, 0], sizes = [1, 8, 8], strides = [1, 1, 1]} : vector<4x8x8xf32> to vector<1x8x8xf32>
    %97 = vector.shape_cast %96 : vector<1x8x8xf32> to vector<8x8xf32>
    %98 = tpu.concatenate %91, %93, %95, %97 in 1 : vector<8x8xf32>, vector<8x8xf32>, vector<8x8xf32>, vector<8x8xf32> -> vector<8x32xf32>
    %c0_27 = arith.constant 0 : index
    %c0_28 = arith.constant 0 : index
    %c0_29 = arith.constant 0 : index
    %99 = vector.load %arg7[%c0_27, %c0_28, %c0_29] : memref<4x32x32xf32, #tpu.memory_space<vmem>>, vector<1x32x32xf32>
    %100 = vector.shape_cast %99 : vector<1x32x32xf32> to vector<32x32xf32>
    %cst_30 = arith.constant dense<0.000000e+00> : vector<8x32xf32>
    %101 = tpu.matmul %98, %100, %cst_30 {dimension_numbers = #tpu.dot_dimension_numbers<[1], [0], [0], [1], [0, 0, 1, 1], [], []>} : vector<8x32xf32>, vector<32x32xf32>, vector<8x32xf32> -> vector<8x32xf32>
    %c0_31 = arith.constant 0 : index
    %c0_32 = arith.constant 0 : index
    %c0_33 = arith.constant 0 : index
    %102 = vector.load %arg8[%c0_31, %c0_32, %c0_33] : memref<4x1x32xf32, #tpu.memory_space<vmem>>, vector<1x1x32xf32>
    %103 = vector.shape_cast %102 : vector<1x1x32xf32> to vector<1x32xf32>
    %104 = vector.broadcast %103 : vector<1x32xf32> to vector<8x32xf32>
    %105 = arith.addf %101, %104 : vector<8x32xf32>
    %106 = arith.addf %2, %105 : vector<8x32xf32>
    %cst_34 = arith.constant dense<0.000000e+00> : vector<8xf32>
    %107 = vector.multi_reduction <add>, %106, %cst_34 [1] : vector<8x32xf32> to vector<8xf32>
    %108 = vector.shape_cast %107 : vector<8xf32> to vector<8x1xf32>
    %cst_35 = arith.constant 3.200000e+01 : f32
    %109 = vector.broadcast %cst_35 : f32 to vector<8x1xf32>
    %110 = arith.divf %108, %109 : vector<8x1xf32>
    %111 = vector.broadcast %110 : vector<8x1xf32> to vector<8x32xf32>
    %112 = arith.subf %106, %111 : vector<8x32xf32>
    %113 = arith.mulf %112, %112 : vector<8x32xf32>
    %cst_36 = arith.constant dense<0.000000e+00> : vector<8xf32>
    %114 = vector.multi_reduction <add>, %113, %cst_36 [1] : vector<8x32xf32> to vector<8xf32>
    %115 = vector.shape_cast %114 : vector<8xf32> to vector<8x1xf32>
    %cst_37 = arith.constant 3.200000e+01 : f32
    %116 = vector.broadcast %cst_37 : f32 to vector<8x1xf32>
    %117 = arith.divf %115, %116 : vector<8x1xf32>
    %118 = vector.broadcast %110 : vector<8x1xf32> to vector<8x32xf32>
    %119 = arith.subf %106, %118 : vector<8x32xf32>
    %cst_38 = arith.constant 9.99999974E-6 : f32
    %120 = vector.broadcast %cst_38 : f32 to vector<8x1xf32>
    %121 = arith.addf %117, %120 : vector<8x1xf32>
    %122 = math.rsqrt %121 : vector<8x1xf32>
    %123 = vector.broadcast %122 : vector<8x1xf32> to vector<8x32xf32>
    %124 = arith.mulf %119, %123 : vector<8x32xf32>
    %c1 = arith.constant 1 : index
    %c0_39 = arith.constant 0 : index
    %c0_40 = arith.constant 0 : index
    %125 = vector.load %arg3[%c1, %c0_39, %c0_40] : memref<5x1x32xf32, #tpu.memory_space<vmem>>, vector<1x1x32xf32>
    %126 = vector.shape_cast %125 : vector<1x1x32xf32> to vector<1x32xf32>
    %127 = vector.broadcast %126 : vector<1x32xf32> to vector<8x32xf32>
    %128 = arith.mulf %124, %127 : vector<8x32xf32>
    %c1_41 = arith.constant 1 : index
    %c0_42 = arith.constant 0 : index
    %c0_43 = arith.constant 0 : index
    %129 = vector.load %arg4[%c1_41, %c0_42, %c0_43] : memref<5x1x32xf32, #tpu.memory_space<vmem>>, vector<1x1x32xf32>
    %130 = vector.shape_cast %129 : vector<1x1x32xf32> to vector<1x32xf32>
    %131 = vector.broadcast %130 : vector<1x32xf32> to vector<8x32xf32>
    %132 = arith.addf %128, %131 : vector<8x32xf32>
    %c1_44 = arith.constant 1 : index
    %c0_45 = arith.constant 0 : index
    %c0_46 = arith.constant 0 : index
    %133 = vector.load %arg5[%c1_44, %c0_45, %c0_46] : memref<4x32x96xf32, #tpu.memory_space<vmem>>, vector<1x32x96xf32>
    %134 = vector.shape_cast %133 : vector<1x32x96xf32> to vector<32x96xf32>
    %c1_47 = arith.constant 1 : index
    %c0_48 = arith.constant 0 : index
    %c0_49 = arith.constant 0 : index
    %135 = vector.load %arg6[%c1_47, %c0_48, %c0_49] : memref<4x1x96xf32, #tpu.memory_space<vmem>>, vector<1x1x96xf32>
    %136 = vector.shape_cast %135 : vector<1x1x96xf32> to vector<1x96xf32>
    %cst_50 = arith.constant dense<0.000000e+00> : vector<8x96xf32>
    %137 = tpu.matmul %132, %134, %cst_50 {dimension_numbers = #tpu.dot_dimension_numbers<[1], [0], [0], [1], [0, 0, 1, 1], [], []>} : vector<8x32xf32>, vector<32x96xf32>, vector<8x96xf32> -> vector<8x96xf32>
    %138 = vector.broadcast %136 : vector<1x96xf32> to vector<8x96xf32>
    %139 = arith.addf %137, %138 : vector<8x96xf32>
    %140 = vector.extract_strided_slice %139 {offsets = [0, 0], sizes = [8, 32], strides = [1, 1]} : vector<8x96xf32> to vector<8x32xf32>
    %141 = vector.extract_strided_slice %139 {offsets = [0, 32], sizes = [8, 32], strides = [1, 1]} : vector<8x96xf32> to vector<8x32xf32>
    %142 = vector.extract_strided_slice %139 {offsets = [0, 64], sizes = [8, 32], strides = [1, 1]} : vector<8x96xf32> to vector<8x32xf32>
    %143 = vector.extract_strided_slice %140 {offsets = [0, 0], sizes = [8, 8], strides = [1, 1]} : vector<8x32xf32> to vector<8x8xf32>
    %144 = vector.extract_strided_slice %140 {offsets = [0, 8], sizes = [8, 8], strides = [1, 1]} : vector<8x32xf32> to vector<8x8xf32>
    %145 = vector.extract_strided_slice %140 {offsets = [0, 16], sizes = [8, 8], strides = [1, 1]} : vector<8x32xf32> to vector<8x8xf32>
    %146 = vector.extract_strided_slice %140 {offsets = [0, 24], sizes = [8, 8], strides = [1, 1]} : vector<8x32xf32> to vector<8x8xf32>
    %147 = vector.shape_cast %143 : vector<8x8xf32> to vector<1x8x8xf32>
    %148 = vector.shape_cast %144 : vector<8x8xf32> to vector<1x8x8xf32>
    %149 = vector.shape_cast %145 : vector<8x8xf32> to vector<1x8x8xf32>
    %150 = vector.shape_cast %146 : vector<8x8xf32> to vector<1x8x8xf32>
    %151 = tpu.concatenate %147, %148, %149, %150 in 0 : vector<1x8x8xf32>, vector<1x8x8xf32>, vector<1x8x8xf32>, vector<1x8x8xf32> -> vector<4x8x8xf32>
    %152 = vector.extract_strided_slice %141 {offsets = [0, 0], sizes = [8, 8], strides = [1, 1]} : vector<8x32xf32> to vector<8x8xf32>
    %153 = vector.extract_strided_slice %141 {offsets = [0, 8], sizes = [8, 8], strides = [1, 1]} : vector<8x32xf32> to vector<8x8xf32>
    %154 = vector.extract_strided_slice %141 {offsets = [0, 16], sizes = [8, 8], strides = [1, 1]} : vector<8x32xf32> to vector<8x8xf32>
    %155 = vector.extract_strided_slice %141 {offsets = [0, 24], sizes = [8, 8], strides = [1, 1]} : vector<8x32xf32> to vector<8x8xf32>
    %156 = vector.shape_cast %152 : vector<8x8xf32> to vector<1x8x8xf32>
    %157 = vector.shape_cast %153 : vector<8x8xf32> to vector<1x8x8xf32>
    %158 = vector.shape_cast %154 : vector<8x8xf32> to vector<1x8x8xf32>
    %159 = vector.shape_cast %155 : vector<8x8xf32> to vector<1x8x8xf32>
    %160 = tpu.concatenate %156, %157, %158, %159 in 0 : vector<1x8x8xf32>, vector<1x8x8xf32>, vector<1x8x8xf32>, vector<1x8x8xf32> -> vector<4x8x8xf32>
    %161 = vector.extract_strided_slice %142 {offsets = [0, 0], sizes = [8, 8], strides = [1, 1]} : vector<8x32xf32> to vector<8x8xf32>
    %162 = vector.extract_strided_slice %142 {offsets = [0, 8], sizes = [8, 8], strides = [1, 1]} : vector<8x32xf32> to vector<8x8xf32>
    %163 = vector.extract_strided_slice %142 {offsets = [0, 16], sizes = [8, 8], strides = [1, 1]} : vector<8x32xf32> to vector<8x8xf32>
    %164 = vector.extract_strided_slice %142 {offsets = [0, 24], sizes = [8, 8], strides = [1, 1]} : vector<8x32xf32> to vector<8x8xf32>
    %165 = vector.shape_cast %161 : vector<8x8xf32> to vector<1x8x8xf32>
    %166 = vector.shape_cast %162 : vector<8x8xf32> to vector<1x8x8xf32>
    %167 = vector.shape_cast %163 : vector<8x8xf32> to vector<1x8x8xf32>
    %168 = vector.shape_cast %164 : vector<8x8xf32> to vector<1x8x8xf32>
    %169 = tpu.concatenate %165, %166, %167, %168 in 0 : vector<1x8x8xf32>, vector<1x8x8xf32>, vector<1x8x8xf32>, vector<1x8x8xf32> -> vector<4x8x8xf32>
    "tpu.trace_start"() <{level = 10 : i32, message = "hqc,hkc->hqk"}> : () -> ()
    %cst_51 = arith.constant dense<0.000000e+00> : vector<4x8x8xf32>
    %170 = tpu.matmul %151, %160, %cst_51 {dimension_numbers = #tpu.dot_dimension_numbers<[2], [2], [1], [1], [0, 0, 0, 1, 1, 1], [0], [0]>} : vector<4x8x8xf32>, vector<4x8x8xf32>, vector<4x8x8xf32> -> vector<4x8x8xf32>
    "tpu.trace_stop"() : () -> ()
    %cst_52 = arith.constant 0.353553385 : f32
    %171 = vector.broadcast %cst_52 : f32 to vector<4x8x8xf32>
    %172 = arith.mulf %170, %171 : vector<4x8x8xf32>
    %173 = vector.shape_cast %8 : vector<8x8xf32> to vector<1x8x8xf32>
    %174 = vector.broadcast %173 : vector<1x8x8xf32> to vector<4x8x8xf32>
    %175 = arith.addf %172, %174 : vector<4x8x8xf32>
    %cst_53 = arith.constant dense<0xFF800000> : vector<4x8xf32>
    %176 = vector.multi_reduction <maximumf>, %175, %cst_53 [2] : vector<4x8x8xf32> to vector<4x8xf32>
    %177 = vector.shape_cast %176 : vector<4x8xf32> to vector<4x8x1xf32>
    %178 = vector.broadcast %177 : vector<4x8x1xf32> to vector<4x8x8xf32>
    %179 = arith.subf %175, %178 : vector<4x8x8xf32>
    %180 = math.exp %179 : vector<4x8x8xf32>
    %cst_54 = arith.constant dense<0.000000e+00> : vector<4x8xf32>
    %181 = vector.multi_reduction <add>, %180, %cst_54 [2] : vector<4x8x8xf32> to vector<4x8xf32>
    %182 = vector.shape_cast %181 : vector<4x8xf32> to vector<4x8x1xf32>
    %183 = tpu.reciprocal %182 {approx = true} : vector<4x8x1xf32> -> vector<4x8x1xf32>
    %184 = vector.broadcast %183 : vector<4x8x1xf32> to vector<4x8x8xf32>
    %185 = arith.mulf %180, %184 : vector<4x8x8xf32>
    "tpu.trace_start"() <{level = 10 : i32, message = "hqk,hkc->hqc"}> : () -> ()
    %cst_55 = arith.constant dense<0.000000e+00> : vector<4x8x8xf32>
    %186 = tpu.matmul %185, %169, %cst_55 {dimension_numbers = #tpu.dot_dimension_numbers<[2], [1], [1], [2], [0, 0, 0, 1, 1, 2], [0], [0]>} : vector<4x8x8xf32>, vector<4x8x8xf32>, vector<4x8x8xf32> -> vector<4x8x8xf32>
    "tpu.trace_stop"() : () -> ()
    %187 = vector.extract_strided_slice %186 {offsets = [0, 0, 0], sizes = [1, 8, 8], strides = [1, 1, 1]} : vector<4x8x8xf32> to vector<1x8x8xf32>
    %188 = vector.shape_cast %187 : vector<1x8x8xf32> to vector<8x8xf32>
    %189 = vector.extract_strided_slice %186 {offsets = [1, 0, 0], sizes = [1, 8, 8], strides = [1, 1, 1]} : vector<4x8x8xf32> to vector<1x8x8xf32>
    %190 = vector.shape_cast %189 : vector<1x8x8xf32> to vector<8x8xf32>
    %191 = vector.extract_strided_slice %186 {offsets = [2, 0, 0], sizes = [1, 8, 8], strides = [1, 1, 1]} : vector<4x8x8xf32> to vector<1x8x8xf32>
    %192 = vector.shape_cast %191 : vector<1x8x8xf32> to vector<8x8xf32>
    %193 = vector.extract_strided_slice %186 {offsets = [3, 0, 0], sizes = [1, 8, 8], strides = [1, 1, 1]} : vector<4x8x8xf32> to vector<1x8x8xf32>
    %194 = vector.shape_cast %193 : vector<1x8x8xf32> to vector<8x8xf32>
    %195 = tpu.concatenate %188, %190, %192, %194 in 1 : vector<8x8xf32>, vector<8x8xf32>, vector<8x8xf32>, vector<8x8xf32> -> vector<8x32xf32>
    %c1_56 = arith.constant 1 : index
    %c0_57 = arith.constant 0 : index
    %c0_58 = arith.constant 0 : index
    %196 = vector.load %arg7[%c1_56, %c0_57, %c0_58] : memref<4x32x32xf32, #tpu.memory_space<vmem>>, vector<1x32x32xf32>
    %197 = vector.shape_cast %196 : vector<1x32x32xf32> to vector<32x32xf32>
    %cst_59 = arith.constant dense<0.000000e+00> : vector<8x32xf32>
    %198 = tpu.matmul %195, %197, %cst_59 {dimension_numbers = #tpu.dot_dimension_numbers<[1], [0], [0], [1], [0, 0, 1, 1], [], []>} : vector<8x32xf32>, vector<32x32xf32>, vector<8x32xf32> -> vector<8x32xf32>
    %c1_60 = arith.constant 1 : index
    %c0_61 = arith.constant 0 : index
    %c0_62 = arith.constant 0 : index
    %199 = vector.load %arg8[%c1_60, %c0_61, %c0_62] : memref<4x1x32xf32, #tpu.memory_space<vmem>>, vector<1x1x32xf32>
    %200 = vector.shape_cast %199 : vector<1x1x32xf32> to vector<1x32xf32>
    %201 = vector.broadcast %200 : vector<1x32xf32> to vector<8x32xf32>
    %202 = arith.addf %198, %201 : vector<8x32xf32>
    %203 = arith.addf %106, %202 : vector<8x32xf32>
    %cst_63 = arith.constant dense<0.000000e+00> : vector<8xf32>
    %204 = vector.multi_reduction <add>, %203, %cst_63 [1] : vector<8x32xf32> to vector<8xf32>
    %205 = vector.shape_cast %204 : vector<8xf32> to vector<8x1xf32>
    %cst_64 = arith.constant 3.200000e+01 : f32
    %206 = vector.broadcast %cst_64 : f32 to vector<8x1xf32>
    %207 = arith.divf %205, %206 : vector<8x1xf32>
    %208 = vector.broadcast %207 : vector<8x1xf32> to vector<8x32xf32>
    %209 = arith.subf %203, %208 : vector<8x32xf32>
    %210 = arith.mulf %209, %209 : vector<8x32xf32>
    %cst_65 = arith.constant dense<0.000000e+00> : vector<8xf32>
    %211 = vector.multi_reduction <add>, %210, %cst_65 [1] : vector<8x32xf32> to vector<8xf32>
    %212 = vector.shape_cast %211 : vector<8xf32> to vector<8x1xf32>
    %cst_66 = arith.constant 3.200000e+01 : f32
    %213 = vector.broadcast %cst_66 : f32 to vector<8x1xf32>
    %214 = arith.divf %212, %213 : vector<8x1xf32>
    %215 = vector.broadcast %207 : vector<8x1xf32> to vector<8x32xf32>
    %216 = arith.subf %203, %215 : vector<8x32xf32>
    %cst_67 = arith.constant 9.99999974E-6 : f32
    %217 = vector.broadcast %cst_67 : f32 to vector<8x1xf32>
    %218 = arith.addf %214, %217 : vector<8x1xf32>
    %219 = math.rsqrt %218 : vector<8x1xf32>
    %220 = vector.broadcast %219 : vector<8x1xf32> to vector<8x32xf32>
    %221 = arith.mulf %216, %220 : vector<8x32xf32>
    %c2 = arith.constant 2 : index
    %c0_68 = arith.constant 0 : index
    %c0_69 = arith.constant 0 : index
    %222 = vector.load %arg3[%c2, %c0_68, %c0_69] : memref<5x1x32xf32, #tpu.memory_space<vmem>>, vector<1x1x32xf32>
    %223 = vector.shape_cast %222 : vector<1x1x32xf32> to vector<1x32xf32>
    %224 = vector.broadcast %223 : vector<1x32xf32> to vector<8x32xf32>
    %225 = arith.mulf %221, %224 : vector<8x32xf32>
    %c2_70 = arith.constant 2 : index
    %c0_71 = arith.constant 0 : index
    %c0_72 = arith.constant 0 : index
    %226 = vector.load %arg4[%c2_70, %c0_71, %c0_72] : memref<5x1x32xf32, #tpu.memory_space<vmem>>, vector<1x1x32xf32>
    %227 = vector.shape_cast %226 : vector<1x1x32xf32> to vector<1x32xf32>
    %228 = vector.broadcast %227 : vector<1x32xf32> to vector<8x32xf32>
    %229 = arith.addf %225, %228 : vector<8x32xf32>
    %c2_73 = arith.constant 2 : index
    %c0_74 = arith.constant 0 : index
    %c0_75 = arith.constant 0 : index
    %230 = vector.load %arg5[%c2_73, %c0_74, %c0_75] : memref<4x32x96xf32, #tpu.memory_space<vmem>>, vector<1x32x96xf32>
    %231 = vector.shape_cast %230 : vector<1x32x96xf32> to vector<32x96xf32>
    %c2_76 = arith.constant 2 : index
    %c0_77 = arith.constant 0 : index
    %c0_78 = arith.constant 0 : index
    %232 = vector.load %arg6[%c2_76, %c0_77, %c0_78] : memref<4x1x96xf32, #tpu.memory_space<vmem>>, vector<1x1x96xf32>
    %233 = vector.shape_cast %232 : vector<1x1x96xf32> to vector<1x96xf32>
    %234 = vector.extract_strided_slice %231 {offsets = [0, 0], sizes = [32, 32], strides = [1, 1]} : vector<32x96xf32> to vector<32x32xf32>
    %cst_79 = arith.constant dense<0.000000e+00> : vector<8x32xf32>
    %235 = tpu.matmul %229, %234, %cst_79 {dimension_numbers = #tpu.dot_dimension_numbers<[1], [0], [0], [1], [0, 0, 1, 1], [], []>} : vector<8x32xf32>, vector<32x32xf32>, vector<8x32xf32> -> vector<8x32xf32>
    %236 = vector.extract_strided_slice %233 {offsets = [0, 0], sizes = [1, 32], strides = [1, 1]} : vector<1x96xf32> to vector<1x32xf32>
    %237 = vector.broadcast %236 : vector<1x32xf32> to vector<8x32xf32>
    %238 = arith.addf %235, %237 : vector<8x32xf32>
    %239 = vector.extract_strided_slice %231 {offsets = [0, 32], sizes = [32, 64], strides = [1, 1]} : vector<32x96xf32> to vector<32x64xf32>
    %cst_80 = arith.constant dense<0.000000e+00> : vector<10x64xf32>
    %240 = tpu.matmul %3, %239, %cst_80 {dimension_numbers = #tpu.dot_dimension_numbers<[1], [0], [0], [1], [0, 0, 1, 1], [], []>} : vector<10x32xf32>, vector<32x64xf32>, vector<10x64xf32> -> vector<10x64xf32>
    %241 = vector.extract_strided_slice %233 {offsets = [0, 32], sizes = [1, 64], strides = [1, 1]} : vector<1x96xf32> to vector<1x64xf32>
    %242 = vector.broadcast %241 : vector<1x64xf32> to vector<10x64xf32>
    %243 = arith.addf %240, %242 : vector<10x64xf32>
    %244 = vector.extract_strided_slice %243 {offsets = [0, 0], sizes = [10, 32], strides = [1, 1]} : vector<10x64xf32> to vector<10x32xf32>
    %245 = vector.extract_strided_slice %243 {offsets = [0, 32], sizes = [10, 32], strides = [1, 1]} : vector<10x64xf32> to vector<10x32xf32>
    %246 = vector.extract_strided_slice %238 {offsets = [0, 0], sizes = [8, 8], strides = [1, 1]} : vector<8x32xf32> to vector<8x8xf32>
    %247 = vector.extract_strided_slice %238 {offsets = [0, 8], sizes = [8, 8], strides = [1, 1]} : vector<8x32xf32> to vector<8x8xf32>
    %248 = vector.extract_strided_slice %238 {offsets = [0, 16], sizes = [8, 8], strides = [1, 1]} : vector<8x32xf32> to vector<8x8xf32>
    %249 = vector.extract_strided_slice %238 {offsets = [0, 24], sizes = [8, 8], strides = [1, 1]} : vector<8x32xf32> to vector<8x8xf32>
    %250 = vector.shape_cast %246 : vector<8x8xf32> to vector<1x8x8xf32>
    %251 = vector.shape_cast %247 : vector<8x8xf32> to vector<1x8x8xf32>
    %252 = vector.shape_cast %248 : vector<8x8xf32> to vector<1x8x8xf32>
    %253 = vector.shape_cast %249 : vector<8x8xf32> to vector<1x8x8xf32>
    %254 = tpu.concatenate %250, %251, %252, %253 in 0 : vector<1x8x8xf32>, vector<1x8x8xf32>, vector<1x8x8xf32>, vector<1x8x8xf32> -> vector<4x8x8xf32>
    %255 = vector.extract_strided_slice %244 {offsets = [0, 0], sizes = [10, 8], strides = [1, 1]} : vector<10x32xf32> to vector<10x8xf32>
    %256 = vector.extract_strided_slice %244 {offsets = [0, 8], sizes = [10, 8], strides = [1, 1]} : vector<10x32xf32> to vector<10x8xf32>
    %257 = vector.extract_strided_slice %244 {offsets = [0, 16], sizes = [10, 8], strides = [1, 1]} : vector<10x32xf32> to vector<10x8xf32>
    %258 = vector.extract_strided_slice %244 {offsets = [0, 24], sizes = [10, 8], strides = [1, 1]} : vector<10x32xf32> to vector<10x8xf32>
    %259 = vector.shape_cast %255 : vector<10x8xf32> to vector<1x10x8xf32>
    %260 = vector.shape_cast %256 : vector<10x8xf32> to vector<1x10x8xf32>
    %261 = vector.shape_cast %257 : vector<10x8xf32> to vector<1x10x8xf32>
    %262 = vector.shape_cast %258 : vector<10x8xf32> to vector<1x10x8xf32>
    %263 = tpu.concatenate %259, %260, %261, %262 in 0 : vector<1x10x8xf32>, vector<1x10x8xf32>, vector<1x10x8xf32>, vector<1x10x8xf32> -> vector<4x10x8xf32>
    %264 = vector.extract_strided_slice %245 {offsets = [0, 0], sizes = [10, 8], strides = [1, 1]} : vector<10x32xf32> to vector<10x8xf32>
    %265 = vector.extract_strided_slice %245 {offsets = [0, 8], sizes = [10, 8], strides = [1, 1]} : vector<10x32xf32> to vector<10x8xf32>
    %266 = vector.extract_strided_slice %245 {offsets = [0, 16], sizes = [10, 8], strides = [1, 1]} : vector<10x32xf32> to vector<10x8xf32>
    %267 = vector.extract_strided_slice %245 {offsets = [0, 24], sizes = [10, 8], strides = [1, 1]} : vector<10x32xf32> to vector<10x8xf32>
    %268 = vector.shape_cast %264 : vector<10x8xf32> to vector<1x10x8xf32>
    %269 = vector.shape_cast %265 : vector<10x8xf32> to vector<1x10x8xf32>
    %270 = vector.shape_cast %266 : vector<10x8xf32> to vector<1x10x8xf32>
    %271 = vector.shape_cast %267 : vector<10x8xf32> to vector<1x10x8xf32>
    %272 = tpu.concatenate %268, %269, %270, %271 in 0 : vector<1x10x8xf32>, vector<1x10x8xf32>, vector<1x10x8xf32>, vector<1x10x8xf32> -> vector<4x10x8xf32>
    "tpu.trace_start"() <{level = 10 : i32, message = "hqc,hkc->hqk"}> : () -> ()
    %cst_81 = arith.constant dense<0.000000e+00> : vector<4x8x10xf32>
    %273 = tpu.matmul %254, %263, %cst_81 {dimension_numbers = #tpu.dot_dimension_numbers<[2], [2], [1], [1], [0, 0, 0, 1, 1, 1], [0], [0]>} : vector<4x8x8xf32>, vector<4x10x8xf32>, vector<4x8x10xf32> -> vector<4x8x10xf32>
    "tpu.trace_stop"() : () -> ()
    %cst_82 = arith.constant 0.353553385 : f32
    %274 = vector.broadcast %cst_82 : f32 to vector<4x8x10xf32>
    %275 = arith.mulf %273, %274 : vector<4x8x10xf32>
    %276 = vector.shape_cast %9 : vector<8x10xf32> to vector<1x8x10xf32>
    %277 = vector.broadcast %276 : vector<1x8x10xf32> to vector<4x8x10xf32>
    %278 = arith.addf %275, %277 : vector<4x8x10xf32>
    %cst_83 = arith.constant dense<0xFF800000> : vector<4x8xf32>
    %279 = vector.multi_reduction <maximumf>, %278, %cst_83 [2] : vector<4x8x10xf32> to vector<4x8xf32>
    %280 = vector.shape_cast %279 : vector<4x8xf32> to vector<4x8x1xf32>
    %281 = vector.broadcast %280 : vector<4x8x1xf32> to vector<4x8x10xf32>
    %282 = arith.subf %278, %281 : vector<4x8x10xf32>
    %283 = math.exp %282 : vector<4x8x10xf32>
    %cst_84 = arith.constant dense<0.000000e+00> : vector<4x8xf32>
    %284 = vector.multi_reduction <add>, %283, %cst_84 [2] : vector<4x8x10xf32> to vector<4x8xf32>
    %285 = vector.shape_cast %284 : vector<4x8xf32> to vector<4x8x1xf32>
    %286 = tpu.reciprocal %285 {approx = true} : vector<4x8x1xf32> -> vector<4x8x1xf32>
    %287 = vector.broadcast %286 : vector<4x8x1xf32> to vector<4x8x10xf32>
    %288 = arith.mulf %283, %287 : vector<4x8x10xf32>
    "tpu.trace_start"() <{level = 10 : i32, message = "hqk,hkc->hqc"}> : () -> ()
    %cst_85 = arith.constant dense<0.000000e+00> : vector<4x8x8xf32>
    %289 = tpu.matmul %288, %272, %cst_85 {dimension_numbers = #tpu.dot_dimension_numbers<[2], [1], [1], [2], [0, 0, 0, 1, 1, 2], [0], [0]>} : vector<4x8x10xf32>, vector<4x10x8xf32>, vector<4x8x8xf32> -> vector<4x8x8xf32>
    "tpu.trace_stop"() : () -> ()
    %290 = vector.extract_strided_slice %289 {offsets = [0, 0, 0], sizes = [1, 8, 8], strides = [1, 1, 1]} : vector<4x8x8xf32> to vector<1x8x8xf32>
    %291 = vector.shape_cast %290 : vector<1x8x8xf32> to vector<8x8xf32>
    %292 = vector.extract_strided_slice %289 {offsets = [1, 0, 0], sizes = [1, 8, 8], strides = [1, 1, 1]} : vector<4x8x8xf32> to vector<1x8x8xf32>
    %293 = vector.shape_cast %292 : vector<1x8x8xf32> to vector<8x8xf32>
    %294 = vector.extract_strided_slice %289 {offsets = [2, 0, 0], sizes = [1, 8, 8], strides = [1, 1, 1]} : vector<4x8x8xf32> to vector<1x8x8xf32>
    %295 = vector.shape_cast %294 : vector<1x8x8xf32> to vector<8x8xf32>
    %296 = vector.extract_strided_slice %289 {offsets = [3, 0, 0], sizes = [1, 8, 8], strides = [1, 1, 1]} : vector<4x8x8xf32> to vector<1x8x8xf32>
    %297 = vector.shape_cast %296 : vector<1x8x8xf32> to vector<8x8xf32>
    %298 = tpu.concatenate %291, %293, %295, %297 in 1 : vector<8x8xf32>, vector<8x8xf32>, vector<8x8xf32>, vector<8x8xf32> -> vector<8x32xf32>
    %c2_86 = arith.constant 2 : index
    %c0_87 = arith.constant 0 : index
    %c0_88 = arith.constant 0 : index
    %299 = vector.load %arg7[%c2_86, %c0_87, %c0_88] : memref<4x32x32xf32, #tpu.memory_space<vmem>>, vector<1x32x32xf32>
    %300 = vector.shape_cast %299 : vector<1x32x32xf32> to vector<32x32xf32>
    %cst_89 = arith.constant dense<0.000000e+00> : vector<8x32xf32>
    %301 = tpu.matmul %298, %300, %cst_89 {dimension_numbers = #tpu.dot_dimension_numbers<[1], [0], [0], [1], [0, 0, 1, 1], [], []>} : vector<8x32xf32>, vector<32x32xf32>, vector<8x32xf32> -> vector<8x32xf32>
    %c2_90 = arith.constant 2 : index
    %c0_91 = arith.constant 0 : index
    %c0_92 = arith.constant 0 : index
    %302 = vector.load %arg8[%c2_90, %c0_91, %c0_92] : memref<4x1x32xf32, #tpu.memory_space<vmem>>, vector<1x1x32xf32>
    %303 = vector.shape_cast %302 : vector<1x1x32xf32> to vector<1x32xf32>
    %304 = vector.broadcast %303 : vector<1x32xf32> to vector<8x32xf32>
    %305 = arith.addf %301, %304 : vector<8x32xf32>
    %306 = arith.addf %203, %305 : vector<8x32xf32>
    %cst_93 = arith.constant dense<0.000000e+00> : vector<8xf32>
    %307 = vector.multi_reduction <add>, %306, %cst_93 [1] : vector<8x32xf32> to vector<8xf32>
    %308 = vector.shape_cast %307 : vector<8xf32> to vector<8x1xf32>
    %cst_94 = arith.constant 3.200000e+01 : f32
    %309 = vector.broadcast %cst_94 : f32 to vector<8x1xf32>
    %310 = arith.divf %308, %309 : vector<8x1xf32>
    %311 = vector.broadcast %310 : vector<8x1xf32> to vector<8x32xf32>
    %312 = arith.subf %306, %311 : vector<8x32xf32>
    %313 = arith.mulf %312, %312 : vector<8x32xf32>
    %cst_95 = arith.constant dense<0.000000e+00> : vector<8xf32>
    %314 = vector.multi_reduction <add>, %313, %cst_95 [1] : vector<8x32xf32> to vector<8xf32>
    %315 = vector.shape_cast %314 : vector<8xf32> to vector<8x1xf32>
    %cst_96 = arith.constant 3.200000e+01 : f32
    %316 = vector.broadcast %cst_96 : f32 to vector<8x1xf32>
    %317 = arith.divf %315, %316 : vector<8x1xf32>
    %318 = vector.broadcast %310 : vector<8x1xf32> to vector<8x32xf32>
    %319 = arith.subf %306, %318 : vector<8x32xf32>
    %cst_97 = arith.constant 9.99999974E-6 : f32
    %320 = vector.broadcast %cst_97 : f32 to vector<8x1xf32>
    %321 = arith.addf %317, %320 : vector<8x1xf32>
    %322 = math.rsqrt %321 : vector<8x1xf32>
    %323 = vector.broadcast %322 : vector<8x1xf32> to vector<8x32xf32>
    %324 = arith.mulf %319, %323 : vector<8x32xf32>
    %c3 = arith.constant 3 : index
    %c0_98 = arith.constant 0 : index
    %c0_99 = arith.constant 0 : index
    %325 = vector.load %arg3[%c3, %c0_98, %c0_99] : memref<5x1x32xf32, #tpu.memory_space<vmem>>, vector<1x1x32xf32>
    %326 = vector.shape_cast %325 : vector<1x1x32xf32> to vector<1x32xf32>
    %327 = vector.broadcast %326 : vector<1x32xf32> to vector<8x32xf32>
    %328 = arith.mulf %324, %327 : vector<8x32xf32>
    %c3_100 = arith.constant 3 : index
    %c0_101 = arith.constant 0 : index
    %c0_102 = arith.constant 0 : index
    %329 = vector.load %arg4[%c3_100, %c0_101, %c0_102] : memref<5x1x32xf32, #tpu.memory_space<vmem>>, vector<1x1x32xf32>
    %330 = vector.shape_cast %329 : vector<1x1x32xf32> to vector<1x32xf32>
    %331 = vector.broadcast %330 : vector<1x32xf32> to vector<8x32xf32>
    %332 = arith.addf %328, %331 : vector<8x32xf32>
    %c3_103 = arith.constant 3 : index
    %c0_104 = arith.constant 0 : index
    %c0_105 = arith.constant 0 : index
    %333 = vector.load %arg5[%c3_103, %c0_104, %c0_105] : memref<4x32x96xf32, #tpu.memory_space<vmem>>, vector<1x32x96xf32>
    %334 = vector.shape_cast %333 : vector<1x32x96xf32> to vector<32x96xf32>
    %c3_106 = arith.constant 3 : index
    %c0_107 = arith.constant 0 : index
    %c0_108 = arith.constant 0 : index
    %335 = vector.load %arg6[%c3_106, %c0_107, %c0_108] : memref<4x1x96xf32, #tpu.memory_space<vmem>>, vector<1x1x96xf32>
    %336 = vector.shape_cast %335 : vector<1x1x96xf32> to vector<1x96xf32>
    %337 = vector.extract_strided_slice %334 {offsets = [0, 0], sizes = [32, 32], strides = [1, 1]} : vector<32x96xf32> to vector<32x32xf32>
    %cst_109 = arith.constant dense<0.000000e+00> : vector<8x32xf32>
    %338 = tpu.matmul %332, %337, %cst_109 {dimension_numbers = #tpu.dot_dimension_numbers<[1], [0], [0], [1], [0, 0, 1, 1], [], []>} : vector<8x32xf32>, vector<32x32xf32>, vector<8x32xf32> -> vector<8x32xf32>
    %339 = vector.extract_strided_slice %336 {offsets = [0, 0], sizes = [1, 32], strides = [1, 1]} : vector<1x96xf32> to vector<1x32xf32>
    %340 = vector.broadcast %339 : vector<1x32xf32> to vector<8x32xf32>
    %341 = arith.addf %338, %340 : vector<8x32xf32>
    %342 = vector.extract_strided_slice %334 {offsets = [0, 32], sizes = [32, 64], strides = [1, 1]} : vector<32x96xf32> to vector<32x64xf32>
    %cst_110 = arith.constant dense<0.000000e+00> : vector<10x64xf32>
    %343 = tpu.matmul %4, %342, %cst_110 {dimension_numbers = #tpu.dot_dimension_numbers<[1], [0], [0], [1], [0, 0, 1, 1], [], []>} : vector<10x32xf32>, vector<32x64xf32>, vector<10x64xf32> -> vector<10x64xf32>
    %344 = vector.extract_strided_slice %336 {offsets = [0, 32], sizes = [1, 64], strides = [1, 1]} : vector<1x96xf32> to vector<1x64xf32>
    %345 = vector.broadcast %344 : vector<1x64xf32> to vector<10x64xf32>
    %346 = arith.addf %343, %345 : vector<10x64xf32>
    %347 = vector.extract_strided_slice %346 {offsets = [0, 0], sizes = [10, 32], strides = [1, 1]} : vector<10x64xf32> to vector<10x32xf32>
    %348 = vector.extract_strided_slice %346 {offsets = [0, 32], sizes = [10, 32], strides = [1, 1]} : vector<10x64xf32> to vector<10x32xf32>
    %349 = vector.extract_strided_slice %341 {offsets = [0, 0], sizes = [8, 8], strides = [1, 1]} : vector<8x32xf32> to vector<8x8xf32>
    %350 = vector.extract_strided_slice %341 {offsets = [0, 8], sizes = [8, 8], strides = [1, 1]} : vector<8x32xf32> to vector<8x8xf32>
    %351 = vector.extract_strided_slice %341 {offsets = [0, 16], sizes = [8, 8], strides = [1, 1]} : vector<8x32xf32> to vector<8x8xf32>
    %352 = vector.extract_strided_slice %341 {offsets = [0, 24], sizes = [8, 8], strides = [1, 1]} : vector<8x32xf32> to vector<8x8xf32>
    %353 = vector.shape_cast %349 : vector<8x8xf32> to vector<1x8x8xf32>
    %354 = vector.shape_cast %350 : vector<8x8xf32> to vector<1x8x8xf32>
    %355 = vector.shape_cast %351 : vector<8x8xf32> to vector<1x8x8xf32>
    %356 = vector.shape_cast %352 : vector<8x8xf32> to vector<1x8x8xf32>
    %357 = tpu.concatenate %353, %354, %355, %356 in 0 : vector<1x8x8xf32>, vector<1x8x8xf32>, vector<1x8x8xf32>, vector<1x8x8xf32> -> vector<4x8x8xf32>
    %358 = vector.extract_strided_slice %347 {offsets = [0, 0], sizes = [10, 8], strides = [1, 1]} : vector<10x32xf32> to vector<10x8xf32>
    %359 = vector.extract_strided_slice %347 {offsets = [0, 8], sizes = [10, 8], strides = [1, 1]} : vector<10x32xf32> to vector<10x8xf32>
    %360 = vector.extract_strided_slice %347 {offsets = [0, 16], sizes = [10, 8], strides = [1, 1]} : vector<10x32xf32> to vector<10x8xf32>
    %361 = vector.extract_strided_slice %347 {offsets = [0, 24], sizes = [10, 8], strides = [1, 1]} : vector<10x32xf32> to vector<10x8xf32>
    %362 = vector.shape_cast %358 : vector<10x8xf32> to vector<1x10x8xf32>
    %363 = vector.shape_cast %359 : vector<10x8xf32> to vector<1x10x8xf32>
    %364 = vector.shape_cast %360 : vector<10x8xf32> to vector<1x10x8xf32>
    %365 = vector.shape_cast %361 : vector<10x8xf32> to vector<1x10x8xf32>
    %366 = tpu.concatenate %362, %363, %364, %365 in 0 : vector<1x10x8xf32>, vector<1x10x8xf32>, vector<1x10x8xf32>, vector<1x10x8xf32> -> vector<4x10x8xf32>
    %367 = vector.extract_strided_slice %348 {offsets = [0, 0], sizes = [10, 8], strides = [1, 1]} : vector<10x32xf32> to vector<10x8xf32>
    %368 = vector.extract_strided_slice %348 {offsets = [0, 8], sizes = [10, 8], strides = [1, 1]} : vector<10x32xf32> to vector<10x8xf32>
    %369 = vector.extract_strided_slice %348 {offsets = [0, 16], sizes = [10, 8], strides = [1, 1]} : vector<10x32xf32> to vector<10x8xf32>
    %370 = vector.extract_strided_slice %348 {offsets = [0, 24], sizes = [10, 8], strides = [1, 1]} : vector<10x32xf32> to vector<10x8xf32>
    %371 = vector.shape_cast %367 : vector<10x8xf32> to vector<1x10x8xf32>
    %372 = vector.shape_cast %368 : vector<10x8xf32> to vector<1x10x8xf32>
    %373 = vector.shape_cast %369 : vector<10x8xf32> to vector<1x10x8xf32>
    %374 = vector.shape_cast %370 : vector<10x8xf32> to vector<1x10x8xf32>
    %375 = tpu.concatenate %371, %372, %373, %374 in 0 : vector<1x10x8xf32>, vector<1x10x8xf32>, vector<1x10x8xf32>, vector<1x10x8xf32> -> vector<4x10x8xf32>
    "tpu.trace_start"() <{level = 10 : i32, message = "hqc,hkc->hqk"}> : () -> ()
    %cst_111 = arith.constant dense<0.000000e+00> : vector<4x8x10xf32>
    %376 = tpu.matmul %357, %366, %cst_111 {dimension_numbers = #tpu.dot_dimension_numbers<[2], [2], [1], [1], [0, 0, 0, 1, 1, 1], [0], [0]>} : vector<4x8x8xf32>, vector<4x10x8xf32>, vector<4x8x10xf32> -> vector<4x8x10xf32>
    "tpu.trace_stop"() : () -> ()
    %cst_112 = arith.constant 0.353553385 : f32
    %377 = vector.broadcast %cst_112 : f32 to vector<4x8x10xf32>
    %378 = arith.mulf %376, %377 : vector<4x8x10xf32>
    %379 = vector.shape_cast %9 : vector<8x10xf32> to vector<1x8x10xf32>
    %380 = vector.broadcast %379 : vector<1x8x10xf32> to vector<4x8x10xf32>
    %381 = arith.addf %378, %380 : vector<4x8x10xf32>
    %cst_113 = arith.constant dense<0xFF800000> : vector<4x8xf32>
    %382 = vector.multi_reduction <maximumf>, %381, %cst_113 [2] : vector<4x8x10xf32> to vector<4x8xf32>
    %383 = vector.shape_cast %382 : vector<4x8xf32> to vector<4x8x1xf32>
    %384 = vector.broadcast %383 : vector<4x8x1xf32> to vector<4x8x10xf32>
    %385 = arith.subf %381, %384 : vector<4x8x10xf32>
    %386 = math.exp %385 : vector<4x8x10xf32>
    %cst_114 = arith.constant dense<0.000000e+00> : vector<4x8xf32>
    %387 = vector.multi_reduction <add>, %386, %cst_114 [2] : vector<4x8x10xf32> to vector<4x8xf32>
    %388 = vector.shape_cast %387 : vector<4x8xf32> to vector<4x8x1xf32>
    %389 = tpu.reciprocal %388 {approx = true} : vector<4x8x1xf32> -> vector<4x8x1xf32>
    %390 = vector.broadcast %389 : vector<4x8x1xf32> to vector<4x8x10xf32>
    %391 = arith.mulf %386, %390 : vector<4x8x10xf32>
    "tpu.trace_start"() <{level = 10 : i32, message = "hqk,hkc->hqc"}> : () -> ()
    %cst_115 = arith.constant dense<0.000000e+00> : vector<4x8x8xf32>
    %392 = tpu.matmul %391, %375, %cst_115 {dimension_numbers = #tpu.dot_dimension_numbers<[2], [1], [1], [2], [0, 0, 0, 1, 1, 2], [0], [0]>} : vector<4x8x10xf32>, vector<4x10x8xf32>, vector<4x8x8xf32> -> vector<4x8x8xf32>
    "tpu.trace_stop"() : () -> ()
    %393 = vector.extract_strided_slice %392 {offsets = [0, 0, 0], sizes = [1, 8, 8], strides = [1, 1, 1]} : vector<4x8x8xf32> to vector<1x8x8xf32>
    %394 = vector.shape_cast %393 : vector<1x8x8xf32> to vector<8x8xf32>
    %395 = vector.extract_strided_slice %392 {offsets = [1, 0, 0], sizes = [1, 8, 8], strides = [1, 1, 1]} : vector<4x8x8xf32> to vector<1x8x8xf32>
    %396 = vector.shape_cast %395 : vector<1x8x8xf32> to vector<8x8xf32>
    %397 = vector.extract_strided_slice %392 {offsets = [2, 0, 0], sizes = [1, 8, 8], strides = [1, 1, 1]} : vector<4x8x8xf32> to vector<1x8x8xf32>
    %398 = vector.shape_cast %397 : vector<1x8x8xf32> to vector<8x8xf32>
    %399 = vector.extract_strided_slice %392 {offsets = [3, 0, 0], sizes = [1, 8, 8], strides = [1, 1, 1]} : vector<4x8x8xf32> to vector<1x8x8xf32>
    %400 = vector.shape_cast %399 : vector<1x8x8xf32> to vector<8x8xf32>
    %401 = tpu.concatenate %394, %396, %398, %400 in 1 : vector<8x8xf32>, vector<8x8xf32>, vector<8x8xf32>, vector<8x8xf32> -> vector<8x32xf32>
    %c3_116 = arith.constant 3 : index
    %c0_117 = arith.constant 0 : index
    %c0_118 = arith.constant 0 : index
    %402 = vector.load %arg7[%c3_116, %c0_117, %c0_118] : memref<4x32x32xf32, #tpu.memory_space<vmem>>, vector<1x32x32xf32>
    %403 = vector.shape_cast %402 : vector<1x32x32xf32> to vector<32x32xf32>
    %cst_119 = arith.constant dense<0.000000e+00> : vector<8x32xf32>
    %404 = tpu.matmul %401, %403, %cst_119 {dimension_numbers = #tpu.dot_dimension_numbers<[1], [0], [0], [1], [0, 0, 1, 1], [], []>} : vector<8x32xf32>, vector<32x32xf32>, vector<8x32xf32> -> vector<8x32xf32>
    %c3_120 = arith.constant 3 : index
    %c0_121 = arith.constant 0 : index
    %c0_122 = arith.constant 0 : index
    %405 = vector.load %arg8[%c3_120, %c0_121, %c0_122] : memref<4x1x32xf32, #tpu.memory_space<vmem>>, vector<1x1x32xf32>
    %406 = vector.shape_cast %405 : vector<1x1x32xf32> to vector<1x32xf32>
    %407 = vector.broadcast %406 : vector<1x32xf32> to vector<8x32xf32>
    %408 = arith.addf %404, %407 : vector<8x32xf32>
    %409 = arith.addf %306, %408 : vector<8x32xf32>
    %cst_123 = arith.constant dense<0.000000e+00> : vector<8xf32>
    %410 = vector.multi_reduction <add>, %409, %cst_123 [1] : vector<8x32xf32> to vector<8xf32>
    %411 = vector.shape_cast %410 : vector<8xf32> to vector<8x1xf32>
    %cst_124 = arith.constant 3.200000e+01 : f32
    %412 = vector.broadcast %cst_124 : f32 to vector<8x1xf32>
    %413 = arith.divf %411, %412 : vector<8x1xf32>
    %414 = vector.broadcast %413 : vector<8x1xf32> to vector<8x32xf32>
    %415 = arith.subf %409, %414 : vector<8x32xf32>
    %416 = arith.mulf %415, %415 : vector<8x32xf32>
    %cst_125 = arith.constant dense<0.000000e+00> : vector<8xf32>
    %417 = vector.multi_reduction <add>, %416, %cst_125 [1] : vector<8x32xf32> to vector<8xf32>
    %418 = vector.shape_cast %417 : vector<8xf32> to vector<8x1xf32>
    %cst_126 = arith.constant 3.200000e+01 : f32
    %419 = vector.broadcast %cst_126 : f32 to vector<8x1xf32>
    %420 = arith.divf %418, %419 : vector<8x1xf32>
    %421 = vector.broadcast %413 : vector<8x1xf32> to vector<8x32xf32>
    %422 = arith.subf %409, %421 : vector<8x32xf32>
    %cst_127 = arith.constant 9.99999974E-6 : f32
    %423 = vector.broadcast %cst_127 : f32 to vector<8x1xf32>
    %424 = arith.addf %420, %423 : vector<8x1xf32>
    %425 = math.rsqrt %424 : vector<8x1xf32>
    %426 = vector.broadcast %425 : vector<8x1xf32> to vector<8x32xf32>
    %427 = arith.mulf %422, %426 : vector<8x32xf32>
    %c4 = arith.constant 4 : index
    %c0_128 = arith.constant 0 : index
    %c0_129 = arith.constant 0 : index
    %428 = vector.load %arg3[%c4, %c0_128, %c0_129] : memref<5x1x32xf32, #tpu.memory_space<vmem>>, vector<1x1x32xf32>
    %429 = vector.shape_cast %428 : vector<1x1x32xf32> to vector<1x32xf32>
    %430 = vector.broadcast %429 : vector<1x32xf32> to vector<8x32xf32>
    %431 = arith.mulf %427, %430 : vector<8x32xf32>
    %c4_130 = arith.constant 4 : index
    %c0_131 = arith.constant 0 : index
    %c0_132 = arith.constant 0 : index
    %432 = vector.load %arg4[%c4_130, %c0_131, %c0_132] : memref<5x1x32xf32, #tpu.memory_space<vmem>>, vector<1x1x32xf32>
    %433 = vector.shape_cast %432 : vector<1x1x32xf32> to vector<1x32xf32>
    %434 = vector.broadcast %433 : vector<1x32xf32> to vector<8x32xf32>
    %435 = arith.addf %431, %434 : vector<8x32xf32>
    %c0_133 = arith.constant 0 : index
    %c0_134 = arith.constant 0 : index
    %436 = vector.load %arg9[%c0_133, %c0_134] : memref<32x64xf32, #tpu.memory_space<vmem>>, vector<32x64xf32>
    %cst_135 = arith.constant dense<0.000000e+00> : vector<8x64xf32>
    %437 = tpu.matmul %435, %436, %cst_135 {dimension_numbers = #tpu.dot_dimension_numbers<[1], [0], [0], [1], [0, 0, 1, 1], [], []>} : vector<8x32xf32>, vector<32x64xf32>, vector<8x64xf32> -> vector<8x64xf32>
    %c0_136 = arith.constant 0 : index
    %c0_137 = arith.constant 0 : index
    %438 = vector.load %arg10[%c0_136, %c0_137] : memref<1x64xf32, #tpu.memory_space<vmem>>, vector<1x64xf32>
    %439 = vector.broadcast %438 : vector<1x64xf32> to vector<8x64xf32>
    %440 = arith.addf %437, %439 : vector<8x64xf32>
    %cst_138 = arith.constant 0.000000e+00 : f32
    %441 = vector.broadcast %cst_138 : f32 to vector<8x64xf32>
    %442 = arith.maximumf %440, %441 : vector<8x64xf32>
    %c0_139 = arith.constant 0 : index
    %c0_140 = arith.constant 0 : index
    %443 = vector.load %arg11[%c0_139, %c0_140] : memref<64x32xf32, #tpu.memory_space<vmem>>, vector<64x32xf32>
    %cst_141 = arith.constant dense<0.000000e+00> : vector<8x32xf32>
    %444 = tpu.matmul %442, %443, %cst_141 {dimension_numbers = #tpu.dot_dimension_numbers<[1], [0], [0], [1], [0, 0, 1, 1], [], []>} : vector<8x64xf32>, vector<64x32xf32>, vector<8x32xf32> -> vector<8x32xf32>
    %c0_142 = arith.constant 0 : index
    %c0_143 = arith.constant 0 : index
    %445 = vector.load %arg12[%c0_142, %c0_143] : memref<1x32xf32, #tpu.memory_space<vmem>>, vector<1x32xf32>
    %446 = vector.broadcast %445 : vector<1x32xf32> to vector<8x32xf32>
    %447 = arith.addf %444, %446 : vector<8x32xf32>
    %448 = arith.addf %409, %447 : vector<8x32xf32>
    %c0_144 = arith.constant 0 : index
    %c0_145 = arith.constant 0 : index
    %449 = vector.load %arg13[%c0_144, %c0_145] : memref<32x64xf32, #tpu.memory_space<vmem>>, vector<32x64xf32>
    %cst_146 = arith.constant dense<0.000000e+00> : vector<8x64xf32>
    %450 = tpu.matmul %448, %449, %cst_146 {dimension_numbers = #tpu.dot_dimension_numbers<[1], [0], [0], [1], [0, 0, 1, 1], [], []>} : vector<8x32xf32>, vector<32x64xf32>, vector<8x64xf32> -> vector<8x64xf32>
    %c0_147 = arith.constant 0 : index
    %c0_148 = arith.constant 0 : index
    %451 = vector.load %arg14[%c0_147, %c0_148] : memref<1x64xf32, #tpu.memory_space<vmem>>, vector<1x64xf32>
    %452 = vector.broadcast %451 : vector<1x64xf32> to vector<8x64xf32>
    %453 = arith.addf %450, %452 : vector<8x64xf32>
    %454 = vector.extract_strided_slice %453 {offsets = [0, 0], sizes = [8, 32], strides = [1, 1]} : vector<8x64xf32> to vector<8x32xf32>
    %455 = vector.extract_strided_slice %453 {offsets = [0, 32], sizes = [8, 32], strides = [1, 1]} : vector<8x64xf32> to vector<8x32xf32>
    %cst_149 = arith.constant dense<0.000000e+00> : vector<8x8xf32>
    %456 = tpu.matmul %454, %455, %cst_149 {dimension_numbers = #tpu.dot_dimension_numbers<[1], [1], [0], [0], [0, 0, 1, 0], [], []>} : vector<8x32xf32>, vector<8x32xf32>, vector<8x8xf32> -> vector<8x8xf32>
    %cst_150 = arith.constant 0.176776692 : f32
    %457 = vector.broadcast %cst_150 : f32 to vector<8x8xf32>
    %458 = arith.mulf %456, %457 : vector<8x8xf32>
    %459 = arith.addf %458, %7 : vector<8x8xf32>
    %cst_151 = arith.constant dense<0xFF800000> : vector<8xf32>
    %460 = vector.multi_reduction <maximumf>, %459, %cst_151 [1] : vector<8x8xf32> to vector<8xf32>
    %461 = vector.shape_cast %460 : vector<8xf32> to vector<8x1xf32>
    %462 = vector.broadcast %461 : vector<8x1xf32> to vector<8x8xf32>
    %463 = arith.subf %459, %462 : vector<8x8xf32>
    %464 = math.exp %463 : vector<8x8xf32>
    %cst_152 = arith.constant dense<0.000000e+00> : vector<8xf32>
    %465 = vector.multi_reduction <add>, %464, %cst_152 [1] : vector<8x8xf32> to vector<8xf32>
    %466 = vector.shape_cast %465 : vector<8xf32> to vector<8x1xf32>
    %467 = tpu.reciprocal %466 {approx = true} : vector<8x1xf32> -> vector<8x1xf32>
    %468 = vector.broadcast %467 : vector<8x1xf32> to vector<8x8xf32>
    %469 = arith.mulf %464, %468 : vector<8x8xf32>
    %470 = tpu.concatenate %448, %469 in 1 : vector<8x32xf32>, vector<8x8xf32> -> vector<8x40xf32>
    %c0_153 = arith.constant 0 : index
    %c0_154 = arith.constant 0 : index
    %c0_155 = arith.constant 0 : index
    %471 = vector.load %arg15[%c0_153, %c0_154, %c0_155] : memref<1x8x40xf32, #tpu.memory_space<vmem>>, vector<1x8x40xf32>
    %472 = vector.shape_cast %471 : vector<1x8x40xf32> to vector<8x40xf32>
    %473 = vector.shape_cast %470 : vector<8x40xf32> to vector<1x8x40xf32>
    tpu.vector_store %arg15[%c0_153, %c0_154, %c0_155], %473 {strides = array<i32>} : memref<1x8x40xf32, #tpu.memory_space<vmem>>, vector<1x8x40xf32>,
    return
  }
  func.func @transform_0(%arg0: i32) -> (i32, i32, i32) {
    %c0_i32 = arith.constant 0 : i32
    %c0_i32_0 = arith.constant 0 : i32
    %c0_i32_1 = arith.constant 0 : i32
    return %arg0, %c0_i32, %c0_i32_0 : i32, i32, i32
  }
  func.func @transform_1(%arg0: i32) -> (i32, i32, i32) {
    %c0_i32 = arith.constant 0 : i32
    %c0_i32_0 = arith.constant 0 : i32
    %c0_i32_1 = arith.constant 0 : i32
    return %arg0, %c0_i32, %c0_i32_0 : i32, i32, i32
  }
  func.func @transform_2(%arg0: i32) -> (i32, i32, i32) {
    %c0_i32 = arith.constant 0 : i32
    %c0_i32_0 = arith.constant 0 : i32
    %c0_i32_1 = arith.constant 0 : i32
    %c0_i32_2 = arith.constant 0 : i32
    return %c0_i32, %c0_i32_0, %c0_i32_1 : i32, i32, i32
  }
  func.func @transform_3(%arg0: i32) -> (i32, i32, i32) {
    %c0_i32 = arith.constant 0 : i32
    %c0_i32_0 = arith.constant 0 : i32
    %c0_i32_1 = arith.constant 0 : i32
    %c0_i32_2 = arith.constant 0 : i32
    return %c0_i32, %c0_i32_0, %c0_i32_1 : i32, i32, i32
  }
  func.func @transform_4(%arg0: i32) -> (i32, i32, i32) {
    %c0_i32 = arith.constant 0 : i32
    %c0_i32_0 = arith.constant 0 : i32
    %c0_i32_1 = arith.constant 0 : i32
    %c0_i32_2 = arith.constant 0 : i32
    return %c0_i32, %c0_i32_0, %c0_i32_1 : i32, i32, i32
  }
  func.func @transform_5(%arg0: i32) -> (i32, i32, i32) {
    %c0_i32 = arith.constant 0 : i32
    %c0_i32_0 = arith.constant 0 : i32
    %c0_i32_1 = arith.constant 0 : i32
    %c0_i32_2 = arith.constant 0 : i32
    return %c0_i32, %c0_i32_0, %c0_i32_1 : i32, i32, i32
  }
  func.func @transform_6(%arg0: i32) -> (i32, i32, i32) {
    %c0_i32 = arith.constant 0 : i32
    %c0_i32_0 = arith.constant 0 : i32
    %c0_i32_1 = arith.constant 0 : i32
    %c0_i32_2 = arith.constant 0 : i32
    return %c0_i32, %c0_i32_0, %c0_i32_1 : i32, i32, i32
  }
  func.func @transform_7(%arg0: i32) -> (i32, i32, i32) {
    %c0_i32 = arith.constant 0 : i32
    %c0_i32_0 = arith.constant 0 : i32
    %c0_i32_1 = arith.constant 0 : i32
    %c0_i32_2 = arith.constant 0 : i32
    return %c0_i32, %c0_i32_0, %c0_i32_1 : i32, i32, i32
  }
  func.func @transform_8(%arg0: i32) -> (i32, i32) {
    %c0_i32 = arith.constant 0 : i32
    %c0_i32_0 = arith.constant 0 : i32
    %c0_i32_1 = arith.constant 0 : i32
    return %c0_i32, %c0_i32_0 : i32, i32
  }
  func.func @transform_9(%arg0: i32) -> (i32, i32) {
    %c0_i32 = arith.constant 0 : i32
    %c0_i32_0 = arith.constant 0 : i32
    %c0_i32_1 = arith.constant 0 : i32
    return %c0_i32, %c0_i32_0 : i32, i32
  }
  func.func @transform_10(%arg0: i32) -> (i32, i32) {
    %c0_i32 = arith.constant 0 : i32
    %c0_i32_0 = arith.constant 0 : i32
    %c0_i32_1 = arith.constant 0 : i32
    return %c0_i32, %c0_i32_0 : i32, i32
  }
  func.func @transform_11(%arg0: i32) -> (i32, i32) {
    %c0_i32 = arith.constant 0 : i32
    %c0_i32_0 = arith.constant 0 : i32
    %c0_i32_1 = arith.constant 0 : i32
    return %c0_i32, %c0_i32_0 : i32, i32
  }
  func.func @transform_12(%arg0: i32) -> (i32, i32) {
    %c0_i32 = arith.constant 0 : i32
    %c0_i32_0 = arith.constant 0 : i32
    %c0_i32_1 = arith.constant 0 : i32
    return %c0_i32, %c0_i32_0 : i32, i32
  }
  func.func @transform_13(%arg0: i32) -> (i32, i32) {
    %c0_i32 = arith.constant 0 : i32
    %c0_i32_0 = arith.constant 0 : i32
    %c0_i32_1 = arith.constant 0 : i32
    return %c0_i32, %c0_i32_0 : i32, i32
  }
  func.func @transform_14(%arg0: i32) -> (i32, i32, i32) {
    %c0_i32 = arith.constant 0 : i32
    %c0_i32_0 = arith.constant 0 : i32
    %c0_i32_1 = arith.constant 0 : i32
    return %arg0, %c0_i32, %c0_i32_0 : i32, i32, i32
  }
}

module attributes {stable_mosaic.version = 11 : i64} {
  func.func @_decoder_block_kernel(%arg0: i32, %arg1: memref<1x28x32xf32, #tpu.memory_space<vmem>>, %arg2: memref<1x8x26xf32, #tpu.memory_space<vmem>>, %arg3: memref<5x1x32xf32, #tpu.memory_space<vmem>>, %arg4: memref<5x1x32xf32, #tpu.memory_space<vmem>>, %arg5: memref<4x32x96xf32, #tpu.memory_space<vmem>>, %arg6: memref<4x1x96xf32, #tpu.memory_space<vmem>>, %arg7: memref<4x32x32xf32, #tpu.memory_space<vmem>>, %arg8: memref<4x1x32xf32, #tpu.memory_space<vmem>>, %arg9: memref<32x64xf32, #tpu.memory_space<vmem>>, %arg10: memref<1x64xf32, #tpu.memory_space<vmem>>, %arg11: memref<64x32xf32, #tpu.memory_space<vmem>>, %arg12: memref<1x32xf32, #tpu.memory_space<vmem>>, %arg13: memref<32x10xf32, #tpu.memory_space<vmem>>, %arg14: memref<1x10xf32, #tpu.memory_space<vmem>>, %arg15: memref<1x8x42xf32, #tpu.memory_space<vmem>>) attributes {dimension_semantics = [#tpu.dimension_semantics<parallel>], iteration_bounds = array<i64: 2>, scalar_prefetch = 0 : i64, scratch_operands = 0 : i64, tpu.core_type = #tpu.core_type<tc>, window_params = [{transform_indices = @transform_0, window_bounds = array<i64: 1, 28, 32>}, {transform_indices = @transform_1, window_bounds = array<i64: 1, 8, 26>}, {pipeline_mode = #tpu.pipeline_mode<synchronous>, transform_indices = @transform_2, window_bounds = array<i64: 5, 1, 32>}, {pipeline_mode = #tpu.pipeline_mode<synchronous>, transform_indices = @transform_3, window_bounds = array<i64: 5, 1, 32>}, {pipeline_mode = #tpu.pipeline_mode<synchronous>, transform_indices = @transform_4, window_bounds = array<i64: 4, 32, 96>}, {pipeline_mode = #tpu.pipeline_mode<synchronous>, transform_indices = @transform_5, window_bounds = array<i64: 4, 1, 96>}, {pipeline_mode = #tpu.pipeline_mode<synchronous>, transform_indices = @transform_6, window_bounds = array<i64: 4, 32, 32>}, {pipeline_mode = #tpu.pipeline_mode<synchronous>, transform_indices = @transform_7, window_bounds = array<i64: 4, 1, 32>}, {pipeline_mode = #tpu.pipeline_mode<synchronous>, transform_indices = @transform_8, window_bounds = array<i64: 32, 64>}, {pipeline_mode = #tpu.pipeline_mode<synchronous>, transform_indices = @transform_9, window_bounds = array<i64: 1, 64>}, {pipeline_mode = #tpu.pipeline_mode<synchronous>, transform_indices = @transform_10, window_bounds = array<i64: 64, 32>}, {pipeline_mode = #tpu.pipeline_mode<synchronous>, transform_indices = @transform_11, window_bounds = array<i64: 1, 32>}, {pipeline_mode = #tpu.pipeline_mode<synchronous>, transform_indices = @transform_12, window_bounds = array<i64: 32, 10>}, {pipeline_mode = #tpu.pipeline_mode<synchronous>, transform_indices = @transform_13, window_bounds = array<i64: 1, 10>}, {transform_indices = @transform_14, window_bounds = array<i64: 1, 8, 42>}]} {
    %c0 = arith.constant 0 : index
    %c0_0 = arith.constant 0 : index
    %c0_1 = arith.constant 0 : index
    %0 = vector.load %arg1[%c0, %c0_0, %c0_1] : memref<1x28x32xf32, #tpu.memory_space<vmem>>, vector<1x28x32xf32>
    %1 = vector.shape_cast %0 : vector<1x28x32xf32> to vector<28x32xf32>
    %2 = vector.extract_strided_slice %1 {offsets = [0, 0], sizes = [8, 32], strides = [1, 1]} : vector<28x32xf32> to vector<8x32xf32>
    %3 = vector.extract_strided_slice %1 {offsets = [8, 0], sizes = [10, 32], strides = [1, 1]} : vector<28x32xf32> to vector<10x32xf32>
    %4 = vector.extract_strided_slice %1 {offsets = [18, 0], sizes = [10, 32], strides = [1, 1]} : vector<28x32xf32> to vector<10x32xf32>
    %c0_2 = arith.constant 0 : index
    %c0_3 = arith.constant 0 : index
    %c0_4 = arith.constant 0 : index
    %5 = vector.load %arg2[%c0_2, %c0_3, %c0_4] : memref<1x8x26xf32, #tpu.memory_space<vmem>>, vector<1x8x26xf32>
    %6 = vector.shape_cast %5 : vector<1x8x26xf32> to vector<8x26xf32>
    %7 = vector.extract_strided_slice %6 {offsets = [0, 0], sizes = [8, 8], strides = [1, 1]} : vector<8x26xf32> to vector<8x8xf32>
    %8 = vector.extract_strided_slice %6 {offsets = [0, 8], sizes = [8, 8], strides = [1, 1]} : vector<8x26xf32> to vector<8x8xf32>
    %9 = vector.extract_strided_slice %6 {offsets = [0, 16], sizes = [8, 10], strides = [1, 1]} : vector<8x26xf32> to vector<8x10xf32>
    %cst = arith.constant dense<0.000000e+00> : vector<8xf32>
    %10 = vector.multi_reduction <add>, %2, %cst [1] : vector<8x32xf32> to vector<8xf32>
    %11 = vector.shape_cast %10 : vector<8xf32> to vector<8x1xf32>
    %cst_5 = arith.constant 3.200000e+01 : f32
    %12 = vector.broadcast %cst_5 : f32 to vector<8x1xf32>
    %13 = arith.divf %11, %12 : vector<8x1xf32>
    %14 = vector.broadcast %13 : vector<8x1xf32> to vector<8x32xf32>
    %15 = arith.subf %2, %14 : vector<8x32xf32>
    %16 = arith.mulf %15, %15 : vector<8x32xf32>
    %cst_6 = arith.constant dense<0.000000e+00> : vector<8xf32>
    %17 = vector.multi_reduction <add>, %16, %cst_6 [1] : vector<8x32xf32> to vector<8xf32>
    %18 = vector.shape_cast %17 : vector<8xf32> to vector<8x1xf32>
    %cst_7 = arith.constant 3.200000e+01 : f32
    %19 = vector.broadcast %cst_7 : f32 to vector<8x1xf32>
    %20 = arith.divf %18, %19 : vector<8x1xf32>
    %21 = vector.broadcast %13 : vector<8x1xf32> to vector<8x32xf32>
    %22 = arith.subf %2, %21 : vector<8x32xf32>
    %cst_8 = arith.constant 9.99999974E-6 : f32
    %23 = vector.broadcast %cst_8 : f32 to vector<8x1xf32>
    %24 = arith.addf %20, %23 : vector<8x1xf32>
    %25 = math.rsqrt %24 : vector<8x1xf32>
    %26 = vector.broadcast %25 : vector<8x1xf32> to vector<8x32xf32>
    %27 = arith.mulf %22, %26 : vector<8x32xf32>
    %c0_9 = arith.constant 0 : index
    %c0_10 = arith.constant 0 : index
    %c0_11 = arith.constant 0 : index
    %28 = vector.load %arg3[%c0_9, %c0_10, %c0_11] : memref<5x1x32xf32, #tpu.memory_space<vmem>>, vector<1x1x32xf32>
    %29 = vector.shape_cast %28 : vector<1x1x32xf32> to vector<1x32xf32>
    %30 = vector.broadcast %29 : vector<1x32xf32> to vector<8x32xf32>
    %31 = arith.mulf %27, %30 : vector<8x32xf32>
    %c0_12 = arith.constant 0 : index
    %c0_13 = arith.constant 0 : index
    %c0_14 = arith.constant 0 : index
    %32 = vector.load %arg4[%c0_12, %c0_13, %c0_14] : memref<5x1x32xf32, #tpu.memory_space<vmem>>, vector<1x1x32xf32>
    %33 = vector.shape_cast %32 : vector<1x1x32xf32> to vector<1x32xf32>
    %34 = vector.broadcast %33 : vector<1x32xf32> to vector<8x32xf32>
    %35 = arith.addf %31, %34 : vector<8x32xf32>
    %c0_15 = arith.constant 0 : index
    %c0_16 = arith.constant 0 : index
    %c0_17 = arith.constant 0 : index
    %36 = vector.load %arg5[%c0_15, %c0_16, %c0_17] : memref<4x32x96xf32, #tpu.memory_space<vmem>>, vector<1x32x96xf32>
    %37 = vector.shape_cast %36 : vector<1x32x96xf32> to vector<32x96xf32>
    %c0_18 = arith.constant 0 : index
    %c0_19 = arith.constant 0 : index
    %c0_20 = arith.constant 0 : index
    %38 = vector.load %arg6[%c0_18, %c0_19, %c0_20] : memref<4x1x96xf32, #tpu.memory_space<vmem>>, vector<1x1x96xf32>
    %39 = vector.shape_cast %38 : vector<1x1x96xf32> to vector<1x96xf32>
    %cst_21 = arith.constant dense<0.000000e+00> : vector<8x96xf32>
    %40 = tpu.matmul %35, %37, %cst_21 {dimension_numbers = #tpu.dot_dimension_numbers<[1], [0], [0], [1], [0, 0, 1, 1], [], []>} : vector<8x32xf32>, vector<32x96xf32>, vector<8x96xf32> -> vector<8x96xf32>
    %41 = vector.broadcast %39 : vector<1x96xf32> to vector<8x96xf32>
    %42 = arith.addf %40, %41 : vector<8x96xf32>
    %43 = vector.extract_strided_slice %42 {offsets = [0, 0], sizes = [8, 32], strides = [1, 1]} : vector<8x96xf32> to vector<8x32xf32>
    %44 = vector.extract_strided_slice %42 {offsets = [0, 32], sizes = [8, 32], strides = [1, 1]} : vector<8x96xf32> to vector<8x32xf32>
    %45 = vector.extract_strided_slice %42 {offsets = [0, 64], sizes = [8, 32], strides = [1, 1]} : vector<8x96xf32> to vector<8x32xf32>
    %46 = vector.extract_strided_slice %43 {offsets = [0, 0], sizes = [8, 8], strides = [1, 1]} : vector<8x32xf32> to vector<8x8xf32>
    %47 = vector.extract_strided_slice %43 {offsets = [0, 8], sizes = [8, 8], strides = [1, 1]} : vector<8x32xf32> to vector<8x8xf32>
    %48 = vector.extract_strided_slice %43 {offsets = [0, 16], sizes = [8, 8], strides = [1, 1]} : vector<8x32xf32> to vector<8x8xf32>
    %49 = vector.extract_strided_slice %43 {offsets = [0, 24], sizes = [8, 8], strides = [1, 1]} : vector<8x32xf32> to vector<8x8xf32>
    %50 = vector.shape_cast %46 : vector<8x8xf32> to vector<1x8x8xf32>
    %51 = vector.shape_cast %47 : vector<8x8xf32> to vector<1x8x8xf32>
    %52 = vector.shape_cast %48 : vector<8x8xf32> to vector<1x8x8xf32>
    %53 = vector.shape_cast %49 : vector<8x8xf32> to vector<1x8x8xf32>
    %54 = tpu.concatenate %50, %51, %52, %53 in 0 : vector<1x8x8xf32>, vector<1x8x8xf32>, vector<1x8x8xf32>, vector<1x8x8xf32> -> vector<4x8x8xf32>
    %55 = vector.extract_strided_slice %44 {offsets = [0, 0], sizes = [8, 8], strides = [1, 1]} : vector<8x32xf32> to vector<8x8xf32>
    %56 = vector.extract_strided_slice %44 {offsets = [0, 8], sizes = [8, 8], strides = [1, 1]} : vector<8x32xf32> to vector<8x8xf32>
    %57 = vector.extract_strided_slice %44 {offsets = [0, 16], sizes = [8, 8], strides = [1, 1]} : vector<8x32xf32> to vector<8x8xf32>
    %58 = vector.extract_strided_slice %44 {offsets = [0, 24], sizes = [8, 8], strides = [1, 1]} : vector<8x32xf32> to vector<8x8xf32>
    %59 = vector.shape_cast %55 : vector<8x8xf32> to vector<1x8x8xf32>
    %60 = vector.shape_cast %56 : vector<8x8xf32> to vector<1x8x8xf32>
    %61 = vector.shape_cast %57 : vector<8x8xf32> to vector<1x8x8xf32>
    %62 = vector.shape_cast %58 : vector<8x8xf32> to vector<1x8x8xf32>
    %63 = tpu.concatenate %59, %60, %61, %62 in 0 : vector<1x8x8xf32>, vector<1x8x8xf32>, vector<1x8x8xf32>, vector<1x8x8xf32> -> vector<4x8x8xf32>
    %64 = vector.extract_strided_slice %45 {offsets = [0, 0], sizes = [8, 8], strides = [1, 1]} : vector<8x32xf32> to vector<8x8xf32>
    %65 = vector.extract_strided_slice %45 {offsets = [0, 8], sizes = [8, 8], strides = [1, 1]} : vector<8x32xf32> to vector<8x8xf32>
    %66 = vector.extract_strided_slice %45 {offsets = [0, 16], sizes = [8, 8], strides = [1, 1]} : vector<8x32xf32> to vector<8x8xf32>
    %67 = vector.extract_strided_slice %45 {offsets = [0, 24], sizes = [8, 8], strides = [1, 1]} : vector<8x32xf32> to vector<8x8xf32>
    %68 = vector.shape_cast %64 : vector<8x8xf32> to vector<1x8x8xf32>
    %69 = vector.shape_cast %65 : vector<8x8xf32> to vector<1x8x8xf32>
    %70 = vector.shape_cast %66 : vector<8x8xf32> to vector<1x8x8xf32>
    %71 = vector.shape_cast %67 : vector<8x8xf32> to vector<1x8x8xf32>
    %72 = tpu.concatenate %68, %69, %70, %71 in 0 : vector<1x8x8xf32>, vector<1x8x8xf32>, vector<1x8x8xf32>, vector<1x8x8xf32> -> vector<4x8x8xf32>
    "tpu.trace_start"() <{level = 10 : i32, message = "hqc,hkc->hqk"}> : () -> ()
    %cst_22 = arith.constant dense<0.000000e+00> : vector<4x8x8xf32>
    %73 = tpu.matmul %54, %63, %cst_22 {dimension_numbers = #tpu.dot_dimension_numbers<[2], [2], [1], [1], [0, 0, 0, 1, 1, 1], [0], [0]>} : vector<4x8x8xf32>, vector<4x8x8xf32>, vector<4x8x8xf32> -> vector<4x8x8xf32>
    "tpu.trace_stop"() : () -> ()
    %cst_23 = arith.constant 0.353553385 : f32
    %74 = vector.broadcast %cst_23 : f32 to vector<4x8x8xf32>
    %75 = arith.mulf %73, %74 : vector<4x8x8xf32>
    %76 = vector.shape_cast %7 : vector<8x8xf32> to vector<1x8x8xf32>
    %77 = vector.broadcast %76 : vector<1x8x8xf32> to vector<4x8x8xf32>
    %78 = arith.addf %75, %77 : vector<4x8x8xf32>
    %cst_24 = arith.constant dense<0xFF800000> : vector<4x8xf32>
    %79 = vector.multi_reduction <maximumf>, %78, %cst_24 [2] : vector<4x8x8xf32> to vector<4x8xf32>
    %80 = vector.shape_cast %79 : vector<4x8xf32> to vector<4x8x1xf32>
    %81 = vector.broadcast %80 : vector<4x8x1xf32> to vector<4x8x8xf32>
    %82 = arith.subf %78, %81 : vector<4x8x8xf32>
    %83 = math.exp %82 : vector<4x8x8xf32>
    %cst_25 = arith.constant dense<0.000000e+00> : vector<4x8xf32>
    %84 = vector.multi_reduction <add>, %83, %cst_25 [2] : vector<4x8x8xf32> to vector<4x8xf32>
    %85 = vector.shape_cast %84 : vector<4x8xf32> to vector<4x8x1xf32>
    %86 = tpu.reciprocal %85 {approx = true} : vector<4x8x1xf32> -> vector<4x8x1xf32>
    %87 = vector.broadcast %86 : vector<4x8x1xf32> to vector<4x8x8xf32>
    %88 = arith.mulf %83, %87 : vector<4x8x8xf32>
    "tpu.trace_start"() <{level = 10 : i32, message = "hqk,hkc->hqc"}> : () -> ()
    %cst_26 = arith.constant dense<0.000000e+00> : vector<4x8x8xf32>
    %89 = tpu.matmul %88, %72, %cst_26 {dimension_numbers = #tpu.dot_dimension_numbers<[2], [1], [1], [2], [0, 0, 0, 1, 1, 2], [0], [0]>} : vector<4x8x8xf32>, vector<4x8x8xf32>, vector<4x8x8xf32> -> vector<4x8x8xf32>
    "tpu.trace_stop"() : () -> ()
    %90 = vector.extract_strided_slice %89 {offsets = [0, 0, 0], sizes = [1, 8, 8], strides = [1, 1, 1]} : vector<4x8x8xf32> to vector<1x8x8xf32>
    %91 = vector.shape_cast %90 : vector<1x8x8xf32> to vector<8x8xf32>
    %92 = vector.extract_strided_slice %89 {offsets = [1, 0, 0], sizes = [1, 8, 8], strides = [1, 1, 1]} : vector<4x8x8xf32> to vector<1x8x8xf32>
    %93 = vector.shape_cast %92 : vector<1x8x8xf32> to vector<8x8xf32>
    %94 = vector.extract_strided_slice %89 {offsets = [2, 0, 0], sizes = [1, 8, 8], strides = [1, 1, 1]} : vector<4x8x8xf32> to vector<1x8x8xf32>
    %95 = vector.shape_cast %94 : vector<1x8x8xf32> to vector<8x8xf32>
    %96 = vector.extract_strided_slice %89 {offsets = [3, 0, 0], sizes = [1, 8, 8], strides = [1, 1, 1]} : vector<4x8x8xf32> to vector<1x8x8xf32>
    %97 = vector.shape_cast %96 : vector<1x8x8xf32> to vector<8x8xf32>
    %98 = tpu.concatenate %91, %93, %95, %97 in 1 : vector<8x8xf32>, vector<8x8xf32>, vector<8x8xf32>, vector<8x8xf32> -> vector<8x32xf32>
    %c0_27 = arith.constant 0 : index
    %c0_28 = arith.constant 0 : index
    %c0_29 = arith.constant 0 : index
    %99 = vector.load %arg7[%c0_27, %c0_28, %c0_29] : memref<4x32x32xf32, #tpu.memory_space<vmem>>, vector<1x32x32xf32>
    %100 = vector.shape_cast %99 : vector<1x32x32xf32> to vector<32x32xf32>
    %cst_30 = arith.constant dense<0.000000e+00> : vector<8x32xf32>
    %101 = tpu.matmul %98, %100, %cst_30 {dimension_numbers = #tpu.dot_dimension_numbers<[1], [0], [0], [1], [0, 0, 1, 1], [], []>} : vector<8x32xf32>, vector<32x32xf32>, vector<8x32xf32> -> vector<8x32xf32>
    %c0_31 = arith.constant 0 : index
    %c0_32 = arith.constant 0 : index
    %c0_33 = arith.constant 0 : index
    %102 = vector.load %arg8[%c0_31, %c0_32, %c0_33] : memref<4x1x32xf32, #tpu.memory_space<vmem>>, vector<1x1x32xf32>
    %103 = vector.shape_cast %102 : vector<1x1x32xf32> to vector<1x32xf32>
    %104 = vector.broadcast %103 : vector<1x32xf32> to vector<8x32xf32>
    %105 = arith.addf %101, %104 : vector<8x32xf32>
    %106 = arith.addf %2, %105 : vector<8x32xf32>
    %cst_34 = arith.constant dense<0.000000e+00> : vector<8xf32>
    %107 = vector.multi_reduction <add>, %106, %cst_34 [1] : vector<8x32xf32> to vector<8xf32>
    %108 = vector.shape_cast %107 : vector<8xf32> to vector<8x1xf32>
    %cst_35 = arith.constant 3.200000e+01 : f32
    %109 = vector.broadcast %cst_35 : f32 to vector<8x1xf32>
    %110 = arith.divf %108, %109 : vector<8x1xf32>
    %111 = vector.broadcast %110 : vector<8x1xf32> to vector<8x32xf32>
    %112 = arith.subf %106, %111 : vector<8x32xf32>
    %113 = arith.mulf %112, %112 : vector<8x32xf32>
    %cst_36 = arith.constant dense<0.000000e+00> : vector<8xf32>
    %114 = vector.multi_reduction <add>, %113, %cst_36 [1] : vector<8x32xf32> to vector<8xf32>
    %115 = vector.shape_cast %114 : vector<8xf32> to vector<8x1xf32>
    %cst_37 = arith.constant 3.200000e+01 : f32
    %116 = vector.broadcast %cst_37 : f32 to vector<8x1xf32>
    %117 = arith.divf %115, %116 : vector<8x1xf32>
    %118 = vector.broadcast %110 : vector<8x1xf32> to vector<8x32xf32>
    %119 = arith.subf %106, %118 : vector<8x32xf32>
    %cst_38 = arith.constant 9.99999974E-6 : f32
    %120 = vector.broadcast %cst_38 : f32 to vector<8x1xf32>
    %121 = arith.addf %117, %120 : vector<8x1xf32>
    %122 = math.rsqrt %121 : vector<8x1xf32>
    %123 = vector.broadcast %122 : vector<8x1xf32> to vector<8x32xf32>
    %124 = arith.mulf %119, %123 : vector<8x32xf32>
    %c1 = arith.constant 1 : index
    %c0_39 = arith.constant 0 : index
    %c0_40 = arith.constant 0 : index
    %125 = vector.load %arg3[%c1, %c0_39, %c0_40] : memref<5x1x32xf32, #tpu.memory_space<vmem>>, vector<1x1x32xf32>
    %126 = vector.shape_cast %125 : vector<1x1x32xf32> to vector<1x32xf32>
    %127 = vector.broadcast %126 : vector<1x32xf32> to vector<8x32xf32>
    %128 = arith.mulf %124, %127 : vector<8x32xf32>
    %c1_41 = arith.constant 1 : index
    %c0_42 = arith.constant 0 : index
    %c0_43 = arith.constant 0 : index
    %129 = vector.load %arg4[%c1_41, %c0_42, %c0_43] : memref<5x1x32xf32, #tpu.memory_space<vmem>>, vector<1x1x32xf32>
    %130 = vector.shape_cast %129 : vector<1x1x32xf32> to vector<1x32xf32>
    %131 = vector.broadcast %130 : vector<1x32xf32> to vector<8x32xf32>
    %132 = arith.addf %128, %131 : vector<8x32xf32>
    %c1_44 = arith.constant 1 : index
    %c0_45 = arith.constant 0 : index
    %c0_46 = arith.constant 0 : index
    %133 = vector.load %arg5[%c1_44, %c0_45, %c0_46] : memref<4x32x96xf32, #tpu.memory_space<vmem>>, vector<1x32x96xf32>
    %134 = vector.shape_cast %133 : vector<1x32x96xf32> to vector<32x96xf32>
    %c1_47 = arith.constant 1 : index
    %c0_48 = arith.constant 0 : index
    %c0_49 = arith.constant 0 : index
    %135 = vector.load %arg6[%c1_47, %c0_48, %c0_49] : memref<4x1x96xf32, #tpu.memory_space<vmem>>, vector<1x1x96xf32>
    %136 = vector.shape_cast %135 : vector<1x1x96xf32> to vector<1x96xf32>
    %cst_50 = arith.constant dense<0.000000e+00> : vector<8x96xf32>
    %137 = tpu.matmul %132, %134, %cst_50 {dimension_numbers = #tpu.dot_dimension_numbers<[1], [0], [0], [1], [0, 0, 1, 1], [], []>} : vector<8x32xf32>, vector<32x96xf32>, vector<8x96xf32> -> vector<8x96xf32>
    %138 = vector.broadcast %136 : vector<1x96xf32> to vector<8x96xf32>
    %139 = arith.addf %137, %138 : vector<8x96xf32>
    %140 = vector.extract_strided_slice %139 {offsets = [0, 0], sizes = [8, 32], strides = [1, 1]} : vector<8x96xf32> to vector<8x32xf32>
    %141 = vector.extract_strided_slice %139 {offsets = [0, 32], sizes = [8, 32], strides = [1, 1]} : vector<8x96xf32> to vector<8x32xf32>
    %142 = vector.extract_strided_slice %139 {offsets = [0, 64], sizes = [8, 32], strides = [1, 1]} : vector<8x96xf32> to vector<8x32xf32>
    %143 = vector.extract_strided_slice %140 {offsets = [0, 0], sizes = [8, 8], strides = [1, 1]} : vector<8x32xf32> to vector<8x8xf32>
    %144 = vector.extract_strided_slice %140 {offsets = [0, 8], sizes = [8, 8], strides = [1, 1]} : vector<8x32xf32> to vector<8x8xf32>
    %145 = vector.extract_strided_slice %140 {offsets = [0, 16], sizes = [8, 8], strides = [1, 1]} : vector<8x32xf32> to vector<8x8xf32>
    %146 = vector.extract_strided_slice %140 {offsets = [0, 24], sizes = [8, 8], strides = [1, 1]} : vector<8x32xf32> to vector<8x8xf32>
    %147 = vector.shape_cast %143 : vector<8x8xf32> to vector<1x8x8xf32>
    %148 = vector.shape_cast %144 : vector<8x8xf32> to vector<1x8x8xf32>
    %149 = vector.shape_cast %145 : vector<8x8xf32> to vector<1x8x8xf32>
    %150 = vector.shape_cast %146 : vector<8x8xf32> to vector<1x8x8xf32>
    %151 = tpu.concatenate %147, %148, %149, %150 in 0 : vector<1x8x8xf32>, vector<1x8x8xf32>, vector<1x8x8xf32>, vector<1x8x8xf32> -> vector<4x8x8xf32>
    %152 = vector.extract_strided_slice %141 {offsets = [0, 0], sizes = [8, 8], strides = [1, 1]} : vector<8x32xf32> to vector<8x8xf32>
    %153 = vector.extract_strided_slice %141 {offsets = [0, 8], sizes = [8, 8], strides = [1, 1]} : vector<8x32xf32> to vector<8x8xf32>
    %154 = vector.extract_strided_slice %141 {offsets = [0, 16], sizes = [8, 8], strides = [1, 1]} : vector<8x32xf32> to vector<8x8xf32>
    %155 = vector.extract_strided_slice %141 {offsets = [0, 24], sizes = [8, 8], strides = [1, 1]} : vector<8x32xf32> to vector<8x8xf32>
    %156 = vector.shape_cast %152 : vector<8x8xf32> to vector<1x8x8xf32>
    %157 = vector.shape_cast %153 : vector<8x8xf32> to vector<1x8x8xf32>
    %158 = vector.shape_cast %154 : vector<8x8xf32> to vector<1x8x8xf32>
    %159 = vector.shape_cast %155 : vector<8x8xf32> to vector<1x8x8xf32>
    %160 = tpu.concatenate %156, %157, %158, %159 in 0 : vector<1x8x8xf32>, vector<1x8x8xf32>, vector<1x8x8xf32>, vector<1x8x8xf32> -> vector<4x8x8xf32>
    %161 = vector.extract_strided_slice %142 {offsets = [0, 0], sizes = [8, 8], strides = [1, 1]} : vector<8x32xf32> to vector<8x8xf32>
    %162 = vector.extract_strided_slice %142 {offsets = [0, 8], sizes = [8, 8], strides = [1, 1]} : vector<8x32xf32> to vector<8x8xf32>
    %163 = vector.extract_strided_slice %142 {offsets = [0, 16], sizes = [8, 8], strides = [1, 1]} : vector<8x32xf32> to vector<8x8xf32>
    %164 = vector.extract_strided_slice %142 {offsets = [0, 24], sizes = [8, 8], strides = [1, 1]} : vector<8x32xf32> to vector<8x8xf32>
    %165 = vector.shape_cast %161 : vector<8x8xf32> to vector<1x8x8xf32>
    %166 = vector.shape_cast %162 : vector<8x8xf32> to vector<1x8x8xf32>
    %167 = vector.shape_cast %163 : vector<8x8xf32> to vector<1x8x8xf32>
    %168 = vector.shape_cast %164 : vector<8x8xf32> to vector<1x8x8xf32>
    %169 = tpu.concatenate %165, %166, %167, %168 in 0 : vector<1x8x8xf32>, vector<1x8x8xf32>, vector<1x8x8xf32>, vector<1x8x8xf32> -> vector<4x8x8xf32>
    "tpu.trace_start"() <{level = 10 : i32, message = "hqc,hkc->hqk"}> : () -> ()
    %cst_51 = arith.constant dense<0.000000e+00> : vector<4x8x8xf32>
    %170 = tpu.matmul %151, %160, %cst_51 {dimension_numbers = #tpu.dot_dimension_numbers<[2], [2], [1], [1], [0, 0, 0, 1, 1, 1], [0], [0]>} : vector<4x8x8xf32>, vector<4x8x8xf32>, vector<4x8x8xf32> -> vector<4x8x8xf32>
    "tpu.trace_stop"() : () -> ()
    %cst_52 = arith.constant 0.353553385 : f32
    %171 = vector.broadcast %cst_52 : f32 to vector<4x8x8xf32>
    %172 = arith.mulf %170, %171 : vector<4x8x8xf32>
    %173 = vector.shape_cast %8 : vector<8x8xf32> to vector<1x8x8xf32>
    %174 = vector.broadcast %173 : vector<1x8x8xf32> to vector<4x8x8xf32>
    %175 = arith.addf %172, %174 : vector<4x8x8xf32>
    %cst_53 = arith.constant dense<0xFF800000> : vector<4x8xf32>
    %176 = vector.multi_reduction <maximumf>, %175, %cst_53 [2] : vector<4x8x8xf32> to vector<4x8xf32>
    %177 = vector.shape_cast %176 : vector<4x8xf32> to vector<4x8x1xf32>
    %178 = vector.broadcast %177 : vector<4x8x1xf32> to vector<4x8x8xf32>
    %179 = arith.subf %175, %178 : vector<4x8x8xf32>
    %180 = math.exp %179 : vector<4x8x8xf32>
    %cst_54 = arith.constant dense<0.000000e+00> : vector<4x8xf32>
    %181 = vector.multi_reduction <add>, %180, %cst_54 [2] : vector<4x8x8xf32> to vector<4x8xf32>
    %182 = vector.shape_cast %181 : vector<4x8xf32> to vector<4x8x1xf32>
    %183 = tpu.reciprocal %182 {approx = true} : vector<4x8x1xf32> -> vector<4x8x1xf32>
    %184 = vector.broadcast %183 : vector<4x8x1xf32> to vector<4x8x8xf32>
    %185 = arith.mulf %180, %184 : vector<4x8x8xf32>
    "tpu.trace_start"() <{level = 10 : i32, message = "hqk,hkc->hqc"}> : () -> ()
    %cst_55 = arith.constant dense<0.000000e+00> : vector<4x8x8xf32>
    %186 = tpu.matmul %185, %169, %cst_55 {dimension_numbers = #tpu.dot_dimension_numbers<[2], [1], [1], [2], [0, 0, 0, 1, 1, 2], [0], [0]>} : vector<4x8x8xf32>, vector<4x8x8xf32>, vector<4x8x8xf32> -> vector<4x8x8xf32>
    "tpu.trace_stop"() : () -> ()
    %187 = vector.extract_strided_slice %186 {offsets = [0, 0, 0], sizes = [1, 8, 8], strides = [1, 1, 1]} : vector<4x8x8xf32> to vector<1x8x8xf32>
    %188 = vector.shape_cast %187 : vector<1x8x8xf32> to vector<8x8xf32>
    %189 = vector.extract_strided_slice %186 {offsets = [1, 0, 0], sizes = [1, 8, 8], strides = [1, 1, 1]} : vector<4x8x8xf32> to vector<1x8x8xf32>
    %190 = vector.shape_cast %189 : vector<1x8x8xf32> to vector<8x8xf32>
    %191 = vector.extract_strided_slice %186 {offsets = [2, 0, 0], sizes = [1, 8, 8], strides = [1, 1, 1]} : vector<4x8x8xf32> to vector<1x8x8xf32>
    %192 = vector.shape_cast %191 : vector<1x8x8xf32> to vector<8x8xf32>
    %193 = vector.extract_strided_slice %186 {offsets = [3, 0, 0], sizes = [1, 8, 8], strides = [1, 1, 1]} : vector<4x8x8xf32> to vector<1x8x8xf32>
    %194 = vector.shape_cast %193 : vector<1x8x8xf32> to vector<8x8xf32>
    %195 = tpu.concatenate %188, %190, %192, %194 in 1 : vector<8x8xf32>, vector<8x8xf32>, vector<8x8xf32>, vector<8x8xf32> -> vector<8x32xf32>
    %c1_56 = arith.constant 1 : index
    %c0_57 = arith.constant 0 : index
    %c0_58 = arith.constant 0 : index
    %196 = vector.load %arg7[%c1_56, %c0_57, %c0_58] : memref<4x32x32xf32, #tpu.memory_space<vmem>>, vector<1x32x32xf32>
    %197 = vector.shape_cast %196 : vector<1x32x32xf32> to vector<32x32xf32>
    %cst_59 = arith.constant dense<0.000000e+00> : vector<8x32xf32>
    %198 = tpu.matmul %195, %197, %cst_59 {dimension_numbers = #tpu.dot_dimension_numbers<[1], [0], [0], [1], [0, 0, 1, 1], [], []>} : vector<8x32xf32>, vector<32x32xf32>, vector<8x32xf32> -> vector<8x32xf32>
    %c1_60 = arith.constant 1 : index
    %c0_61 = arith.constant 0 : index
    %c0_62 = arith.constant 0 : index
    %199 = vector.load %arg8[%c1_60, %c0_61, %c0_62] : memref<4x1x32xf32, #tpu.memory_space<vmem>>, vector<1x1x32xf32>
    %200 = vector.shape_cast %199 : vector<1x1x32xf32> to vector<1x32xf32>
    %201 = vector.broadcast %200 : vector<1x32xf32> to vector<8x32xf32>
    %202 = arith.addf %198, %201 : vector<8x32xf32>
    %203 = arith.addf %106, %202 : vector<8x32xf32>
    %cst_63 = arith.constant dense<0.000000e+00> : vector<8xf32>
    %204 = vector.multi_reduction <add>, %203, %cst_63 [1] : vector<8x32xf32> to vector<8xf32>
    %205 = vector.shape_cast %204 : vector<8xf32> to vector<8x1xf32>
    %cst_64 = arith.constant 3.200000e+01 : f32
    %206 = vector.broadcast %cst_64 : f32 to vector<8x1xf32>
    %207 = arith.divf %205, %206 : vector<8x1xf32>
    %208 = vector.broadcast %207 : vector<8x1xf32> to vector<8x32xf32>
    %209 = arith.subf %203, %208 : vector<8x32xf32>
    %210 = arith.mulf %209, %209 : vector<8x32xf32>
    %cst_65 = arith.constant dense<0.000000e+00> : vector<8xf32>
    %211 = vector.multi_reduction <add>, %210, %cst_65 [1] : vector<8x32xf32> to vector<8xf32>
    %212 = vector.shape_cast %211 : vector<8xf32> to vector<8x1xf32>
    %cst_66 = arith.constant 3.200000e+01 : f32
    %213 = vector.broadcast %cst_66 : f32 to vector<8x1xf32>
    %214 = arith.divf %212, %213 : vector<8x1xf32>
    %215 = vector.broadcast %207 : vector<8x1xf32> to vector<8x32xf32>
    %216 = arith.subf %203, %215 : vector<8x32xf32>
    %cst_67 = arith.constant 9.99999974E-6 : f32
    %217 = vector.broadcast %cst_67 : f32 to vector<8x1xf32>
    %218 = arith.addf %214, %217 : vector<8x1xf32>
    %219 = math.rsqrt %218 : vector<8x1xf32>
    %220 = vector.broadcast %219 : vector<8x1xf32> to vector<8x32xf32>
    %221 = arith.mulf %216, %220 : vector<8x32xf32>
    %c2 = arith.constant 2 : index
    %c0_68 = arith.constant 0 : index
    %c0_69 = arith.constant 0 : index
    %222 = vector.load %arg3[%c2, %c0_68, %c0_69] : memref<5x1x32xf32, #tpu.memory_space<vmem>>, vector<1x1x32xf32>
    %223 = vector.shape_cast %222 : vector<1x1x32xf32> to vector<1x32xf32>
    %224 = vector.broadcast %223 : vector<1x32xf32> to vector<8x32xf32>
    %225 = arith.mulf %221, %224 : vector<8x32xf32>
    %c2_70 = arith.constant 2 : index
    %c0_71 = arith.constant 0 : index
    %c0_72 = arith.constant 0 : index
    %226 = vector.load %arg4[%c2_70, %c0_71, %c0_72] : memref<5x1x32xf32, #tpu.memory_space<vmem>>, vector<1x1x32xf32>
    %227 = vector.shape_cast %226 : vector<1x1x32xf32> to vector<1x32xf32>
    %228 = vector.broadcast %227 : vector<1x32xf32> to vector<8x32xf32>
    %229 = arith.addf %225, %228 : vector<8x32xf32>
    %c2_73 = arith.constant 2 : index
    %c0_74 = arith.constant 0 : index
    %c0_75 = arith.constant 0 : index
    %230 = vector.load %arg5[%c2_73, %c0_74, %c0_75] : memref<4x32x96xf32, #tpu.memory_space<vmem>>, vector<1x32x96xf32>
    %231 = vector.shape_cast %230 : vector<1x32x96xf32> to vector<32x96xf32>
    %c2_76 = arith.constant 2 : index
    %c0_77 = arith.constant 0 : index
    %c0_78 = arith.constant 0 : index
    %232 = vector.load %arg6[%c2_76, %c0_77, %c0_78] : memref<4x1x96xf32, #tpu.memory_space<vmem>>, vector<1x1x96xf32>
    %233 = vector.shape_cast %232 : vector<1x1x96xf32> to vector<1x96xf32>
    %234 = vector.extract_strided_slice %231 {offsets = [0, 0], sizes = [32, 32], strides = [1, 1]} : vector<32x96xf32> to vector<32x32xf32>
    %cst_79 = arith.constant dense<0.000000e+00> : vector<8x32xf32>
    %235 = tpu.matmul %229, %234, %cst_79 {dimension_numbers = #tpu.dot_dimension_numbers<[1], [0], [0], [1], [0, 0, 1, 1], [], []>} : vector<8x32xf32>, vector<32x32xf32>, vector<8x32xf32> -> vector<8x32xf32>
    %236 = vector.extract_strided_slice %233 {offsets = [0, 0], sizes = [1, 32], strides = [1, 1]} : vector<1x96xf32> to vector<1x32xf32>
    %237 = vector.broadcast %236 : vector<1x32xf32> to vector<8x32xf32>
    %238 = arith.addf %235, %237 : vector<8x32xf32>
    %239 = vector.extract_strided_slice %231 {offsets = [0, 32], sizes = [32, 64], strides = [1, 1]} : vector<32x96xf32> to vector<32x64xf32>
    %cst_80 = arith.constant dense<0.000000e+00> : vector<10x64xf32>
    %240 = tpu.matmul %3, %239, %cst_80 {dimension_numbers = #tpu.dot_dimension_numbers<[1], [0], [0], [1], [0, 0, 1, 1], [], []>} : vector<10x32xf32>, vector<32x64xf32>, vector<10x64xf32> -> vector<10x64xf32>
    %241 = vector.extract_strided_slice %233 {offsets = [0, 32], sizes = [1, 64], strides = [1, 1]} : vector<1x96xf32> to vector<1x64xf32>
    %242 = vector.broadcast %241 : vector<1x64xf32> to vector<10x64xf32>
    %243 = arith.addf %240, %242 : vector<10x64xf32>
    %244 = vector.extract_strided_slice %243 {offsets = [0, 0], sizes = [10, 32], strides = [1, 1]} : vector<10x64xf32> to vector<10x32xf32>
    %245 = vector.extract_strided_slice %243 {offsets = [0, 32], sizes = [10, 32], strides = [1, 1]} : vector<10x64xf32> to vector<10x32xf32>
    %246 = vector.extract_strided_slice %238 {offsets = [0, 0], sizes = [8, 8], strides = [1, 1]} : vector<8x32xf32> to vector<8x8xf32>
    %247 = vector.extract_strided_slice %238 {offsets = [0, 8], sizes = [8, 8], strides = [1, 1]} : vector<8x32xf32> to vector<8x8xf32>
    %248 = vector.extract_strided_slice %238 {offsets = [0, 16], sizes = [8, 8], strides = [1, 1]} : vector<8x32xf32> to vector<8x8xf32>
    %249 = vector.extract_strided_slice %238 {offsets = [0, 24], sizes = [8, 8], strides = [1, 1]} : vector<8x32xf32> to vector<8x8xf32>
    %250 = vector.shape_cast %246 : vector<8x8xf32> to vector<1x8x8xf32>
    %251 = vector.shape_cast %247 : vector<8x8xf32> to vector<1x8x8xf32>
    %252 = vector.shape_cast %248 : vector<8x8xf32> to vector<1x8x8xf32>
    %253 = vector.shape_cast %249 : vector<8x8xf32> to vector<1x8x8xf32>
    %254 = tpu.concatenate %250, %251, %252, %253 in 0 : vector<1x8x8xf32>, vector<1x8x8xf32>, vector<1x8x8xf32>, vector<1x8x8xf32> -> vector<4x8x8xf32>
    %255 = vector.extract_strided_slice %244 {offsets = [0, 0], sizes = [10, 8], strides = [1, 1]} : vector<10x32xf32> to vector<10x8xf32>
    %256 = vector.extract_strided_slice %244 {offsets = [0, 8], sizes = [10, 8], strides = [1, 1]} : vector<10x32xf32> to vector<10x8xf32>
    %257 = vector.extract_strided_slice %244 {offsets = [0, 16], sizes = [10, 8], strides = [1, 1]} : vector<10x32xf32> to vector<10x8xf32>
    %258 = vector.extract_strided_slice %244 {offsets = [0, 24], sizes = [10, 8], strides = [1, 1]} : vector<10x32xf32> to vector<10x8xf32>
    %259 = vector.shape_cast %255 : vector<10x8xf32> to vector<1x10x8xf32>
    %260 = vector.shape_cast %256 : vector<10x8xf32> to vector<1x10x8xf32>
    %261 = vector.shape_cast %257 : vector<10x8xf32> to vector<1x10x8xf32>
    %262 = vector.shape_cast %258 : vector<10x8xf32> to vector<1x10x8xf32>
    %263 = tpu.concatenate %259, %260, %261, %262 in 0 : vector<1x10x8xf32>, vector<1x10x8xf32>, vector<1x10x8xf32>, vector<1x10x8xf32> -> vector<4x10x8xf32>
    %264 = vector.extract_strided_slice %245 {offsets = [0, 0], sizes = [10, 8], strides = [1, 1]} : vector<10x32xf32> to vector<10x8xf32>
    %265 = vector.extract_strided_slice %245 {offsets = [0, 8], sizes = [10, 8], strides = [1, 1]} : vector<10x32xf32> to vector<10x8xf32>
    %266 = vector.extract_strided_slice %245 {offsets = [0, 16], sizes = [10, 8], strides = [1, 1]} : vector<10x32xf32> to vector<10x8xf32>
    %267 = vector.extract_strided_slice %245 {offsets = [0, 24], sizes = [10, 8], strides = [1, 1]} : vector<10x32xf32> to vector<10x8xf32>
    %268 = vector.shape_cast %264 : vector<10x8xf32> to vector<1x10x8xf32>
    %269 = vector.shape_cast %265 : vector<10x8xf32> to vector<1x10x8xf32>
    %270 = vector.shape_cast %266 : vector<10x8xf32> to vector<1x10x8xf32>
    %271 = vector.shape_cast %267 : vector<10x8xf32> to vector<1x10x8xf32>
    %272 = tpu.concatenate %268, %269, %270, %271 in 0 : vector<1x10x8xf32>, vector<1x10x8xf32>, vector<1x10x8xf32>, vector<1x10x8xf32> -> vector<4x10x8xf32>
    "tpu.trace_start"() <{level = 10 : i32, message = "hqc,hkc->hqk"}> : () -> ()
    %cst_81 = arith.constant dense<0.000000e+00> : vector<4x8x10xf32>
    %273 = tpu.matmul %254, %263, %cst_81 {dimension_numbers = #tpu.dot_dimension_numbers<[2], [2], [1], [1], [0, 0, 0, 1, 1, 1], [0], [0]>} : vector<4x8x8xf32>, vector<4x10x8xf32>, vector<4x8x10xf32> -> vector<4x8x10xf32>
    "tpu.trace_stop"() : () -> ()
    %cst_82 = arith.constant 0.353553385 : f32
    %274 = vector.broadcast %cst_82 : f32 to vector<4x8x10xf32>
    %275 = arith.mulf %273, %274 : vector<4x8x10xf32>
    %276 = vector.shape_cast %9 : vector<8x10xf32> to vector<1x8x10xf32>
    %277 = vector.broadcast %276 : vector<1x8x10xf32> to vector<4x8x10xf32>
    %278 = arith.addf %275, %277 : vector<4x8x10xf32>
    %cst_83 = arith.constant dense<0xFF800000> : vector<4x8xf32>
    %279 = vector.multi_reduction <maximumf>, %278, %cst_83 [2] : vector<4x8x10xf32> to vector<4x8xf32>
    %280 = vector.shape_cast %279 : vector<4x8xf32> to vector<4x8x1xf32>
    %281 = vector.broadcast %280 : vector<4x8x1xf32> to vector<4x8x10xf32>
    %282 = arith.subf %278, %281 : vector<4x8x10xf32>
    %283 = math.exp %282 : vector<4x8x10xf32>
    %cst_84 = arith.constant dense<0.000000e+00> : vector<4x8xf32>
    %284 = vector.multi_reduction <add>, %283, %cst_84 [2] : vector<4x8x10xf32> to vector<4x8xf32>
    %285 = vector.shape_cast %284 : vector<4x8xf32> to vector<4x8x1xf32>
    %286 = tpu.reciprocal %285 {approx = true} : vector<4x8x1xf32> -> vector<4x8x1xf32>
    %287 = vector.broadcast %286 : vector<4x8x1xf32> to vector<4x8x10xf32>
    %288 = arith.mulf %283, %287 : vector<4x8x10xf32>
    "tpu.trace_start"() <{level = 10 : i32, message = "hqk,hkc->hqc"}> : () -> ()
    %cst_85 = arith.constant dense<0.000000e+00> : vector<4x8x8xf32>
    %289 = tpu.matmul %288, %272, %cst_85 {dimension_numbers = #tpu.dot_dimension_numbers<[2], [1], [1], [2], [0, 0, 0, 1, 1, 2], [0], [0]>} : vector<4x8x10xf32>, vector<4x10x8xf32>, vector<4x8x8xf32> -> vector<4x8x8xf32>
    "tpu.trace_stop"() : () -> ()
    %290 = vector.extract_strided_slice %289 {offsets = [0, 0, 0], sizes = [1, 8, 8], strides = [1, 1, 1]} : vector<4x8x8xf32> to vector<1x8x8xf32>
    %291 = vector.shape_cast %290 : vector<1x8x8xf32> to vector<8x8xf32>
    %292 = vector.extract_strided_slice %289 {offsets = [1, 0, 0], sizes = [1, 8, 8], strides = [1, 1, 1]} : vector<4x8x8xf32> to vector<1x8x8xf32>
    %293 = vector.shape_cast %292 : vector<1x8x8xf32> to vector<8x8xf32>
    %294 = vector.extract_strided_slice %289 {offsets = [2, 0, 0], sizes = [1, 8, 8], strides = [1, 1, 1]} : vector<4x8x8xf32> to vector<1x8x8xf32>
    %295 = vector.shape_cast %294 : vector<1x8x8xf32> to vector<8x8xf32>
    %296 = vector.extract_strided_slice %289 {offsets = [3, 0, 0], sizes = [1, 8, 8], strides = [1, 1, 1]} : vector<4x8x8xf32> to vector<1x8x8xf32>
    %297 = vector.shape_cast %296 : vector<1x8x8xf32> to vector<8x8xf32>
    %298 = tpu.concatenate %291, %293, %295, %297 in 1 : vector<8x8xf32>, vector<8x8xf32>, vector<8x8xf32>, vector<8x8xf32> -> vector<8x32xf32>
    %c2_86 = arith.constant 2 : index
    %c0_87 = arith.constant 0 : index
    %c0_88 = arith.constant 0 : index
    %299 = vector.load %arg7[%c2_86, %c0_87, %c0_88] : memref<4x32x32xf32, #tpu.memory_space<vmem>>, vector<1x32x32xf32>
    %300 = vector.shape_cast %299 : vector<1x32x32xf32> to vector<32x32xf32>
    %cst_89 = arith.constant dense<0.000000e+00> : vector<8x32xf32>
    %301 = tpu.matmul %298, %300, %cst_89 {dimension_numbers = #tpu.dot_dimension_numbers<[1], [0], [0], [1], [0, 0, 1, 1], [], []>} : vector<8x32xf32>, vector<32x32xf32>, vector<8x32xf32> -> vector<8x32xf32>
    %c2_90 = arith.constant 2 : index
    %c0_91 = arith.constant 0 : index
    %c0_92 = arith.constant 0 : index
    %302 = vector.load %arg8[%c2_90, %c0_91, %c0_92] : memref<4x1x32xf32, #tpu.memory_space<vmem>>, vector<1x1x32xf32>
    %303 = vector.shape_cast %302 : vector<1x1x32xf32> to vector<1x32xf32>
    %304 = vector.broadcast %303 : vector<1x32xf32> to vector<8x32xf32>
    %305 = arith.addf %301, %304 : vector<8x32xf32>
    %306 = arith.addf %203, %305 : vector<8x32xf32>
    %cst_93 = arith.constant dense<0.000000e+00> : vector<8xf32>
    %307 = vector.multi_reduction <add>, %306, %cst_93 [1] : vector<8x32xf32> to vector<8xf32>
    %308 = vector.shape_cast %307 : vector<8xf32> to vector<8x1xf32>
    %cst_94 = arith.constant 3.200000e+01 : f32
    %309 = vector.broadcast %cst_94 : f32 to vector<8x1xf32>
    %310 = arith.divf %308, %309 : vector<8x1xf32>
    %311 = vector.broadcast %310 : vector<8x1xf32> to vector<8x32xf32>
    %312 = arith.subf %306, %311 : vector<8x32xf32>
    %313 = arith.mulf %312, %312 : vector<8x32xf32>
    %cst_95 = arith.constant dense<0.000000e+00> : vector<8xf32>
    %314 = vector.multi_reduction <add>, %313, %cst_95 [1] : vector<8x32xf32> to vector<8xf32>
    %315 = vector.shape_cast %314 : vector<8xf32> to vector<8x1xf32>
    %cst_96 = arith.constant 3.200000e+01 : f32
    %316 = vector.broadcast %cst_96 : f32 to vector<8x1xf32>
    %317 = arith.divf %315, %316 : vector<8x1xf32>
    %318 = vector.broadcast %310 : vector<8x1xf32> to vector<8x32xf32>
    %319 = arith.subf %306, %318 : vector<8x32xf32>
    %cst_97 = arith.constant 9.99999974E-6 : f32
    %320 = vector.broadcast %cst_97 : f32 to vector<8x1xf32>
    %321 = arith.addf %317, %320 : vector<8x1xf32>
    %322 = math.rsqrt %321 : vector<8x1xf32>
    %323 = vector.broadcast %322 : vector<8x1xf32> to vector<8x32xf32>
    %324 = arith.mulf %319, %323 : vector<8x32xf32>
    %c3 = arith.constant 3 : index
    %c0_98 = arith.constant 0 : index
    %c0_99 = arith.constant 0 : index
    %325 = vector.load %arg3[%c3, %c0_98, %c0_99] : memref<5x1x32xf32, #tpu.memory_space<vmem>>, vector<1x1x32xf32>
    %326 = vector.shape_cast %325 : vector<1x1x32xf32> to vector<1x32xf32>
    %327 = vector.broadcast %326 : vector<1x32xf32> to vector<8x32xf32>
    %328 = arith.mulf %324, %327 : vector<8x32xf32>
    %c3_100 = arith.constant 3 : index
    %c0_101 = arith.constant 0 : index
    %c0_102 = arith.constant 0 : index
    %329 = vector.load %arg4[%c3_100, %c0_101, %c0_102] : memref<5x1x32xf32, #tpu.memory_space<vmem>>, vector<1x1x32xf32>
    %330 = vector.shape_cast %329 : vector<1x1x32xf32> to vector<1x32xf32>
    %331 = vector.broadcast %330 : vector<1x32xf32> to vector<8x32xf32>
    %332 = arith.addf %328, %331 : vector<8x32xf32>
    %c3_103 = arith.constant 3 : index
    %c0_104 = arith.constant 0 : index
    %c0_105 = arith.constant 0 : index
    %333 = vector.load %arg5[%c3_103, %c0_104, %c0_105] : memref<4x32x96xf32, #tpu.memory_space<vmem>>, vector<1x32x96xf32>
    %334 = vector.shape_cast %333 : vector<1x32x96xf32> to vector<32x96xf32>
    %c3_106 = arith.constant 3 : index
    %c0_107 = arith.constant 0 : index
    %c0_108 = arith.constant 0 : index
    %335 = vector.load %arg6[%c3_106, %c0_107, %c0_108] : memref<4x1x96xf32, #tpu.memory_space<vmem>>, vector<1x1x96xf32>
    %336 = vector.shape_cast %335 : vector<1x1x96xf32> to vector<1x96xf32>
    %337 = vector.extract_strided_slice %334 {offsets = [0, 0], sizes = [32, 32], strides = [1, 1]} : vector<32x96xf32> to vector<32x32xf32>
    %cst_109 = arith.constant dense<0.000000e+00> : vector<8x32xf32>
    %338 = tpu.matmul %332, %337, %cst_109 {dimension_numbers = #tpu.dot_dimension_numbers<[1], [0], [0], [1], [0, 0, 1, 1], [], []>} : vector<8x32xf32>, vector<32x32xf32>, vector<8x32xf32> -> vector<8x32xf32>
    %339 = vector.extract_strided_slice %336 {offsets = [0, 0], sizes = [1, 32], strides = [1, 1]} : vector<1x96xf32> to vector<1x32xf32>
    %340 = vector.broadcast %339 : vector<1x32xf32> to vector<8x32xf32>
    %341 = arith.addf %338, %340 : vector<8x32xf32>
    %342 = vector.extract_strided_slice %334 {offsets = [0, 32], sizes = [32, 64], strides = [1, 1]} : vector<32x96xf32> to vector<32x64xf32>
    %cst_110 = arith.constant dense<0.000000e+00> : vector<10x64xf32>
    %343 = tpu.matmul %4, %342, %cst_110 {dimension_numbers = #tpu.dot_dimension_numbers<[1], [0], [0], [1], [0, 0, 1, 1], [], []>} : vector<10x32xf32>, vector<32x64xf32>, vector<10x64xf32> -> vector<10x64xf32>
    %344 = vector.extract_strided_slice %336 {offsets = [0, 32], sizes = [1, 64], strides = [1, 1]} : vector<1x96xf32> to vector<1x64xf32>
    %345 = vector.broadcast %344 : vector<1x64xf32> to vector<10x64xf32>
    %346 = arith.addf %343, %345 : vector<10x64xf32>
    %347 = vector.extract_strided_slice %346 {offsets = [0, 0], sizes = [10, 32], strides = [1, 1]} : vector<10x64xf32> to vector<10x32xf32>
    %348 = vector.extract_strided_slice %346 {offsets = [0, 32], sizes = [10, 32], strides = [1, 1]} : vector<10x64xf32> to vector<10x32xf32>
    %349 = vector.extract_strided_slice %341 {offsets = [0, 0], sizes = [8, 8], strides = [1, 1]} : vector<8x32xf32> to vector<8x8xf32>
    %350 = vector.extract_strided_slice %341 {offsets = [0, 8], sizes = [8, 8], strides = [1, 1]} : vector<8x32xf32> to vector<8x8xf32>
    %351 = vector.extract_strided_slice %341 {offsets = [0, 16], sizes = [8, 8], strides = [1, 1]} : vector<8x32xf32> to vector<8x8xf32>
    %352 = vector.extract_strided_slice %341 {offsets = [0, 24], sizes = [8, 8], strides = [1, 1]} : vector<8x32xf32> to vector<8x8xf32>
    %353 = vector.shape_cast %349 : vector<8x8xf32> to vector<1x8x8xf32>
    %354 = vector.shape_cast %350 : vector<8x8xf32> to vector<1x8x8xf32>
    %355 = vector.shape_cast %351 : vector<8x8xf32> to vector<1x8x8xf32>
    %356 = vector.shape_cast %352 : vector<8x8xf32> to vector<1x8x8xf32>
    %357 = tpu.concatenate %353, %354, %355, %356 in 0 : vector<1x8x8xf32>, vector<1x8x8xf32>, vector<1x8x8xf32>, vector<1x8x8xf32> -> vector<4x8x8xf32>
    %358 = vector.extract_strided_slice %347 {offsets = [0, 0], sizes = [10, 8], strides = [1, 1]} : vector<10x32xf32> to vector<10x8xf32>
    %359 = vector.extract_strided_slice %347 {offsets = [0, 8], sizes = [10, 8], strides = [1, 1]} : vector<10x32xf32> to vector<10x8xf32>
    %360 = vector.extract_strided_slice %347 {offsets = [0, 16], sizes = [10, 8], strides = [1, 1]} : vector<10x32xf32> to vector<10x8xf32>
    %361 = vector.extract_strided_slice %347 {offsets = [0, 24], sizes = [10, 8], strides = [1, 1]} : vector<10x32xf32> to vector<10x8xf32>
    %362 = vector.shape_cast %358 : vector<10x8xf32> to vector<1x10x8xf32>
    %363 = vector.shape_cast %359 : vector<10x8xf32> to vector<1x10x8xf32>
    %364 = vector.shape_cast %360 : vector<10x8xf32> to vector<1x10x8xf32>
    %365 = vector.shape_cast %361 : vector<10x8xf32> to vector<1x10x8xf32>
    %366 = tpu.concatenate %362, %363, %364, %365 in 0 : vector<1x10x8xf32>, vector<1x10x8xf32>, vector<1x10x8xf32>, vector<1x10x8xf32> -> vector<4x10x8xf32>
    %367 = vector.extract_strided_slice %348 {offsets = [0, 0], sizes = [10, 8], strides = [1, 1]} : vector<10x32xf32> to vector<10x8xf32>
    %368 = vector.extract_strided_slice %348 {offsets = [0, 8], sizes = [10, 8], strides = [1, 1]} : vector<10x32xf32> to vector<10x8xf32>
    %369 = vector.extract_strided_slice %348 {offsets = [0, 16], sizes = [10, 8], strides = [1, 1]} : vector<10x32xf32> to vector<10x8xf32>
    %370 = vector.extract_strided_slice %348 {offsets = [0, 24], sizes = [10, 8], strides = [1, 1]} : vector<10x32xf32> to vector<10x8xf32>
    %371 = vector.shape_cast %367 : vector<10x8xf32> to vector<1x10x8xf32>
    %372 = vector.shape_cast %368 : vector<10x8xf32> to vector<1x10x8xf32>
    %373 = vector.shape_cast %369 : vector<10x8xf32> to vector<1x10x8xf32>
    %374 = vector.shape_cast %370 : vector<10x8xf32> to vector<1x10x8xf32>
    %375 = tpu.concatenate %371, %372, %373, %374 in 0 : vector<1x10x8xf32>, vector<1x10x8xf32>, vector<1x10x8xf32>, vector<1x10x8xf32> -> vector<4x10x8xf32>
    "tpu.trace_start"() <{level = 10 : i32, message = "hqc,hkc->hqk"}> : () -> ()
    %cst_111 = arith.constant dense<0.000000e+00> : vector<4x8x10xf32>
    %376 = tpu.matmul %357, %366, %cst_111 {dimension_numbers = #tpu.dot_dimension_numbers<[2], [2], [1], [1], [0, 0, 0, 1, 1, 1], [0], [0]>} : vector<4x8x8xf32>, vector<4x10x8xf32>, vector<4x8x10xf32> -> vector<4x8x10xf32>
    "tpu.trace_stop"() : () -> ()
    %cst_112 = arith.constant 0.353553385 : f32
    %377 = vector.broadcast %cst_112 : f32 to vector<4x8x10xf32>
    %378 = arith.mulf %376, %377 : vector<4x8x10xf32>
    %379 = vector.shape_cast %9 : vector<8x10xf32> to vector<1x8x10xf32>
    %380 = vector.broadcast %379 : vector<1x8x10xf32> to vector<4x8x10xf32>
    %381 = arith.addf %378, %380 : vector<4x8x10xf32>
    %cst_113 = arith.constant dense<0xFF800000> : vector<4x8xf32>
    %382 = vector.multi_reduction <maximumf>, %381, %cst_113 [2] : vector<4x8x10xf32> to vector<4x8xf32>
    %383 = vector.shape_cast %382 : vector<4x8xf32> to vector<4x8x1xf32>
    %384 = vector.broadcast %383 : vector<4x8x1xf32> to vector<4x8x10xf32>
    %385 = arith.subf %381, %384 : vector<4x8x10xf32>
    %386 = math.exp %385 : vector<4x8x10xf32>
    %cst_114 = arith.constant dense<0.000000e+00> : vector<4x8xf32>
    %387 = vector.multi_reduction <add>, %386, %cst_114 [2] : vector<4x8x10xf32> to vector<4x8xf32>
    %388 = vector.shape_cast %387 : vector<4x8xf32> to vector<4x8x1xf32>
    %389 = tpu.reciprocal %388 {approx = true} : vector<4x8x1xf32> -> vector<4x8x1xf32>
    %390 = vector.broadcast %389 : vector<4x8x1xf32> to vector<4x8x10xf32>
    %391 = arith.mulf %386, %390 : vector<4x8x10xf32>
    "tpu.trace_start"() <{level = 10 : i32, message = "hqk,hkc->hqc"}> : () -> ()
    %cst_115 = arith.constant dense<0.000000e+00> : vector<4x8x8xf32>
    %392 = tpu.matmul %391, %375, %cst_115 {dimension_numbers = #tpu.dot_dimension_numbers<[2], [1], [1], [2], [0, 0, 0, 1, 1, 2], [0], [0]>} : vector<4x8x10xf32>, vector<4x10x8xf32>, vector<4x8x8xf32> -> vector<4x8x8xf32>
    "tpu.trace_stop"() : () -> ()
    %393 = vector.extract_strided_slice %392 {offsets = [0, 0, 0], sizes = [1, 8, 8], strides = [1, 1, 1]} : vector<4x8x8xf32> to vector<1x8x8xf32>
    %394 = vector.shape_cast %393 : vector<1x8x8xf32> to vector<8x8xf32>
    %395 = vector.extract_strided_slice %392 {offsets = [1, 0, 0], sizes = [1, 8, 8], strides = [1, 1, 1]} : vector<4x8x8xf32> to vector<1x8x8xf32>
    %396 = vector.shape_cast %395 : vector<1x8x8xf32> to vector<8x8xf32>
    %397 = vector.extract_strided_slice %392 {offsets = [2, 0, 0], sizes = [1, 8, 8], strides = [1, 1, 1]} : vector<4x8x8xf32> to vector<1x8x8xf32>
    %398 = vector.shape_cast %397 : vector<1x8x8xf32> to vector<8x8xf32>
    %399 = vector.extract_strided_slice %392 {offsets = [3, 0, 0], sizes = [1, 8, 8], strides = [1, 1, 1]} : vector<4x8x8xf32> to vector<1x8x8xf32>
    %400 = vector.shape_cast %399 : vector<1x8x8xf32> to vector<8x8xf32>
    %401 = tpu.concatenate %394, %396, %398, %400 in 1 : vector<8x8xf32>, vector<8x8xf32>, vector<8x8xf32>, vector<8x8xf32> -> vector<8x32xf32>
    %c3_116 = arith.constant 3 : index
    %c0_117 = arith.constant 0 : index
    %c0_118 = arith.constant 0 : index
    %402 = vector.load %arg7[%c3_116, %c0_117, %c0_118] : memref<4x32x32xf32, #tpu.memory_space<vmem>>, vector<1x32x32xf32>
    %403 = vector.shape_cast %402 : vector<1x32x32xf32> to vector<32x32xf32>
    %cst_119 = arith.constant dense<0.000000e+00> : vector<8x32xf32>
    %404 = tpu.matmul %401, %403, %cst_119 {dimension_numbers = #tpu.dot_dimension_numbers<[1], [0], [0], [1], [0, 0, 1, 1], [], []>} : vector<8x32xf32>, vector<32x32xf32>, vector<8x32xf32> -> vector<8x32xf32>
    %c3_120 = arith.constant 3 : index
    %c0_121 = arith.constant 0 : index
    %c0_122 = arith.constant 0 : index
    %405 = vector.load %arg8[%c3_120, %c0_121, %c0_122] : memref<4x1x32xf32, #tpu.memory_space<vmem>>, vector<1x1x32xf32>
    %406 = vector.shape_cast %405 : vector<1x1x32xf32> to vector<1x32xf32>
    %407 = vector.broadcast %406 : vector<1x32xf32> to vector<8x32xf32>
    %408 = arith.addf %404, %407 : vector<8x32xf32>
    %409 = arith.addf %306, %408 : vector<8x32xf32>
    %cst_123 = arith.constant dense<0.000000e+00> : vector<8xf32>
    %410 = vector.multi_reduction <add>, %409, %cst_123 [1] : vector<8x32xf32> to vector<8xf32>
    %411 = vector.shape_cast %410 : vector<8xf32> to vector<8x1xf32>
    %cst_124 = arith.constant 3.200000e+01 : f32
    %412 = vector.broadcast %cst_124 : f32 to vector<8x1xf32>
    %413 = arith.divf %411, %412 : vector<8x1xf32>
    %414 = vector.broadcast %413 : vector<8x1xf32> to vector<8x32xf32>
    %415 = arith.subf %409, %414 : vector<8x32xf32>
    %416 = arith.mulf %415, %415 : vector<8x32xf32>
    %cst_125 = arith.constant dense<0.000000e+00> : vector<8xf32>
    %417 = vector.multi_reduction <add>, %416, %cst_125 [1] : vector<8x32xf32> to vector<8xf32>
    %418 = vector.shape_cast %417 : vector<8xf32> to vector<8x1xf32>
    %cst_126 = arith.constant 3.200000e+01 : f32
    %419 = vector.broadcast %cst_126 : f32 to vector<8x1xf32>
    %420 = arith.divf %418, %419 : vector<8x1xf32>
    %421 = vector.broadcast %413 : vector<8x1xf32> to vector<8x32xf32>
    %422 = arith.subf %409, %421 : vector<8x32xf32>
    %cst_127 = arith.constant 9.99999974E-6 : f32
    %423 = vector.broadcast %cst_127 : f32 to vector<8x1xf32>
    %424 = arith.addf %420, %423 : vector<8x1xf32>
    %425 = math.rsqrt %424 : vector<8x1xf32>
    %426 = vector.broadcast %425 : vector<8x1xf32> to vector<8x32xf32>
    %427 = arith.mulf %422, %426 : vector<8x32xf32>
    %c4 = arith.constant 4 : index
    %c0_128 = arith.constant 0 : index
    %c0_129 = arith.constant 0 : index
    %428 = vector.load %arg3[%c4, %c0_128, %c0_129] : memref<5x1x32xf32, #tpu.memory_space<vmem>>, vector<1x1x32xf32>
    %429 = vector.shape_cast %428 : vector<1x1x32xf32> to vector<1x32xf32>
    %430 = vector.broadcast %429 : vector<1x32xf32> to vector<8x32xf32>
    %431 = arith.mulf %427, %430 : vector<8x32xf32>
    %c4_130 = arith.constant 4 : index
    %c0_131 = arith.constant 0 : index
    %c0_132 = arith.constant 0 : index
    %432 = vector.load %arg4[%c4_130, %c0_131, %c0_132] : memref<5x1x32xf32, #tpu.memory_space<vmem>>, vector<1x1x32xf32>
    %433 = vector.shape_cast %432 : vector<1x1x32xf32> to vector<1x32xf32>
    %434 = vector.broadcast %433 : vector<1x32xf32> to vector<8x32xf32>
    %435 = arith.addf %431, %434 : vector<8x32xf32>
    %c0_133 = arith.constant 0 : index
    %c0_134 = arith.constant 0 : index
    %436 = vector.load %arg9[%c0_133, %c0_134] : memref<32x64xf32, #tpu.memory_space<vmem>>, vector<32x64xf32>
    %cst_135 = arith.constant dense<0.000000e+00> : vector<8x64xf32>
    %437 = tpu.matmul %435, %436, %cst_135 {dimension_numbers = #tpu.dot_dimension_numbers<[1], [0], [0], [1], [0, 0, 1, 1], [], []>} : vector<8x32xf32>, vector<32x64xf32>, vector<8x64xf32> -> vector<8x64xf32>
    %c0_136 = arith.constant 0 : index
    %c0_137 = arith.constant 0 : index
    %438 = vector.load %arg10[%c0_136, %c0_137] : memref<1x64xf32, #tpu.memory_space<vmem>>, vector<1x64xf32>
    %439 = vector.broadcast %438 : vector<1x64xf32> to vector<8x64xf32>
    %440 = arith.addf %437, %439 : vector<8x64xf32>
    %cst_138 = arith.constant 0.000000e+00 : f32
    %441 = vector.broadcast %cst_138 : f32 to vector<8x64xf32>
    %442 = arith.maximumf %440, %441 : vector<8x64xf32>
    %c0_139 = arith.constant 0 : index
    %c0_140 = arith.constant 0 : index
    %443 = vector.load %arg11[%c0_139, %c0_140] : memref<64x32xf32, #tpu.memory_space<vmem>>, vector<64x32xf32>
    %cst_141 = arith.constant dense<0.000000e+00> : vector<8x32xf32>
    %444 = tpu.matmul %442, %443, %cst_141 {dimension_numbers = #tpu.dot_dimension_numbers<[1], [0], [0], [1], [0, 0, 1, 1], [], []>} : vector<8x64xf32>, vector<64x32xf32>, vector<8x32xf32> -> vector<8x32xf32>
    %c0_142 = arith.constant 0 : index
    %c0_143 = arith.constant 0 : index
    %445 = vector.load %arg12[%c0_142, %c0_143] : memref<1x32xf32, #tpu.memory_space<vmem>>, vector<1x32xf32>
    %446 = vector.broadcast %445 : vector<1x32xf32> to vector<8x32xf32>
    %447 = arith.addf %444, %446 : vector<8x32xf32>
    %448 = arith.addf %409, %447 : vector<8x32xf32>
    %c0_144 = arith.constant 0 : index
    %c0_145 = arith.constant 0 : index
    %449 = vector.load %arg13[%c0_144, %c0_145] : memref<32x10xf32, #tpu.memory_space<vmem>>, vector<32x10xf32>
    %cst_146 = arith.constant dense<0.000000e+00> : vector<8x10xf32>
    %450 = tpu.matmul %448, %449, %cst_146 {dimension_numbers = #tpu.dot_dimension_numbers<[1], [0], [0], [1], [0, 0, 1, 1], [], []>} : vector<8x32xf32>, vector<32x10xf32>, vector<8x10xf32> -> vector<8x10xf32>
    %c0_147 = arith.constant 0 : index
    %c0_148 = arith.constant 0 : index
    %451 = vector.load %arg14[%c0_147, %c0_148] : memref<1x10xf32, #tpu.memory_space<vmem>>, vector<1x10xf32>
    %452 = vector.broadcast %451 : vector<1x10xf32> to vector<8x10xf32>
    %453 = arith.addf %450, %452 : vector<8x10xf32>
    %cst_149 = arith.constant dense<0xFF800000> : vector<8xf32>
    %454 = vector.multi_reduction <maximumf>, %453, %cst_149 [1] : vector<8x10xf32> to vector<8xf32>
    %455 = vector.shape_cast %454 : vector<8xf32> to vector<8x1xf32>
    %456 = vector.broadcast %455 : vector<8x1xf32> to vector<8x10xf32>
    %457 = arith.subf %453, %456 : vector<8x10xf32>
    %458 = math.exp %457 : vector<8x10xf32>
    %cst_150 = arith.constant dense<0.000000e+00> : vector<8xf32>
    %459 = vector.multi_reduction <add>, %458, %cst_150 [1] : vector<8x10xf32> to vector<8xf32>
    %460 = vector.shape_cast %459 : vector<8xf32> to vector<8x1xf32>
    %461 = tpu.reciprocal %460 {approx = true} : vector<8x1xf32> -> vector<8x1xf32>
    %462 = vector.broadcast %461 : vector<8x1xf32> to vector<8x10xf32>
    %463 = arith.mulf %458, %462 : vector<8x10xf32>
    %464 = tpu.concatenate %448, %463 in 1 : vector<8x32xf32>, vector<8x10xf32> -> vector<8x42xf32>
    %c0_151 = arith.constant 0 : index
    %c0_152 = arith.constant 0 : index
    %c0_153 = arith.constant 0 : index
    %465 = vector.load %arg15[%c0_151, %c0_152, %c0_153] : memref<1x8x42xf32, #tpu.memory_space<vmem>>, vector<1x8x42xf32>
    %466 = vector.shape_cast %465 : vector<1x8x42xf32> to vector<8x42xf32>
    %467 = vector.shape_cast %464 : vector<8x42xf32> to vector<1x8x42xf32>
    tpu.vector_store %arg15[%c0_151, %c0_152, %c0_153], %467 {strides = array<i32>} : memref<1x8x42xf32, #tpu.memory_space<vmem>>, vector<1x8x42xf32>,
    return
  }
  func.func @transform_0(%arg0: i32) -> (i32, i32, i32) {
    %c0_i32 = arith.constant 0 : i32
    %c0_i32_0 = arith.constant 0 : i32
    %c0_i32_1 = arith.constant 0 : i32
    return %arg0, %c0_i32, %c0_i32_0 : i32, i32, i32
  }
  func.func @transform_1(%arg0: i32) -> (i32, i32, i32) {
    %c0_i32 = arith.constant 0 : i32
    %c0_i32_0 = arith.constant 0 : i32
    %c0_i32_1 = arith.constant 0 : i32
    return %arg0, %c0_i32, %c0_i32_0 : i32, i32, i32
  }
  func.func @transform_2(%arg0: i32) -> (i32, i32, i32) {
    %c0_i32 = arith.constant 0 : i32
    %c0_i32_0 = arith.constant 0 : i32
    %c0_i32_1 = arith.constant 0 : i32
    %c0_i32_2 = arith.constant 0 : i32
    return %c0_i32, %c0_i32_0, %c0_i32_1 : i32, i32, i32
  }
  func.func @transform_3(%arg0: i32) -> (i32, i32, i32) {
    %c0_i32 = arith.constant 0 : i32
    %c0_i32_0 = arith.constant 0 : i32
    %c0_i32_1 = arith.constant 0 : i32
    %c0_i32_2 = arith.constant 0 : i32
    return %c0_i32, %c0_i32_0, %c0_i32_1 : i32, i32, i32
  }
  func.func @transform_4(%arg0: i32) -> (i32, i32, i32) {
    %c0_i32 = arith.constant 0 : i32
    %c0_i32_0 = arith.constant 0 : i32
    %c0_i32_1 = arith.constant 0 : i32
    %c0_i32_2 = arith.constant 0 : i32
    return %c0_i32, %c0_i32_0, %c0_i32_1 : i32, i32, i32
  }
  func.func @transform_5(%arg0: i32) -> (i32, i32, i32) {
    %c0_i32 = arith.constant 0 : i32
    %c0_i32_0 = arith.constant 0 : i32
    %c0_i32_1 = arith.constant 0 : i32
    %c0_i32_2 = arith.constant 0 : i32
    return %c0_i32, %c0_i32_0, %c0_i32_1 : i32, i32, i32
  }
  func.func @transform_6(%arg0: i32) -> (i32, i32, i32) {
    %c0_i32 = arith.constant 0 : i32
    %c0_i32_0 = arith.constant 0 : i32
    %c0_i32_1 = arith.constant 0 : i32
    %c0_i32_2 = arith.constant 0 : i32
    return %c0_i32, %c0_i32_0, %c0_i32_1 : i32, i32, i32
  }
  func.func @transform_7(%arg0: i32) -> (i32, i32, i32) {
    %c0_i32 = arith.constant 0 : i32
    %c0_i32_0 = arith.constant 0 : i32
    %c0_i32_1 = arith.constant 0 : i32
    %c0_i32_2 = arith.constant 0 : i32
    return %c0_i32, %c0_i32_0, %c0_i32_1 : i32, i32, i32
  }
  func.func @transform_8(%arg0: i32) -> (i32, i32) {
    %c0_i32 = arith.constant 0 : i32
    %c0_i32_0 = arith.constant 0 : i32
    %c0_i32_1 = arith.constant 0 : i32
    return %c0_i32, %c0_i32_0 : i32, i32
  }
  func.func @transform_9(%arg0: i32) -> (i32, i32) {
    %c0_i32 = arith.constant 0 : i32
    %c0_i32_0 = arith.constant 0 : i32
    %c0_i32_1 = arith.constant 0 : i32
    return %c0_i32, %c0_i32_0 : i32, i32
  }
  func.func @transform_10(%arg0: i32) -> (i32, i32) {
    %c0_i32 = arith.constant 0 : i32
    %c0_i32_0 = arith.constant 0 : i32
    %c0_i32_1 = arith.constant 0 : i32
    return %c0_i32, %c0_i32_0 : i32, i32
  }
  func.func @transform_11(%arg0: i32) -> (i32, i32) {
    %c0_i32 = arith.constant 0 : i32
    %c0_i32_0 = arith.constant 0 : i32
    %c0_i32_1 = arith.constant 0 : i32
    return %c0_i32, %c0_i32_0 : i32, i32
  }
  func.func @transform_12(%arg0: i32) -> (i32, i32) {
    %c0_i32 = arith.constant 0 : i32
    %c0_i32_0 = arith.constant 0 : i32
    %c0_i32_1 = arith.constant 0 : i32
    return %c0_i32, %c0_i32_0 : i32, i32
  }
  func.func @transform_13(%arg0: i32) -> (i32, i32) {
    %c0_i32 = arith.constant 0 : i32
    %c0_i32_0 = arith.constant 0 : i32
    %c0_i32_1 = arith.constant 0 : i32
    return %c0_i32, %c0_i32_0 : i32, i32
  }
  func.func @transform_14(%arg0: i32) -> (i32, i32, i32) {
    %c0_i32 = arith.constant 0 : i32
    %c0_i32_0 = arith.constant 0 : i32
    %c0_i32_1 = arith.constant 0 : i32
    return %arg0, %c0_i32, %c0_i32_0 : i32, i32, i32
  }
}

module attributes {stable_mosaic.version = 11 : i64} {
  func.func @_decoder_block_kernel(%arg0: i32, %arg1: memref<1x28x32xf32, #tpu.memory_space<vmem>>, %arg2: memref<1x8x26xf32, #tpu.memory_space<vmem>>, %arg3: memref<1x10x20xf32, #tpu.memory_space<vmem>>, %arg4: memref<5x1x32xf32, #tpu.memory_space<vmem>>, %arg5: memref<5x1x32xf32, #tpu.memory_space<vmem>>, %arg6: memref<4x32x96xf32, #tpu.memory_space<vmem>>, %arg7: memref<4x1x96xf32, #tpu.memory_space<vmem>>, %arg8: memref<4x32x32xf32, #tpu.memory_space<vmem>>, %arg9: memref<4x1x32xf32, #tpu.memory_space<vmem>>, %arg10: memref<32x64xf32, #tpu.memory_space<vmem>>, %arg11: memref<1x64xf32, #tpu.memory_space<vmem>>, %arg12: memref<64x32xf32, #tpu.memory_space<vmem>>, %arg13: memref<1x32xf32, #tpu.memory_space<vmem>>, %arg14: memref<32x20xf32, #tpu.memory_space<vmem>>, %arg15: memref<1x20xf32, #tpu.memory_space<vmem>>, %arg16: memref<32x1xf32, #tpu.memory_space<vmem>>, %arg17: memref<1x1xf32, #tpu.memory_space<vmem>>, %arg18: memref<1x8x52xf32, #tpu.memory_space<vmem>>) attributes {dimension_semantics = [#tpu.dimension_semantics<parallel>], iteration_bounds = array<i64: 2>, scalar_prefetch = 0 : i64, scratch_operands = 0 : i64, tpu.core_type = #tpu.core_type<tc>, window_params = [{transform_indices = @transform_0, window_bounds = array<i64: 1, 28, 32>}, {transform_indices = @transform_1, window_bounds = array<i64: 1, 8, 26>}, {transform_indices = @transform_2, window_bounds = array<i64: 1, 10, 20>}, {pipeline_mode = #tpu.pipeline_mode<synchronous>, transform_indices = @transform_3, window_bounds = array<i64: 5, 1, 32>}, {pipeline_mode = #tpu.pipeline_mode<synchronous>, transform_indices = @transform_4, window_bounds = array<i64: 5, 1, 32>}, {pipeline_mode = #tpu.pipeline_mode<synchronous>, transform_indices = @transform_5, window_bounds = array<i64: 4, 32, 96>}, {pipeline_mode = #tpu.pipeline_mode<synchronous>, transform_indices = @transform_6, window_bounds = array<i64: 4, 1, 96>}, {pipeline_mode = #tpu.pipeline_mode<synchronous>, transform_indices = @transform_7, window_bounds = array<i64: 4, 32, 32>}, {pipeline_mode = #tpu.pipeline_mode<synchronous>, transform_indices = @transform_8, window_bounds = array<i64: 4, 1, 32>}, {pipeline_mode = #tpu.pipeline_mode<synchronous>, transform_indices = @transform_9, window_bounds = array<i64: 32, 64>}, {pipeline_mode = #tpu.pipeline_mode<synchronous>, transform_indices = @transform_10, window_bounds = array<i64: 1, 64>}, {pipeline_mode = #tpu.pipeline_mode<synchronous>, transform_indices = @transform_11, window_bounds = array<i64: 64, 32>}, {pipeline_mode = #tpu.pipeline_mode<synchronous>, transform_indices = @transform_12, window_bounds = array<i64: 1, 32>}, {pipeline_mode = #tpu.pipeline_mode<synchronous>, transform_indices = @transform_13, window_bounds = array<i64: 32, 20>}, {pipeline_mode = #tpu.pipeline_mode<synchronous>, transform_indices = @transform_14, window_bounds = array<i64: 1, 20>}, {pipeline_mode = #tpu.pipeline_mode<synchronous>, transform_indices = @transform_15, window_bounds = array<i64: 32, 1>}, {pipeline_mode = #tpu.pipeline_mode<synchronous>, transform_indices = @transform_16, window_bounds = array<i64: 1, 1>}, {transform_indices = @transform_17, window_bounds = array<i64: 1, 8, 52>}]} {
    %c0 = arith.constant 0 : index
    %c0_0 = arith.constant 0 : index
    %c0_1 = arith.constant 0 : index
    %0 = vector.load %arg1[%c0, %c0_0, %c0_1] : memref<1x28x32xf32, #tpu.memory_space<vmem>>, vector<1x28x32xf32>
    %1 = vector.shape_cast %0 : vector<1x28x32xf32> to vector<28x32xf32>
    %2 = vector.extract_strided_slice %1 {offsets = [0, 0], sizes = [8, 32], strides = [1, 1]} : vector<28x32xf32> to vector<8x32xf32>
    %3 = vector.extract_strided_slice %1 {offsets = [8, 0], sizes = [10, 32], strides = [1, 1]} : vector<28x32xf32> to vector<10x32xf32>
    %4 = vector.extract_strided_slice %1 {offsets = [18, 0], sizes = [10, 32], strides = [1, 1]} : vector<28x32xf32> to vector<10x32xf32>
    %c0_2 = arith.constant 0 : index
    %c0_3 = arith.constant 0 : index
    %c0_4 = arith.constant 0 : index
    %5 = vector.load %arg2[%c0_2, %c0_3, %c0_4] : memref<1x8x26xf32, #tpu.memory_space<vmem>>, vector<1x8x26xf32>
    %6 = vector.shape_cast %5 : vector<1x8x26xf32> to vector<8x26xf32>
    %7 = vector.extract_strided_slice %6 {offsets = [0, 0], sizes = [8, 8], strides = [1, 1]} : vector<8x26xf32> to vector<8x8xf32>
    %8 = vector.extract_strided_slice %6 {offsets = [0, 8], sizes = [8, 8], strides = [1, 1]} : vector<8x26xf32> to vector<8x8xf32>
    %9 = vector.extract_strided_slice %6 {offsets = [0, 16], sizes = [8, 10], strides = [1, 1]} : vector<8x26xf32> to vector<8x10xf32>
    %cst = arith.constant dense<0.000000e+00> : vector<8xf32>
    %10 = vector.multi_reduction <add>, %2, %cst [1] : vector<8x32xf32> to vector<8xf32>
    %11 = vector.shape_cast %10 : vector<8xf32> to vector<8x1xf32>
    %cst_5 = arith.constant 3.200000e+01 : f32
    %12 = vector.broadcast %cst_5 : f32 to vector<8x1xf32>
    %13 = arith.divf %11, %12 : vector<8x1xf32>
    %14 = vector.broadcast %13 : vector<8x1xf32> to vector<8x32xf32>
    %15 = arith.subf %2, %14 : vector<8x32xf32>
    %16 = arith.mulf %15, %15 : vector<8x32xf32>
    %cst_6 = arith.constant dense<0.000000e+00> : vector<8xf32>
    %17 = vector.multi_reduction <add>, %16, %cst_6 [1] : vector<8x32xf32> to vector<8xf32>
    %18 = vector.shape_cast %17 : vector<8xf32> to vector<8x1xf32>
    %cst_7 = arith.constant 3.200000e+01 : f32
    %19 = vector.broadcast %cst_7 : f32 to vector<8x1xf32>
    %20 = arith.divf %18, %19 : vector<8x1xf32>
    %21 = vector.broadcast %13 : vector<8x1xf32> to vector<8x32xf32>
    %22 = arith.subf %2, %21 : vector<8x32xf32>
    %cst_8 = arith.constant 9.99999974E-6 : f32
    %23 = vector.broadcast %cst_8 : f32 to vector<8x1xf32>
    %24 = arith.addf %20, %23 : vector<8x1xf32>
    %25 = math.rsqrt %24 : vector<8x1xf32>
    %26 = vector.broadcast %25 : vector<8x1xf32> to vector<8x32xf32>
    %27 = arith.mulf %22, %26 : vector<8x32xf32>
    %c0_9 = arith.constant 0 : index
    %c0_10 = arith.constant 0 : index
    %c0_11 = arith.constant 0 : index
    %28 = vector.load %arg4[%c0_9, %c0_10, %c0_11] : memref<5x1x32xf32, #tpu.memory_space<vmem>>, vector<1x1x32xf32>
    %29 = vector.shape_cast %28 : vector<1x1x32xf32> to vector<1x32xf32>
    %30 = vector.broadcast %29 : vector<1x32xf32> to vector<8x32xf32>
    %31 = arith.mulf %27, %30 : vector<8x32xf32>
    %c0_12 = arith.constant 0 : index
    %c0_13 = arith.constant 0 : index
    %c0_14 = arith.constant 0 : index
    %32 = vector.load %arg5[%c0_12, %c0_13, %c0_14] : memref<5x1x32xf32, #tpu.memory_space<vmem>>, vector<1x1x32xf32>
    %33 = vector.shape_cast %32 : vector<1x1x32xf32> to vector<1x32xf32>
    %34 = vector.broadcast %33 : vector<1x32xf32> to vector<8x32xf32>
    %35 = arith.addf %31, %34 : vector<8x32xf32>
    %c0_15 = arith.constant 0 : index
    %c0_16 = arith.constant 0 : index
    %c0_17 = arith.constant 0 : index
    %36 = vector.load %arg6[%c0_15, %c0_16, %c0_17] : memref<4x32x96xf32, #tpu.memory_space<vmem>>, vector<1x32x96xf32>
    %37 = vector.shape_cast %36 : vector<1x32x96xf32> to vector<32x96xf32>
    %c0_18 = arith.constant 0 : index
    %c0_19 = arith.constant 0 : index
    %c0_20 = arith.constant 0 : index
    %38 = vector.load %arg7[%c0_18, %c0_19, %c0_20] : memref<4x1x96xf32, #tpu.memory_space<vmem>>, vector<1x1x96xf32>
    %39 = vector.shape_cast %38 : vector<1x1x96xf32> to vector<1x96xf32>
    %cst_21 = arith.constant dense<0.000000e+00> : vector<8x96xf32>
    %40 = tpu.matmul %35, %37, %cst_21 {dimension_numbers = #tpu.dot_dimension_numbers<[1], [0], [0], [1], [0, 0, 1, 1], [], []>} : vector<8x32xf32>, vector<32x96xf32>, vector<8x96xf32> -> vector<8x96xf32>
    %41 = vector.broadcast %39 : vector<1x96xf32> to vector<8x96xf32>
    %42 = arith.addf %40, %41 : vector<8x96xf32>
    %43 = vector.extract_strided_slice %42 {offsets = [0, 0], sizes = [8, 32], strides = [1, 1]} : vector<8x96xf32> to vector<8x32xf32>
    %44 = vector.extract_strided_slice %42 {offsets = [0, 32], sizes = [8, 32], strides = [1, 1]} : vector<8x96xf32> to vector<8x32xf32>
    %45 = vector.extract_strided_slice %42 {offsets = [0, 64], sizes = [8, 32], strides = [1, 1]} : vector<8x96xf32> to vector<8x32xf32>
    %46 = vector.extract_strided_slice %43 {offsets = [0, 0], sizes = [8, 8], strides = [1, 1]} : vector<8x32xf32> to vector<8x8xf32>
    %47 = vector.extract_strided_slice %43 {offsets = [0, 8], sizes = [8, 8], strides = [1, 1]} : vector<8x32xf32> to vector<8x8xf32>
    %48 = vector.extract_strided_slice %43 {offsets = [0, 16], sizes = [8, 8], strides = [1, 1]} : vector<8x32xf32> to vector<8x8xf32>
    %49 = vector.extract_strided_slice %43 {offsets = [0, 24], sizes = [8, 8], strides = [1, 1]} : vector<8x32xf32> to vector<8x8xf32>
    %50 = vector.shape_cast %46 : vector<8x8xf32> to vector<1x8x8xf32>
    %51 = vector.shape_cast %47 : vector<8x8xf32> to vector<1x8x8xf32>
    %52 = vector.shape_cast %48 : vector<8x8xf32> to vector<1x8x8xf32>
    %53 = vector.shape_cast %49 : vector<8x8xf32> to vector<1x8x8xf32>
    %54 = tpu.concatenate %50, %51, %52, %53 in 0 : vector<1x8x8xf32>, vector<1x8x8xf32>, vector<1x8x8xf32>, vector<1x8x8xf32> -> vector<4x8x8xf32>
    %55 = vector.extract_strided_slice %44 {offsets = [0, 0], sizes = [8, 8], strides = [1, 1]} : vector<8x32xf32> to vector<8x8xf32>
    %56 = vector.extract_strided_slice %44 {offsets = [0, 8], sizes = [8, 8], strides = [1, 1]} : vector<8x32xf32> to vector<8x8xf32>
    %57 = vector.extract_strided_slice %44 {offsets = [0, 16], sizes = [8, 8], strides = [1, 1]} : vector<8x32xf32> to vector<8x8xf32>
    %58 = vector.extract_strided_slice %44 {offsets = [0, 24], sizes = [8, 8], strides = [1, 1]} : vector<8x32xf32> to vector<8x8xf32>
    %59 = vector.shape_cast %55 : vector<8x8xf32> to vector<1x8x8xf32>
    %60 = vector.shape_cast %56 : vector<8x8xf32> to vector<1x8x8xf32>
    %61 = vector.shape_cast %57 : vector<8x8xf32> to vector<1x8x8xf32>
    %62 = vector.shape_cast %58 : vector<8x8xf32> to vector<1x8x8xf32>
    %63 = tpu.concatenate %59, %60, %61, %62 in 0 : vector<1x8x8xf32>, vector<1x8x8xf32>, vector<1x8x8xf32>, vector<1x8x8xf32> -> vector<4x8x8xf32>
    %64 = vector.extract_strided_slice %45 {offsets = [0, 0], sizes = [8, 8], strides = [1, 1]} : vector<8x32xf32> to vector<8x8xf32>
    %65 = vector.extract_strided_slice %45 {offsets = [0, 8], sizes = [8, 8], strides = [1, 1]} : vector<8x32xf32> to vector<8x8xf32>
    %66 = vector.extract_strided_slice %45 {offsets = [0, 16], sizes = [8, 8], strides = [1, 1]} : vector<8x32xf32> to vector<8x8xf32>
    %67 = vector.extract_strided_slice %45 {offsets = [0, 24], sizes = [8, 8], strides = [1, 1]} : vector<8x32xf32> to vector<8x8xf32>
    %68 = vector.shape_cast %64 : vector<8x8xf32> to vector<1x8x8xf32>
    %69 = vector.shape_cast %65 : vector<8x8xf32> to vector<1x8x8xf32>
    %70 = vector.shape_cast %66 : vector<8x8xf32> to vector<1x8x8xf32>
    %71 = vector.shape_cast %67 : vector<8x8xf32> to vector<1x8x8xf32>
    %72 = tpu.concatenate %68, %69, %70, %71 in 0 : vector<1x8x8xf32>, vector<1x8x8xf32>, vector<1x8x8xf32>, vector<1x8x8xf32> -> vector<4x8x8xf32>
    "tpu.trace_start"() <{level = 10 : i32, message = "hqc,hkc->hqk"}> : () -> ()
    %cst_22 = arith.constant dense<0.000000e+00> : vector<4x8x8xf32>
    %73 = tpu.matmul %54, %63, %cst_22 {dimension_numbers = #tpu.dot_dimension_numbers<[2], [2], [1], [1], [0, 0, 0, 1, 1, 1], [0], [0]>} : vector<4x8x8xf32>, vector<4x8x8xf32>, vector<4x8x8xf32> -> vector<4x8x8xf32>
    "tpu.trace_stop"() : () -> ()
    %cst_23 = arith.constant 0.353553385 : f32
    %74 = vector.broadcast %cst_23 : f32 to vector<4x8x8xf32>
    %75 = arith.mulf %73, %74 : vector<4x8x8xf32>
    %76 = vector.shape_cast %7 : vector<8x8xf32> to vector<1x8x8xf32>
    %77 = vector.broadcast %76 : vector<1x8x8xf32> to vector<4x8x8xf32>
    %78 = arith.addf %75, %77 : vector<4x8x8xf32>
    %cst_24 = arith.constant dense<0xFF800000> : vector<4x8xf32>
    %79 = vector.multi_reduction <maximumf>, %78, %cst_24 [2] : vector<4x8x8xf32> to vector<4x8xf32>
    %80 = vector.shape_cast %79 : vector<4x8xf32> to vector<4x8x1xf32>
    %81 = vector.broadcast %80 : vector<4x8x1xf32> to vector<4x8x8xf32>
    %82 = arith.subf %78, %81 : vector<4x8x8xf32>
    %83 = math.exp %82 : vector<4x8x8xf32>
    %cst_25 = arith.constant dense<0.000000e+00> : vector<4x8xf32>
    %84 = vector.multi_reduction <add>, %83, %cst_25 [2] : vector<4x8x8xf32> to vector<4x8xf32>
    %85 = vector.shape_cast %84 : vector<4x8xf32> to vector<4x8x1xf32>
    %86 = tpu.reciprocal %85 {approx = true} : vector<4x8x1xf32> -> vector<4x8x1xf32>
    %87 = vector.broadcast %86 : vector<4x8x1xf32> to vector<4x8x8xf32>
    %88 = arith.mulf %83, %87 : vector<4x8x8xf32>
    "tpu.trace_start"() <{level = 10 : i32, message = "hqk,hkc->hqc"}> : () -> ()
    %cst_26 = arith.constant dense<0.000000e+00> : vector<4x8x8xf32>
    %89 = tpu.matmul %88, %72, %cst_26 {dimension_numbers = #tpu.dot_dimension_numbers<[2], [1], [1], [2], [0, 0, 0, 1, 1, 2], [0], [0]>} : vector<4x8x8xf32>, vector<4x8x8xf32>, vector<4x8x8xf32> -> vector<4x8x8xf32>
    "tpu.trace_stop"() : () -> ()
    %90 = vector.extract_strided_slice %89 {offsets = [0, 0, 0], sizes = [1, 8, 8], strides = [1, 1, 1]} : vector<4x8x8xf32> to vector<1x8x8xf32>
    %91 = vector.shape_cast %90 : vector<1x8x8xf32> to vector<8x8xf32>
    %92 = vector.extract_strided_slice %89 {offsets = [1, 0, 0], sizes = [1, 8, 8], strides = [1, 1, 1]} : vector<4x8x8xf32> to vector<1x8x8xf32>
    %93 = vector.shape_cast %92 : vector<1x8x8xf32> to vector<8x8xf32>
    %94 = vector.extract_strided_slice %89 {offsets = [2, 0, 0], sizes = [1, 8, 8], strides = [1, 1, 1]} : vector<4x8x8xf32> to vector<1x8x8xf32>
    %95 = vector.shape_cast %94 : vector<1x8x8xf32> to vector<8x8xf32>
    %96 = vector.extract_strided_slice %89 {offsets = [3, 0, 0], sizes = [1, 8, 8], strides = [1, 1, 1]} : vector<4x8x8xf32> to vector<1x8x8xf32>
    %97 = vector.shape_cast %96 : vector<1x8x8xf32> to vector<8x8xf32>
    %98 = tpu.concatenate %91, %93, %95, %97 in 1 : vector<8x8xf32>, vector<8x8xf32>, vector<8x8xf32>, vector<8x8xf32> -> vector<8x32xf32>
    %c0_27 = arith.constant 0 : index
    %c0_28 = arith.constant 0 : index
    %c0_29 = arith.constant 0 : index
    %99 = vector.load %arg8[%c0_27, %c0_28, %c0_29] : memref<4x32x32xf32, #tpu.memory_space<vmem>>, vector<1x32x32xf32>
    %100 = vector.shape_cast %99 : vector<1x32x32xf32> to vector<32x32xf32>
    %cst_30 = arith.constant dense<0.000000e+00> : vector<8x32xf32>
    %101 = tpu.matmul %98, %100, %cst_30 {dimension_numbers = #tpu.dot_dimension_numbers<[1], [0], [0], [1], [0, 0, 1, 1], [], []>} : vector<8x32xf32>, vector<32x32xf32>, vector<8x32xf32> -> vector<8x32xf32>
    %c0_31 = arith.constant 0 : index
    %c0_32 = arith.constant 0 : index
    %c0_33 = arith.constant 0 : index
    %102 = vector.load %arg9[%c0_31, %c0_32, %c0_33] : memref<4x1x32xf32, #tpu.memory_space<vmem>>, vector<1x1x32xf32>
    %103 = vector.shape_cast %102 : vector<1x1x32xf32> to vector<1x32xf32>
    %104 = vector.broadcast %103 : vector<1x32xf32> to vector<8x32xf32>
    %105 = arith.addf %101, %104 : vector<8x32xf32>
    %106 = arith.addf %2, %105 : vector<8x32xf32>
    %cst_34 = arith.constant dense<0.000000e+00> : vector<8xf32>
    %107 = vector.multi_reduction <add>, %106, %cst_34 [1] : vector<8x32xf32> to vector<8xf32>
    %108 = vector.shape_cast %107 : vector<8xf32> to vector<8x1xf32>
    %cst_35 = arith.constant 3.200000e+01 : f32
    %109 = vector.broadcast %cst_35 : f32 to vector<8x1xf32>
    %110 = arith.divf %108, %109 : vector<8x1xf32>
    %111 = vector.broadcast %110 : vector<8x1xf32> to vector<8x32xf32>
    %112 = arith.subf %106, %111 : vector<8x32xf32>
    %113 = arith.mulf %112, %112 : vector<8x32xf32>
    %cst_36 = arith.constant dense<0.000000e+00> : vector<8xf32>
    %114 = vector.multi_reduction <add>, %113, %cst_36 [1] : vector<8x32xf32> to vector<8xf32>
    %115 = vector.shape_cast %114 : vector<8xf32> to vector<8x1xf32>
    %cst_37 = arith.constant 3.200000e+01 : f32
    %116 = vector.broadcast %cst_37 : f32 to vector<8x1xf32>
    %117 = arith.divf %115, %116 : vector<8x1xf32>
    %118 = vector.broadcast %110 : vector<8x1xf32> to vector<8x32xf32>
    %119 = arith.subf %106, %118 : vector<8x32xf32>
    %cst_38 = arith.constant 9.99999974E-6 : f32
    %120 = vector.broadcast %cst_38 : f32 to vector<8x1xf32>
    %121 = arith.addf %117, %120 : vector<8x1xf32>
    %122 = math.rsqrt %121 : vector<8x1xf32>
    %123 = vector.broadcast %122 : vector<8x1xf32> to vector<8x32xf32>
    %124 = arith.mulf %119, %123 : vector<8x32xf32>
    %c1 = arith.constant 1 : index
    %c0_39 = arith.constant 0 : index
    %c0_40 = arith.constant 0 : index
    %125 = vector.load %arg4[%c1, %c0_39, %c0_40] : memref<5x1x32xf32, #tpu.memory_space<vmem>>, vector<1x1x32xf32>
    %126 = vector.shape_cast %125 : vector<1x1x32xf32> to vector<1x32xf32>
    %127 = vector.broadcast %126 : vector<1x32xf32> to vector<8x32xf32>
    %128 = arith.mulf %124, %127 : vector<8x32xf32>
    %c1_41 = arith.constant 1 : index
    %c0_42 = arith.constant 0 : index
    %c0_43 = arith.constant 0 : index
    %129 = vector.load %arg5[%c1_41, %c0_42, %c0_43] : memref<5x1x32xf32, #tpu.memory_space<vmem>>, vector<1x1x32xf32>
    %130 = vector.shape_cast %129 : vector<1x1x32xf32> to vector<1x32xf32>
    %131 = vector.broadcast %130 : vector<1x32xf32> to vector<8x32xf32>
    %132 = arith.addf %128, %131 : vector<8x32xf32>
    %c1_44 = arith.constant 1 : index
    %c0_45 = arith.constant 0 : index
    %c0_46 = arith.constant 0 : index
    %133 = vector.load %arg6[%c1_44, %c0_45, %c0_46] : memref<4x32x96xf32, #tpu.memory_space<vmem>>, vector<1x32x96xf32>
    %134 = vector.shape_cast %133 : vector<1x32x96xf32> to vector<32x96xf32>
    %c1_47 = arith.constant 1 : index
    %c0_48 = arith.constant 0 : index
    %c0_49 = arith.constant 0 : index
    %135 = vector.load %arg7[%c1_47, %c0_48, %c0_49] : memref<4x1x96xf32, #tpu.memory_space<vmem>>, vector<1x1x96xf32>
    %136 = vector.shape_cast %135 : vector<1x1x96xf32> to vector<1x96xf32>
    %cst_50 = arith.constant dense<0.000000e+00> : vector<8x96xf32>
    %137 = tpu.matmul %132, %134, %cst_50 {dimension_numbers = #tpu.dot_dimension_numbers<[1], [0], [0], [1], [0, 0, 1, 1], [], []>} : vector<8x32xf32>, vector<32x96xf32>, vector<8x96xf32> -> vector<8x96xf32>
    %138 = vector.broadcast %136 : vector<1x96xf32> to vector<8x96xf32>
    %139 = arith.addf %137, %138 : vector<8x96xf32>
    %140 = vector.extract_strided_slice %139 {offsets = [0, 0], sizes = [8, 32], strides = [1, 1]} : vector<8x96xf32> to vector<8x32xf32>
    %141 = vector.extract_strided_slice %139 {offsets = [0, 32], sizes = [8, 32], strides = [1, 1]} : vector<8x96xf32> to vector<8x32xf32>
    %142 = vector.extract_strided_slice %139 {offsets = [0, 64], sizes = [8, 32], strides = [1, 1]} : vector<8x96xf32> to vector<8x32xf32>
    %143 = vector.extract_strided_slice %140 {offsets = [0, 0], sizes = [8, 8], strides = [1, 1]} : vector<8x32xf32> to vector<8x8xf32>
    %144 = vector.extract_strided_slice %140 {offsets = [0, 8], sizes = [8, 8], strides = [1, 1]} : vector<8x32xf32> to vector<8x8xf32>
    %145 = vector.extract_strided_slice %140 {offsets = [0, 16], sizes = [8, 8], strides = [1, 1]} : vector<8x32xf32> to vector<8x8xf32>
    %146 = vector.extract_strided_slice %140 {offsets = [0, 24], sizes = [8, 8], strides = [1, 1]} : vector<8x32xf32> to vector<8x8xf32>
    %147 = vector.shape_cast %143 : vector<8x8xf32> to vector<1x8x8xf32>
    %148 = vector.shape_cast %144 : vector<8x8xf32> to vector<1x8x8xf32>
    %149 = vector.shape_cast %145 : vector<8x8xf32> to vector<1x8x8xf32>
    %150 = vector.shape_cast %146 : vector<8x8xf32> to vector<1x8x8xf32>
    %151 = tpu.concatenate %147, %148, %149, %150 in 0 : vector<1x8x8xf32>, vector<1x8x8xf32>, vector<1x8x8xf32>, vector<1x8x8xf32> -> vector<4x8x8xf32>
    %152 = vector.extract_strided_slice %141 {offsets = [0, 0], sizes = [8, 8], strides = [1, 1]} : vector<8x32xf32> to vector<8x8xf32>
    %153 = vector.extract_strided_slice %141 {offsets = [0, 8], sizes = [8, 8], strides = [1, 1]} : vector<8x32xf32> to vector<8x8xf32>
    %154 = vector.extract_strided_slice %141 {offsets = [0, 16], sizes = [8, 8], strides = [1, 1]} : vector<8x32xf32> to vector<8x8xf32>
    %155 = vector.extract_strided_slice %141 {offsets = [0, 24], sizes = [8, 8], strides = [1, 1]} : vector<8x32xf32> to vector<8x8xf32>
    %156 = vector.shape_cast %152 : vector<8x8xf32> to vector<1x8x8xf32>
    %157 = vector.shape_cast %153 : vector<8x8xf32> to vector<1x8x8xf32>
    %158 = vector.shape_cast %154 : vector<8x8xf32> to vector<1x8x8xf32>
    %159 = vector.shape_cast %155 : vector<8x8xf32> to vector<1x8x8xf32>
    %160 = tpu.concatenate %156, %157, %158, %159 in 0 : vector<1x8x8xf32>, vector<1x8x8xf32>, vector<1x8x8xf32>, vector<1x8x8xf32> -> vector<4x8x8xf32>
    %161 = vector.extract_strided_slice %142 {offsets = [0, 0], sizes = [8, 8], strides = [1, 1]} : vector<8x32xf32> to vector<8x8xf32>
    %162 = vector.extract_strided_slice %142 {offsets = [0, 8], sizes = [8, 8], strides = [1, 1]} : vector<8x32xf32> to vector<8x8xf32>
    %163 = vector.extract_strided_slice %142 {offsets = [0, 16], sizes = [8, 8], strides = [1, 1]} : vector<8x32xf32> to vector<8x8xf32>
    %164 = vector.extract_strided_slice %142 {offsets = [0, 24], sizes = [8, 8], strides = [1, 1]} : vector<8x32xf32> to vector<8x8xf32>
    %165 = vector.shape_cast %161 : vector<8x8xf32> to vector<1x8x8xf32>
    %166 = vector.shape_cast %162 : vector<8x8xf32> to vector<1x8x8xf32>
    %167 = vector.shape_cast %163 : vector<8x8xf32> to vector<1x8x8xf32>
    %168 = vector.shape_cast %164 : vector<8x8xf32> to vector<1x8x8xf32>
    %169 = tpu.concatenate %165, %166, %167, %168 in 0 : vector<1x8x8xf32>, vector<1x8x8xf32>, vector<1x8x8xf32>, vector<1x8x8xf32> -> vector<4x8x8xf32>
    "tpu.trace_start"() <{level = 10 : i32, message = "hqc,hkc->hqk"}> : () -> ()
    %cst_51 = arith.constant dense<0.000000e+00> : vector<4x8x8xf32>
    %170 = tpu.matmul %151, %160, %cst_51 {dimension_numbers = #tpu.dot_dimension_numbers<[2], [2], [1], [1], [0, 0, 0, 1, 1, 1], [0], [0]>} : vector<4x8x8xf32>, vector<4x8x8xf32>, vector<4x8x8xf32> -> vector<4x8x8xf32>
    "tpu.trace_stop"() : () -> ()
    %cst_52 = arith.constant 0.353553385 : f32
    %171 = vector.broadcast %cst_52 : f32 to vector<4x8x8xf32>
    %172 = arith.mulf %170, %171 : vector<4x8x8xf32>
    %173 = vector.shape_cast %8 : vector<8x8xf32> to vector<1x8x8xf32>
    %174 = vector.broadcast %173 : vector<1x8x8xf32> to vector<4x8x8xf32>
    %175 = arith.addf %172, %174 : vector<4x8x8xf32>
    %cst_53 = arith.constant dense<0xFF800000> : vector<4x8xf32>
    %176 = vector.multi_reduction <maximumf>, %175, %cst_53 [2] : vector<4x8x8xf32> to vector<4x8xf32>
    %177 = vector.shape_cast %176 : vector<4x8xf32> to vector<4x8x1xf32>
    %178 = vector.broadcast %177 : vector<4x8x1xf32> to vector<4x8x8xf32>
    %179 = arith.subf %175, %178 : vector<4x8x8xf32>
    %180 = math.exp %179 : vector<4x8x8xf32>
    %cst_54 = arith.constant dense<0.000000e+00> : vector<4x8xf32>
    %181 = vector.multi_reduction <add>, %180, %cst_54 [2] : vector<4x8x8xf32> to vector<4x8xf32>
    %182 = vector.shape_cast %181 : vector<4x8xf32> to vector<4x8x1xf32>
    %183 = tpu.reciprocal %182 {approx = true} : vector<4x8x1xf32> -> vector<4x8x1xf32>
    %184 = vector.broadcast %183 : vector<4x8x1xf32> to vector<4x8x8xf32>
    %185 = arith.mulf %180, %184 : vector<4x8x8xf32>
    "tpu.trace_start"() <{level = 10 : i32, message = "hqk,hkc->hqc"}> : () -> ()
    %cst_55 = arith.constant dense<0.000000e+00> : vector<4x8x8xf32>
    %186 = tpu.matmul %185, %169, %cst_55 {dimension_numbers = #tpu.dot_dimension_numbers<[2], [1], [1], [2], [0, 0, 0, 1, 1, 2], [0], [0]>} : vector<4x8x8xf32>, vector<4x8x8xf32>, vector<4x8x8xf32> -> vector<4x8x8xf32>
    "tpu.trace_stop"() : () -> ()
    %187 = vector.extract_strided_slice %186 {offsets = [0, 0, 0], sizes = [1, 8, 8], strides = [1, 1, 1]} : vector<4x8x8xf32> to vector<1x8x8xf32>
    %188 = vector.shape_cast %187 : vector<1x8x8xf32> to vector<8x8xf32>
    %189 = vector.extract_strided_slice %186 {offsets = [1, 0, 0], sizes = [1, 8, 8], strides = [1, 1, 1]} : vector<4x8x8xf32> to vector<1x8x8xf32>
    %190 = vector.shape_cast %189 : vector<1x8x8xf32> to vector<8x8xf32>
    %191 = vector.extract_strided_slice %186 {offsets = [2, 0, 0], sizes = [1, 8, 8], strides = [1, 1, 1]} : vector<4x8x8xf32> to vector<1x8x8xf32>
    %192 = vector.shape_cast %191 : vector<1x8x8xf32> to vector<8x8xf32>
    %193 = vector.extract_strided_slice %186 {offsets = [3, 0, 0], sizes = [1, 8, 8], strides = [1, 1, 1]} : vector<4x8x8xf32> to vector<1x8x8xf32>
    %194 = vector.shape_cast %193 : vector<1x8x8xf32> to vector<8x8xf32>
    %195 = tpu.concatenate %188, %190, %192, %194 in 1 : vector<8x8xf32>, vector<8x8xf32>, vector<8x8xf32>, vector<8x8xf32> -> vector<8x32xf32>
    %c1_56 = arith.constant 1 : index
    %c0_57 = arith.constant 0 : index
    %c0_58 = arith.constant 0 : index
    %196 = vector.load %arg8[%c1_56, %c0_57, %c0_58] : memref<4x32x32xf32, #tpu.memory_space<vmem>>, vector<1x32x32xf32>
    %197 = vector.shape_cast %196 : vector<1x32x32xf32> to vector<32x32xf32>
    %cst_59 = arith.constant dense<0.000000e+00> : vector<8x32xf32>
    %198 = tpu.matmul %195, %197, %cst_59 {dimension_numbers = #tpu.dot_dimension_numbers<[1], [0], [0], [1], [0, 0, 1, 1], [], []>} : vector<8x32xf32>, vector<32x32xf32>, vector<8x32xf32> -> vector<8x32xf32>
    %c1_60 = arith.constant 1 : index
    %c0_61 = arith.constant 0 : index
    %c0_62 = arith.constant 0 : index
    %199 = vector.load %arg9[%c1_60, %c0_61, %c0_62] : memref<4x1x32xf32, #tpu.memory_space<vmem>>, vector<1x1x32xf32>
    %200 = vector.shape_cast %199 : vector<1x1x32xf32> to vector<1x32xf32>
    %201 = vector.broadcast %200 : vector<1x32xf32> to vector<8x32xf32>
    %202 = arith.addf %198, %201 : vector<8x32xf32>
    %203 = arith.addf %106, %202 : vector<8x32xf32>
    %cst_63 = arith.constant dense<0.000000e+00> : vector<8xf32>
    %204 = vector.multi_reduction <add>, %203, %cst_63 [1] : vector<8x32xf32> to vector<8xf32>
    %205 = vector.shape_cast %204 : vector<8xf32> to vector<8x1xf32>
    %cst_64 = arith.constant 3.200000e+01 : f32
    %206 = vector.broadcast %cst_64 : f32 to vector<8x1xf32>
    %207 = arith.divf %205, %206 : vector<8x1xf32>
    %208 = vector.broadcast %207 : vector<8x1xf32> to vector<8x32xf32>
    %209 = arith.subf %203, %208 : vector<8x32xf32>
    %210 = arith.mulf %209, %209 : vector<8x32xf32>
    %cst_65 = arith.constant dense<0.000000e+00> : vector<8xf32>
    %211 = vector.multi_reduction <add>, %210, %cst_65 [1] : vector<8x32xf32> to vector<8xf32>
    %212 = vector.shape_cast %211 : vector<8xf32> to vector<8x1xf32>
    %cst_66 = arith.constant 3.200000e+01 : f32
    %213 = vector.broadcast %cst_66 : f32 to vector<8x1xf32>
    %214 = arith.divf %212, %213 : vector<8x1xf32>
    %215 = vector.broadcast %207 : vector<8x1xf32> to vector<8x32xf32>
    %216 = arith.subf %203, %215 : vector<8x32xf32>
    %cst_67 = arith.constant 9.99999974E-6 : f32
    %217 = vector.broadcast %cst_67 : f32 to vector<8x1xf32>
    %218 = arith.addf %214, %217 : vector<8x1xf32>
    %219 = math.rsqrt %218 : vector<8x1xf32>
    %220 = vector.broadcast %219 : vector<8x1xf32> to vector<8x32xf32>
    %221 = arith.mulf %216, %220 : vector<8x32xf32>
    %c2 = arith.constant 2 : index
    %c0_68 = arith.constant 0 : index
    %c0_69 = arith.constant 0 : index
    %222 = vector.load %arg4[%c2, %c0_68, %c0_69] : memref<5x1x32xf32, #tpu.memory_space<vmem>>, vector<1x1x32xf32>
    %223 = vector.shape_cast %222 : vector<1x1x32xf32> to vector<1x32xf32>
    %224 = vector.broadcast %223 : vector<1x32xf32> to vector<8x32xf32>
    %225 = arith.mulf %221, %224 : vector<8x32xf32>
    %c2_70 = arith.constant 2 : index
    %c0_71 = arith.constant 0 : index
    %c0_72 = arith.constant 0 : index
    %226 = vector.load %arg5[%c2_70, %c0_71, %c0_72] : memref<5x1x32xf32, #tpu.memory_space<vmem>>, vector<1x1x32xf32>
    %227 = vector.shape_cast %226 : vector<1x1x32xf32> to vector<1x32xf32>
    %228 = vector.broadcast %227 : vector<1x32xf32> to vector<8x32xf32>
    %229 = arith.addf %225, %228 : vector<8x32xf32>
    %c2_73 = arith.constant 2 : index
    %c0_74 = arith.constant 0 : index
    %c0_75 = arith.constant 0 : index
    %230 = vector.load %arg6[%c2_73, %c0_74, %c0_75] : memref<4x32x96xf32, #tpu.memory_space<vmem>>, vector<1x32x96xf32>
    %231 = vector.shape_cast %230 : vector<1x32x96xf32> to vector<32x96xf32>
    %c2_76 = arith.constant 2 : index
    %c0_77 = arith.constant 0 : index
    %c0_78 = arith.constant 0 : index
    %232 = vector.load %arg7[%c2_76, %c0_77, %c0_78] : memref<4x1x96xf32, #tpu.memory_space<vmem>>, vector<1x1x96xf32>
    %233 = vector.shape_cast %232 : vector<1x1x96xf32> to vector<1x96xf32>
    %234 = vector.extract_strided_slice %231 {offsets = [0, 0], sizes = [32, 32], strides = [1, 1]} : vector<32x96xf32> to vector<32x32xf32>
    %cst_79 = arith.constant dense<0.000000e+00> : vector<8x32xf32>
    %235 = tpu.matmul %229, %234, %cst_79 {dimension_numbers = #tpu.dot_dimension_numbers<[1], [0], [0], [1], [0, 0, 1, 1], [], []>} : vector<8x32xf32>, vector<32x32xf32>, vector<8x32xf32> -> vector<8x32xf32>
    %236 = vector.extract_strided_slice %233 {offsets = [0, 0], sizes = [1, 32], strides = [1, 1]} : vector<1x96xf32> to vector<1x32xf32>
    %237 = vector.broadcast %236 : vector<1x32xf32> to vector<8x32xf32>
    %238 = arith.addf %235, %237 : vector<8x32xf32>
    %239 = vector.extract_strided_slice %231 {offsets = [0, 32], sizes = [32, 64], strides = [1, 1]} : vector<32x96xf32> to vector<32x64xf32>
    %cst_80 = arith.constant dense<0.000000e+00> : vector<10x64xf32>
    %240 = tpu.matmul %3, %239, %cst_80 {dimension_numbers = #tpu.dot_dimension_numbers<[1], [0], [0], [1], [0, 0, 1, 1], [], []>} : vector<10x32xf32>, vector<32x64xf32>, vector<10x64xf32> -> vector<10x64xf32>
    %241 = vector.extract_strided_slice %233 {offsets = [0, 32], sizes = [1, 64], strides = [1, 1]} : vector<1x96xf32> to vector<1x64xf32>
    %242 = vector.broadcast %241 : vector<1x64xf32> to vector<10x64xf32>
    %243 = arith.addf %240, %242 : vector<10x64xf32>
    %244 = vector.extract_strided_slice %243 {offsets = [0, 0], sizes = [10, 32], strides = [1, 1]} : vector<10x64xf32> to vector<10x32xf32>
    %245 = vector.extract_strided_slice %243 {offsets = [0, 32], sizes = [10, 32], strides = [1, 1]} : vector<10x64xf32> to vector<10x32xf32>
    %246 = vector.extract_strided_slice %238 {offsets = [0, 0], sizes = [8, 8], strides = [1, 1]} : vector<8x32xf32> to vector<8x8xf32>
    %247 = vector.extract_strided_slice %238 {offsets = [0, 8], sizes = [8, 8], strides = [1, 1]} : vector<8x32xf32> to vector<8x8xf32>
    %248 = vector.extract_strided_slice %238 {offsets = [0, 16], sizes = [8, 8], strides = [1, 1]} : vector<8x32xf32> to vector<8x8xf32>
    %249 = vector.extract_strided_slice %238 {offsets = [0, 24], sizes = [8, 8], strides = [1, 1]} : vector<8x32xf32> to vector<8x8xf32>
    %250 = vector.shape_cast %246 : vector<8x8xf32> to vector<1x8x8xf32>
    %251 = vector.shape_cast %247 : vector<8x8xf32> to vector<1x8x8xf32>
    %252 = vector.shape_cast %248 : vector<8x8xf32> to vector<1x8x8xf32>
    %253 = vector.shape_cast %249 : vector<8x8xf32> to vector<1x8x8xf32>
    %254 = tpu.concatenate %250, %251, %252, %253 in 0 : vector<1x8x8xf32>, vector<1x8x8xf32>, vector<1x8x8xf32>, vector<1x8x8xf32> -> vector<4x8x8xf32>
    %255 = vector.extract_strided_slice %244 {offsets = [0, 0], sizes = [10, 8], strides = [1, 1]} : vector<10x32xf32> to vector<10x8xf32>
    %256 = vector.extract_strided_slice %244 {offsets = [0, 8], sizes = [10, 8], strides = [1, 1]} : vector<10x32xf32> to vector<10x8xf32>
    %257 = vector.extract_strided_slice %244 {offsets = [0, 16], sizes = [10, 8], strides = [1, 1]} : vector<10x32xf32> to vector<10x8xf32>
    %258 = vector.extract_strided_slice %244 {offsets = [0, 24], sizes = [10, 8], strides = [1, 1]} : vector<10x32xf32> to vector<10x8xf32>
    %259 = vector.shape_cast %255 : vector<10x8xf32> to vector<1x10x8xf32>
    %260 = vector.shape_cast %256 : vector<10x8xf32> to vector<1x10x8xf32>
    %261 = vector.shape_cast %257 : vector<10x8xf32> to vector<1x10x8xf32>
    %262 = vector.shape_cast %258 : vector<10x8xf32> to vector<1x10x8xf32>
    %263 = tpu.concatenate %259, %260, %261, %262 in 0 : vector<1x10x8xf32>, vector<1x10x8xf32>, vector<1x10x8xf32>, vector<1x10x8xf32> -> vector<4x10x8xf32>
    %264 = vector.extract_strided_slice %245 {offsets = [0, 0], sizes = [10, 8], strides = [1, 1]} : vector<10x32xf32> to vector<10x8xf32>
    %265 = vector.extract_strided_slice %245 {offsets = [0, 8], sizes = [10, 8], strides = [1, 1]} : vector<10x32xf32> to vector<10x8xf32>
    %266 = vector.extract_strided_slice %245 {offsets = [0, 16], sizes = [10, 8], strides = [1, 1]} : vector<10x32xf32> to vector<10x8xf32>
    %267 = vector.extract_strided_slice %245 {offsets = [0, 24], sizes = [10, 8], strides = [1, 1]} : vector<10x32xf32> to vector<10x8xf32>
    %268 = vector.shape_cast %264 : vector<10x8xf32> to vector<1x10x8xf32>
    %269 = vector.shape_cast %265 : vector<10x8xf32> to vector<1x10x8xf32>
    %270 = vector.shape_cast %266 : vector<10x8xf32> to vector<1x10x8xf32>
    %271 = vector.shape_cast %267 : vector<10x8xf32> to vector<1x10x8xf32>
    %272 = tpu.concatenate %268, %269, %270, %271 in 0 : vector<1x10x8xf32>, vector<1x10x8xf32>, vector<1x10x8xf32>, vector<1x10x8xf32> -> vector<4x10x8xf32>
    "tpu.trace_start"() <{level = 10 : i32, message = "hqc,hkc->hqk"}> : () -> ()
    %cst_81 = arith.constant dense<0.000000e+00> : vector<4x8x10xf32>
    %273 = tpu.matmul %254, %263, %cst_81 {dimension_numbers = #tpu.dot_dimension_numbers<[2], [2], [1], [1], [0, 0, 0, 1, 1, 1], [0], [0]>} : vector<4x8x8xf32>, vector<4x10x8xf32>, vector<4x8x10xf32> -> vector<4x8x10xf32>
    "tpu.trace_stop"() : () -> ()
    %cst_82 = arith.constant 0.353553385 : f32
    %274 = vector.broadcast %cst_82 : f32 to vector<4x8x10xf32>
    %275 = arith.mulf %273, %274 : vector<4x8x10xf32>
    %276 = vector.shape_cast %9 : vector<8x10xf32> to vector<1x8x10xf32>
    %277 = vector.broadcast %276 : vector<1x8x10xf32> to vector<4x8x10xf32>
    %278 = arith.addf %275, %277 : vector<4x8x10xf32>
    %cst_83 = arith.constant dense<0xFF800000> : vector<4x8xf32>
    %279 = vector.multi_reduction <maximumf>, %278, %cst_83 [2] : vector<4x8x10xf32> to vector<4x8xf32>
    %280 = vector.shape_cast %279 : vector<4x8xf32> to vector<4x8x1xf32>
    %281 = vector.broadcast %280 : vector<4x8x1xf32> to vector<4x8x10xf32>
    %282 = arith.subf %278, %281 : vector<4x8x10xf32>
    %283 = math.exp %282 : vector<4x8x10xf32>
    %cst_84 = arith.constant dense<0.000000e+00> : vector<4x8xf32>
    %284 = vector.multi_reduction <add>, %283, %cst_84 [2] : vector<4x8x10xf32> to vector<4x8xf32>
    %285 = vector.shape_cast %284 : vector<4x8xf32> to vector<4x8x1xf32>
    %286 = tpu.reciprocal %285 {approx = true} : vector<4x8x1xf32> -> vector<4x8x1xf32>
    %287 = vector.broadcast %286 : vector<4x8x1xf32> to vector<4x8x10xf32>
    %288 = arith.mulf %283, %287 : vector<4x8x10xf32>
    "tpu.trace_start"() <{level = 10 : i32, message = "hqk,hkc->hqc"}> : () -> ()
    %cst_85 = arith.constant dense<0.000000e+00> : vector<4x8x8xf32>
    %289 = tpu.matmul %288, %272, %cst_85 {dimension_numbers = #tpu.dot_dimension_numbers<[2], [1], [1], [2], [0, 0, 0, 1, 1, 2], [0], [0]>} : vector<4x8x10xf32>, vector<4x10x8xf32>, vector<4x8x8xf32> -> vector<4x8x8xf32>
    "tpu.trace_stop"() : () -> ()
    %290 = vector.extract_strided_slice %289 {offsets = [0, 0, 0], sizes = [1, 8, 8], strides = [1, 1, 1]} : vector<4x8x8xf32> to vector<1x8x8xf32>
    %291 = vector.shape_cast %290 : vector<1x8x8xf32> to vector<8x8xf32>
    %292 = vector.extract_strided_slice %289 {offsets = [1, 0, 0], sizes = [1, 8, 8], strides = [1, 1, 1]} : vector<4x8x8xf32> to vector<1x8x8xf32>
    %293 = vector.shape_cast %292 : vector<1x8x8xf32> to vector<8x8xf32>
    %294 = vector.extract_strided_slice %289 {offsets = [2, 0, 0], sizes = [1, 8, 8], strides = [1, 1, 1]} : vector<4x8x8xf32> to vector<1x8x8xf32>
    %295 = vector.shape_cast %294 : vector<1x8x8xf32> to vector<8x8xf32>
    %296 = vector.extract_strided_slice %289 {offsets = [3, 0, 0], sizes = [1, 8, 8], strides = [1, 1, 1]} : vector<4x8x8xf32> to vector<1x8x8xf32>
    %297 = vector.shape_cast %296 : vector<1x8x8xf32> to vector<8x8xf32>
    %298 = tpu.concatenate %291, %293, %295, %297 in 1 : vector<8x8xf32>, vector<8x8xf32>, vector<8x8xf32>, vector<8x8xf32> -> vector<8x32xf32>
    %c2_86 = arith.constant 2 : index
    %c0_87 = arith.constant 0 : index
    %c0_88 = arith.constant 0 : index
    %299 = vector.load %arg8[%c2_86, %c0_87, %c0_88] : memref<4x32x32xf32, #tpu.memory_space<vmem>>, vector<1x32x32xf32>
    %300 = vector.shape_cast %299 : vector<1x32x32xf32> to vector<32x32xf32>
    %cst_89 = arith.constant dense<0.000000e+00> : vector<8x32xf32>
    %301 = tpu.matmul %298, %300, %cst_89 {dimension_numbers = #tpu.dot_dimension_numbers<[1], [0], [0], [1], [0, 0, 1, 1], [], []>} : vector<8x32xf32>, vector<32x32xf32>, vector<8x32xf32> -> vector<8x32xf32>
    %c2_90 = arith.constant 2 : index
    %c0_91 = arith.constant 0 : index
    %c0_92 = arith.constant 0 : index
    %302 = vector.load %arg9[%c2_90, %c0_91, %c0_92] : memref<4x1x32xf32, #tpu.memory_space<vmem>>, vector<1x1x32xf32>
    %303 = vector.shape_cast %302 : vector<1x1x32xf32> to vector<1x32xf32>
    %304 = vector.broadcast %303 : vector<1x32xf32> to vector<8x32xf32>
    %305 = arith.addf %301, %304 : vector<8x32xf32>
    %cst_93 = arith.constant dense<0.000000e+00> : vector<8x10xf32>
    %306 = vector.multi_reduction <add>, %288, %cst_93 [0] : vector<4x8x10xf32> to vector<8x10xf32>
    %cst_94 = arith.constant 4.000000e+00 : f32
    %307 = vector.broadcast %cst_94 : f32 to vector<8x10xf32>
    %308 = arith.divf %306, %307 : vector<8x10xf32>
    %309 = arith.addf %203, %305 : vector<8x32xf32>
    %cst_95 = arith.constant dense<0.000000e+00> : vector<8xf32>
    %310 = vector.multi_reduction <add>, %309, %cst_95 [1] : vector<8x32xf32> to vector<8xf32>
    %311 = vector.shape_cast %310 : vector<8xf32> to vector<8x1xf32>
    %cst_96 = arith.constant 3.200000e+01 : f32
    %312 = vector.broadcast %cst_96 : f32 to vector<8x1xf32>
    %313 = arith.divf %311, %312 : vector<8x1xf32>
    %314 = vector.broadcast %313 : vector<8x1xf32> to vector<8x32xf32>
    %315 = arith.subf %309, %314 : vector<8x32xf32>
    %316 = arith.mulf %315, %315 : vector<8x32xf32>
    %cst_97 = arith.constant dense<0.000000e+00> : vector<8xf32>
    %317 = vector.multi_reduction <add>, %316, %cst_97 [1] : vector<8x32xf32> to vector<8xf32>
    %318 = vector.shape_cast %317 : vector<8xf32> to vector<8x1xf32>
    %cst_98 = arith.constant 3.200000e+01 : f32
    %319 = vector.broadcast %cst_98 : f32 to vector<8x1xf32>
    %320 = arith.divf %318, %319 : vector<8x1xf32>
    %321 = vector.broadcast %313 : vector<8x1xf32> to vector<8x32xf32>
    %322 = arith.subf %309, %321 : vector<8x32xf32>
    %cst_99 = arith.constant 9.99999974E-6 : f32
    %323 = vector.broadcast %cst_99 : f32 to vector<8x1xf32>
    %324 = arith.addf %320, %323 : vector<8x1xf32>
    %325 = math.rsqrt %324 : vector<8x1xf32>
    %326 = vector.broadcast %325 : vector<8x1xf32> to vector<8x32xf32>
    %327 = arith.mulf %322, %326 : vector<8x32xf32>
    %c3 = arith.constant 3 : index
    %c0_100 = arith.constant 0 : index
    %c0_101 = arith.constant 0 : index
    %328 = vector.load %arg4[%c3, %c0_100, %c0_101] : memref<5x1x32xf32, #tpu.memory_space<vmem>>, vector<1x1x32xf32>
    %329 = vector.shape_cast %328 : vector<1x1x32xf32> to vector<1x32xf32>
    %330 = vector.broadcast %329 : vector<1x32xf32> to vector<8x32xf32>
    %331 = arith.mulf %327, %330 : vector<8x32xf32>
    %c3_102 = arith.constant 3 : index
    %c0_103 = arith.constant 0 : index
    %c0_104 = arith.constant 0 : index
    %332 = vector.load %arg5[%c3_102, %c0_103, %c0_104] : memref<5x1x32xf32, #tpu.memory_space<vmem>>, vector<1x1x32xf32>
    %333 = vector.shape_cast %332 : vector<1x1x32xf32> to vector<1x32xf32>
    %334 = vector.broadcast %333 : vector<1x32xf32> to vector<8x32xf32>
    %335 = arith.addf %331, %334 : vector<8x32xf32>
    %c3_105 = arith.constant 3 : index
    %c0_106 = arith.constant 0 : index
    %c0_107 = arith.constant 0 : index
    %336 = vector.load %arg6[%c3_105, %c0_106, %c0_107] : memref<4x32x96xf32, #tpu.memory_space<vmem>>, vector<1x32x96xf32>
    %337 = vector.shape_cast %336 : vector<1x32x96xf32> to vector<32x96xf32>
    %c3_108 = arith.constant 3 : index
    %c0_109 = arith.constant 0 : index
    %c0_110 = arith.constant 0 : index
    %338 = vector.load %arg7[%c3_108, %c0_109, %c0_110] : memref<4x1x96xf32, #tpu.memory_space<vmem>>, vector<1x1x96xf32>
    %339 = vector.shape_cast %338 : vector<1x1x96xf32> to vector<1x96xf32>
    %340 = vector.extract_strided_slice %337 {offsets = [0, 0], sizes = [32, 32], strides = [1, 1]} : vector<32x96xf32> to vector<32x32xf32>
    %cst_111 = arith.constant dense<0.000000e+00> : vector<8x32xf32>
    %341 = tpu.matmul %335, %340, %cst_111 {dimension_numbers = #tpu.dot_dimension_numbers<[1], [0], [0], [1], [0, 0, 1, 1], [], []>} : vector<8x32xf32>, vector<32x32xf32>, vector<8x32xf32> -> vector<8x32xf32>
    %342 = vector.extract_strided_slice %339 {offsets = [0, 0], sizes = [1, 32], strides = [1, 1]} : vector<1x96xf32> to vector<1x32xf32>
    %343 = vector.broadcast %342 : vector<1x32xf32> to vector<8x32xf32>
    %344 = arith.addf %341, %343 : vector<8x32xf32>
    %345 = vector.extract_strided_slice %337 {offsets = [0, 32], sizes = [32, 64], strides = [1, 1]} : vector<32x96xf32> to vector<32x64xf32>
    %cst_112 = arith.constant dense<0.000000e+00> : vector<10x64xf32>
    %346 = tpu.matmul %4, %345, %cst_112 {dimension_numbers = #tpu.dot_dimension_numbers<[1], [0], [0], [1], [0, 0, 1, 1], [], []>} : vector<10x32xf32>, vector<32x64xf32>, vector<10x64xf32> -> vector<10x64xf32>
    %347 = vector.extract_strided_slice %339 {offsets = [0, 32], sizes = [1, 64], strides = [1, 1]} : vector<1x96xf32> to vector<1x64xf32>
    %348 = vector.broadcast %347 : vector<1x64xf32> to vector<10x64xf32>
    %349 = arith.addf %346, %348 : vector<10x64xf32>
    %350 = vector.extract_strided_slice %349 {offsets = [0, 0], sizes = [10, 32], strides = [1, 1]} : vector<10x64xf32> to vector<10x32xf32>
    %351 = vector.extract_strided_slice %349 {offsets = [0, 32], sizes = [10, 32], strides = [1, 1]} : vector<10x64xf32> to vector<10x32xf32>
    %352 = vector.extract_strided_slice %344 {offsets = [0, 0], sizes = [8, 8], strides = [1, 1]} : vector<8x32xf32> to vector<8x8xf32>
    %353 = vector.extract_strided_slice %344 {offsets = [0, 8], sizes = [8, 8], strides = [1, 1]} : vector<8x32xf32> to vector<8x8xf32>
    %354 = vector.extract_strided_slice %344 {offsets = [0, 16], sizes = [8, 8], strides = [1, 1]} : vector<8x32xf32> to vector<8x8xf32>
    %355 = vector.extract_strided_slice %344 {offsets = [0, 24], sizes = [8, 8], strides = [1, 1]} : vector<8x32xf32> to vector<8x8xf32>
    %356 = vector.shape_cast %352 : vector<8x8xf32> to vector<1x8x8xf32>
    %357 = vector.shape_cast %353 : vector<8x8xf32> to vector<1x8x8xf32>
    %358 = vector.shape_cast %354 : vector<8x8xf32> to vector<1x8x8xf32>
    %359 = vector.shape_cast %355 : vector<8x8xf32> to vector<1x8x8xf32>
    %360 = tpu.concatenate %356, %357, %358, %359 in 0 : vector<1x8x8xf32>, vector<1x8x8xf32>, vector<1x8x8xf32>, vector<1x8x8xf32> -> vector<4x8x8xf32>
    %361 = vector.extract_strided_slice %350 {offsets = [0, 0], sizes = [10, 8], strides = [1, 1]} : vector<10x32xf32> to vector<10x8xf32>
    %362 = vector.extract_strided_slice %350 {offsets = [0, 8], sizes = [10, 8], strides = [1, 1]} : vector<10x32xf32> to vector<10x8xf32>
    %363 = vector.extract_strided_slice %350 {offsets = [0, 16], sizes = [10, 8], strides = [1, 1]} : vector<10x32xf32> to vector<10x8xf32>
    %364 = vector.extract_strided_slice %350 {offsets = [0, 24], sizes = [10, 8], strides = [1, 1]} : vector<10x32xf32> to vector<10x8xf32>
    %365 = vector.shape_cast %361 : vector<10x8xf32> to vector<1x10x8xf32>
    %366 = vector.shape_cast %362 : vector<10x8xf32> to vector<1x10x8xf32>
    %367 = vector.shape_cast %363 : vector<10x8xf32> to vector<1x10x8xf32>
    %368 = vector.shape_cast %364 : vector<10x8xf32> to vector<1x10x8xf32>
    %369 = tpu.concatenate %365, %366, %367, %368 in 0 : vector<1x10x8xf32>, vector<1x10x8xf32>, vector<1x10x8xf32>, vector<1x10x8xf32> -> vector<4x10x8xf32>
    %370 = vector.extract_strided_slice %351 {offsets = [0, 0], sizes = [10, 8], strides = [1, 1]} : vector<10x32xf32> to vector<10x8xf32>
    %371 = vector.extract_strided_slice %351 {offsets = [0, 8], sizes = [10, 8], strides = [1, 1]} : vector<10x32xf32> to vector<10x8xf32>
    %372 = vector.extract_strided_slice %351 {offsets = [0, 16], sizes = [10, 8], strides = [1, 1]} : vector<10x32xf32> to vector<10x8xf32>
    %373 = vector.extract_strided_slice %351 {offsets = [0, 24], sizes = [10, 8], strides = [1, 1]} : vector<10x32xf32> to vector<10x8xf32>
    %374 = vector.shape_cast %370 : vector<10x8xf32> to vector<1x10x8xf32>
    %375 = vector.shape_cast %371 : vector<10x8xf32> to vector<1x10x8xf32>
    %376 = vector.shape_cast %372 : vector<10x8xf32> to vector<1x10x8xf32>
    %377 = vector.shape_cast %373 : vector<10x8xf32> to vector<1x10x8xf32>
    %378 = tpu.concatenate %374, %375, %376, %377 in 0 : vector<1x10x8xf32>, vector<1x10x8xf32>, vector<1x10x8xf32>, vector<1x10x8xf32> -> vector<4x10x8xf32>
    "tpu.trace_start"() <{level = 10 : i32, message = "hqc,hkc->hqk"}> : () -> ()
    %cst_113 = arith.constant dense<0.000000e+00> : vector<4x8x10xf32>
    %379 = tpu.matmul %360, %369, %cst_113 {dimension_numbers = #tpu.dot_dimension_numbers<[2], [2], [1], [1], [0, 0, 0, 1, 1, 1], [0], [0]>} : vector<4x8x8xf32>, vector<4x10x8xf32>, vector<4x8x10xf32> -> vector<4x8x10xf32>
    "tpu.trace_stop"() : () -> ()
    %cst_114 = arith.constant 0.353553385 : f32
    %380 = vector.broadcast %cst_114 : f32 to vector<4x8x10xf32>
    %381 = arith.mulf %379, %380 : vector<4x8x10xf32>
    %382 = vector.shape_cast %9 : vector<8x10xf32> to vector<1x8x10xf32>
    %383 = vector.broadcast %382 : vector<1x8x10xf32> to vector<4x8x10xf32>
    %384 = arith.addf %381, %383 : vector<4x8x10xf32>
    %cst_115 = arith.constant dense<0xFF800000> : vector<4x8xf32>
    %385 = vector.multi_reduction <maximumf>, %384, %cst_115 [2] : vector<4x8x10xf32> to vector<4x8xf32>
    %386 = vector.shape_cast %385 : vector<4x8xf32> to vector<4x8x1xf32>
    %387 = vector.broadcast %386 : vector<4x8x1xf32> to vector<4x8x10xf32>
    %388 = arith.subf %384, %387 : vector<4x8x10xf32>
    %389 = math.exp %388 : vector<4x8x10xf32>
    %cst_116 = arith.constant dense<0.000000e+00> : vector<4x8xf32>
    %390 = vector.multi_reduction <add>, %389, %cst_116 [2] : vector<4x8x10xf32> to vector<4x8xf32>
    %391 = vector.shape_cast %390 : vector<4x8xf32> to vector<4x8x1xf32>
    %392 = tpu.reciprocal %391 {approx = true} : vector<4x8x1xf32> -> vector<4x8x1xf32>
    %393 = vector.broadcast %392 : vector<4x8x1xf32> to vector<4x8x10xf32>
    %394 = arith.mulf %389, %393 : vector<4x8x10xf32>
    "tpu.trace_start"() <{level = 10 : i32, message = "hqk,hkc->hqc"}> : () -> ()
    %cst_117 = arith.constant dense<0.000000e+00> : vector<4x8x8xf32>
    %395 = tpu.matmul %394, %378, %cst_117 {dimension_numbers = #tpu.dot_dimension_numbers<[2], [1], [1], [2], [0, 0, 0, 1, 1, 2], [0], [0]>} : vector<4x8x10xf32>, vector<4x10x8xf32>, vector<4x8x8xf32> -> vector<4x8x8xf32>
    "tpu.trace_stop"() : () -> ()
    %396 = vector.extract_strided_slice %395 {offsets = [0, 0, 0], sizes = [1, 8, 8], strides = [1, 1, 1]} : vector<4x8x8xf32> to vector<1x8x8xf32>
    %397 = vector.shape_cast %396 : vector<1x8x8xf32> to vector<8x8xf32>
    %398 = vector.extract_strided_slice %395 {offsets = [1, 0, 0], sizes = [1, 8, 8], strides = [1, 1, 1]} : vector<4x8x8xf32> to vector<1x8x8xf32>
    %399 = vector.shape_cast %398 : vector<1x8x8xf32> to vector<8x8xf32>
    %400 = vector.extract_strided_slice %395 {offsets = [2, 0, 0], sizes = [1, 8, 8], strides = [1, 1, 1]} : vector<4x8x8xf32> to vector<1x8x8xf32>
    %401 = vector.shape_cast %400 : vector<1x8x8xf32> to vector<8x8xf32>
    %402 = vector.extract_strided_slice %395 {offsets = [3, 0, 0], sizes = [1, 8, 8], strides = [1, 1, 1]} : vector<4x8x8xf32> to vector<1x8x8xf32>
    %403 = vector.shape_cast %402 : vector<1x8x8xf32> to vector<8x8xf32>
    %404 = tpu.concatenate %397, %399, %401, %403 in 1 : vector<8x8xf32>, vector<8x8xf32>, vector<8x8xf32>, vector<8x8xf32> -> vector<8x32xf32>
    %c3_118 = arith.constant 3 : index
    %c0_119 = arith.constant 0 : index
    %c0_120 = arith.constant 0 : index
    %405 = vector.load %arg8[%c3_118, %c0_119, %c0_120] : memref<4x32x32xf32, #tpu.memory_space<vmem>>, vector<1x32x32xf32>
    %406 = vector.shape_cast %405 : vector<1x32x32xf32> to vector<32x32xf32>
    %cst_121 = arith.constant dense<0.000000e+00> : vector<8x32xf32>
    %407 = tpu.matmul %404, %406, %cst_121 {dimension_numbers = #tpu.dot_dimension_numbers<[1], [0], [0], [1], [0, 0, 1, 1], [], []>} : vector<8x32xf32>, vector<32x32xf32>, vector<8x32xf32> -> vector<8x32xf32>
    %c3_122 = arith.constant 3 : index
    %c0_123 = arith.constant 0 : index
    %c0_124 = arith.constant 0 : index
    %408 = vector.load %arg9[%c3_122, %c0_123, %c0_124] : memref<4x1x32xf32, #tpu.memory_space<vmem>>, vector<1x1x32xf32>
    %409 = vector.shape_cast %408 : vector<1x1x32xf32> to vector<1x32xf32>
    %410 = vector.broadcast %409 : vector<1x32xf32> to vector<8x32xf32>
    %411 = arith.addf %407, %410 : vector<8x32xf32>
    %412 = arith.addf %309, %411 : vector<8x32xf32>
    %cst_125 = arith.constant dense<0.000000e+00> : vector<8xf32>
    %413 = vector.multi_reduction <add>, %412, %cst_125 [1] : vector<8x32xf32> to vector<8xf32>
    %414 = vector.shape_cast %413 : vector<8xf32> to vector<8x1xf32>
    %cst_126 = arith.constant 3.200000e+01 : f32
    %415 = vector.broadcast %cst_126 : f32 to vector<8x1xf32>
    %416 = arith.divf %414, %415 : vector<8x1xf32>
    %417 = vector.broadcast %416 : vector<8x1xf32> to vector<8x32xf32>
    %418 = arith.subf %412, %417 : vector<8x32xf32>
    %419 = arith.mulf %418, %418 : vector<8x32xf32>
    %cst_127 = arith.constant dense<0.000000e+00> : vector<8xf32>
    %420 = vector.multi_reduction <add>, %419, %cst_127 [1] : vector<8x32xf32> to vector<8xf32>
    %421 = vector.shape_cast %420 : vector<8xf32> to vector<8x1xf32>
    %cst_128 = arith.constant 3.200000e+01 : f32
    %422 = vector.broadcast %cst_128 : f32 to vector<8x1xf32>
    %423 = arith.divf %421, %422 : vector<8x1xf32>
    %424 = vector.broadcast %416 : vector<8x1xf32> to vector<8x32xf32>
    %425 = arith.subf %412, %424 : vector<8x32xf32>
    %cst_129 = arith.constant 9.99999974E-6 : f32
    %426 = vector.broadcast %cst_129 : f32 to vector<8x1xf32>
    %427 = arith.addf %423, %426 : vector<8x1xf32>
    %428 = math.rsqrt %427 : vector<8x1xf32>
    %429 = vector.broadcast %428 : vector<8x1xf32> to vector<8x32xf32>
    %430 = arith.mulf %425, %429 : vector<8x32xf32>
    %c4 = arith.constant 4 : index
    %c0_130 = arith.constant 0 : index
    %c0_131 = arith.constant 0 : index
    %431 = vector.load %arg4[%c4, %c0_130, %c0_131] : memref<5x1x32xf32, #tpu.memory_space<vmem>>, vector<1x1x32xf32>
    %432 = vector.shape_cast %431 : vector<1x1x32xf32> to vector<1x32xf32>
    %433 = vector.broadcast %432 : vector<1x32xf32> to vector<8x32xf32>
    %434 = arith.mulf %430, %433 : vector<8x32xf32>
    %c4_132 = arith.constant 4 : index
    %c0_133 = arith.constant 0 : index
    %c0_134 = arith.constant 0 : index
    %435 = vector.load %arg5[%c4_132, %c0_133, %c0_134] : memref<5x1x32xf32, #tpu.memory_space<vmem>>, vector<1x1x32xf32>
    %436 = vector.shape_cast %435 : vector<1x1x32xf32> to vector<1x32xf32>
    %437 = vector.broadcast %436 : vector<1x32xf32> to vector<8x32xf32>
    %438 = arith.addf %434, %437 : vector<8x32xf32>
    %c0_135 = arith.constant 0 : index
    %c0_136 = arith.constant 0 : index
    %439 = vector.load %arg10[%c0_135, %c0_136] : memref<32x64xf32, #tpu.memory_space<vmem>>, vector<32x64xf32>
    %cst_137 = arith.constant dense<0.000000e+00> : vector<8x64xf32>
    %440 = tpu.matmul %438, %439, %cst_137 {dimension_numbers = #tpu.dot_dimension_numbers<[1], [0], [0], [1], [0, 0, 1, 1], [], []>} : vector<8x32xf32>, vector<32x64xf32>, vector<8x64xf32> -> vector<8x64xf32>
    %c0_138 = arith.constant 0 : index
    %c0_139 = arith.constant 0 : index
    %441 = vector.load %arg11[%c0_138, %c0_139] : memref<1x64xf32, #tpu.memory_space<vmem>>, vector<1x64xf32>
    %442 = vector.broadcast %441 : vector<1x64xf32> to vector<8x64xf32>
    %443 = arith.addf %440, %442 : vector<8x64xf32>
    %cst_140 = arith.constant 0.000000e+00 : f32
    %444 = vector.broadcast %cst_140 : f32 to vector<8x64xf32>
    %445 = arith.maximumf %443, %444 : vector<8x64xf32>
    %c0_141 = arith.constant 0 : index
    %c0_142 = arith.constant 0 : index
    %446 = vector.load %arg12[%c0_141, %c0_142] : memref<64x32xf32, #tpu.memory_space<vmem>>, vector<64x32xf32>
    %cst_143 = arith.constant dense<0.000000e+00> : vector<8x32xf32>
    %447 = tpu.matmul %445, %446, %cst_143 {dimension_numbers = #tpu.dot_dimension_numbers<[1], [0], [0], [1], [0, 0, 1, 1], [], []>} : vector<8x64xf32>, vector<64x32xf32>, vector<8x32xf32> -> vector<8x32xf32>
    %c0_144 = arith.constant 0 : index
    %c0_145 = arith.constant 0 : index
    %448 = vector.load %arg13[%c0_144, %c0_145] : memref<1x32xf32, #tpu.memory_space<vmem>>, vector<1x32xf32>
    %449 = vector.broadcast %448 : vector<1x32xf32> to vector<8x32xf32>
    %450 = arith.addf %447, %449 : vector<8x32xf32>
    %451 = arith.addf %412, %450 : vector<8x32xf32>
    %c0_146 = arith.constant 0 : index
    %c0_147 = arith.constant 0 : index
    %452 = vector.load %arg14[%c0_146, %c0_147] : memref<32x20xf32, #tpu.memory_space<vmem>>, vector<32x20xf32>
    %cst_148 = arith.constant dense<0.000000e+00> : vector<8x20xf32>
    %453 = tpu.matmul %451, %452, %cst_148 {dimension_numbers = #tpu.dot_dimension_numbers<[1], [0], [0], [1], [0, 0, 1, 1], [], []>} : vector<8x32xf32>, vector<32x20xf32>, vector<8x20xf32> -> vector<8x20xf32>
    %c0_149 = arith.constant 0 : index
    %c0_150 = arith.constant 0 : index
    %454 = vector.load %arg15[%c0_149, %c0_150] : memref<1x20xf32, #tpu.memory_space<vmem>>, vector<1x20xf32>
    %455 = vector.broadcast %454 : vector<1x20xf32> to vector<8x20xf32>
    %456 = arith.addf %453, %455 : vector<8x20xf32>
    %cst_151 = arith.constant dense<0xFF800000> : vector<8xf32>
    %457 = vector.multi_reduction <maximumf>, %456, %cst_151 [1] : vector<8x20xf32> to vector<8xf32>
    %458 = vector.shape_cast %457 : vector<8xf32> to vector<8x1xf32>
    %459 = vector.broadcast %458 : vector<8x1xf32> to vector<8x20xf32>
    %460 = arith.subf %456, %459 : vector<8x20xf32>
    %461 = math.exp %460 : vector<8x20xf32>
    %cst_152 = arith.constant dense<0.000000e+00> : vector<8xf32>
    %462 = vector.multi_reduction <add>, %461, %cst_152 [1] : vector<8x20xf32> to vector<8xf32>
    %463 = vector.shape_cast %462 : vector<8xf32> to vector<8x1xf32>
    %464 = tpu.reciprocal %463 {approx = true} : vector<8x1xf32> -> vector<8x1xf32>
    %465 = vector.broadcast %464 : vector<8x1xf32> to vector<8x20xf32>
    %466 = arith.mulf %461, %465 : vector<8x20xf32>
    %c0_153 = arith.constant 0 : index
    %c0_154 = arith.constant 0 : index
    %467 = vector.load %arg16[%c0_153, %c0_154] : memref<32x1xf32, #tpu.memory_space<vmem>>, vector<32x1xf32>
    %cst_155 = arith.constant dense<0.000000e+00> : vector<8x1xf32>
    %468 = tpu.matmul %451, %467, %cst_155 {dimension_numbers = #tpu.dot_dimension_numbers<[1], [0], [0], [1], [0, 0, 1, 1], [], []>} : vector<8x32xf32>, vector<32x1xf32>, vector<8x1xf32> -> vector<8x1xf32>
    %c0_156 = arith.constant 0 : index
    %c0_157 = arith.constant 0 : index
    %469 = vector.load %arg17[%c0_156, %c0_157] : memref<1x1xf32, #tpu.memory_space<vmem>>, vector<1x1xf32>
    %470 = vector.broadcast %469 : vector<1x1xf32> to vector<8x1xf32>
    %471 = arith.addf %468, %470 : vector<8x1xf32>
    %cst_158 = arith.constant 0.000000e+00 : f32
    %472 = vector.broadcast %cst_158 : f32 to vector<8x1xf32>
    %473 = arith.subf %472, %471 : vector<8x1xf32>
    %474 = math.exp %473 : vector<8x1xf32>
    %cst_159 = arith.constant 1.000000e+00 : f32
    %475 = vector.broadcast %cst_159 : f32 to vector<8x1xf32>
    %476 = arith.addf %475, %474 : vector<8x1xf32>
    %cst_160 = arith.constant 1.000000e+00 : f32
    %477 = vector.broadcast %cst_160 : f32 to vector<8x1xf32>
    %478 = arith.divf %477, %476 : vector<8x1xf32>
    %c0_161 = arith.constant 0 : index
    %c0_162 = arith.constant 0 : index
    %c0_163 = arith.constant 0 : index
    %479 = vector.load %arg3[%c0_161, %c0_162, %c0_163] : memref<1x10x20xf32, #tpu.memory_space<vmem>>, vector<1x10x20xf32>
    %480 = vector.shape_cast %479 : vector<1x10x20xf32> to vector<10x20xf32>
    %cst_164 = arith.constant dense<0.000000e+00> : vector<8x20xf32>
    %481 = tpu.matmul %308, %480, %cst_164 {dimension_numbers = #tpu.dot_dimension_numbers<[1], [0], [0], [1], [0, 0, 1, 1], [], []>} : vector<8x10xf32>, vector<10x20xf32>, vector<8x20xf32> -> vector<8x20xf32>
    %482 = vector.broadcast %478 : vector<8x1xf32> to vector<8x20xf32>
    %483 = arith.mulf %482, %466 : vector<8x20xf32>
    %cst_165 = arith.constant 1.000000e+00 : f32
    %484 = vector.broadcast %cst_165 : f32 to vector<8x1xf32>
    %485 = arith.subf %484, %478 : vector<8x1xf32>
    %486 = vector.broadcast %485 : vector<8x1xf32> to vector<8x20xf32>
    %487 = arith.mulf %486, %481 : vector<8x20xf32>
    %488 = arith.addf %483, %487 : vector<8x20xf32>
    %489 = tpu.concatenate %451, %488 in 1 : vector<8x32xf32>, vector<8x20xf32> -> vector<8x52xf32>
    %c0_166 = arith.constant 0 : index
    %c0_167 = arith.constant 0 : index
    %c0_168 = arith.constant 0 : index
    %490 = vector.load %arg18[%c0_166, %c0_167, %c0_168] : memref<1x8x52xf32, #tpu.memory_space<vmem>>, vector<1x8x52xf32>
    %491 = vector.shape_cast %490 : vector<1x8x52xf32> to vector<8x52xf32>
    %492 = vector.shape_cast %489 : vector<8x52xf32> to vector<1x8x52xf32>
    tpu.vector_store %arg18[%c0_166, %c0_167, %c0_168], %492 {strides = array<i32>} : memref<1x8x52xf32, #tpu.memory_space<vmem>>, vector<1x8x52xf32>,
    return
  }
  func.func @transform_0(%arg0: i32) -> (i32, i32, i32) {
    %c0_i32 = arith.constant 0 : i32
    %c0_i32_0 = arith.constant 0 : i32
    %c0_i32_1 = arith.constant 0 : i32
    return %arg0, %c0_i32, %c0_i32_0 : i32, i32, i32
  }
  func.func @transform_1(%arg0: i32) -> (i32, i32, i32) {
    %c0_i32 = arith.constant 0 : i32
    %c0_i32_0 = arith.constant 0 : i32
    %c0_i32_1 = arith.constant 0 : i32
    return %arg0, %c0_i32, %c0_i32_0 : i32, i32, i32
  }
  func.func @transform_2(%arg0: i32) -> (i32, i32, i32) {
    %c0_i32 = arith.constant 0 : i32
    %c0_i32_0 = arith.constant 0 : i32
    %c0_i32_1 = arith.constant 0 : i32
    return %arg0, %c0_i32, %c0_i32_0 : i32, i32, i32
  }
  func.func @transform_3(%arg0: i32) -> (i32, i32, i32) {
    %c0_i32 = arith.constant 0 : i32
    %c0_i32_0 = arith.constant 0 : i32
    %c0_i32_1 = arith.constant 0 : i32
    %c0_i32_2 = arith.constant 0 : i32
    return %c0_i32, %c0_i32_0, %c0_i32_1 : i32, i32, i32
  }
  func.func @transform_4(%arg0: i32) -> (i32, i32, i32) {
    %c0_i32 = arith.constant 0 : i32
    %c0_i32_0 = arith.constant 0 : i32
    %c0_i32_1 = arith.constant 0 : i32
    %c0_i32_2 = arith.constant 0 : i32
    return %c0_i32, %c0_i32_0, %c0_i32_1 : i32, i32, i32
  }
  func.func @transform_5(%arg0: i32) -> (i32, i32, i32) {
    %c0_i32 = arith.constant 0 : i32
    %c0_i32_0 = arith.constant 0 : i32
    %c0_i32_1 = arith.constant 0 : i32
    %c0_i32_2 = arith.constant 0 : i32
    return %c0_i32, %c0_i32_0, %c0_i32_1 : i32, i32, i32
  }
  func.func @transform_6(%arg0: i32) -> (i32, i32, i32) {
    %c0_i32 = arith.constant 0 : i32
    %c0_i32_0 = arith.constant 0 : i32
    %c0_i32_1 = arith.constant 0 : i32
    %c0_i32_2 = arith.constant 0 : i32
    return %c0_i32, %c0_i32_0, %c0_i32_1 : i32, i32, i32
  }
  func.func @transform_7(%arg0: i32) -> (i32, i32, i32) {
    %c0_i32 = arith.constant 0 : i32
    %c0_i32_0 = arith.constant 0 : i32
    %c0_i32_1 = arith.constant 0 : i32
    %c0_i32_2 = arith.constant 0 : i32
    return %c0_i32, %c0_i32_0, %c0_i32_1 : i32, i32, i32
  }
  func.func @transform_8(%arg0: i32) -> (i32, i32, i32) {
    %c0_i32 = arith.constant 0 : i32
    %c0_i32_0 = arith.constant 0 : i32
    %c0_i32_1 = arith.constant 0 : i32
    %c0_i32_2 = arith.constant 0 : i32
    return %c0_i32, %c0_i32_0, %c0_i32_1 : i32, i32, i32
  }
  func.func @transform_9(%arg0: i32) -> (i32, i32) {
    %c0_i32 = arith.constant 0 : i32
    %c0_i32_0 = arith.constant 0 : i32
    %c0_i32_1 = arith.constant 0 : i32
    return %c0_i32, %c0_i32_0 : i32, i32
  }
  func.func @transform_10(%arg0: i32) -> (i32, i32) {
    %c0_i32 = arith.constant 0 : i32
    %c0_i32_0 = arith.constant 0 : i32
    %c0_i32_1 = arith.constant 0 : i32
    return %c0_i32, %c0_i32_0 : i32, i32
  }
  func.func @transform_11(%arg0: i32) -> (i32, i32) {
    %c0_i32 = arith.constant 0 : i32
    %c0_i32_0 = arith.constant 0 : i32
    %c0_i32_1 = arith.constant 0 : i32
    return %c0_i32, %c0_i32_0 : i32, i32
  }
  func.func @transform_12(%arg0: i32) -> (i32, i32) {
    %c0_i32 = arith.constant 0 : i32
    %c0_i32_0 = arith.constant 0 : i32
    %c0_i32_1 = arith.constant 0 : i32
    return %c0_i32, %c0_i32_0 : i32, i32
  }
  func.func @transform_13(%arg0: i32) -> (i32, i32) {
    %c0_i32 = arith.constant 0 : i32
    %c0_i32_0 = arith.constant 0 : i32
    %c0_i32_1 = arith.constant 0 : i32
    return %c0_i32, %c0_i32_0 : i32, i32
  }
  func.func @transform_14(%arg0: i32) -> (i32, i32) {
    %c0_i32 = arith.constant 0 : i32
    %c0_i32_0 = arith.constant 0 : i32
    %c0_i32_1 = arith.constant 0 : i32
    return %c0_i32, %c0_i32_0 : i32, i32
  }
  func.func @transform_15(%arg0: i32) -> (i32, i32) {
    %c0_i32 = arith.constant 0 : i32
    %c0_i32_0 = arith.constant 0 : i32
    %c0_i32_1 = arith.constant 0 : i32
    return %c0_i32, %c0_i32_0 : i32, i32
  }
  func.func @transform_16(%arg0: i32) -> (i32, i32) {
    %c0_i32 = arith.constant 0 : i32
    %c0_i32_0 = arith.constant 0 : i32
    %c0_i32_1 = arith.constant 0 : i32
    return %c0_i32, %c0_i32_0 : i32, i32
  }
  func.func @transform_17(%arg0: i32) -> (i32, i32, i32) {
    %c0_i32 = arith.constant 0 : i32
    %c0_i32_0 = arith.constant 0 : i32
    %c0_i32_1 = arith.constant 0 : i32
    return %arg0, %c0_i32, %c0_i32_0 : i32, i32, i32
  }
}

</mosaic_0001>

<bundles_post_ra>
// kernel: graph_transformer_decoder.3
= control target key start
LH: loop header
LB: loop body
LE: loop exit
PB: predicated region body
PF: predicated region fallthrough
CT: control target
= control target key end

     0   :  { %s5846_s29 = smov 0   ;;  %s6576_s0 = inlined_call_operand.vmem [shape: f32[2,28,32], index: 0, kind: input, shape index: {}]   ;;  %s6577_s1 = inlined_call_operand.vmem [shape: f32[2,8,26], index: 1, kind: input, shape index: {}]   ;;  %s6578_s2 = inlined_call_operand.vmem [shape: f32[5,1,32], index: 2, kind: input, shape index: {}]   ;;  %s6579_s3 = inlined_call_operand.vmem [shape: f32[5,1,32], index: 3, kind: input, shape index: {}]   ;;  %s6580_s4 = inlined_call_operand.vmem [shape: f32[4,32,96], index: 4, kind: input, shape index: {}]   ;;  %s6581_s5 = inlined_call_operand.vmem [shape: f32[4,1,96], index: 5, kind: input, shape index: {}]   ;;  %s6582_s6 = inlined_call_operand.vmem [shape: f32[4,32,32], index: 6, kind: input, shape index: {}]   ;;  %s6583_s7 = inlined_call_operand.vmem [shape: f32[4,1,32], index: 7, kind: input, shape index: {}]   ;;  %s6584_s8 = inlined_call_operand.vmem [shape: f32[32,64], index: 8, kind: input, shape index: {}]   ;;  %s6585_s9 = inlined_call_operand.vmem [shape: f32[1,64], index: 9, kind: input, shape index: {}]   ;;  %s6586_s10 = inlined_call_operand.vmem [shape: f32[64,32], index: 10, kind: input, shape index: {}]   ;;  %s6587_s11 = inlined_call_operand.vmem [shape: f32[1,32], index: 11, kind: input, shape index: {}]   ;;  %s6588_s12 = inlined_call_operand.vmem [shape: f32[32,64], index: 12, kind: input, shape index: {}]   ;;  %s6589_s13 = inlined_call_operand.vmem [shape: f32[1,64], index: 13, kind: input, shape index: {}]   ;;  %s6590_s14 = inlined_call_operand.vmem [shape: f32[2,8,40], index: 14, kind: output, shape index: {}]  }
   0x1   :  { %6608 = sst [smem:[#allocation2_spill]] %s6576_s0 }
   0x2   :  { %6609 = sst [smem:[#allocation3_spill]] %s6577_s1 }
   0x3 LB: > { %s4755_s30 = sadd.s32 4294967295, %s5756_s29   ;;  %p4759_p0 = scmp.ge.s32.totalorder %s5756_s29, 1  ;;  %s5756_s29 = sphi %s5846_s29, %s24_s29  }
   0x4   : > { %p421_p1 = scmp.lt.s32.totalorder %s5756_s29, 3 }
   0x6   : > { %p422_p2 = pnand %p4759_p0, %p421_p1 }
   0x7   : > { %p470_p3 = scmp.lt.s32.totalorder (!%p422_p2), %s4755_s30, 1  ;;  %vm488_vm0 = vcmask (!%p422_p2), 261120   ;;  %s6610_s0 = sld [smem:[#allocation2_spill]] (!%p422_p2)  ;;  %v519_v7 = vld [vmem:[%s6580_s4] sm:$0xff] (!%p422_p2)  ;;  %v520_v8 = vld [vmem:[%s6580_s4 + $0x8] sm:$0xff] (!%p422_p2)  ;;  %v521_v9 = vld [vmem:[%s6580_s4 + $0x10] sm:$0xff] (!%p422_p2) }
   0x8   : > { %425 = sbr.rel (%p422_p2) target bundleno = 8891 (0x22bb), region = 76  ;;  %v5758_v10 = vmov (!%p422_p2), 0.0|0.0   ;;  %v5409_v11 = vpack.c.bf16 (!%p422_p2), %v520_v8, %v519_v7  ;;  %v522_v12 = vld [vmem:[%s6580_s4 + $0x18] sm:$0xff] (!%p422_p2)  ;;  %vm5759_vm1 = vmmov (!%p422_p2), 0   ;;  %v5760_v13 = vmov (!%p422_p2), 0.0   ;;  %s6600_s20 = smov (!%p422_p2), 104  }
   0x9   : > { %5408 = vmatprep.subr.bf16.mxu0 (!%p422_p2), %v5758_v10  ;;  %5068 = vmatprep.mubr.msk.f32.mxu0 (!%p422_p2), %vm5759_vm1, %v5760_v13  ;;  %v5412_v14 = vpack.c.bf16 (!%p422_p2), %v522_v12, %v521_v9  ;;  %v4764_v19 = vld [vmem:[%s6578_s2] ss:$0 sm:$0xff] (!%p422_p2)  ;;  %s6602_s21 = smov (!%p422_p2), 120   ;;  %s6604_s22 = smov (!%p422_p2), 112   ;;  %vm612_vm2 = vcmask (!%p422_p2), 64512   ;;  %vm1284_vm3 = vcmask (!%p422_p2), 130048  }
   0xa   : > { %5071 = vmatprep.subr.mxu1 (!%p422_p2), %v5760_v13  ;;  %5073 = vmatprep.mubr.msk.f32.mxu1 (!%p422_p2), %vm5759_vm1, %v5760_v13  ;;  %v4765_v21 = vld [vmem:[%s6579_s3] ss:$0 sm:$0xff] (!%p422_p2)  ;;  %s6606_s23 = smov (!%p422_p2), 96   ;;  %s6611_s1 = sld [smem:[#allocation3_spill]] (!%p422_p2)  ;;  %vm1286_vm4 = vcmask (!%p422_p2), 195584   ;;  %vm6193_vm5 = vmpackc.low (!%p422_p2), %vm612_vm2, %vm612_vm2  ;;  %vm2816_vm6 = vcmask (!%p422_p2), 80896  }
   0xb   : > { %5410 = vmatpush3.bf16.msra.mxu0 (!%p422_p2), %v5409_v11  ;;  %v4766_v24 = vld [vmem:[%s6581_s5] ss:$0 sm:$0xff] (!%p422_p2)  ;;  %s6592_s28 = smov (!%p422_p2), 64   ;;  %s6594_s16 = smov (!%p422_p2), 16   ;;  %vm2869_vm7 = vcmask (!%p422_p2), 1041408   ;;  %vm5769_vm8 = vmmov (!%p422_p2), 1  }
   0xc   : > { %5411 = vmatprep.subr.bf16.mxu0 (!%p422_p2), %v5758_v10  ;;  %s6596_s17 = smov (!%p422_p2), 24   ;;  %s6614_s19 = smov (!%p422_p2), 24   ;;  %vm6257_vm9 = vmpackc.low (!%p422_p2), %vm2869_vm7, %vm5769_vm8  ;;  %vm3402_vm10 = vcmask (!%p422_p2), 1045504   ;;  %vm4434_vm11 = vcmask (!%p422_p2), 523264   ;;  %vm4688_vm12 = vcmask (!%p422_p2), 326656  }
   0xd   : > { %s6615_s25 = smov (!%p422_p2), 16   ;;  %s6619_s26 = smov (!%p422_p2), 120  }
   0xf   : > { %s6626_s30 = smov (!%p470_p3, %s4755_s30), 1  ;;  %5413 = vmatpush3.bf16.msra.mxu0 %v5412_v14 }
  0x10   : > { %s4906_s15 = sshll.u32 %s6626_s30, 5  ;;  %5081 = vmatprep.subr.mxu0 %v5760_v13  ;;  %s6591_s24 = sshll.u32 %s6626_s30, 3 }
  0x11   : > { %s5860_s18 = scalar_lea.vmem %s6610_s0, %s4906_s15  ;;  %s5953_s27 = scalar_lea.vmem %s6611_s1, %s6591_s24 }
  0x12   : > { %v5863_v0 = vld [vmem:[%s5860_s18] sm:$0xff]  ;;  %s6598_s15 = smov 8   ;;  %s6612_s24 = smov 64  }
  0x13   : > { %v489_v1 = vsel %vm488_vm0, %v5863_v0, 0.0  ;;  %v5956_v35 = vld [vmem:[%s5953_s27] sm:$0xff] }
  0x14   : > { %490 = vadd.xlane.f32.xlu0 %v489_v1 }
  0xa1   : > { %v491_v2 = vpop.xlane.xlu0 %490 }
  0xa2   : > { %v493_v3 = vmul.f32 0.03125, %v491_v2 }
  0xa4   : > { %v494_v4 = vsub.f32 %v5863_v0, %v493_v3 }
  0xa6   : > { %v495_v5 = vmul.f32 %v494_v4, %v494_v4 }
  0xa8   : > { %v496_v6 = vsel %vm488_vm0, %v495_v5, 0.0 }
  0xa9   : > { %497 = vadd.xlane.f32.xlu0 %v496_v6 }
 0x136   : > { %v498_v15 = vpop.xlane.xlu0 %497 }
 0x137   : > { %v499_v16 = vmul.f32 0.03125, %v498_v15 }
 0x139   : > { %v500_v17 = vadd.f32 1e-05, %v499_v16 }
 0x13b   : > { %5671 = vrsqrt.f32 %v500_v17 }
 0x145   : > { %v5672_v18 = vpop.eup %5671 }
 0x146   : > { %v502_v20 = vmul.f32 %v5672_v18, %v494_v4 }
 0x148   : > { %v510_v22 = vmul.f32 %v4764_v19, %v502_v20 }
 0x14a   : > { %v518_v23 = vadd.f32 %v4765_v21, %v510_v22 }
 0x14c   : > { %5069 = vmatmul.mubr.msk.f32.vlgmr.msra.gmra.mrb[0].mxu0 %vm488_vm0, %v518_v23 }
 0x14d   : > { %5083 = vmatprep.mubr.msk.f32.mxu0 %vm5759_vm1, %v5760_v13 }
 0x21f   : > { %v599_v25 = vpop.f32.mrb[0].mxu0 }
 0x220   : > { %v5901_v26 = vadd.f32 %v4766_v24, %v599_v25  ;;  %v5070_v27 = vpop.f32.mrb[1].mxu0 }
 0x222   : > { %608 = vrot.lane.b32.xlu0 %v5901_v26, %s6600_s20  ;;  %604 = vrot.lane.b32.xlu1 %v5901_v26, %s6602_s21 }
 0x226   : > { %606 = vrot.lane.b32.xlu1 %v5901_v26, %s6604_s22 }
 0x22a   : > { %610 = vrot.lane.b32.xlu1 %v5901_v26, %s6606_s23 }
 0x294   : > { %v5911_v28 = vpop.permute.xlu1 %604  ;;  %v5919_v30 = vpop.permute.xlu0 %608 }
 0x295   : > { %687 = vrot.lane.b32.xlu1 %v5911_v28, %s6606_s23 }
 0x298   : > { %v5915_v29 = vpop.permute.xlu1 %606 }
 0x299   : > { %763 = vrot.lane.b32.xlu1 %v5915_v29, %s6606_s23 }
 0x29c   : > { %v611_v31 = vpop.permute.xlu1 %610 }
 0x29d   : > { %839 = vrot.lane.b32.xlu1 %v5919_v30, %s6606_s23  ;;  %5072 = vmatpush3.xpose.msk.msra.mxu1 %vm612_vm2, %v611_v31 }
 0x29e   : > { %5076 = vmatprep.subr.mxu1 %v5760_v13 }
 0x2a0   : > { %5074 = vmatmul.mubr.msk.f32.vlgmr.msra.gmra.mrb[0].mxu1 %vm612_vm2, %v5901_v26 }
 0x2a1   : > { %5078 = vmatprep.mubr.msk.f32.mxu1 %vm5759_vm1, %v5760_v13 }
 0x307   : > { %v688_v32 = vpop.permute.xlu1 %687 }
 0x308   : > { %5077 = vmatpush3.xpose.msk.msra.mxu1 %vm612_vm2, %v688_v32 }
 0x309   : > { %5086 = vmatprep.subr.mxu1 %v5760_v13 }
 0x30b   : > { %5079 = vmatmul.mubr.msk.f32.vlgmr.msra.gmra.mrb[2].mxu1 %vm612_vm2, %v5911_v28  ;;  %v764_v33 = vpop.permute.xlu1 %763 }
 0x30c   : > { %5082 = vmatpush3.xpose.msk.msra.mxu0 %vm612_vm2, %v764_v33  ;;  %5088 = vmatprep.mubr.msk.f32.mxu1 %vm5759_vm1, %v5760_v13  ;;  %v1288_v33 = vld [vmem:[%s6582_s6] sm:$0xff] }
 0x30d   : > { %5091 = vmatprep.subr.mxu0 %v5760_v13 }
 0x30f   : > { %5084 = vmatmul.mubr.msk.f32.vlgmr.msra.gmra.mrb[2].mxu0 %vm612_vm2, %v5915_v29  ;;  %v840_v34 = vpop.permute.xlu1 %839 }
 0x310   : > { %5087 = vmatpush3.xpose.msk.msra.mxu1 %vm612_vm2, %v840_v34  ;;  %5093 = vmatprep.mubr.msk.f32.mxu0 %vm5759_vm1, %v5760_v13  ;;  %v1289_v34 = vld [vmem:[%s6582_s6 + $0x8] sm:$0xff] }
 0x311   : > { %5096 = vmatprep.subr.mxu1 %v5760_v13 }
 0x313   : > { %5089 = vmatmul.mubr.msk.f32.vlgmr.msra.gmra.mrb[4].mxu1 %vm612_vm2, %v5919_v30 }
 0x314   : > { %5098 = vmatprep.mubr.msk.f32.mxu1 %vm5759_vm1, %v5760_v13 }
 0x373   : > { %v683_v36 = vpop.f32.mrb[0].mxu1 }
 0x374   : > { %v915_v37 = vmul.f32 0.35355338, %v683_v36  ;;  %v5075_v38 = vpop.f32.mrb[1].mxu1  ;;  %v5415_v36 = vpack.c.bf16 %v1289_v34, %v1288_v33 }
 0x375   : > { %v1291_v38 = vld [vmem:[%s6582_s6 + $0x18] sm:$0xff] }
 0x376   : > { %v919_v39 = vadd.f32 %v915_v37, %v5956_v35  ;;  %v1290_v37 = vld [vmem:[%s6582_s6 + $0x10] sm:$0xff] }
 0x378   : > { %v923_v40 = vsel %vm612_vm2, %v919_v39, -inf }
 0x379   : > { %924 = vmax.xlane.f32.xlu1 %v923_v40 }
 0x3de   : > { %v759_v41 = vpop.f32.mrb[2].mxu1 }
 0x3df   : > { %v916_v42 = vmul.f32 0.35355338, %v759_v41  ;;  %v5080_v43 = vpop.f32.mrb[3].mxu1 }
 0x3e1   : > { %v920_v44 = vadd.f32 %v916_v42, %v5956_v35 }
 0x3e2   : > { %v835_v45 = vpop.f32.mrb[2].mxu0 }
 0x3e3   : > { %v917_v46 = vmul.f32 0.35355338, %v835_v45  ;;  %v5085_v47 = vpop.f32.mrb[3].mxu0  ;;  %v926_v48 = vsel %vm612_vm2, %v920_v44, -inf }
 0x3e4   : > { %927 = vmax.xlane.f32.xlu0 %v926_v48 }
 0x3e5   : > { %v921_v49 = vadd.f32 %v917_v46, %v5956_v35 }
 0x3e6   : > { %v911_v50 = vpop.f32.mrb[4].mxu1 }
 0x3e7   : > { %v918_v51 = vmul.f32 0.35355338, %v911_v50  ;;  %v5090_v52 = vpop.f32.mrb[5].mxu1  ;;  %v929_v53 = vsel %vm612_vm2, %v921_v49, -inf }
 0x3e8   : > { %930 = vmax.xlane.f32.xlu1 %v929_v53  ;;  %v4780_v52 = vld [vmem:[%s6583_s7] ss:$0 sm:$0xff] }
 0x3e9   : > { %v922_v54 = vadd.f32 %v918_v51, %v5956_v35 }
 0x3eb   : > { %v932_v55 = vsel %vm612_vm2, %v922_v54, -inf }
 0x3ec   : > { %933 = vmax.xlane.f32.xlu0 %v932_v55 }
 0x3f9   : > { %967 = vrot.lane.b32.xlu1 %v5901_v26, %s6592_s28 }
 0x406   : > { %v925_v56 = vpop.xlane.xlu1 %924 }
 0x407   : > { %v935_v57 = vsub.f32 %v919_v39, %v925_v56  ;;  %v5418_v39 = vpack.c.bf16 %v1291_v38, %v1290_v37 }
 0x409   : > { %v939_v58 = vmul.f32 1.442695, %v935_v57 }
 0x40b   : > { %5673 = vpow2.f32 %v939_v58 }
 0x415   : > { %v5674_v59 = vpop.eup %5673 }
 0x416   : > { %v947_v60 = vsel %vm612_vm2, %v5674_v59, 0.0 }
 0x41d   : > { %948 = vadd.xlane.f32.xlu1 %v947_v60 }
 0x471   : > { %v928_v61 = vpop.xlane.xlu0 %927 }
 0x472   : > { %v936_v62 = vsub.f32 %v920_v44, %v928_v61 }
 0x474   : > { %v941_v63 = vmul.f32 1.442695, %v936_v62 }
 0x475   : > { %v931_v1 = vpop.xlane.xlu1 %930 }
 0x476   : > { %5675 = vpow2.f32 %v941_v63  ;;  %v937_v2 = vsub.f32 %v921_v49, %v931_v1  ;;  %v4786_v63 = vld [vmem:[%s6580_s4 + $0x20] sm:$0xff] }
 0x478   : > { %v943_v3 = vmul.f32 1.442695, %v937_v2  ;;  %v4788_v2 = vld [vmem:[%s6580_s4 + $0x30] sm:$0xff] }
 0x479   : > { %v934_v4 = vpop.xlane.xlu0 %933  ;;  %v968_v5 = vpop.permute.xlu1 %967 }
 0x47a   : > { %5677 = vpow2.f32 %v943_v3  ;;  %v938_v6 = vsub.f32 %v922_v54, %v934_v4  ;;  %5092 = vmatpush3.msra.mxu0 %v968_v5  ;;  %v4789_v3 = vld [vmem:[%s6580_s4 + $0x38] sm:$0xff] }
 0x47b   : > { %5101 = vmatprep.subr.mxu0 %v5760_v13  ;;  %v5424_v4 = vpack.c.bf16 %v4789_v3, %v4788_v2 }
 0x47c   : > { %v945_v7 = vmul.f32 1.442695, %v938_v6 }
 0x47e   : > { %5679 = vpow2.f32 %v945_v7 }
 0x480   : > { %v5676_v8 = vpop.eup %5675 }
 0x481   : > { %v950_v9 = vsel %vm612_vm2, %v5676_v8, 0.0 }
 0x482   : > { %951 = vadd.xlane.f32.xlu0 %v950_v9  ;;  %v4783_v9 = vld [vmem:[%s6578_s2 + $0x1] ss:$0 sm:$0xff] }
 0x484   : > { %v5678_v11 = vpop.eup %5677 }
 0x485   : > { %v953_v12 = vsel %vm612_vm2, %v5678_v11, 0.0 }
 0x486   : > { %954 = vadd.xlane.f32.xlu1 %v953_v12  ;;  %v4785_v12 = vld [vmem:[%s6579_s3 + $0x1] ss:$0 sm:$0xff] }
 0x488   : > { %v5680_v14 = vpop.eup %5679 }
 0x489   : > { %v956_v15 = vsel %vm612_vm2, %v5680_v14, 0.0 }
 0x48a   : > { %957 = vadd.xlane.f32.xlu0 %v956_v15 }
 0x497   : > { %1119 = vrot.lane.b32.xlu1 %v5915_v29, %s6592_s28 }
 0x49b   : > { %1195 = vrot.lane.b32.xlu1 %v5919_v30, %s6592_s28 }
 0x4a0   : > { %1043 = vrot.lane.b32.xlu0 %v5911_v28, %s6592_s28  ;;  %s6613_s28 = smov 8  }
 0x4aa   : > { %v949_v16 = vpop.xlane.xlu1 %948 }
 0x4ab   : > { %5681 = vrcp.f32 %v949_v16  ;;  %v4791_v16 = vld [vmem:[%s6581_s5 + $0x1] ss:$0 sm:$0xff] }
 0x4b5   : > { %v5682_v17 = vpop.eup %5681 }
 0x4b6   : > { %v963_v18 = vmul.f32 %v5682_v17, %v5674_v59 }
 0x4b8   : > { %5094 = vmatmul.mubr.msk.f32.vlgmr.msra.gmra.mrb[4].mxu0 %vm612_vm2, %v963_v18 }
 0x4b9   : > { %5103 = vmatprep.mubr.msk.f32.mxu0 %vm5759_vm1, %v5760_v13 }
 0x50f   : > { %v952_v19 = vpop.xlane.xlu0 %951 }
 0x510   : > { %5683 = vrcp.f32 %v952_v19 }
 0x513   : > { %v955_v20 = vpop.xlane.xlu1 %954 }
 0x514   : > { %5685 = vrcp.f32 %v955_v20 }
 0x517   : > { %v958_v21 = vpop.xlane.xlu0 %957  ;;  %v1120_v22 = vpop.permute.xlu1 %1119 }
 0x518   : > { %5687 = vrcp.f32 %v958_v21  ;;  %5102 = vmatpush3.msra.mxu0 %v1120_v22 }
 0x519   : > { %5414 = vmatprep.subr.bf16.mxu0 %v5758_v10 }
 0x51a   : > { %v5684_v23 = vpop.eup %5683 }
 0x51b   : > { %v964_v24 = vmul.f32 %v5684_v23, %v5676_v8  ;;  %v1044_v25 = vpop.permute.xlu0 %1043  ;;  %v1196_v26 = vpop.permute.xlu1 %1195 }
 0x51c   : > { %5097 = vmatpush3.msra.mxu1 %v1044_v25 }
 0x51d   : > { %5099 = vmatmul.mubr.msk.f32.vlgmr.msra.gmra.mrb[6].mxu1 %vm612_vm2, %v964_v24  ;;  %5106 = vmatprep.subr.mxu1 %v5760_v13 }
 0x51e   : > { %v5686_v27 = vpop.eup %5685  ;;  %5107 = vmatpush3.msra.mxu1 %v1196_v26  ;;  %5108 = vmatprep.mubr.msk.f32.mxu1 %vm5759_vm1, %v5760_v13 }
 0x51f   : > { %v965_v28 = vmul.f32 %v5686_v27, %v5678_v11  ;;  %5420 = vmatprep.subr.bf16.mxu1 %v5758_v10 }
 0x521   : > { %5104 = vmatmul.mubr.msk.f32.vlgmr.msra.gmra.mrb[6].mxu0 %vm612_vm2, %v965_v28 }
 0x522   : > { %v5688_v29 = vpop.eup %5687  ;;  %5119 = vmatprep.mubr.msk.f32.mxu0 %vm5759_vm1, %v5760_v13  ;;  %5416 = vmatpush3.bf16.msra.mxu0 %v5415_v36 }
 0x523   : > { %v966_v30 = vmul.f32 %v5688_v29, %v5680_v14  ;;  %5417 = vmatprep.subr.bf16.mxu0 %v5758_v10 }
 0x525   : > { %5109 = vmatmul.mubr.msk.f32.vlgmr.msra.gmra.mrb[8].mxu1 %vm612_vm2, %v966_v30 }
 0x526   : > { %5130 = vmatprep.mubr.msk.f32.mxu1 %vm5759_vm1, %v5760_v13  ;;  %5419 = vmatpush3.bf16.msra.mxu0 %v5418_v39 }
 0x527   : > { %5133 = vmatprep.subr.mxu0 %v5760_v13 }
 0x58b   : > { %v1039_v31 = vpop.f32.mrb[4].mxu0 }
 0x58c   : > { %v5095_v32 = vpop.f32.mrb[5].mxu0 }
 0x5f0   : > { %v1115_v40 = vpop.f32.mrb[6].mxu1 }
 0x5f1   : > { %1272 = vrot.lane.b32.xlu0 %v1115_v40, %s6598_s15  ;;  %v5100_v41 = vpop.f32.mrb[7].mxu1 }
 0x5f4   : > { %v1191_v42 = vpop.f32.mrb[6].mxu0 }
 0x5f5   : > { %1276 = vrot.lane.b32.xlu1 %v1191_v42, %s6594_s16  ;;  %v5105_v43 = vpop.f32.mrb[7].mxu0  ;;  %s6618_s16 = smov 112  }
 0x5f8   : > { %v1267_v44 = vpop.f32.mrb[8].mxu1 }
 0x5f9   : > { %1280 = vrot.lane.b32.xlu0 %v1267_v44, %s6596_s17  ;;  %v5110_v45 = vpop.f32.mrb[9].mxu1 }
 0x663   : > { %v1273_v46 = vpop.permute.xlu0 %1272 }
 0x664   : > { %v1283_v48 = vsel %vm612_vm2, %v1039_v31, %v1273_v46 }
 0x667   : > { %v1277_v47 = vpop.permute.xlu1 %1276 }
 0x668   : > { %v1285_v49 = vsel %vm1284_vm3, %v1283_v48, %v1277_v47 }
 0x66b   : > { %v1281_v50 = vpop.permute.xlu0 %1280 }
 0x66c   : > { %v1287_v51 = vsel %vm1286_vm4, %v1285_v49, %v1281_v50 }
 0x66d   : > { %5120 = vmatmul.mubr.msk.f32.vlgmr.msra.gmra.mrb[8].mxu0 %vm488_vm0, %v1287_v51 }
 0x66e   : > { %5135 = vmatprep.mubr.msk.f32.mxu0 %vm5759_vm1, %v5760_v13 }
 0x740   : > { %v1368_v53 = vpop.f32.mrb[8].mxu0 }
 0x741   : > { %v1369_v54 = vadd.f32 %v4780_v52, %v1368_v53  ;;  %v5121_v55 = vpop.f32.mrb[9].mxu0 }
 0x743   : > { %v6021_v56 = vadd.f32 %v1369_v54, %v5863_v0  ;;  %v4787_v0 = vld [vmem:[%s6580_s4 + $0x28] sm:$0xff] }
 0x744   : > { %v5421_v1 = vpack.c.bf16 %v4787_v0, %v4786_v63 }
 0x745   : > { %v1373_v57 = vsel %vm488_vm0, %v6021_v56, 0.0 }
 0x746   : > { %1374 = vadd.xlane.f32.xlu1 %v1373_v57  ;;  %5422 = vmatpush3.bf16.msra.mxu1 %v5421_v1 }
 0x747   : > { %5423 = vmatprep.subr.bf16.mxu1 %v5758_v10 }
 0x74a   : > { %5425 = vmatpush3.bf16.msra.mxu1 %v5424_v4 }
 0x74b   : > { %5138 = vmatprep.subr.mxu1 %v5760_v13 }
 0x7d3   : > { %v1375_v58 = vpop.xlane.xlu1 %1374 }
 0x7d4   : > { %v1376_v59 = vmul.f32 0.03125, %v1375_v58 }
 0x7d6   : > { %v1377_v60 = vsub.f32 %v6021_v56, %v1376_v59 }
 0x7d8   : > { %v1378_v61 = vmul.f32 %v1377_v60, %v1377_v60 }
 0x7da   : > { %v1379_v62 = vsel %vm488_vm0, %v1378_v61, 0.0 }
 0x7db   : > { %1380 = vadd.xlane.f32.xlu0 %v1379_v62 }
 0x868   : > { %v1381_v5 = vpop.xlane.xlu0 %1380 }
 0x869   : > { %v1382_v6 = vmul.f32 0.03125, %v1381_v5 }
 0x86b   : > { %v1383_v7 = vadd.f32 1e-05, %v1382_v6 }
 0x86d   : > { %5689 = vrsqrt.f32 %v1383_v7 }
 0x877   : > { %v5690_v8 = vpop.eup %5689 }
 0x878   : > { %v1385_v11 = vmul.f32 %v5690_v8, %v1377_v60 }
 0x87a   : > { %v1394_v14 = vmul.f32 %v4783_v9, %v1385_v11 }
 0x87c   : > { %v1403_v15 = vadd.f32 %v4785_v12, %v1394_v14 }
 0x87e   : > { %5131 = vmatmul.mubr.msk.f32.vlgmr.msra.gmra.mrb[10].mxu1 %vm488_vm0, %v1403_v15 }
 0x87f   : > { %5140 = vmatprep.mubr.msk.f32.mxu1 %vm5759_vm1, %v5760_v13 }
 0x951   : > { %v1486_v17 = vpop.f32.mrb[10].mxu1 }
 0x952   : > { %v1487_v18 = vadd.f32 %v4791_v16, %v1486_v17  ;;  %v5132_v19 = vpop.f32.mrb[11].mxu1 }
 0x954   : > { %1493 = vrot.lane.b32.xlu1 %v1487_v18, %s6604_s22  ;;  %1491 = vrot.lane.b32.xlu0 %v1487_v18, %s6602_s21 }
 0x958   : > { %1495 = vrot.lane.b32.xlu1 %v1487_v18, %s6600_s20  ;;  %1497 = vrot.lane.b32.xlu0 %v1487_v18, %s6606_s23  ;;  %s6620_s20 = smov 104  }
 0x9c6   : > { %v6057_v20 = vpop.permute.xlu1 %1493  ;;  %v1492_v21 = vpop.permute.xlu0 %1491 }
 0x9c7   : > { %1649 = vrot.lane.b32.xlu0 %v6057_v20, %s6606_s23  ;;  %1573 = vrot.lane.b32.xlu1 %v1492_v21, %s6606_s23 }
 0x9ca   : > { %v6062_v22 = vpop.permute.xlu1 %1495  ;;  %v1498_v23 = vpop.permute.xlu0 %1497 }
 0x9cb   : > { %1725 = vrot.lane.b32.xlu1 %v6062_v22, %s6606_s23  ;;  %5134 = vmatpush3.xpose.msk.msra.mxu0 %vm612_vm2, %v1498_v23 }
 0x9cc   : > { %1806 = vrot.lane.b32.xlu0 %v5956_v35, %s6602_s21  ;;  %5143 = vmatprep.subr.mxu0 %v5760_v13 }
 0x9ce   : > { %5136 = vmatmul.mubr.msk.f32.vlgmr.msra.gmra.mrb[10].mxu0 %vm612_vm2, %v1487_v18 }
 0x9cf   : > { %5145 = vmatprep.mubr.msk.f32.mxu0 %vm5759_vm1, %v5760_v13 }
 0xa39   : > { %v1574_v24 = vpop.permute.xlu1 %1573  ;;  %v1650_v25 = vpop.permute.xlu0 %1649 }
 0xa3a   : > { %5139 = vmatpush3.xpose.msk.msra.mxu1 %vm612_vm2, %v1574_v24  ;;  %5144 = vmatpush3.xpose.msk.msra.mxu0 %vm612_vm2, %v1650_v25 }
 0xa3b   : > { %5148 = vmatprep.subr.mxu1 %v5760_v13  ;;  %5153 = vmatprep.subr.mxu0 %v5760_v13 }
 0xa3d   : > { %5141 = vmatmul.mubr.msk.f32.vlgmr.msra.gmra.mrb[12].mxu1 %vm612_vm2, %v1492_v21  ;;  %v1726_v26 = vpop.permute.xlu1 %1725  ;;  %5146 = vmatmul.mubr.msk.f32.vlgmr.msra.gmra.mrb[12].mxu0 %vm612_vm2, %v6057_v20 }
 0xa3e   : > { %5149 = vmatpush3.xpose.msk.msra.mxu1 %vm612_vm2, %v1726_v26  ;;  %5150 = vmatprep.mubr.msk.f32.mxu1 %vm5759_vm1, %v5760_v13  ;;  %v1807_v28 = vpop.permute.xlu0 %1806  ;;  %v4805_v26 = vld [vmem:[%s6582_s6 + $0x20] sm:$0xff] }
 0xa3f   : > { %5158 = vmatprep.subr.mxu1 %v5760_v13  ;;  %5155 = vmatprep.mubr.msk.f32.mxu0 %vm5759_vm1, %v5760_v13 }
 0xa41   : > { %5151 = vmatmul.mubr.msk.f32.vlgmr.msra.gmra.mrb[14].mxu1 %vm612_vm2, %v6062_v22 }
 0xa42   : > { %5160 = vmatprep.mubr.msk.f32.mxu1 %vm5759_vm1, %v5760_v13 }
 0xaa1   : > { %v1569_v27 = vpop.f32.mrb[10].mxu0 }
 0xaa2   : > { %v1801_v29 = vmul.f32 0.35355338, %v1569_v27  ;;  %v5137_v30 = vpop.f32.mrb[11].mxu0  ;;  %v4806_v27 = vld [vmem:[%s6582_s6 + $0x28] sm:$0xff] }
 0xaa3   : > { %v4808_v30 = vld [vmem:[%s6582_s6 + $0x38] sm:$0xff] }
 0xaa4   : > { %v1809_v31 = vadd.f32 %v1807_v28, %v1801_v29  ;;  %v4807_v29 = vld [vmem:[%s6582_s6 + $0x30] sm:$0xff] }
 0xaa6   : > { %v1813_v32 = vsel %vm612_vm2, %v1809_v31, -inf }
 0xaa7   : > { %1814 = vmax.xlane.f32.xlu1 %v1813_v32 }
 0xb10   : > { %v1645_v33 = vpop.f32.mrb[12].mxu1  ;;  %v1721_v34 = vpop.f32.mrb[12].mxu0 }
 0xb11   : > { %v1802_v36 = vmul.f32 0.35355338, %v1645_v33  ;;  %v1803_v37 = vmul.f32 0.35355338, %v1721_v34  ;;  %v5142_v38 = vpop.f32.mrb[13].mxu1  ;;  %v5147_v39 = vpop.f32.mrb[13].mxu0 }
 0xb13   : > { %v1810_v40 = vadd.f32 %v1807_v28, %v1802_v36  ;;  %v1811_v45 = vadd.f32 %v1807_v28, %v1803_v37 }
 0xb14   : > { %v1797_v41 = vpop.f32.mrb[14].mxu1 }
 0xb15   : > { %v1804_v42 = vmul.f32 0.35355338, %v1797_v41  ;;  %v5152_v43 = vpop.f32.mrb[15].mxu1  ;;  %v1816_v44 = vsel %vm612_vm2, %v1810_v40, -inf  ;;  %v1819_v48 = vsel %vm612_vm2, %v1811_v45, -inf }
 0xb16   : > { %1817 = vmax.xlane.f32.xlu0 %v1816_v44 }
 0xb17   : > { %v1812_v46 = vadd.f32 %v1807_v28, %v1804_v42  ;;  %v5427_v28 = vpack.c.bf16 %v4806_v27, %v4805_v26 }
 0xb19   : > { %v1822_v47 = vsel %vm612_vm2, %v1812_v46, -inf }
 0xb1a   : > { %1823 = vmax.xlane.f32.xlu1 %v1822_v47  ;;  %1820 = vmax.xlane.f32.xlu0 %v1819_v48 }
 0xb2b   : > { %1933 = vrot.lane.b32.xlu1 %v1492_v21, %s6612_s24 }
 0xb30   : > { %1857 = vrot.lane.b32.xlu0 %v1487_v18, %s6612_s24 }
 0xb34   : > { %v1815_v49 = vpop.xlane.xlu1 %1814 }
 0xb35   : > { %v1825_v50 = vsub.f32 %v1809_v31, %v1815_v49  ;;  %v5430_v31 = vpack.c.bf16 %v4808_v30, %v4807_v29 }
 0xb37   : > { %v1829_v51 = vmul.f32 1.442695, %v1825_v50 }
 0xb39   : > { %5691 = vpow2.f32 %v1829_v51  ;;  %v4816_v51 = vld [vmem:[%s6580_s4 + $0x40] sm:$0xff] }
 0xb43   : > { %v5692_v52 = vpop.eup %5691 }
 0xb44   : > { %v1837_v53 = vsel %vm612_vm2, %v5692_v52, 0.0 }
 0xb4f   : > { %1838 = vadd.xlane.f32.xlu0 %v1837_v53  ;;  %v4818_v53 = vld [vmem:[%s6580_s4 + $0x50] sm:$0xff] }
 0xba3   : > { %v1818_v54 = vpop.xlane.xlu0 %1817 }
 0xba4   : > { %v1826_v55 = vsub.f32 %v1810_v40, %v1818_v54 }
 0xba6   : > { %v1831_v57 = vmul.f32 1.442695, %v1826_v55 }
 0xba7   : > { %v1824_v58 = vpop.xlane.xlu1 %1823  ;;  %v1821_v59 = vpop.xlane.xlu0 %1820 }
 0xba8   : > { %5693 = vpow2.f32 %v1831_v57  ;;  %v1828_v60 = vsub.f32 %v1812_v46, %v1824_v58  ;;  %v1827_v61 = vsub.f32 %v1811_v45, %v1821_v59  ;;  %v4810_v45 = vld [vmem:[%s6583_s7 + $0x1] ss:$0 sm:$0xff] }
 0xbaa   : > { %v1835_v62 = vmul.f32 1.442695, %v1828_v60  ;;  %v1833_v63 = vmul.f32 1.442695, %v1827_v61 }
 0xbab   : > { %v1934_v0 = vpop.permute.xlu1 %1933  ;;  %v1858_v1 = vpop.permute.xlu0 %1857 }
 0xbac   : > { %5695 = vpow2.f32 %v1835_v62  ;;  %5154 = vmatpush3.msra.mxu0 %v1858_v1  ;;  %5159 = vmatpush3.msra.mxu1 %v1934_v0 }
 0xbad   : > { %5697 = vpow2.f32 %v1833_v63  ;;  %5163 = vmatprep.subr.mxu0 %v5760_v13  ;;  %5168 = vmatprep.subr.mxu1 %v5760_v13 }
 0xbb2   : > { %v5694_v2 = vpop.eup %5693 }
 0xbb3   : > { %v1840_v3 = vsel %vm612_vm2, %v5694_v2, 0.0 }
 0xbb4   : > { %1841 = vadd.xlane.f32.xlu1 %v1840_v3 }
 0xbb6   : > { %v5696_v4 = vpop.eup %5695 }
 0xbb7   : > { %v5698_v5 = vpop.eup %5697  ;;  %v1846_v6 = vsel %vm612_vm2, %v5696_v4, 0.0 }
 0xbb8   : > { %1847 = vadd.xlane.f32.xlu1 %v1846_v6  ;;  %v1843_v7 = vsel %vm612_vm2, %v5698_v5, 0.0 }
 0xbb9   : > { %1844 = vadd.xlane.f32.xlu0 %v1843_v7 }
 0xbc9   : > { %2009 = vrot.lane.b32.xlu1 %v6057_v20, %s6612_s24 }
 0xbcf   : > { %2085 = vrot.lane.b32.xlu0 %v6062_v22, %s6612_s24 }
 0xbdc   : > { %v1839_v8 = vpop.xlane.xlu0 %1838 }
 0xbdd   : > { %5699 = vrcp.f32 %v1839_v8 }
 0xbe7   : > { %v5700_v9 = vpop.eup %5699 }
 0xbe8   : > { %v1853_v11 = vmul.f32 %v5700_v9, %v5692_v52  ;;  %v4817_v52 = vld [vmem:[%s6580_s4 + $0x48] sm:$0xff] }
 0xbe9   : > { %v5581_v54 = vpack.i.bf16 %v4817_v52, %v4816_v51  ;;  %v5433_v55 = vpack.c.bf16 %v4817_v52, %v4816_v51 }
 0xbea   : > { %5156 = vmatmul.mubr.msk.f32.vlgmr.msra.gmra.mrb[14].mxu0 %vm612_vm2, %v1853_v11 }
 0xbeb   : > { %5165 = vmatprep.mubr.msk.f32.mxu0 %vm5759_vm1, %v5760_v13 }
 0xc41   : > { %v1842_v12 = vpop.xlane.xlu1 %1841 }
 0xc42   : > { %5701 = vrcp.f32 %v1842_v12 }
 0xc45   : > { %v1848_v14 = vpop.xlane.xlu1 %1847 }
 0xc46   : > { %5703 = vrcp.f32 %v1848_v14  ;;  %v1845_v15 = vpop.xlane.xlu0 %1844 }
 0xc47   : > { %5705 = vrcp.f32 %v1845_v15  ;;  %v6173_v15 = vld [vmem:[%s5860_s18 + $0x10] sm:$0xff] }
 0xc49   : > { %v2010_v16 = vpop.permute.xlu1 %2009 }
 0xc4a   : > { %5164 = vmatpush3.msra.mxu0 %v2010_v16  ;;  %v2086_v19 = vpop.permute.xlu0 %2085 }
 0xc4b   : > { %5426 = vmatprep.subr.bf16.mxu0 %v5758_v10 }
 0xc4c   : > { %v5702_v17 = vpop.eup %5701 }
 0xc4d   : > { %v1854_v18 = vmul.f32 %v5702_v17, %v5694_v2  ;;  %v4813_v17 = vld [vmem:[%s6578_s2 + $0x2] ss:$0 sm:$0xff] }
 0xc4f   : > { %5161 = vmatmul.mubr.msk.f32.vlgmr.msra.gmra.mrb[16].mxu1 %vm612_vm2, %v1854_v18 }
 0xc50   : > { %v5704_v20 = vpop.eup %5703  ;;  %5169 = vmatpush3.msra.mxu1 %v2086_v19  ;;  %5170 = vmatprep.mubr.msk.f32.mxu1 %vm5759_vm1, %v5760_v13  ;;  %v4815_v19 = vld [vmem:[%s6579_s3 + $0x2] ss:$0 sm:$0xff] }
 0xc51   : > { %v5706_v21 = vpop.eup %5705  ;;  %v1856_v22 = vmul.f32 %v5704_v20, %v5696_v4  ;;  %5432 = vmatprep.subr.bf16.mxu1 %v5758_v10  ;;  %v484_v4 = vld [vmem:[%s5860_s18 + $0x8] sm:$0xff] }
 0xc52   : > { %v1855_v23 = vmul.f32 %v5706_v21, %v5698_v5  ;;  %v4821_v5 = vld [vmem:[%s6581_s5 + $0x2] ss:$0 sm:$0xff] }
 0xc53   : > { %5171 = vmatmul.mubr.msk.f32.vlgmr.msra.gmra.mrb[18].mxu1 %vm612_vm2, %v1856_v22 }
 0xc54   : > { %5166 = vmatmul.mubr.msk.f32.vlgmr.msra.gmra.mrb[16].mxu0 %vm612_vm2, %v1855_v23  ;;  %5192 = vmatprep.mubr.msk.f32.mxu1 %vm5759_vm1, %v5760_v13 }
 0xc55   : > { %5181 = vmatprep.mubr.msk.f32.mxu0 %vm5759_vm1, %v5760_v13  ;;  %5428 = vmatpush3.bf16.msra.mxu0 %v5427_v28 }
 0xc56   : > { %5429 = vmatprep.subr.bf16.mxu0 %v5758_v10  ;;  %5434 = vmatpush3.bf16.msra.mxu1 %v5433_v55 }
 0xc57   : > { %5435 = vmatprep.subr.bf16.mxu1 %v5758_v10 }
 0xc59   : > { %5431 = vmatpush3.bf16.msra.mxu0 %v5430_v31 }
 0xcbd   : > { %v1929_v24 = vpop.f32.mrb[14].mxu0 }
 0xcbe   : > { %v5157_v25 = vpop.f32.mrb[15].mxu0 }
 0xd22   : > { %v2005_v32 = vpop.f32.mrb[16].mxu1 }
 0xd23   : > { %2162 = vrot.lane.b32.xlu1 %v2005_v32, %s6613_s28  ;;  %v5162_v33 = vpop.f32.mrb[17].mxu1 }
 0xd26   : > { %v2157_v34 = vpop.f32.mrb[18].mxu1 }
 0xd27   : > { %v2081_v36 = vpop.f32.mrb[16].mxu0  ;;  %2170 = vrot.lane.b32.xlu1 %v2157_v34, %s6614_s19  ;;  %v5172_v37 = vpop.f32.mrb[19].mxu1 }
 0xd28   : > { %2166 = vrot.lane.b32.xlu0 %v2081_v36, %s6615_s25  ;;  %v5167_v38 = vpop.f32.mrb[17].mxu0 }
 0xd95   : > { %v2163_v39 = vpop.permute.xlu1 %2162 }
 0xd96   : > { %v2173_v41 = vsel %vm612_vm2, %v1929_v24, %v2163_v39 }
 0xd99   : > { %v2171_v40 = vpop.permute.xlu1 %2170 }
 0xd9a   : > { %v2167_v42 = vpop.permute.xlu0 %2166 }
 0xd9b   : > { %v2174_v43 = vsel %vm1284_vm3, %v2173_v41, %v2167_v42 }
 0xd9c   : > { %v2175_v44 = vsel %vm1286_vm4, %v2174_v43, %v2171_v40 }
 0xd9d   : > { %5182 = vmatmul.mubr.msk.f32.vlgmr.msra.gmra.mrb[18].mxu0 %vm488_vm0, %v2175_v44 }
 0xd9e   : > { %5203 = vmatprep.mubr.msk.f32.mxu0 %vm488_vm0, %v484_v4 }
 0xe70   : > { %v2258_v46 = vpop.f32.mrb[18].mxu0 }
 0xe71   : > { %v2259_v47 = vadd.f32 %v4810_v45, %v2258_v46  ;;  %v5183_v48 = vpop.f32.mrb[19].mxu0 }
 0xe73   : > { %v6144_v49 = vadd.f32 %v2259_v47, %v6021_v56  ;;  %v4819_v56 = vld [vmem:[%s6580_s4 + $0x58] sm:$0xff] }
 0xe74   : > { %v5586_v57 = vpack.i.bf16 %v4819_v56, %v4818_v53  ;;  %v5436_v58 = vpack.c.bf16 %v4819_v56, %v4818_v53 }
 0xe75   : > { %v2263_v50 = vsel %vm488_vm0, %v6144_v49, 0.0 }
 0xe76   : > { %2264 = vadd.xlane.f32.xlu0 %v2263_v50  ;;  %5437 = vmatpush3.bf16.msra.mxu1 %v5436_v58 }
 0xe77   : > { %5446 = vmatprep.subr.bf16.mxu1 %v5758_v10 }
 0xe8c   : > { %5582 = vrot.lane.b32.xlu0 %v5581_v54, %s6606_s23 }
 0xe90   : > { %2396 = vrot.lane.b32.xlu0 %v4821_v5, %s6606_s23 }
 0xf03   : > { %v2265_v59 = vpop.xlane.xlu0 %2264 }
 0xf04   : > { %v2266_v60 = vmul.f32 0.03125, %v2265_v59 }
 0xf06   : > { %v2267_v61 = vsub.f32 %v6144_v49, %v2266_v60 }
 0xf07   : > { %v5583_v62 = vpop.permute.xlu0 %5582 }
 0xf08   : > { %v2268_v63 = vmul.f32 %v2267_v61, %v2267_v61  ;;  %v5585_v0 = vunpack.i.h.bf16 %v5583_v62  ;;  %v5584_v1 = vunpack.i.l.bf16 %v5583_v62 }
 0xf0a   : > { %v2269_v2 = vsel %vm488_vm0, %v2268_v63, 0.0  ;;  %v5438_v3 = vpack.c.bf16 %v5585_v0, %v5584_v1 }
 0xf0b   : > { %2270 = vadd.xlane.f32.xlu1 %v2269_v2  ;;  %v2397_v22 = vpop.permute.xlu0 %2396 }
 0xf0c   : > { %5439 = vmatprep.subr.bf16.mxu0 %v5438_v3 }
 0xf0d   : > { %5441 = vmatpush3.bf16.msra.mxu0 %v5438_v3 }
 0xf1c   : > { %5587 = vrot.lane.b32.xlu1 %v5586_v57, %s6606_s23 }
 0xf98   : > { %v2271_v6 = vpop.xlane.xlu1 %2270 }
 0xf99   : > { %v2272_v7 = vmul.f32 0.03125, %v2271_v6 }
 0xf9b   : > { %v2273_v8 = vadd.f32 1e-05, %v2272_v7 }
 0xf9c   : > { %v5588_v9 = vpop.permute.xlu1 %5587 }
 0xf9d   : > { %5707 = vrsqrt.f32 %v2273_v8  ;;  %v5590_v11 = vunpack.i.h.bf16 %v5588_v9  ;;  %v5589_v12 = vunpack.i.l.bf16 %v5588_v9 }
 0xf9f   : > { %v5442_v14 = vpack.c.bf16 %v5590_v11, %v5589_v12 }
 0xfa1   : > { %5443 = vmatprep.subr.bf16.mxu0 %v5442_v14 }
 0xfa2   : > { %5445 = vmatpush3.bf16.msra.mxu0 %v5442_v14 }
 0xfa3   : > { %5450 = vmatprep.subr.bf16.mxu0 %v5758_v10 }
 0xfa5   : > { %5204 = vmatmul.mubr.msk.f32.vlgmr.msra.gmra.mrb[20].mxu0 %vm488_vm0, %v6173_v15 }
 0xfa6   : > { %5217 = vmatprep.mubr.msk.f32.mxu0 %vm5759_vm1, %v5760_v13 }
 0xfa7   : > { %v5708_v16 = vpop.eup %5707 }
 0xfa8   : > { %v2275_v18 = vmul.f32 %v5708_v16, %v2267_v61 }
 0xfaa   : > { %v2284_v20 = vmul.f32 %v4813_v17, %v2275_v18 }
 0xfac   : > { %v2293_v21 = vadd.f32 %v4815_v19, %v2284_v20 }
 0xfae   : > { %5193 = vmatmul.mubr.msk.f32.vlgmr.msra.gmra.mrb[20].mxu1 %vm488_vm0, %v2293_v21 }
 0xfaf   : > { %5210 = vmatprep.mubr.msk.f32.mxu1 %vm5759_vm1, %v5760_v13 }
0x1078   : > { %v5205_v23 = vpop.f32.mrb[20].mxu0 }
0x1079   : > { %v2477_v24 = vadd.f32 %v5205_v23, %v2397_v22  ;;  %v2471_v25 = vpop.f32.mrb[21].mxu0  ;;  %v4886_v23 = vld [vmem:[%s6582_s6 + $0x68] sm:$0xff] }
0x107a   : > { %v2472_v26 = vadd.f32 %v2471_v25, %v2397_v22 }
0x107c   : > { %v6189_v27 = vpack.i.bf16 %v2477_v24, %v2472_v26  ;;  %v5447_v28 = vpack.c.bf16 %v2477_v24, %v2472_v26 }
0x107e   : > { %5597 = vrot.lane.b32.xlu0 %v6189_v27, %s6618_s16  ;;  %5592 = vrot.lane.b32.xlu1 %v6189_v27, %s6619_s26 }
0x107f   : > { %5449 = vmatpush3.bf16.xpose.msk.msra.mxu1 %vm6193_vm5, %v5447_v28 }
0x1080   : > { %5454 = vmatprep.subr.bf16.mxu1 %v5758_v10 }
0x1081   : > { %v2376_v30 = vpop.f32.mrb[20].mxu1 }
0x1082   : > { %v2377_v31 = vadd.f32 %v4821_v5, %v2376_v30  ;;  %v5194_v32 = vpop.f32.mrb[21].mxu1  ;;  %5602 = vrot.lane.b32.xlu1 %v6189_v27, %s6620_s20 }
0x1084   : > { %2481 = vrot.lane.b32.xlu0 %v2377_v31, %s6619_s26 }
0x1086   : > { %5211 = vmatmul.mubr.msk.f32.vlgmr.msra.gmra.mrb[22].mxu1 %vm612_vm2, %v2377_v31  ;;  %2483 = vrot.lane.b32.xlu1 %v2377_v31, %s6618_s16 }
0x1087   : > { %5224 = vmatprep.mubr.msk.f32.mxu1 %vm5759_vm1, %v5760_v13 }
0x1088   : > { %2485 = vrot.lane.b32.xlu0 %v2377_v31, %s6620_s20 }
0x108a   : > { %2809 = vrot.lane.b32.xlu1 %v5956_v35, %s6618_s16 }
0x10f0   : > { %v6214_v33 = vpop.permute.xlu0 %5597  ;;  %v6216_v34 = vpop.permute.xlu1 %5592 }
0x10f1   : > { %v5600_v36 = vunpack.i.h.bf16 %v6214_v33  ;;  %v5599_v37 = vunpack.i.l.bf16 %v6214_v33  ;;  %v5595_v38 = vunpack.i.h.bf16 %v6216_v34  ;;  %v5594_v39 = vunpack.i.l.bf16 %v6216_v34 }
0x10f3   : > { %v5455_v40 = vpack.c.bf16 %v5600_v36, %v5599_v37  ;;  %v5451_v41 = vpack.c.bf16 %v5595_v38, %v5594_v39 }
0x10f4   : > { %v6222_v42 = vpop.permute.xlu1 %5602 }
0x10f5   : > { %v5605_v43 = vunpack.i.h.bf16 %v6222_v42  ;;  %v5604_v35 = vunpack.i.l.bf16 %v6222_v42  ;;  %5453 = vmatpush3.bf16.xpose.msk.msra.mxu0 %vm6193_vm5, %v5451_v41  ;;  %5457 = vmatpush3.bf16.xpose.msk.msra.mxu1 %vm6193_vm5, %v5455_v40 }
0x10f6   : > { %5458 = vmatprep.subr.bf16.mxu0 %v5758_v10  ;;  %5462 = vmatprep.subr.bf16.mxu1 %v5758_v10  ;;  %v2482_v45 = vpop.permute.xlu0 %2481 }
0x10f7   : > { %v5459_v44 = vpack.c.bf16 %v5605_v43, %v5604_v35 }
0x10f8   : > { %v2484_v46 = vpop.permute.xlu1 %2483 }
0x10fa   : > { %v2486_v47 = vpop.permute.xlu0 %2485 }
0x10fc   : > { %5218 = vmatmul.mubr.msk.f32.vlgmr.msra.gmra.mrb[22].mxu0 %vm612_vm2, %v2482_v45  ;;  %5225 = vmatmul.mubr.msk.f32.vlgmr.msra.gmra.mrb[24].mxu1 %vm612_vm2, %v2484_v46  ;;  %v6244_v50 = vpop.permute.xlu1 %2809 }
0x10fd   : > { %5461 = vmatpush3.bf16.xpose.msk.msra.mxu0 %vm6193_vm5, %v5459_v44  ;;  %5231 = vmatprep.mubr.msk.f32.mxu0 %vm5759_vm1, %v5760_v13 }
0x10fe   : > { %5238 = vmatprep.mubr.msk.f32.mxu1 %vm5759_vm1, %v5760_v13  ;;  %5470 = vmatprep.subr.bf16.mxu0 %v5758_v10 }
0x1104   : > { %5232 = vmatmul.mubr.msk.f32.vlgmr.msra.gmra.mrb[24].mxu0 %vm612_vm2, %v2486_v47 }
0x1105   : > { %5252 = vmatprep.mubr.msk.f32.mxu0 %vm5759_vm1, %v5760_v13 }
0x1159   : > { %v2573_v48 = vpop.f32.mrb[22].mxu1 }
0x115a   : > { %v2805_v51 = vmul.f32 0.35355338, %v2573_v48  ;;  %v5212_v52 = vpop.f32.mrb[23].mxu1 }
0x115c   : > { %v2812_v53 = vadd.f32 %v6244_v50, %v2805_v51 }
0x115e   : > { %v2817_v54 = vsel %vm2816_vm6, %v2812_v53, -inf }
0x115f   : > { %2818 = vmax.xlane.f32.xlu0 %v2817_v54 }
0x11cf   : > { %v2649_v55 = vpop.f32.mrb[22].mxu0  ;;  %v2725_v56 = vpop.f32.mrb[24].mxu1 }
0x11d0   : > { %v2806_v57 = vmul.f32 0.35355338, %v2649_v55  ;;  %v2807_v58 = vmul.f32 0.35355338, %v2725_v56  ;;  %v5219_v59 = vpop.f32.mrb[23].mxu0  ;;  %v5226_v60 = vpop.f32.mrb[25].mxu1 }
0x11d2   : > { %v2813_v61 = vadd.f32 %v6244_v50, %v2806_v57  ;;  %v2814_v62 = vadd.f32 %v6244_v50, %v2807_v58 }
0x11d4   : > { %v2820_v63 = vsel %vm2816_vm6, %v2813_v61, -inf  ;;  %v2823_v0 = vsel %vm2816_vm6, %v2814_v62, -inf }
0x11d5   : > { %2821 = vmax.xlane.f32.xlu1 %v2820_v63  ;;  %2824 = vmax.xlane.f32.xlu0 %v2823_v0  ;;  %v4845_v63 = vld [vmem:[%s6582_s6 + $0x40] sm:$0xff]  ;;  %v4846_v0 = vld [vmem:[%s6582_s6 + $0x48] sm:$0xff] }
0x11d7   : > { %v2801_v1 = vpop.f32.mrb[24].mxu0 }
0x11d8   : > { %v2808_v2 = vmul.f32 0.35355338, %v2801_v1  ;;  %v5233_v3 = vpop.f32.mrb[25].mxu0  ;;  %v5479_v1 = vpack.c.bf16 %v4846_v0, %v4845_v63 }
0x11d9   : > { %v4848_v3 = vld [vmem:[%s6582_s6 + $0x58] sm:$0xff] }
0x11da   : > { %v2815_v4 = vadd.f32 %v6244_v50, %v2808_v2  ;;  %v4847_v2 = vld [vmem:[%s6582_s6 + $0x50] sm:$0xff] }
0x11dc   : > { %v2826_v5 = vsel %vm2816_vm6, %v2815_v4, -inf }
0x11dd   : > { %2827 = vmax.xlane.f32.xlu0 %v2826_v5 }
0x11e6   : > { %5607 = vrot.lane.b32.xlu1 %v6189_v27, %s6606_s23 }
0x11ec   : > { %v2819_v6 = vpop.xlane.xlu0 %2818 }
0x11ed   : > { %v2829_v7 = vsub.f32 %v2812_v53, %v2819_v6 }
0x11ef   : > { %v2833_v8 = vmul.f32 1.442695, %v2829_v7 }
0x11f1   : > { %5709 = vpow2.f32 %v2833_v8 }
0x11fb   : > { %v5710_v9 = vpop.eup %5709 }
0x11fc   : > { %v2841_v11 = vsel %vm2816_vm6, %v5710_v9, 0.0 }
0x120a   : > { %2842 = vadd.xlane.f32.xlu1 %v2841_v11 }
0x1262   : > { %v2822_v12 = vpop.xlane.xlu1 %2821  ;;  %v2825_v14 = vpop.xlane.xlu0 %2824 }
0x1263   : > { %v2830_v16 = vsub.f32 %v2813_v61, %v2822_v12  ;;  %v2831_v17 = vsub.f32 %v2814_v62, %v2825_v14 }
0x1265   : > { %v2835_v18 = vmul.f32 1.442695, %v2830_v16  ;;  %v2837_v19 = vmul.f32 1.442695, %v2831_v17 }
0x1266   : > { %v5608_v20 = vpop.permute.xlu1 %5607 }
0x1267   : > { %5711 = vpow2.f32 %v2835_v18  ;;  %v5610_v21 = vunpack.i.h.bf16 %v5608_v20  ;;  %v5609_v22 = vunpack.i.l.bf16 %v5608_v20  ;;  %v4850_v20 = vld [vmem:[%s6583_s7 + $0x2] ss:$0 sm:$0xff] }
0x1268   : > { %5713 = vpow2.f32 %v2837_v19 }
0x1269   : > { %v5463_v24 = vpack.c.bf16 %v5610_v21, %v5609_v22 }
0x126a   : > { %v2828_v25 = vpop.xlane.xlu0 %2827 }
0x126b   : > { %v2832_v26 = vsub.f32 %v2815_v4, %v2828_v25  ;;  %5465 = vmatpush3.bf16.msk.msra.mxu1 %vm6257_vm9, %v5463_v24  ;;  %v5482_v4 = vpack.c.bf16 %v4848_v3, %v4847_v2 }
0x126c   : > { %5466 = vmatprep.subr.bf16.mxu1 %v5758_v10 }
0x126d   : > { %v2839_v27 = vmul.f32 1.442695, %v2832_v26 }
0x126f   : > { %5715 = vpow2.f32 %v2839_v27  ;;  %v4856_v27 = vld [vmem:[%s6580_s4 + $0x60] sm:$0xff] }
0x1271   : > { %v5712_v28 = vpop.eup %5711 }
0x1272   : > { %v5714_v30 = vpop.eup %5713  ;;  %v2844_v31 = vsel %vm2816_vm6, %v5712_v28, 0.0 }
0x1273   : > { %2845 = vadd.xlane.f32.xlu0 %v2844_v31  ;;  %v2847_v32 = vsel %vm2816_vm6, %v5714_v30, 0.0 }
0x1274   : > { %2848 = vadd.xlane.f32.xlu1 %v2847_v32  ;;  %v4859_v32 = vld [vmem:[%s6580_s4 + $0x78] sm:$0xff] }
0x1279   : > { %v5716_v36 = vpop.eup %5715 }
0x127a   : > { %v2850_v37 = vsel %vm2816_vm6, %v5716_v36, 0.0 }
0x127b   : > { %2851 = vadd.xlane.f32.xlu0 %v2850_v37 }
0x1285   : > { %5617 = vrot.lane.b32.xlu1 %v6214_v33, %s6606_s23 }
0x1289   : > { %5622 = vrot.lane.b32.xlu1 %v6222_v42, %s6606_s23 }
0x1291   : > { %5612 = vrot.lane.b32.xlu0 %v6216_v34, %s6606_s23  ;;  %s6623_s23 = smov 96  }
0x1297   : > { %v2843_v38 = vpop.xlane.xlu1 %2842 }
0x1298   : > { %5717 = vrcp.f32 %v2843_v38 }
0x12a2   : > { %v5718_v39 = vpop.eup %5717 }
0x12a3   : > { %v2857_v40 = vmul.f32 %v5718_v39, %v5710_v9 }
0x12a5   : > { %5239 = vmatmul.mubr.msk.f32.vlgmr.msra.gmra.mrb[26].mxu1 %vm2816_vm6, %v2857_v40 }
0x12a6   : > { %5245 = vmatprep.mubr.msk.f32.mxu1 %vm5759_vm1, %v5760_v13 }
0x1300   : > { %v2846_v43 = vpop.xlane.xlu0 %2845 }
0x1301   : > { %v2849_v41 = vpop.xlane.xlu1 %2848 }
0x1302   : > { %5719 = vrcp.f32 %v2849_v41 }
0x1303   : > { %5721 = vrcp.f32 %v2846_v43 }
0x1305   : > { %v5618_v33 = vpop.permute.xlu1 %5617 }
0x1306   : > { %v5620_v35 = vunpack.i.h.bf16 %v5618_v33  ;;  %v5619_v44 = vunpack.i.l.bf16 %v5618_v33  ;;  %v3403_v33 = vrot.slane %v6173_v15, 2 }
0x1308   : > { %v5471_v42 = vpack.c.bf16 %v5620_v35, %v5619_v44  ;;  %v2852_v45 = vpop.xlane.xlu0 %2851  ;;  %v486_v35 = vld [vmem:[%s5860_s18 + $0x18] sm:$0xf] }
0x1309   : > { %5723 = vrcp.f32 %v2852_v45  ;;  %v5623_v46 = vpop.permute.xlu1 %5622  ;;  %v3404_v44 = vrot.slane %v486_v35, 2  ;;  %v4861_v45 = vld [vmem:[%s6581_s5 + $0x3] ss:$0 sm:$0xff] }
0x130a   : > { %5473 = vmatpush3.bf16.msk.msra.mxu0 %vm6257_vm9, %v5471_v42  ;;  %v5625_v54 = vunpack.i.h.bf16 %v5623_v46  ;;  %v5624_v55 = vunpack.i.l.bf16 %v5623_v46 }
0x130b   : > { %5478 = vmatprep.subr.bf16.mxu0 %v5758_v10  ;;  %v3405_v42 = vsel %vm3402_vm10, %v3403_v33, %v3404_v44 }
0x130c   : > { %v5720_v34 = vpop.eup %5719  ;;  %v5613_v47 = vpop.permute.xlu0 %5612  ;;  %v5475_v59 = vpack.c.bf16 %v5625_v54, %v5624_v55 }
0x130d   : > { %v2859_v48 = vmul.f32 %v5720_v34, %v5714_v30  ;;  %v5615_v51 = vunpack.i.h.bf16 %v5613_v47  ;;  %v5614_v52 = vunpack.i.l.bf16 %v5613_v47  ;;  %v5722_v53 = vpop.eup %5721 }
0x130e   : > { %v2858_v57 = vmul.f32 %v5722_v53, %v5712_v28  ;;  %v4857_v28 = vld [vmem:[%s6580_s4 + $0x68] sm:$0xff] }
0x130f   : > { %v5467_v56 = vpack.c.bf16 %v5615_v51, %v5614_v52  ;;  %5253 = vmatmul.mubr.msk.f32.vlgmr.msra.gmra.mrb[26].mxu0 %vm2816_vm6, %v2859_v48  ;;  %v5626_v30 = vpack.i.bf16 %v4857_v28, %v4856_v27  ;;  %v5485_v31 = vpack.c.bf16 %v4857_v28, %v4856_v27 }
0x1310   : > { %5270 = vmatprep.mubr.msk.f32.mxu0 %vm5759_vm1, %v5760_v13  ;;  %5480 = vmatpush3.bf16.msra.mxu0 %v5479_v1 }
0x1311   : > { %5469 = vmatpush3.bf16.msk.msra.mxu1 %vm6257_vm9, %v5467_v56  ;;  %5481 = vmatprep.subr.bf16.mxu0 %v5758_v10 }
0x1312   : > { %5474 = vmatprep.subr.bf16.mxu1 %v5758_v10 }
0x1313   : > { %v5724_v58 = vpop.eup %5723 }
0x1314   : > { %5246 = vmatmul.mubr.msk.f32.vlgmr.msra.gmra.mrb[28].mxu1 %vm2816_vm6, %v2858_v57  ;;  %v2860_v60 = vmul.f32 %v5724_v58, %v5716_v36  ;;  %5483 = vmatpush3.bf16.msra.mxu0 %v5482_v4  ;;  %v4853_v58 = vld [vmem:[%s6578_s2 + $0x3] ss:$0 sm:$0xff] }
0x1315   : > { %5477 = vmatpush3.bf16.msk.msra.mxu1 %vm6257_vm9, %v5475_v59  ;;  %5259 = vmatprep.mubr.msk.f32.mxu1 %vm5759_vm1, %v5760_v13 }
0x1316   : > { %5484 = vmatprep.subr.bf16.mxu1 %v5758_v10 }
0x1318   : > { %5260 = vmatmul.mubr.msk.f32.vlgmr.msra.gmra.mrb[30].mxu1 %vm2816_vm6, %v2860_v60  ;;  %v4855_v60 = vld [vmem:[%s6579_s3 + $0x3] ss:$0 sm:$0xff] }
0x1319   : > { %5281 = vmatprep.mubr.msk.f32.mxu1 %vm5759_vm1, %v5760_v13  ;;  %5486 = vmatpush3.bf16.msra.mxu1 %v5485_v31 }
0x131a   : > { %5487 = vmatprep.subr.bf16.mxu1 %v5758_v10 }
0x1378   : > { %v2938_v61 = vpop.f32.mrb[26].mxu1 }
0x1379   : > { %v5240_v62 = vpop.f32.mrb[27].mxu1 }
0x13e2   : > { %v3098_v5 = vpop.f32.mrb[26].mxu0 }
0x13e3   : > { %3187 = vrot.lane.b32.xlu1 %v3098_v5, %s6615_s25  ;;  %v5254_v6 = vpop.f32.mrb[27].mxu0 }
0x13e7   : > { %v3018_v7 = vpop.f32.mrb[28].mxu1 }
0x13e8   : > { %3183 = vrot.lane.b32.xlu0 %v3018_v7, %s6613_s28  ;;  %v5247_v8 = vpop.f32.mrb[29].mxu1 }
0x13eb   : > { %v3178_v9 = vpop.f32.mrb[30].mxu1 }
0x13ec   : > { %3191 = vrot.lane.b32.xlu0 %v3178_v9, %s6614_s19  ;;  %v5261_v11 = vpop.f32.mrb[31].mxu1 }
0x1455   : > { %v3188_v16 = vpop.permute.xlu1 %3187 }
0x145a   : > { %v3184_v12 = vpop.permute.xlu0 %3183 }
0x145b   : > { %v3194_v14 = vsel %vm612_vm2, %v2938_v61, %v3184_v12 }
0x145c   : > { %v3195_v17 = vsel %vm1284_vm3, %v3194_v14, %v3188_v16 }
0x145e   : > { %v3192_v18 = vpop.permute.xlu0 %3191 }
0x145f   : > { %v3196_v19 = vsel %vm1286_vm4, %v3195_v17, %v3192_v18 }
0x1460   : > { %5271 = vmatmul.mubr.msk.f32.vlgmr.msra.gmra.mrb[28].mxu0 %vm488_vm0, %v3196_v19 }
0x1461   : > { %5292 = vmatprep.mubr.msk.f32.mxu0 %vm488_vm0, %v3405_v42 }
0x1533   : > { %v3279_v21 = vpop.f32.mrb[28].mxu0 }
0x1534   : > { %v3280_v22 = vadd.f32 %v4850_v20, %v3279_v21  ;;  %v5272_v24 = vpop.f32.mrb[29].mxu0 }
0x1536   : > { %v6318_v25 = vadd.f32 %v3280_v22, %v6144_v49  ;;  %v4858_v49 = vld [vmem:[%s6580_s4 + $0x70] sm:$0xff] }
0x1537   : > { %v5631_v36 = vpack.i.bf16 %v4859_v32, %v4858_v49  ;;  %v5488_v37 = vpack.c.bf16 %v4859_v32, %v4858_v49 }
0x1538   : > { %v3284_v26 = vsel %vm488_vm0, %v6318_v25, 0.0 }
0x1539   : > { %3285 = vadd.xlane.f32.xlu1 %v3284_v26  ;;  %5489 = vmatpush3.bf16.msra.mxu1 %v5488_v37 }
0x153a   : > { %5498 = vmatprep.subr.bf16.mxu1 %v5758_v10 }
0x154a   : > { %5632 = vrot.lane.b32.xlu1 %v5631_v36, %s6623_s23 }
0x154e   : > { %3422 = vrot.lane.b32.xlu1 %v4861_v45, %s6623_s23 }
0x15c6   : > { %v3286_v38 = vpop.xlane.xlu1 %3285 }
0x15c7   : > { %v3287_v39 = vmul.f32 0.03125, %v3286_v38 }
0x15c9   : > { %v3288_v40 = vsub.f32 %v6318_v25, %v3287_v39 }
0x15ca   : > { %v5633_v46 = vpop.permute.xlu1 %5632 }
0x15cb   : > { %v3289_v41 = vmul.f32 %v3288_v40, %v3288_v40  ;;  %v5635_v51 = vunpack.i.h.bf16 %v5633_v46  ;;  %v5634_v52 = vunpack.i.l.bf16 %v5633_v46 }
0x15cd   : > { %v3290_v43 = vsel %vm488_vm0, %v3289_v41, 0.0  ;;  %v5494_v56 = vpack.c.bf16 %v5635_v51, %v5634_v52 }
0x15ce   : > { %3291 = vadd.xlane.f32.xlu0 %v3290_v43  ;;  %v3423_v63 = vpop.permute.xlu1 %3422 }
0x15e4   : > { %5627 = vrot.lane.b32.xlu0 %v5626_v30, %s6623_s23 }
0x165b   : > { %v3292_v34 = vpop.xlane.xlu0 %3291 }
0x165c   : > { %v3293_v47 = vmul.f32 0.03125, %v3292_v34 }
0x165e   : > { %v3294_v48 = vadd.f32 1e-05, %v3293_v47 }
0x165f   : > { %v5628_v53 = vpop.permute.xlu0 %5627 }
0x1660   : > { %5725 = vrsqrt.f32 %v3294_v48  ;;  %v5630_v15 = vunpack.i.h.bf16 %v5628_v53  ;;  %v5629_v54 = vunpack.i.l.bf16 %v5628_v53 }
0x1662   : > { %v5490_v55 = vpack.c.bf16 %v5630_v15, %v5629_v54 }
0x1664   : > { %5491 = vmatprep.subr.bf16.mxu0 %v5490_v55 }
0x1665   : > { %5493 = vmatpush3.bf16.msra.mxu0 %v5490_v55 }
0x1666   : > { %5495 = vmatprep.subr.bf16.mxu0 %v5494_v56 }
0x1669   : > { %5497 = vmatpush3.bf16.msra.mxu0 %v5494_v56 }
0x166a   : > { %v5726_v57 = vpop.eup %5725  ;;  %5502 = vmatprep.subr.bf16.mxu0 %v5758_v10 }
0x166b   : > { %v3296_v59 = vmul.f32 %v5726_v57, %v3288_v40 }
0x166c   : > { %5293 = vmatmul.mubr.msk.f32.vlgmr.msra.gmra.mrb[30].mxu0 %vm488_vm0, %v3404_v44 }
0x166d   : > { %v3305_v61 = vmul.f32 %v4853_v58, %v3296_v59  ;;  %5306 = vmatprep.mubr.msk.f32.mxu0 %vm5759_vm1, %v5760_v13 }
0x166f   : > { %v3314_v62 = vadd.f32 %v4855_v60, %v3305_v61 }
0x1671   : > { %5282 = vmatmul.mubr.msk.f32.vlgmr.msra.gmra.mrb[32].mxu1 %vm488_vm0, %v3314_v62 }
0x1672   : > { %5299 = vmatprep.mubr.msk.f32.mxu1 %vm5759_vm1, %v5760_v13 }
0x173f   : > { %v5294_v0 = vpop.f32.mrb[30].mxu0 }
0x1740   : > { %v3501_v1 = vadd.f32 %v5294_v0, %v3423_v63  ;;  %v3495_v2 = vpop.f32.mrb[31].mxu0 }
0x1741   : > { %v3496_v3 = vadd.f32 %v3495_v2, %v3423_v63 }
0x1743   : > { %v6360_v4 = vpack.i.bf16 %v3501_v1, %v3496_v3  ;;  %v5499_v5 = vpack.c.bf16 %v3501_v1, %v3496_v3 }
0x1744   : > { %v3397_v6 = vpop.f32.mrb[32].mxu1 }
0x1745   : > { %5642 = vrot.lane.b32.xlu1 %v6360_v4, %s6618_s16  ;;  %5637 = vrot.lane.b32.xlu0 %v6360_v4, %s6619_s26  ;;  %v5283_v7 = vpop.f32.mrb[33].mxu1  ;;  %v3398_v8 = vadd.f32 %v4861_v45, %v3397_v6 }
0x1746   : > { %5501 = vmatpush3.bf16.xpose.msk.msra.mxu1 %vm6193_vm5, %v5499_v5 }
0x1747   : > { %5506 = vmatprep.subr.bf16.mxu1 %v5758_v10 }
0x1749   : > { %5647 = vrot.lane.b32.xlu0 %v6360_v4, %s6620_s20  ;;  %3505 = vrot.lane.b32.xlu1 %v3398_v8, %s6619_s26 }
0x174d   : > { %5300 = vmatmul.mubr.msk.f32.vlgmr.msra.gmra.mrb[34].mxu1 %vm612_vm2, %v3398_v8  ;;  %3507 = vrot.lane.b32.xlu0 %v3398_v8, %s6618_s16 }
0x174e   : > { %3509 = vrot.lane.b32.xlu1 %v3398_v8, %s6620_s20  ;;  %5313 = vmatprep.mubr.msk.f32.mxu1 %vm5759_vm1, %v5760_v13 }
0x17b7   : > { %v6377_v9 = vpop.permute.xlu1 %5642  ;;  %v6379_v11 = vpop.permute.xlu0 %5637 }
0x17b8   : > { %v5645_v12 = vunpack.i.h.bf16 %v6377_v9  ;;  %v5644_v14 = vunpack.i.l.bf16 %v6377_v9  ;;  %v5640_v16 = vunpack.i.h.bf16 %v6379_v11  ;;  %v5639_v17 = vunpack.i.l.bf16 %v6379_v11 }
0x17ba   : > { %v5507_v18 = vpack.c.bf16 %v5645_v12, %v5644_v14  ;;  %v5503_v19 = vpack.c.bf16 %v5640_v16, %v5639_v17 }
0x17bb   : > { %v6385_v20 = vpop.permute.xlu0 %5647  ;;  %v3506_v26 = vpop.permute.xlu1 %3505 }
0x17bc   : > { %v5650_v21 = vunpack.i.h.bf16 %v6385_v20  ;;  %v5649_v22 = vunpack.i.l.bf16 %v6385_v20  ;;  %5505 = vmatpush3.bf16.xpose.msk.msra.mxu0 %vm6193_vm5, %v5503_v19  ;;  %5509 = vmatpush3.bf16.xpose.msk.msra.mxu1 %vm6193_vm5, %v5507_v18 }
0x17bd   : > { %5510 = vmatprep.subr.bf16.mxu0 %v5758_v10  ;;  %5514 = vmatprep.subr.bf16.mxu1 %v5758_v10 }
0x17be   : > { %v5511_v24 = vpack.c.bf16 %v5650_v21, %v5649_v22 }
0x17bf   : > { %v3508_v27 = vpop.permute.xlu0 %3507 }
0x17c0   : > { %v3510_v28 = vpop.permute.xlu1 %3509 }
0x17c3   : > { %5307 = vmatmul.mubr.msk.f32.vlgmr.msra.gmra.mrb[32].mxu0 %vm612_vm2, %v3506_v26  ;;  %5314 = vmatmul.mubr.msk.f32.vlgmr.msra.gmra.mrb[36].mxu1 %vm612_vm2, %v3508_v27 }
0x17c4   : > { %5513 = vmatpush3.bf16.xpose.msk.msra.mxu0 %vm6193_vm5, %v5511_v24  ;;  %5320 = vmatprep.mubr.msk.f32.mxu0 %vm5759_vm1, %v5760_v13 }
0x17c5   : > { %5327 = vmatprep.mubr.msk.f32.mxu1 %vm5759_vm1, %v5760_v13  ;;  %5522 = vmatprep.subr.bf16.mxu0 %v5758_v10 }
0x17cb   : > { %5321 = vmatmul.mubr.msk.f32.vlgmr.msra.gmra.mrb[34].mxu0 %vm612_vm2, %v3510_v28 }
0x17cc   : > { %5341 = vmatprep.mubr.msk.f32.mxu0 %vm5759_vm1, %v5760_v13 }
0x1820   : > { %v3597_v30 = vpop.f32.mrb[34].mxu1 }
0x1821   : > { %v3829_v31 = vmul.f32 0.35355338, %v3597_v30  ;;  %v5301_v49 = vpop.f32.mrb[35].mxu1 }
0x1823   : > { %v3833_v29 = vadd.f32 %v3829_v31, %v6244_v50 }
0x1825   : > { %v3837_v32 = vsel %vm2816_vm6, %v3833_v29, -inf }
0x1826   : > { %3838 = vmax.xlane.f32.xlu0 %v3837_v32 }
0x1896   : > { %v3673_v36 = vpop.f32.mrb[32].mxu0  ;;  %v3749_v37 = vpop.f32.mrb[36].mxu1 }
0x1897   : > { %v3830_v38 = vmul.f32 0.35355338, %v3673_v36  ;;  %v3831_v39 = vmul.f32 0.35355338, %v3749_v37  ;;  %v5308_v40 = vpop.f32.mrb[33].mxu0  ;;  %v5315_v41 = vpop.f32.mrb[37].mxu1 }
0x1898   : > { %v4885_v41 = vld [vmem:[%s6582_s6 + $0x60] sm:$0xff] }
0x1899   : > { %v3834_v43 = vadd.f32 %v3830_v38, %v6244_v50  ;;  %v3835_v33 = vadd.f32 %v3831_v39, %v6244_v50 }
0x189b   : > { %v3840_v35 = vsel %vm2816_vm6, %v3834_v43, -inf  ;;  %v3843_v44 = vsel %vm2816_vm6, %v3835_v33, -inf }
0x189c   : > { %3841 = vmax.xlane.f32.xlu1 %v3840_v35  ;;  %3844 = vmax.xlane.f32.xlu0 %v3843_v44  ;;  %v4888_v35 = vld [vmem:[%s6582_s6 + $0x78] sm:$0xff] }
0x189e   : > { %v3825_v42 = vpop.f32.mrb[34].mxu0 }
0x189f   : > { %v3832_v45 = vmul.f32 0.35355338, %v3825_v42  ;;  %v5322_v34 = vpop.f32.mrb[35].mxu0 }
0x18a1   : > { %v3836_v46 = vadd.f32 %v3832_v45, %v6244_v50 }
0x18a3   : > { %v3846_v47 = vsel %vm2816_vm6, %v3836_v46, -inf }
0x18a4   : > { %3847 = vmax.xlane.f32.xlu0 %v3846_v47 }
0x18ad   : > { %5652 = vrot.lane.b32.xlu1 %v6360_v4, %s6623_s23 }
0x18b3   : > { %v3839_v48 = vpop.xlane.xlu0 %3838 }
0x18b4   : > { %v3849_v51 = vsub.f32 %v3833_v29, %v3839_v48 }
0x18b6   : > { %v3853_v52 = vmul.f32 1.442695, %v3849_v51 }
0x18b8   : > { %5727 = vpow2.f32 %v3853_v52 }
0x18c2   : > { %v5728_v53 = vpop.eup %5727 }
0x18c3   : > { %v3861_v15 = vsel %vm2816_vm6, %v5728_v53, 0.0 }
0x18d1   : > { %3862 = vadd.xlane.f32.xlu1 %v3861_v15 }
0x1929   : > { %v3842_v54 = vpop.xlane.xlu1 %3841  ;;  %v3845_v55 = vpop.xlane.xlu0 %3844 }
0x192a   : > { %v3850_v56 = vsub.f32 %v3834_v43, %v3842_v54  ;;  %v3851_v57 = vsub.f32 %v3835_v33, %v3845_v55  ;;  %v5531_v43 = vpack.c.bf16 %v4886_v23, %v4885_v41  ;;  %v4887_v33 = vld [vmem:[%s6582_s6 + $0x70] sm:$0xff] }
0x192b   : > { %v5534_v44 = vpack.c.bf16 %v4888_v35, %v4887_v33  ;;  %v4512_v33 = vld [vmem:[%s6588_s12 + $0x18] sm:$0xff] }
0x192c   : > { %v3855_v58 = vmul.f32 1.442695, %v3850_v56  ;;  %v3857_v50 = vmul.f32 1.442695, %v3851_v57  ;;  %v4890_v56 = vld [vmem:[%s6583_s7 + $0x3] ss:$0 sm:$0xff] }
0x192d   : > { %v5653_v59 = vpop.permute.xlu1 %5652 }
0x192e   : > { %5729 = vpow2.f32 %v3855_v58  ;;  %v5655_v60 = vunpack.i.h.bf16 %v5653_v59  ;;  %v5654_v61 = vunpack.i.l.bf16 %v5653_v59 }
0x192f   : > { %5731 = vpow2.f32 %v3857_v50 }
0x1930   : > { %v5515_v62 = vpack.c.bf16 %v5655_v60, %v5654_v61 }
0x1931   : > { %v3848_v63 = vpop.xlane.xlu0 %3847 }
0x1932   : > { %v3852_v0 = vsub.f32 %v3836_v46, %v3848_v63  ;;  %5517 = vmatpush3.bf16.msk.msra.mxu1 %vm6257_vm9, %v5515_v62 }
0x1933   : > { %5518 = vmatprep.subr.bf16.mxu1 %v5758_v10 }
0x1934   : > { %v3859_v1 = vmul.f32 1.442695, %v3852_v0 }
0x1936   : > { %5733 = vpow2.f32 %v3859_v1 }
0x1938   : > { %v5730_v2 = vpop.eup %5729 }
0x1939   : > { %v5732_v3 = vpop.eup %5731  ;;  %v3864_v4 = vsel %vm2816_vm6, %v5730_v2, 0.0 }
0x193a   : > { %3865 = vadd.xlane.f32.xlu0 %v3864_v4  ;;  %v3867_v5 = vsel %vm2816_vm6, %v5732_v3, 0.0  ;;  %v4336_v4 = vld [vmem:[%s6584_s8 + $0x10] sm:$0xff] }
0x193b   : > { %3868 = vadd.xlane.f32.xlu1 %v3867_v5  ;;  %v4337_v5 = vld [vmem:[%s6584_s8 + $0x18] sm:$0xff] }
0x1940   : > { %v5734_v6 = vpop.eup %5733 }
0x1941   : > { %v3870_v7 = vsel %vm2816_vm6, %v5734_v6, 0.0 }
0x1942   : > { %3871 = vadd.xlane.f32.xlu0 %v3870_v7  ;;  %v4419_v7 = vld [vmem:[%s6586_s10] sm:$0xff] }
0x194c   : > { %5662 = vrot.lane.b32.xlu1 %v6377_v9, %s6623_s23 }
0x1950   : > { %5667 = vrot.lane.b32.xlu1 %v6385_v20, %s6623_s23 }
0x1958   : > { %5657 = vrot.lane.b32.xlu0 %v6379_v11, %s6623_s23 }
0x195e   : > { %v3863_v8 = vpop.xlane.xlu1 %3862 }
0x195f   : > { %5735 = vrcp.f32 %v3863_v8  ;;  %v4420_v8 = vld [vmem:[%s6586_s10 + $0x8] sm:$0xff] }
0x1969   : > { %v5736_v12 = vpop.eup %5735 }
0x196a   : > { %v3877_v14 = vmul.f32 %v5736_v12, %v5728_v53  ;;  %v4421_v12 = vld [vmem:[%s6586_s10 + $0x10] sm:$0xff] }
0x196c   : > { %5328 = vmatmul.mubr.msk.f32.vlgmr.msra.gmra.mrb[38].mxu1 %vm2816_vm6, %v3877_v14  ;;  %v5543_v14 = vpack.c.bf16 %v4420_v8, %v4419_v7 }
0x196d   : > { %5334 = vmatprep.mubr.msk.f32.mxu1 %vm5759_vm1, %v5760_v13 }
0x19c7   : > { %v3866_v17 = vpop.xlane.xlu0 %3865 }
0x19c8   : > { %v3869_v16 = vpop.xlane.xlu1 %3868 }
0x19c9   : > { %5737 = vrcp.f32 %v3869_v16  ;;  %v4422_v16 = vld [vmem:[%s6586_s10 + $0x18] sm:$0xff] }
0x19ca   : > { %5739 = vrcp.f32 %v3866_v17  ;;  %v5546_v17 = vpack.c.bf16 %v4422_v16, %v4421_v12 }
0x19cc   : > { %v5663_v9 = vpop.permute.xlu1 %5662 }
0x19cd   : > { %v5665_v18 = vunpack.i.h.bf16 %v5663_v9  ;;  %v5664_v19 = vunpack.i.l.bf16 %v5663_v9  ;;  %v4423_v9 = vld [vmem:[%s6586_s10 + $0x20] sm:$0xff] }
0x19cf   : > { %v5523_v20 = vpack.c.bf16 %v5665_v18, %v5664_v19  ;;  %v3872_v21 = vpop.xlane.xlu0 %3871  ;;  %v4424_v18 = vld [vmem:[%s6586_s10 + $0x28] sm:$0xff] }
0x19d0   : > { %5741 = vrcp.f32 %v3872_v21  ;;  %v5668_v22 = vpop.permute.xlu1 %5667  ;;  %v5549_v19 = vpack.c.bf16 %v4424_v18, %v4423_v9 }
0x19d1   : > { %5525 = vmatpush3.bf16.msk.msra.mxu0 %vm6257_vm9, %v5523_v20  ;;  %v5670_v31 = vunpack.i.h.bf16 %v5668_v22  ;;  %v5669_v49 = vunpack.i.l.bf16 %v5668_v22 }
0x19d2   : > { %5530 = vmatprep.subr.bf16.mxu0 %v5758_v10 }
0x19d3   : > { %v5738_v11 = vpop.eup %5737  ;;  %v5658_v24 = vpop.permute.xlu0 %5657  ;;  %v5527_v37 = vpack.c.bf16 %v5670_v31, %v5669_v49  ;;  %v4425_v31 = vld [vmem:[%s6586_s10 + $0x30] sm:$0xff]  ;;  %v4426_v49 = vld [vmem:[%s6586_s10 + $0x38] sm:$0xff] }
0x19d4   : > { %v3879_v26 = vmul.f32 %v5738_v11, %v5732_v3  ;;  %v5660_v27 = vunpack.i.h.bf16 %v5658_v24  ;;  %v5659_v28 = vunpack.i.l.bf16 %v5658_v24  ;;  %v5740_v30 = vpop.eup %5739  ;;  %v4893_v24 = vld [vmem:[%s6578_s2 + $0x4] ss:$0 sm:$0xff] }
0x19d5   : > { %v3878_v32 = vmul.f32 %v5740_v30, %v5730_v2  ;;  %v4334_v2 = vld [vmem:[%s6584_s8] sm:$0xff] }
0x19d6   : > { %v5519_v29 = vpack.c.bf16 %v5660_v27, %v5659_v28  ;;  %5342 = vmatmul.mubr.msk.f32.vlgmr.msra.gmra.mrb[36].mxu0 %vm2816_vm6, %v3879_v26  ;;  %v4895_v27 = vld [vmem:[%s6579_s3 + $0x4] ss:$0 sm:$0xff] }
0x19d7   : > { %5359 = vmatprep.mubr.msk.f32.mxu0 %vm5759_vm1, %v5760_v13  ;;  %5532 = vmatpush3.bf16.msra.mxu0 %v5531_v43  ;;  %v4511_v43 = vld [vmem:[%s6588_s12 + $0x10] sm:$0xff] }
0x19d8   : > { %5521 = vmatpush3.bf16.msk.msra.mxu1 %vm6257_vm9, %v5519_v29  ;;  %5533 = vmatprep.subr.bf16.mxu0 %v5758_v10  ;;  %v5552_v29 = vpack.c.bf16 %v4426_v49, %v4425_v31  ;;  %v5558_v35 = vpack.c.bf16 %v4512_v33, %v4511_v43 }
0x19d9   : > { %5526 = vmatprep.subr.bf16.mxu1 %v5758_v10 }
0x19da   : > { %v5742_v36 = vpop.eup %5741 }
0x19db   : > { %5335 = vmatmul.mubr.msk.f32.vlgmr.msra.gmra.mrb[40].mxu1 %vm2816_vm6, %v3878_v32  ;;  %v3880_v38 = vmul.f32 %v5742_v36, %v5734_v6  ;;  %5535 = vmatpush3.bf16.msra.mxu0 %v5534_v44  ;;  %v5540_v6 = vpack.c.bf16 %v4337_v5, %v4336_v4  ;;  %v4509_v32 = vld [vmem:[%s6588_s12] sm:$0xff]  ;;  %v4510_v36 = vld [vmem:[%s6588_s12 + $0x8] sm:$0xff] }
0x19dc   : > { %5529 = vmatpush3.bf16.msk.msra.mxu1 %vm6257_vm9, %v5527_v37  ;;  %5348 = vmatprep.mubr.msk.f32.mxu1 %vm5759_vm1, %v5760_v13  ;;  %v5555_v37 = vpack.c.bf16 %v4510_v36, %v4509_v32 }
0x19dd   : > { %5536 = vmatprep.subr.bf16.mxu1 %v5758_v10  ;;  %5542 = vmatprep.subr.bf16.mxu0 %v5758_v10 }
0x19df   : > { %5349 = vmatmul.mubr.msk.f32.vlgmr.msra.gmra.mrb[42].mxu1 %vm2816_vm6, %v3880_v38  ;;  %v4896_v38 = vld [vmem:[%s6585_s9] ss:$0 sm:$0xff] }
0x19e0   : > { %5370 = vmatprep.mubr.msk.f32.mxu1 %vm5759_vm1, %v5760_v13 }
0x1a3f   : > { %v3957_v39 = vpop.f32.mrb[38].mxu1 }
0x1a40   : > { %v5329_v40 = vpop.f32.mrb[39].mxu1 }
0x1aa9   : > { %v4117_v42 = vpop.f32.mrb[36].mxu0 }
0x1aaa   : > { %4206 = vrot.lane.b32.xlu1 %v4117_v42, %s6615_s25  ;;  %v5343_v45 = vpop.f32.mrb[37].mxu0 }
0x1aae   : > { %v4037_v34 = vpop.f32.mrb[40].mxu1 }
0x1aaf   : > { %4202 = vrot.lane.b32.xlu0 %v4037_v34, %s6613_s28  ;;  %v5336_v46 = vpop.f32.mrb[41].mxu1 }
0x1ab0   : > { %v4900_v46 = vld [vmem:[%s6589_s13] ss:$0 sm:$0xff] }
0x1ab2   : > { %v4197_v47 = vpop.f32.mrb[42].mxu1 }
0x1ab3   : > { %4210 = vrot.lane.b32.xlu0 %v4197_v47, %s6614_s19  ;;  %v5350_v48 = vpop.f32.mrb[43].mxu1 }
0x1b1c   : > { %v4207_v53 = vpop.permute.xlu1 %4206 }
0x1b21   : > { %v4203_v51 = vpop.permute.xlu0 %4202 }
0x1b22   : > { %v4213_v52 = vsel %vm612_vm2, %v3957_v39, %v4203_v51 }
0x1b23   : > { %v4214_v15 = vsel %vm1284_vm3, %v4213_v52, %v4207_v53 }
0x1b25   : > { %v4211_v54 = vpop.permute.xlu0 %4210 }
0x1b26   : > { %v4215_v55 = vsel %vm1286_vm4, %v4214_v15, %v4211_v54 }
0x1b27   : > { %5360 = vmatmul.mubr.msk.f32.vlgmr.msra.gmra.mrb[38].mxu0 %vm488_vm0, %v4215_v55  ;;  %v5749_v55 = vld [vmem:[%s5953_s27] sm:$0xff]  ;;  %s6624_s27 = sshll.u32 %s6626_s30, 3 }
0x1b28   : > { %5389 = vmatprep.mubr.msk.f32.mxu0 %vm5759_vm1, %v5760_v13  ;;  %5544 = vmatpush3.bf16.msra.mxu0 %v5543_v14  ;;  %s482_s17 = scalar_lea.vmem %s6590_s14, %s6624_s27 }
0x1b29   : > { %5545 = vmatprep.subr.bf16.mxu0 %v5758_v10 }
0x1b2c   : > { %5547 = vmatpush3.bf16.msra.mxu0 %v5546_v17 }
0x1b2d   : > { %5548 = vmatprep.subr.bf16.mxu0 %v5758_v10 }
0x1b30   : > { %5550 = vmatpush3.bf16.msra.mxu0 %v5549_v19 }
0x1b31   : > { %5551 = vmatprep.subr.bf16.mxu0 %v5758_v10 }
0x1b34   : > { %5553 = vmatpush3.bf16.msra.mxu0 %v5552_v29 }
0x1bfa   : > { %v4298_v57 = vpop.f32.mrb[38].mxu0 }
0x1bfb   : > { %v4299_v58 = vadd.f32 %v4890_v56, %v4298_v57  ;;  %v5361_v50 = vpop.f32.mrb[39].mxu0 }
0x1bfd   : > { %v6478_v59 = vadd.f32 %v4299_v58, %v6318_v25  ;;  %v4335_v25 = vld [vmem:[%s6584_s8 + $0x8] sm:$0xff] }
0x1bfe   : > { %v5537_v3 = vpack.c.bf16 %v4335_v25, %v4334_v2 }
0x1bff   : > { %v4303_v60 = vsel %vm488_vm0, %v6478_v59, 0.0 }
0x1c00   : > { %4304 = vadd.xlane.f32.xlu1 %v4303_v60  ;;  %5538 = vmatpush3.bf16.msra.mxu1 %v5537_v3 }
0x1c01   : > { %5539 = vmatprep.subr.bf16.mxu1 %v5758_v10 }
0x1c04   : > { %5541 = vmatpush3.bf16.msra.mxu1 %v5540_v6 }
0x1c05   : > { %5554 = vmatprep.subr.bf16.mxu1 %v5758_v10 }
0x1c8d   : > { %v4305_v61 = vpop.xlane.xlu1 %4304 }
0x1c8e   : > { %v4306_v62 = vmul.f32 0.03125, %v4305_v61 }
0x1c90   : > { %v4307_v63 = vsub.f32 %v6478_v59, %v4306_v62 }
0x1c92   : > { %v4308_v0 = vmul.f32 %v4307_v63, %v4307_v63 }
0x1c94   : > { %v4309_v1 = vsel %vm488_vm0, %v4308_v0, 0.0 }
0x1c95   : > { %4310 = vadd.xlane.f32.xlu0 %v4309_v1 }
0x1d22   : > { %v4311_v20 = vpop.xlane.xlu0 %4310 }
0x1d23   : > { %v4312_v21 = vmul.f32 0.03125, %v4311_v20 }
0x1d25   : > { %v4313_v11 = vadd.f32 1e-05, %v4312_v21 }
0x1d27   : > { %5743 = vrsqrt.f32 %v4313_v11 }
0x1d31   : > { %v5744_v22 = vpop.eup %5743 }
0x1d32   : > { %v4315_v26 = vmul.f32 %v5744_v22, %v4307_v63 }
0x1d34   : > { %v4324_v28 = vmul.f32 %v4893_v24, %v4315_v26 }
0x1d36   : > { %v4333_v30 = vadd.f32 %v4895_v27, %v4324_v28 }
0x1d38   : > { %5371 = vmatmul.mubr.msk.f32.vlgmr.msra.gmra.mrb[44].mxu1 %vm488_vm0, %v4333_v30 }
0x1d39   : > { %5400 = vmatprep.mubr.msk.f32.mxu1 %vm5759_vm1, %v5760_v13  ;;  %5556 = vmatpush3.bf16.msra.mxu1 %v5555_v37 }
0x1d3a   : > { %5557 = vmatprep.subr.bf16.mxu1 %v5758_v10  ;;  %v4898_v10 = vld [vmem:[%s6587_s11] ss:$0 sm:$0xff] }
0x1d3d   : > { %5559 = vmatpush3.bf16.msra.mxu1 %v5558_v35 }
0x1d3e   : > { %5403 = vmatprep.subr.mxu1 %v5760_v13 }
0x1e0b   : > { %v4414_v39 = vpop.f32.mrb[44].mxu1 }
0x1e0c   : > { %v4415_v40 = vadd.f32 %v4896_v38, %v4414_v39  ;;  %v5372_v41 = vpop.f32.mrb[45].mxu1 }
0x1e0e   : > { %v4418_v23 = vmax.f32 %v4415_v40, 0.0 }
0x1e10   : > { %5390 = vmatmul.mubr.msk.f32.vlgmr.msra.gmra.mrb[40].mxu0 %vm4434_vm11, %v4418_v23 }
0x1ee3   : > { %v4504_v44 = vpop.f32.mrb[40].mxu0 }
0x1ee4   : > { %v4505_v42 = vadd.f32 %v4898_v10, %v4504_v44  ;;  %v5391_v45 = vpop.f32.mrb[41].mxu0 }
0x1ee6   : > { %v4508_v34 = vadd.f32 %v4505_v42, %v6478_v59 }
0x1ee8   : > { %5401 = vmatmul.mubr.msk.f32.vlgmr.msra.gmra.mrb[46].mxu1 %vm488_vm0, %v4508_v34 }
0x1ee9   : > { %5405 = vmatprep.mubr.msk.f32.mxu1 %vm5759_vm1, %v5760_v13 }
0x1fbb   : > { %v4589_v47 = vpop.f32.mrb[46].mxu1 }
0x1fbc   : > { %v4590_v48 = vadd.f32 %v4900_v46, %v4589_v47  ;;  %v5402_v51 = vpop.f32.mrb[47].mxu1 }
0x1fbe   : > { %4594 = vrot.lane.b32.xlu0 %v4590_v48, %s6623_s23  ;;  %s5770_s23 = smov 32  }
0x2030   : > { %v4595_v52 = vpop.permute.xlu0 %4594 }
0x2031   : > { %5404 = vmatpush3.xpose.msk.msra.mxu1 %vm488_vm0, %v4595_v52 }
0x2034   : > { %5406 = vmatmul.mubr.msk.f32.vlgmr.msra.gmra.mrb[48].mxu1 %vm488_vm0, %v4590_v48 }
0x2107   : > { %v4666_v53 = vpop.f32.mrb[48].mxu1 }
0x2108   : > { %v4670_v15 = vmul.f32 0.17677669, %v4666_v53  ;;  %v5407_v54 = vpop.f32.mrb[49].mxu1 }
0x210a   : > { %v4671_v56 = vadd.f32 %v5749_v55, %v4670_v15 }
0x210c   : > { %v4672_v13 = vsel %vm612_vm2, %v4671_v56, -inf }
0x210d   : > { %4673 = vmax.xlane.f32.xlu1 %v4672_v13 }
0x219a   : > { %v4674_v57 = vpop.xlane.xlu1 %4673 }
0x219b   : > { %v4675_v58 = vsub.f32 %v4671_v56, %v4674_v57 }
0x219d   : > { %v4676_v50 = vmul.f32 1.442695, %v4675_v58 }
0x219f   : > { %5745 = vpow2.f32 %v4676_v50 }
0x21a9   : > { %v5746_v59 = vpop.eup %5745 }
0x21aa   : > { %v4678_v60 = vsel %vm612_vm2, %v5746_v59, 0.0 }
0x21ab   : > { %4679 = vadd.xlane.f32.xlu1 %v4678_v60 }
0x2238   : > { %v4680_v61 = vpop.xlane.xlu1 %4679 }
0x2239   : > { %5747 = vrcp.f32 %v4680_v61 }
0x2243   : > { %v5748_v62 = vpop.eup %5747 }
0x2244   : > { %v4682_v63 = vmul.f32 %v5748_v62, %v5746_v59 }
0x2246   : > { %4684 = vrot.lane.b32.xlu1 %v4682_v63, %s5770_s23 }
0x22b8   : > { %v4685_v0 = vpop.permute.xlu1 %4684 }
0x22b9   : > { %v4687_v1 = vsel %vm488_vm0, %v4508_v34, %v4685_v0 }
0x22ba   : > { %4689 = vst.msk [vmem:[%s482_s17] sm:$0xff] %vm4688_vm12, %v4687_v1 }
0x22bb PF: > { %s24_s29 = sadd.s32 1, %s5756_s29  }
0x22bc   : > { %p21_p4 = scmp.ge.s32.totalorder %s24_s29, 4  }
0x22be   :  { %23 = sbr.rel (!%p21_p4) target bundleno = 3 (0x3), region = 129 }

// kernel: graph_transformer_decoder.4
= control target key start
LH: loop header
LB: loop body
LE: loop exit
PB: predicated region body
PF: predicated region fallthrough
CT: control target
= control target key end

     0   :  { %s5757_s29 = smov 0   ;;  %s6477_s0 = inlined_call_operand.vmem [shape: f32[2,28,32], index: 0, kind: input, shape index: {}]   ;;  %s6478_s1 = inlined_call_operand.vmem [shape: f32[2,8,26], index: 1, kind: input, shape index: {}]   ;;  %s6479_s2 = inlined_call_operand.vmem [shape: f32[5,1,32], index: 2, kind: input, shape index: {}]   ;;  %s6480_s3 = inlined_call_operand.vmem [shape: f32[5,1,32], index: 3, kind: input, shape index: {}]   ;;  %s6481_s4 = inlined_call_operand.vmem [shape: f32[4,32,96], index: 4, kind: input, shape index: {}]   ;;  %s6482_s5 = inlined_call_operand.vmem [shape: f32[4,1,96], index: 5, kind: input, shape index: {}]   ;;  %s6483_s6 = inlined_call_operand.vmem [shape: f32[4,32,32], index: 6, kind: input, shape index: {}]   ;;  %s6484_s7 = inlined_call_operand.vmem [shape: f32[4,1,32], index: 7, kind: input, shape index: {}]   ;;  %s6485_s8 = inlined_call_operand.vmem [shape: f32[32,64], index: 8, kind: input, shape index: {}]   ;;  %s6486_s9 = inlined_call_operand.vmem [shape: f32[1,64], index: 9, kind: input, shape index: {}]   ;;  %s6487_s10 = inlined_call_operand.vmem [shape: f32[64,32], index: 10, kind: input, shape index: {}]   ;;  %s6488_s11 = inlined_call_operand.vmem [shape: f32[1,32], index: 11, kind: input, shape index: {}]   ;;  %s6489_s12 = inlined_call_operand.vmem [shape: f32[32,10], index: 12, kind: input, shape index: {}]   ;;  %s6490_s13 = inlined_call_operand.vmem [shape: f32[1,10], index: 13, kind: input, shape index: {}]   ;;  %s6491_s14 = inlined_call_operand.vmem [shape: f32[2,8,42], index: 14, kind: output, shape index: {}]  }
   0x1 LB: > { %s4676_s30 = sadd.s32 4294967295, %s5667_s29   ;;  %p4680_p0 = scmp.ge.s32.totalorder %s5667_s29, 1  ;;  %s5667_s29 = sphi %s5757_s29, %s24_s29  }
   0x2   : > { %p421_p1 = scmp.lt.s32.totalorder %s5667_s29, 3 }
   0x4   : > { %p422_p2 = pnand %p4680_p0, %p421_p1 }
   0x5   : > { %p470_p3 = scmp.lt.s32.totalorder (!%p422_p2), %s4676_s30, 1  ;;  %vm488_vm0 = vcmask (!%p422_p2), 261120   ;;  %v519_v7 = vld [vmem:[%s6481_s4] sm:$0xff] (!%p422_p2)  ;;  %v520_v8 = vld [vmem:[%s6481_s4 + $0x8] sm:$0xff] (!%p422_p2)  ;;  %v521_v9 = vld [vmem:[%s6481_s4 + $0x10] sm:$0xff] (!%p422_p2)  ;;  %v5669_v10 = vmov (!%p422_p2), 0.0|0.0  }
   0x6   : > { %425 = sbr.rel (%p422_p2) target bundleno = 8555 (0x216b), region = 76  ;;  %5320 = vmatprep.subr.bf16.mxu0 (!%p422_p2), %v5669_v10  ;;  %v5321_v11 = vpack.c.bf16 (!%p422_p2), %v520_v8, %v519_v7  ;;  %v522_v12 = vld [vmem:[%s6481_s4 + $0x18] sm:$0xff] (!%p422_p2)  ;;  %vm5670_vm1 = vmmov (!%p422_p2), 0   ;;  %v5671_v13 = vmov (!%p422_p2), 0.0   ;;  %v4685_v19 = vld [vmem:[%s6479_s2] ss:$0 sm:$0xff] (!%p422_p2) }
   0x7   : > { %4985 = vmatprep.mubr.msk.f32.mxu0 (!%p422_p2), %vm5670_vm1, %v5671_v13  ;;  %4988 = vmatprep.subr.mxu1 (!%p422_p2), %v5671_v13  ;;  %v5324_v14 = vpack.c.bf16 (!%p422_p2), %v522_v12, %v521_v9  ;;  %v4686_v21 = vld [vmem:[%s6480_s3] ss:$0 sm:$0xff] (!%p422_p2)  ;;  %s6499_s20 = smov (!%p422_p2), 104   ;;  %s6501_s21 = smov (!%p422_p2), 120   ;;  %vm612_vm2 = vcmask (!%p422_p2), 64512   ;;  %vm1284_vm3 = vcmask (!%p422_p2), 130048  }
   0x8   : > { %4990 = vmatprep.mubr.msk.f32.mxu1 (!%p422_p2), %vm5670_vm1, %v5671_v13  ;;  %5322 = vmatpush3.bf16.msra.mxu0 (!%p422_p2), %v5321_v11  ;;  %v4687_v24 = vld [vmem:[%s6482_s5] ss:$0 sm:$0xff] (!%p422_p2)  ;;  %s6503_s22 = smov (!%p422_p2), 112   ;;  %s6505_s23 = smov (!%p422_p2), 96   ;;  %vm1286_vm4 = vcmask (!%p422_p2), 195584   ;;  %vm6101_vm5 = vmpackc.low (!%p422_p2), %vm612_vm2, %vm612_vm2  ;;  %vm2816_vm6 = vcmask (!%p422_p2), 80896  }
   0x9   : > { %5323 = vmatprep.subr.bf16.mxu0 (!%p422_p2), %v5669_v10  ;;  %s5676_s28 = smov (!%p422_p2), 64   ;;  %s6493_s16 = smov (!%p422_p2), 16   ;;  %vm2869_vm7 = vcmask (!%p422_p2), 1041408   ;;  %vm5680_vm8 = vmmov (!%p422_p2), 1   ;;  %vm3402_vm10 = vcmask (!%p422_p2), 1045504   ;;  %vm4434_vm11 = vcmask (!%p422_p2), 523264  }
   0xa   : > { %s6495_s17 = smov (!%p422_p2), 24   ;;  %s6512_s19 = smov (!%p422_p2), 120   ;;  %vm6165_vm9 = vmpackc.low (!%p422_p2), %vm2869_vm7, %vm5680_vm8  ;;  %vm4609_vm12 = vcmask (!%p422_p2), 343040  }
   0xb   : > { %s6513_s25 = smov (!%p422_p2), 104  }
   0xc   : > { %5325 = vmatpush3.bf16.msra.mxu0 (!%p422_p2), %v5324_v14 }
   0xd   : > { %s6520_s30 = smov (!%p470_p3, %s4676_s30), 1  ;;  %5008 = vmatprep.subr.mxu0 %v5671_v13 }
   0xe   : > { %s4825_s15 = sshll.u32 %s6520_s30, 5  ;;  %s6492_s24 = sshll.u32 %s6520_s30, 3 }
   0xf   : > { %s5771_s18 = scalar_lea.vmem %s6477_s0, %s4825_s15  ;;  %s478_s27 = scalar_lea.vmem %s6478_s1, %s6492_s24 }
  0x10   : > { %v5774_v0 = vld [vmem:[%s5771_s18] sm:$0xff]  ;;  %s6497_s15 = smov 8   ;;  %s6509_s24 = smov 16  }
  0x11   : > { %v489_v1 = vsel %vm488_vm0, %v5774_v0, 0.0  ;;  %v5864_v36 = vld [vmem:[%s478_s27] sm:$0xff]  ;;  %s6518_s27 = sshll.u32 %s6520_s30, 3 }
  0x12   : > { %490 = vadd.xlane.f32.xlu0 %v489_v1 }
  0x9f   : > { %v491_v2 = vpop.xlane.xlu0 %490 }
  0xa0   : > { %v493_v3 = vmul.f32 0.03125, %v491_v2 }
  0xa2   : > { %v494_v4 = vsub.f32 %v5774_v0, %v493_v3 }
  0xa4   : > { %v495_v5 = vmul.f32 %v494_v4, %v494_v4 }
  0xa6   : > { %v496_v6 = vsel %vm488_vm0, %v495_v5, 0.0 }
  0xa7   : > { %497 = vadd.xlane.f32.xlu0 %v496_v6 }
 0x134   : > { %v498_v15 = vpop.xlane.xlu0 %497 }
 0x135   : > { %v499_v16 = vmul.f32 0.03125, %v498_v15 }
 0x137   : > { %v500_v17 = vadd.f32 1e-05, %v499_v16 }
 0x139   : > { %5583 = vrsqrt.f32 %v500_v17 }
 0x143   : > { %v5584_v18 = vpop.eup %5583 }
 0x144   : > { %v502_v20 = vmul.f32 %v5584_v18, %v494_v4 }
 0x146   : > { %v510_v22 = vmul.f32 %v4685_v19, %v502_v20 }
 0x148   : > { %v518_v23 = vadd.f32 %v4686_v21, %v510_v22 }
 0x14a   : > { %4986 = vmatmul.mubr.msk.f32.vlgmr.msra.gmra.mrb[0].mxu0 %vm488_vm0, %v518_v23 }
 0x14b   : > { %5010 = vmatprep.mubr.msk.f32.mxu0 %vm5670_vm1, %v5671_v13 }
 0x21d   : > { %v599_v25 = vpop.f32.mrb[0].mxu0 }
 0x21e   : > { %v5812_v26 = vadd.f32 %v4687_v24, %v599_v25  ;;  %v4987_v27 = vpop.f32.mrb[1].mxu0 }
 0x220   : > { %608 = vrot.lane.b32.xlu0 %v5812_v26, %s6499_s20  ;;  %604 = vrot.lane.b32.xlu1 %v5812_v26, %s6501_s21 }
 0x224   : > { %606 = vrot.lane.b32.xlu1 %v5812_v26, %s6503_s22 }
 0x228   : > { %610 = vrot.lane.b32.xlu1 %v5812_v26, %s6505_s23 }
 0x292   : > { %v5822_v28 = vpop.permute.xlu1 %604  ;;  %v5830_v30 = vpop.permute.xlu0 %608 }
 0x293   : > { %687 = vrot.lane.b32.xlu1 %v5822_v28, %s6505_s23 }
 0x296   : > { %v5826_v29 = vpop.permute.xlu1 %606 }
 0x297   : > { %763 = vrot.lane.b32.xlu1 %v5826_v29, %s6505_s23 }
 0x29a   : > { %v611_v31 = vpop.permute.xlu1 %610 }
 0x29b   : > { %839 = vrot.lane.b32.xlu1 %v5830_v30, %s6505_s23  ;;  %4989 = vmatpush3.xpose.msk.msra.mxu1 %vm612_vm2, %v611_v31 }
 0x29c   : > { %4993 = vmatprep.subr.mxu1 %v5671_v13 }
 0x29e   : > { %4991 = vmatmul.mubr.msk.f32.vlgmr.msra.gmra.mrb[0].mxu1 %vm612_vm2, %v5812_v26 }
 0x29f   : > { %4995 = vmatprep.mubr.msk.f32.mxu1 %vm5670_vm1, %v5671_v13 }
 0x305   : > { %v688_v32 = vpop.permute.xlu1 %687 }
 0x306   : > { %4994 = vmatpush3.xpose.msk.msra.mxu1 %vm612_vm2, %v688_v32 }
 0x307   : > { %4998 = vmatprep.subr.mxu1 %v5671_v13 }
 0x309   : > { %4996 = vmatmul.mubr.msk.f32.vlgmr.msra.gmra.mrb[2].mxu1 %vm612_vm2, %v5822_v28  ;;  %v764_v33 = vpop.permute.xlu1 %763 }
 0x30a   : > { %4999 = vmatpush3.xpose.msk.msra.mxu1 %vm612_vm2, %v764_v33  ;;  %5000 = vmatprep.mubr.msk.f32.mxu1 %vm5670_vm1, %v5671_v13  ;;  %v1288_v33 = vld [vmem:[%s6483_s6] sm:$0xff] }
 0x30b   : > { %5003 = vmatprep.subr.mxu1 %v5671_v13 }
 0x30d   : > { %5001 = vmatmul.mubr.msk.f32.vlgmr.msra.gmra.mrb[4].mxu1 %vm612_vm2, %v5826_v29  ;;  %v840_v34 = vpop.permute.xlu1 %839 }
 0x30e   : > { %5004 = vmatpush3.xpose.msk.msra.mxu1 %vm612_vm2, %v840_v34  ;;  %5005 = vmatprep.mubr.msk.f32.mxu1 %vm5670_vm1, %v5671_v13  ;;  %v1289_v34 = vld [vmem:[%s6483_s6 + $0x8] sm:$0xff] }
 0x30f   : > { %5013 = vmatprep.subr.mxu1 %v5671_v13 }
 0x311   : > { %5006 = vmatmul.mubr.msk.f32.vlgmr.msra.gmra.mrb[6].mxu1 %vm612_vm2, %v5830_v30 }
 0x312   : > { %5015 = vmatprep.mubr.msk.f32.mxu1 %vm5670_vm1, %v5671_v13 }
 0x371   : > { %v683_v35 = vpop.f32.mrb[0].mxu1 }
 0x372   : > { %v915_v37 = vmul.f32 0.35355338, %v683_v35  ;;  %v4992_v38 = vpop.f32.mrb[1].mxu1  ;;  %v5327_v35 = vpack.c.bf16 %v1289_v34, %v1288_v33 }
 0x373   : > { %v1291_v38 = vld [vmem:[%s6483_s6 + $0x18] sm:$0xff] }
 0x374   : > { %v919_v39 = vadd.f32 %v915_v37, %v5864_v36  ;;  %v1290_v37 = vld [vmem:[%s6483_s6 + $0x10] sm:$0xff] }
 0x376   : > { %v923_v40 = vsel %vm612_vm2, %v919_v39, -inf }
 0x377   : > { %924 = vmax.xlane.f32.xlu1 %v923_v40 }
 0x3dc   : > { %v759_v41 = vpop.f32.mrb[2].mxu1 }
 0x3dd   : > { %v916_v42 = vmul.f32 0.35355338, %v759_v41  ;;  %v4997_v43 = vpop.f32.mrb[3].mxu1 }
 0x3df   : > { %v920_v44 = vadd.f32 %v916_v42, %v5864_v36 }
 0x3e0   : > { %v835_v45 = vpop.f32.mrb[4].mxu1 }
 0x3e1   : > { %v917_v46 = vmul.f32 0.35355338, %v835_v45  ;;  %v5002_v47 = vpop.f32.mrb[5].mxu1  ;;  %v926_v48 = vsel %vm612_vm2, %v920_v44, -inf }
 0x3e2   : > { %927 = vmax.xlane.f32.xlu0 %v926_v48 }
 0x3e3   : > { %v921_v49 = vadd.f32 %v917_v46, %v5864_v36 }
 0x3e4   : > { %v911_v50 = vpop.f32.mrb[6].mxu1 }
 0x3e5   : > { %v918_v51 = vmul.f32 0.35355338, %v911_v50  ;;  %v5007_v52 = vpop.f32.mrb[7].mxu1  ;;  %v929_v53 = vsel %vm612_vm2, %v921_v49, -inf }
 0x3e6   : > { %930 = vmax.xlane.f32.xlu1 %v929_v53  ;;  %v4701_v52 = vld [vmem:[%s6484_s7] ss:$0 sm:$0xff] }
 0x3e7   : > { %v922_v54 = vadd.f32 %v918_v51, %v5864_v36 }
 0x3e9   : > { %v932_v55 = vsel %vm612_vm2, %v922_v54, -inf }
 0x3ea   : > { %933 = vmax.xlane.f32.xlu0 %v932_v55 }
 0x3f7   : > { %967 = vrot.lane.b32.xlu1 %v5812_v26, %s5676_s28 }
 0x404   : > { %v925_v56 = vpop.xlane.xlu1 %924 }
 0x405   : > { %v935_v57 = vsub.f32 %v919_v39, %v925_v56  ;;  %v5330_v39 = vpack.c.bf16 %v1291_v38, %v1290_v37 }
 0x407   : > { %v939_v58 = vmul.f32 1.442695, %v935_v57 }
 0x409   : > { %5585 = vpow2.f32 %v939_v58 }
 0x413   : > { %v5586_v59 = vpop.eup %5585 }
 0x414   : > { %v947_v60 = vsel %vm612_vm2, %v5586_v59, 0.0 }
 0x41b   : > { %948 = vadd.xlane.f32.xlu1 %v947_v60 }
 0x46f   : > { %v928_v61 = vpop.xlane.xlu0 %927 }
 0x470   : > { %v936_v62 = vsub.f32 %v920_v44, %v928_v61 }
 0x472   : > { %v941_v63 = vmul.f32 1.442695, %v936_v62 }
 0x473   : > { %v931_v1 = vpop.xlane.xlu1 %930 }
 0x474   : > { %5587 = vpow2.f32 %v941_v63  ;;  %v937_v2 = vsub.f32 %v921_v49, %v931_v1  ;;  %v4707_v63 = vld [vmem:[%s6481_s4 + $0x20] sm:$0xff] }
 0x476   : > { %v943_v3 = vmul.f32 1.442695, %v937_v2  ;;  %v4709_v2 = vld [vmem:[%s6481_s4 + $0x30] sm:$0xff] }
 0x477   : > { %v934_v4 = vpop.xlane.xlu0 %933  ;;  %v968_v5 = vpop.permute.xlu1 %967 }
 0x478   : > { %5589 = vpow2.f32 %v943_v3  ;;  %v938_v6 = vsub.f32 %v922_v54, %v934_v4  ;;  %5009 = vmatpush3.msra.mxu0 %v968_v5  ;;  %v4710_v3 = vld [vmem:[%s6481_s4 + $0x38] sm:$0xff] }
 0x479   : > { %5018 = vmatprep.subr.mxu0 %v5671_v13  ;;  %v5336_v4 = vpack.c.bf16 %v4710_v3, %v4709_v2 }
 0x47a   : > { %v945_v7 = vmul.f32 1.442695, %v938_v6 }
 0x47c   : > { %5591 = vpow2.f32 %v945_v7 }
 0x47e   : > { %v5588_v8 = vpop.eup %5587 }
 0x47f   : > { %v950_v9 = vsel %vm612_vm2, %v5588_v8, 0.0 }
 0x480   : > { %951 = vadd.xlane.f32.xlu0 %v950_v9  ;;  %v4704_v9 = vld [vmem:[%s6479_s2 + $0x1] ss:$0 sm:$0xff] }
 0x482   : > { %v5590_v11 = vpop.eup %5589 }
 0x483   : > { %v953_v12 = vsel %vm612_vm2, %v5590_v11, 0.0 }
 0x484   : > { %954 = vadd.xlane.f32.xlu1 %v953_v12  ;;  %v4706_v12 = vld [vmem:[%s6480_s3 + $0x1] ss:$0 sm:$0xff] }
 0x486   : > { %v5592_v14 = vpop.eup %5591 }
 0x487   : > { %v956_v15 = vsel %vm612_vm2, %v5592_v14, 0.0 }
 0x488   : > { %957 = vadd.xlane.f32.xlu0 %v956_v15 }
 0x495   : > { %1119 = vrot.lane.b32.xlu1 %v5826_v29, %s5676_s28 }
 0x499   : > { %1195 = vrot.lane.b32.xlu1 %v5830_v30, %s5676_s28 }
 0x49e   : > { %1043 = vrot.lane.b32.xlu0 %v5822_v28, %s5676_s28 }
 0x4a8   : > { %v949_v16 = vpop.xlane.xlu1 %948 }
 0x4a9   : > { %5593 = vrcp.f32 %v949_v16  ;;  %v4712_v16 = vld [vmem:[%s6482_s5 + $0x1] ss:$0 sm:$0xff] }
 0x4b3   : > { %v5594_v17 = vpop.eup %5593 }
 0x4b4   : > { %v963_v18 = vmul.f32 %v5594_v17, %v5586_v59 }
 0x4b6   : > { %5011 = vmatmul.mubr.msk.f32.vlgmr.msra.gmra.mrb[2].mxu0 %vm612_vm2, %v963_v18 }
 0x4b7   : > { %5020 = vmatprep.mubr.msk.f32.mxu0 %vm5670_vm1, %v5671_v13 }
 0x50d   : > { %v952_v19 = vpop.xlane.xlu0 %951 }
 0x50e   : > { %5595 = vrcp.f32 %v952_v19 }
 0x511   : > { %v955_v20 = vpop.xlane.xlu1 %954 }
 0x512   : > { %5597 = vrcp.f32 %v955_v20 }
 0x515   : > { %v958_v21 = vpop.xlane.xlu0 %957  ;;  %v1120_v22 = vpop.permute.xlu1 %1119 }
 0x516   : > { %5599 = vrcp.f32 %v958_v21  ;;  %5019 = vmatpush3.msra.mxu0 %v1120_v22 }
 0x517   : > { %5326 = vmatprep.subr.bf16.mxu0 %v5669_v10 }
 0x518   : > { %v5596_v23 = vpop.eup %5595 }
 0x519   : > { %v964_v24 = vmul.f32 %v5596_v23, %v5588_v8  ;;  %v1044_v25 = vpop.permute.xlu0 %1043  ;;  %v1196_v26 = vpop.permute.xlu1 %1195 }
 0x51a   : > { %5014 = vmatpush3.msra.mxu1 %v1044_v25 }
 0x51b   : > { %5016 = vmatmul.mubr.msk.f32.vlgmr.msra.gmra.mrb[8].mxu1 %vm612_vm2, %v964_v24  ;;  %5023 = vmatprep.subr.mxu1 %v5671_v13 }
 0x51c   : > { %v5598_v27 = vpop.eup %5597  ;;  %5024 = vmatpush3.msra.mxu1 %v1196_v26  ;;  %5025 = vmatprep.mubr.msk.f32.mxu1 %vm5670_vm1, %v5671_v13 }
 0x51d   : > { %v965_v28 = vmul.f32 %v5598_v27, %v5590_v11  ;;  %5332 = vmatprep.subr.bf16.mxu1 %v5669_v10 }
 0x51f   : > { %5021 = vmatmul.mubr.msk.f32.vlgmr.msra.gmra.mrb[4].mxu0 %vm612_vm2, %v965_v28 }
 0x520   : > { %v5600_v29 = vpop.eup %5599  ;;  %5036 = vmatprep.mubr.msk.f32.mxu0 %vm5670_vm1, %v5671_v13  ;;  %5328 = vmatpush3.bf16.msra.mxu0 %v5327_v35 }
 0x521   : > { %v966_v30 = vmul.f32 %v5600_v29, %v5592_v14  ;;  %5329 = vmatprep.subr.bf16.mxu0 %v5669_v10 }
 0x523   : > { %5026 = vmatmul.mubr.msk.f32.vlgmr.msra.gmra.mrb[10].mxu1 %vm612_vm2, %v966_v30 }
 0x524   : > { %5047 = vmatprep.mubr.msk.f32.mxu1 %vm5670_vm1, %v5671_v13  ;;  %5331 = vmatpush3.bf16.msra.mxu0 %v5330_v39 }
 0x525   : > { %5050 = vmatprep.subr.mxu0 %v5671_v13 }
 0x589   : > { %v1039_v31 = vpop.f32.mrb[2].mxu0 }
 0x58a   : > { %v5012_v32 = vpop.f32.mrb[3].mxu0 }
 0x5ee   : > { %v1115_v40 = vpop.f32.mrb[8].mxu1 }
 0x5ef   : > { %1272 = vrot.lane.b32.xlu0 %v1115_v40, %s6497_s15  ;;  %v5017_v41 = vpop.f32.mrb[9].mxu1 }
 0x5f2   : > { %v1191_v42 = vpop.f32.mrb[4].mxu0 }
 0x5f3   : > { %1276 = vrot.lane.b32.xlu1 %v1191_v42, %s6493_s16  ;;  %v5022_v43 = vpop.f32.mrb[5].mxu0 }
 0x5f6   : > { %v1267_v44 = vpop.f32.mrb[10].mxu1 }
 0x5f7   : > { %1280 = vrot.lane.b32.xlu0 %v1267_v44, %s6495_s17  ;;  %v5027_v45 = vpop.f32.mrb[11].mxu1  ;;  %s6507_s17 = smov 8  }
 0x661   : > { %v1273_v46 = vpop.permute.xlu0 %1272 }
 0x662   : > { %v1283_v48 = vsel %vm612_vm2, %v1039_v31, %v1273_v46 }
 0x665   : > { %v1277_v47 = vpop.permute.xlu1 %1276 }
 0x666   : > { %v1285_v49 = vsel %vm1284_vm3, %v1283_v48, %v1277_v47 }
 0x669   : > { %v1281_v50 = vpop.permute.xlu0 %1280 }
 0x66a   : > { %v1287_v51 = vsel %vm1286_vm4, %v1285_v49, %v1281_v50 }
 0x66b   : > { %5037 = vmatmul.mubr.msk.f32.vlgmr.msra.gmra.mrb[6].mxu0 %vm488_vm0, %v1287_v51 }
 0x66c   : > { %5052 = vmatprep.mubr.msk.f32.mxu0 %vm5670_vm1, %v5671_v13 }
 0x73e   : > { %v1368_v53 = vpop.f32.mrb[6].mxu0 }
 0x73f   : > { %v1369_v54 = vadd.f32 %v4701_v52, %v1368_v53  ;;  %v5038_v55 = vpop.f32.mrb[7].mxu0 }
 0x741   : > { %v5929_v56 = vadd.f32 %v1369_v54, %v5774_v0  ;;  %v4708_v0 = vld [vmem:[%s6481_s4 + $0x28] sm:$0xff] }
 0x742   : > { %v5333_v1 = vpack.c.bf16 %v4708_v0, %v4707_v63 }
 0x743   : > { %v1373_v57 = vsel %vm488_vm0, %v5929_v56, 0.0 }
 0x744   : > { %1374 = vadd.xlane.f32.xlu1 %v1373_v57  ;;  %5334 = vmatpush3.bf16.msra.mxu1 %v5333_v1 }
 0x745   : > { %5335 = vmatprep.subr.bf16.mxu1 %v5669_v10 }
 0x748   : > { %5337 = vmatpush3.bf16.msra.mxu1 %v5336_v4 }
 0x749   : > { %5055 = vmatprep.subr.mxu1 %v5671_v13 }
 0x7d1   : > { %v1375_v58 = vpop.xlane.xlu1 %1374 }
 0x7d2   : > { %v1376_v59 = vmul.f32 0.03125, %v1375_v58 }
 0x7d4   : > { %v1377_v60 = vsub.f32 %v5929_v56, %v1376_v59 }
 0x7d6   : > { %v1378_v61 = vmul.f32 %v1377_v60, %v1377_v60 }
 0x7d8   : > { %v1379_v62 = vsel %vm488_vm0, %v1378_v61, 0.0 }
 0x7d9   : > { %1380 = vadd.xlane.f32.xlu0 %v1379_v62 }
 0x866   : > { %v1381_v5 = vpop.xlane.xlu0 %1380 }
 0x867   : > { %v1382_v6 = vmul.f32 0.03125, %v1381_v5 }
 0x869   : > { %v1383_v7 = vadd.f32 1e-05, %v1382_v6 }
 0x86b   : > { %5601 = vrsqrt.f32 %v1383_v7 }
 0x875   : > { %v5602_v8 = vpop.eup %5601 }
 0x876   : > { %v1385_v11 = vmul.f32 %v5602_v8, %v1377_v60 }
 0x878   : > { %v1394_v14 = vmul.f32 %v4704_v9, %v1385_v11 }
 0x87a   : > { %v1403_v15 = vadd.f32 %v4706_v12, %v1394_v14 }
 0x87c   : > { %5048 = vmatmul.mubr.msk.f32.vlgmr.msra.gmra.mrb[12].mxu1 %vm488_vm0, %v1403_v15 }
 0x87d   : > { %5057 = vmatprep.mubr.msk.f32.mxu1 %vm5670_vm1, %v5671_v13 }
 0x94f   : > { %v1486_v17 = vpop.f32.mrb[12].mxu1 }
 0x950   : > { %v1487_v18 = vadd.f32 %v4712_v16, %v1486_v17  ;;  %v5049_v19 = vpop.f32.mrb[13].mxu1 }
 0x952   : > { %1493 = vrot.lane.b32.xlu1 %v1487_v18, %s6503_s22  ;;  %1491 = vrot.lane.b32.xlu0 %v1487_v18, %s6501_s21 }
 0x956   : > { %1495 = vrot.lane.b32.xlu1 %v1487_v18, %s6499_s20  ;;  %1497 = vrot.lane.b32.xlu0 %v1487_v18, %s6505_s23  ;;  %s6516_s20 = smov 96  }
 0x9c4   : > { %v5965_v20 = vpop.permute.xlu1 %1493  ;;  %v1492_v21 = vpop.permute.xlu0 %1491 }
 0x9c5   : > { %1649 = vrot.lane.b32.xlu0 %v5965_v20, %s6505_s23  ;;  %1573 = vrot.lane.b32.xlu1 %v1492_v21, %s6505_s23 }
 0x9c8   : > { %v5970_v22 = vpop.permute.xlu1 %1495  ;;  %v1498_v23 = vpop.permute.xlu0 %1497 }
 0x9c9   : > { %1725 = vrot.lane.b32.xlu1 %v5970_v22, %s6505_s23  ;;  %5051 = vmatpush3.xpose.msk.msra.mxu0 %vm612_vm2, %v1498_v23 }
 0x9ca   : > { %1806 = vrot.lane.b32.xlu0 %v5864_v36, %s6501_s21  ;;  %5060 = vmatprep.subr.mxu0 %v5671_v13 }
 0x9cc   : > { %5053 = vmatmul.mubr.msk.f32.vlgmr.msra.gmra.mrb[8].mxu0 %vm612_vm2, %v1487_v18 }
 0x9cd   : > { %5062 = vmatprep.mubr.msk.f32.mxu0 %vm5670_vm1, %v5671_v13 }
 0xa37   : > { %v1574_v24 = vpop.permute.xlu1 %1573  ;;  %v1650_v25 = vpop.permute.xlu0 %1649 }
 0xa38   : > { %5056 = vmatpush3.xpose.msk.msra.mxu1 %vm612_vm2, %v1574_v24  ;;  %5061 = vmatpush3.xpose.msk.msra.mxu0 %vm612_vm2, %v1650_v25 }
 0xa39   : > { %5065 = vmatprep.subr.mxu1 %v5671_v13  ;;  %5070 = vmatprep.subr.mxu0 %v5671_v13 }
 0xa3b   : > { %5058 = vmatmul.mubr.msk.f32.vlgmr.msra.gmra.mrb[14].mxu1 %vm612_vm2, %v1492_v21  ;;  %v1726_v26 = vpop.permute.xlu1 %1725  ;;  %5063 = vmatmul.mubr.msk.f32.vlgmr.msra.gmra.mrb[10].mxu0 %vm612_vm2, %v5965_v20 }
 0xa3c   : > { %5066 = vmatpush3.xpose.msk.msra.mxu1 %vm612_vm2, %v1726_v26  ;;  %5067 = vmatprep.mubr.msk.f32.mxu1 %vm5670_vm1, %v5671_v13  ;;  %v1807_v28 = vpop.permute.xlu0 %1806  ;;  %v4726_v26 = vld [vmem:[%s6483_s6 + $0x20] sm:$0xff] }
 0xa3d   : > { %5075 = vmatprep.subr.mxu1 %v5671_v13  ;;  %5072 = vmatprep.mubr.msk.f32.mxu0 %vm5670_vm1, %v5671_v13 }
 0xa3f   : > { %5068 = vmatmul.mubr.msk.f32.vlgmr.msra.gmra.mrb[16].mxu1 %vm612_vm2, %v5970_v22 }
 0xa40   : > { %5077 = vmatprep.mubr.msk.f32.mxu1 %vm5670_vm1, %v5671_v13 }
 0xa9f   : > { %v1569_v27 = vpop.f32.mrb[8].mxu0 }
 0xaa0   : > { %v1801_v29 = vmul.f32 0.35355338, %v1569_v27  ;;  %v5054_v30 = vpop.f32.mrb[9].mxu0  ;;  %v4727_v27 = vld [vmem:[%s6483_s6 + $0x28] sm:$0xff] }
 0xaa1   : > { %v4729_v30 = vld [vmem:[%s6483_s6 + $0x38] sm:$0xff] }
 0xaa2   : > { %v1809_v31 = vadd.f32 %v1807_v28, %v1801_v29  ;;  %v4728_v29 = vld [vmem:[%s6483_s6 + $0x30] sm:$0xff] }
 0xaa4   : > { %v1813_v32 = vsel %vm612_vm2, %v1809_v31, -inf }
 0xaa5   : > { %1814 = vmax.xlane.f32.xlu1 %v1813_v32 }
 0xb0e   : > { %v1645_v33 = vpop.f32.mrb[14].mxu1  ;;  %v1721_v34 = vpop.f32.mrb[10].mxu0 }
 0xb0f   : > { %v1802_v35 = vmul.f32 0.35355338, %v1645_v33  ;;  %v1803_v37 = vmul.f32 0.35355338, %v1721_v34  ;;  %v5059_v38 = vpop.f32.mrb[15].mxu1  ;;  %v5064_v39 = vpop.f32.mrb[11].mxu0 }
 0xb11   : > { %v1810_v40 = vadd.f32 %v1807_v28, %v1802_v35  ;;  %v1811_v45 = vadd.f32 %v1807_v28, %v1803_v37 }
 0xb12   : > { %v1797_v41 = vpop.f32.mrb[16].mxu1 }
 0xb13   : > { %v1804_v42 = vmul.f32 0.35355338, %v1797_v41  ;;  %v5069_v43 = vpop.f32.mrb[17].mxu1  ;;  %v1816_v44 = vsel %vm612_vm2, %v1810_v40, -inf  ;;  %v1819_v48 = vsel %vm612_vm2, %v1811_v45, -inf }
 0xb14   : > { %1817 = vmax.xlane.f32.xlu0 %v1816_v44 }
 0xb15   : > { %v1812_v46 = vadd.f32 %v1807_v28, %v1804_v42  ;;  %v5339_v28 = vpack.c.bf16 %v4727_v27, %v4726_v26 }
 0xb17   : > { %v1822_v47 = vsel %vm612_vm2, %v1812_v46, -inf }
 0xb18   : > { %1823 = vmax.xlane.f32.xlu1 %v1822_v47  ;;  %1820 = vmax.xlane.f32.xlu0 %v1819_v48 }
 0xb29   : > { %1933 = vrot.lane.b32.xlu1 %v1492_v21, %s5676_s28 }
 0xb2e   : > { %1857 = vrot.lane.b32.xlu0 %v1487_v18, %s5676_s28 }
 0xb32   : > { %v1815_v49 = vpop.xlane.xlu1 %1814 }
 0xb33   : > { %v1825_v50 = vsub.f32 %v1809_v31, %v1815_v49  ;;  %v5342_v31 = vpack.c.bf16 %v4729_v30, %v4728_v29 }
 0xb35   : > { %v1829_v51 = vmul.f32 1.442695, %v1825_v50 }
 0xb37   : > { %5603 = vpow2.f32 %v1829_v51  ;;  %v4737_v51 = vld [vmem:[%s6481_s4 + $0x40] sm:$0xff] }
 0xb41   : > { %v5604_v52 = vpop.eup %5603 }
 0xb42   : > { %v1837_v53 = vsel %vm612_vm2, %v5604_v52, 0.0 }
 0xb4d   : > { %1838 = vadd.xlane.f32.xlu0 %v1837_v53  ;;  %v4739_v53 = vld [vmem:[%s6481_s4 + $0x50] sm:$0xff] }
 0xba1   : > { %v1818_v54 = vpop.xlane.xlu0 %1817 }
 0xba2   : > { %v1826_v55 = vsub.f32 %v1810_v40, %v1818_v54 }
 0xba4   : > { %v1831_v57 = vmul.f32 1.442695, %v1826_v55 }
 0xba5   : > { %v1824_v58 = vpop.xlane.xlu1 %1823  ;;  %v1821_v59 = vpop.xlane.xlu0 %1820 }
 0xba6   : > { %5605 = vpow2.f32 %v1831_v57  ;;  %v1828_v60 = vsub.f32 %v1812_v46, %v1824_v58  ;;  %v1827_v61 = vsub.f32 %v1811_v45, %v1821_v59  ;;  %v4731_v45 = vld [vmem:[%s6484_s7 + $0x1] ss:$0 sm:$0xff] }
 0xba8   : > { %v1835_v62 = vmul.f32 1.442695, %v1828_v60  ;;  %v1833_v63 = vmul.f32 1.442695, %v1827_v61 }
 0xba9   : > { %v1934_v0 = vpop.permute.xlu1 %1933  ;;  %v1858_v1 = vpop.permute.xlu0 %1857 }
 0xbaa   : > { %5607 = vpow2.f32 %v1835_v62  ;;  %5071 = vmatpush3.msra.mxu0 %v1858_v1  ;;  %5076 = vmatpush3.msra.mxu1 %v1934_v0 }
 0xbab   : > { %5609 = vpow2.f32 %v1833_v63  ;;  %5080 = vmatprep.subr.mxu0 %v5671_v13  ;;  %5085 = vmatprep.subr.mxu1 %v5671_v13 }
 0xbb0   : > { %v5606_v2 = vpop.eup %5605 }
 0xbb1   : > { %v1840_v3 = vsel %vm612_vm2, %v5606_v2, 0.0 }
 0xbb2   : > { %1841 = vadd.xlane.f32.xlu1 %v1840_v3 }
 0xbb4   : > { %v5608_v4 = vpop.eup %5607 }
 0xbb5   : > { %v5610_v5 = vpop.eup %5609  ;;  %v1846_v6 = vsel %vm612_vm2, %v5608_v4, 0.0 }
 0xbb6   : > { %1847 = vadd.xlane.f32.xlu1 %v1846_v6  ;;  %v1843_v7 = vsel %vm612_vm2, %v5610_v5, 0.0 }
 0xbb7   : > { %1844 = vadd.xlane.f32.xlu0 %v1843_v7 }
 0xbc7   : > { %2009 = vrot.lane.b32.xlu1 %v5965_v20, %s5676_s28 }
 0xbcd   : > { %2085 = vrot.lane.b32.xlu0 %v5970_v22, %s5676_s28  ;;  %s6508_s28 = smov 24  }
 0xbda   : > { %v1839_v8 = vpop.xlane.xlu0 %1838 }
 0xbdb   : > { %5611 = vrcp.f32 %v1839_v8 }
 0xbe5   : > { %v5612_v9 = vpop.eup %5611 }
 0xbe6   : > { %v1853_v11 = vmul.f32 %v5612_v9, %v5604_v52  ;;  %v4738_v52 = vld [vmem:[%s6481_s4 + $0x48] sm:$0xff] }
 0xbe7   : > { %v5493_v54 = vpack.i.bf16 %v4738_v52, %v4737_v51  ;;  %v5345_v55 = vpack.c.bf16 %v4738_v52, %v4737_v51 }
 0xbe8   : > { %5073 = vmatmul.mubr.msk.f32.vlgmr.msra.gmra.mrb[12].mxu0 %vm612_vm2, %v1853_v11 }
 0xbe9   : > { %5082 = vmatprep.mubr.msk.f32.mxu0 %vm5670_vm1, %v5671_v13 }
 0xc3f   : > { %v1842_v12 = vpop.xlane.xlu1 %1841 }
 0xc40   : > { %5613 = vrcp.f32 %v1842_v12 }
 0xc43   : > { %v1848_v14 = vpop.xlane.xlu1 %1847 }
 0xc44   : > { %5615 = vrcp.f32 %v1848_v14  ;;  %v1845_v15 = vpop.xlane.xlu0 %1844 }
 0xc45   : > { %5617 = vrcp.f32 %v1845_v15  ;;  %v6081_v15 = vld [vmem:[%s5771_s18 + $0x10] sm:$0xff] }
 0xc47   : > { %v2010_v16 = vpop.permute.xlu1 %2009 }
 0xc48   : > { %5081 = vmatpush3.msra.mxu0 %v2010_v16  ;;  %v2086_v19 = vpop.permute.xlu0 %2085 }
 0xc49   : > { %5338 = vmatprep.subr.bf16.mxu0 %v5669_v10 }
 0xc4a   : > { %v5614_v17 = vpop.eup %5613 }
 0xc4b   : > { %v1854_v18 = vmul.f32 %v5614_v17, %v5606_v2  ;;  %v4734_v17 = vld [vmem:[%s6479_s2 + $0x2] ss:$0 sm:$0xff] }
 0xc4d   : > { %5078 = vmatmul.mubr.msk.f32.vlgmr.msra.gmra.mrb[18].mxu1 %vm612_vm2, %v1854_v18 }
 0xc4e   : > { %v5616_v20 = vpop.eup %5615  ;;  %5086 = vmatpush3.msra.mxu1 %v2086_v19  ;;  %5087 = vmatprep.mubr.msk.f32.mxu1 %vm5670_vm1, %v5671_v13  ;;  %v4736_v19 = vld [vmem:[%s6480_s3 + $0x2] ss:$0 sm:$0xff] }
 0xc4f   : > { %v5618_v21 = vpop.eup %5617  ;;  %v1856_v22 = vmul.f32 %v5616_v20, %v5608_v4  ;;  %5344 = vmatprep.subr.bf16.mxu1 %v5669_v10  ;;  %v484_v4 = vld [vmem:[%s5771_s18 + $0x8] sm:$0xff] }
 0xc50   : > { %v1855_v23 = vmul.f32 %v5618_v21, %v5610_v5  ;;  %v4742_v5 = vld [vmem:[%s6482_s5 + $0x2] ss:$0 sm:$0xff] }
 0xc51   : > { %5088 = vmatmul.mubr.msk.f32.vlgmr.msra.gmra.mrb[20].mxu1 %vm612_vm2, %v1856_v22 }
 0xc52   : > { %5083 = vmatmul.mubr.msk.f32.vlgmr.msra.gmra.mrb[14].mxu0 %vm612_vm2, %v1855_v23  ;;  %5109 = vmatprep.mubr.msk.f32.mxu1 %vm5670_vm1, %v5671_v13 }
 0xc53   : > { %5098 = vmatprep.mubr.msk.f32.mxu0 %vm5670_vm1, %v5671_v13  ;;  %5340 = vmatpush3.bf16.msra.mxu0 %v5339_v28 }
 0xc54   : > { %5341 = vmatprep.subr.bf16.mxu0 %v5669_v10  ;;  %5346 = vmatpush3.bf16.msra.mxu1 %v5345_v55 }
 0xc55   : > { %5347 = vmatprep.subr.bf16.mxu1 %v5669_v10 }
 0xc57   : > { %5343 = vmatpush3.bf16.msra.mxu0 %v5342_v31 }
 0xcbb   : > { %v1929_v24 = vpop.f32.mrb[12].mxu0 }
 0xcbc   : > { %v5074_v25 = vpop.f32.mrb[13].mxu0 }
 0xd20   : > { %v2005_v32 = vpop.f32.mrb[18].mxu1 }
 0xd21   : > { %2162 = vrot.lane.b32.xlu1 %v2005_v32, %s6507_s17  ;;  %v5079_v33 = vpop.f32.mrb[19].mxu1 }
 0xd24   : > { %v2157_v34 = vpop.f32.mrb[20].mxu1 }
 0xd25   : > { %v2081_v35 = vpop.f32.mrb[14].mxu0  ;;  %2170 = vrot.lane.b32.xlu1 %v2157_v34, %s6508_s28  ;;  %v5089_v37 = vpop.f32.mrb[21].mxu1 }
 0xd26   : > { %2166 = vrot.lane.b32.xlu0 %v2081_v35, %s6509_s24  ;;  %v5084_v38 = vpop.f32.mrb[15].mxu0 }
 0xd93   : > { %v2163_v39 = vpop.permute.xlu1 %2162 }
 0xd94   : > { %v2173_v41 = vsel %vm612_vm2, %v1929_v24, %v2163_v39 }
 0xd97   : > { %v2171_v40 = vpop.permute.xlu1 %2170 }
 0xd98   : > { %v2167_v42 = vpop.permute.xlu0 %2166 }
 0xd99   : > { %v2174_v43 = vsel %vm1284_vm3, %v2173_v41, %v2167_v42 }
 0xd9a   : > { %v2175_v44 = vsel %vm1286_vm4, %v2174_v43, %v2171_v40 }
 0xd9b   : > { %5099 = vmatmul.mubr.msk.f32.vlgmr.msra.gmra.mrb[16].mxu0 %vm488_vm0, %v2175_v44 }
 0xd9c   : > { %5120 = vmatprep.mubr.msk.f32.mxu0 %vm488_vm0, %v484_v4 }
 0xe6e   : > { %v2258_v46 = vpop.f32.mrb[16].mxu0 }
 0xe6f   : > { %v2259_v47 = vadd.f32 %v4731_v45, %v2258_v46  ;;  %v5100_v48 = vpop.f32.mrb[17].mxu0 }
 0xe71   : > { %v6052_v49 = vadd.f32 %v2259_v47, %v5929_v56  ;;  %v4740_v56 = vld [vmem:[%s6481_s4 + $0x58] sm:$0xff] }
 0xe72   : > { %v5498_v57 = vpack.i.bf16 %v4740_v56, %v4739_v53  ;;  %v5348_v58 = vpack.c.bf16 %v4740_v56, %v4739_v53 }
 0xe73   : > { %v2263_v50 = vsel %vm488_vm0, %v6052_v49, 0.0 }
 0xe74   : > { %2264 = vadd.xlane.f32.xlu0 %v2263_v50  ;;  %5349 = vmatpush3.bf16.msra.mxu1 %v5348_v58 }
 0xe75   : > { %5358 = vmatprep.subr.bf16.mxu1 %v5669_v10 }
 0xe8a   : > { %5494 = vrot.lane.b32.xlu0 %v5493_v54, %s6505_s23 }
 0xe8e   : > { %2396 = vrot.lane.b32.xlu0 %v4742_v5, %s6505_s23 }
 0xf01   : > { %v2265_v59 = vpop.xlane.xlu0 %2264 }
 0xf02   : > { %v2266_v60 = vmul.f32 0.03125, %v2265_v59 }
 0xf04   : > { %v2267_v61 = vsub.f32 %v6052_v49, %v2266_v60 }
 0xf05   : > { %v5495_v62 = vpop.permute.xlu0 %5494 }
 0xf06   : > { %v2268_v63 = vmul.f32 %v2267_v61, %v2267_v61  ;;  %v5497_v0 = vunpack.i.h.bf16 %v5495_v62  ;;  %v5496_v1 = vunpack.i.l.bf16 %v5495_v62 }
 0xf08   : > { %v2269_v2 = vsel %vm488_vm0, %v2268_v63, 0.0  ;;  %v5350_v3 = vpack.c.bf16 %v5497_v0, %v5496_v1 }
 0xf09   : > { %2270 = vadd.xlane.f32.xlu1 %v2269_v2  ;;  %v2397_v22 = vpop.permute.xlu0 %2396 }
 0xf0a   : > { %5351 = vmatprep.subr.bf16.mxu0 %v5350_v3 }
 0xf0b   : > { %5353 = vmatpush3.bf16.msra.mxu0 %v5350_v3 }
 0xf1a   : > { %5499 = vrot.lane.b32.xlu1 %v5498_v57, %s6505_s23 }
 0xf96   : > { %v2271_v6 = vpop.xlane.xlu1 %2270 }
 0xf97   : > { %v2272_v7 = vmul.f32 0.03125, %v2271_v6 }
 0xf99   : > { %v2273_v8 = vadd.f32 1e-05, %v2272_v7 }
 0xf9a   : > { %v5500_v9 = vpop.permute.xlu1 %5499 }
 0xf9b   : > { %5619 = vrsqrt.f32 %v2273_v8  ;;  %v5502_v11 = vunpack.i.h.bf16 %v5500_v9  ;;  %v5501_v12 = vunpack.i.l.bf16 %v5500_v9 }
 0xf9d   : > { %v5354_v14 = vpack.c.bf16 %v5502_v11, %v5501_v12 }
 0xf9f   : > { %5355 = vmatprep.subr.bf16.mxu0 %v5354_v14 }
 0xfa0   : > { %5357 = vmatpush3.bf16.msra.mxu0 %v5354_v14 }
 0xfa1   : > { %5362 = vmatprep.subr.bf16.mxu0 %v5669_v10 }
 0xfa3   : > { %5121 = vmatmul.mubr.msk.f32.vlgmr.msra.gmra.mrb[18].mxu0 %vm488_vm0, %v6081_v15 }
 0xfa4   : > { %5134 = vmatprep.mubr.msk.f32.mxu0 %vm5670_vm1, %v5671_v13 }
 0xfa5   : > { %v5620_v16 = vpop.eup %5619 }
 0xfa6   : > { %v2275_v18 = vmul.f32 %v5620_v16, %v2267_v61 }
 0xfa8   : > { %v2284_v20 = vmul.f32 %v4734_v17, %v2275_v18 }
 0xfaa   : > { %v2293_v21 = vadd.f32 %v4736_v19, %v2284_v20 }
 0xfac   : > { %5110 = vmatmul.mubr.msk.f32.vlgmr.msra.gmra.mrb[22].mxu1 %vm488_vm0, %v2293_v21 }
 0xfad   : > { %5127 = vmatprep.mubr.msk.f32.mxu1 %vm5670_vm1, %v5671_v13 }
0x1076   : > { %v5122_v23 = vpop.f32.mrb[18].mxu0 }
0x1077   : > { %v2477_v24 = vadd.f32 %v5122_v23, %v2397_v22  ;;  %v2471_v25 = vpop.f32.mrb[19].mxu0  ;;  %v4807_v23 = vld [vmem:[%s6483_s6 + $0x68] sm:$0xff] }
0x1078   : > { %v2472_v26 = vadd.f32 %v2471_v25, %v2397_v22 }
0x107a   : > { %v6097_v27 = vpack.i.bf16 %v2477_v24, %v2472_v26  ;;  %v5359_v28 = vpack.c.bf16 %v2477_v24, %v2472_v26 }
0x107c   : > { %5509 = vrot.lane.b32.xlu0 %v6097_v27, %s6503_s22  ;;  %5504 = vrot.lane.b32.xlu1 %v6097_v27, %s6512_s19 }
0x107d   : > { %5361 = vmatpush3.bf16.xpose.msk.msra.mxu1 %vm6101_vm5, %v5359_v28 }
0x107e   : > { %5366 = vmatprep.subr.bf16.mxu1 %v5669_v10 }
0x107f   : > { %v2376_v30 = vpop.f32.mrb[22].mxu1 }
0x1080   : > { %v2377_v31 = vadd.f32 %v4742_v5, %v2376_v30  ;;  %v5111_v32 = vpop.f32.mrb[23].mxu1  ;;  %5514 = vrot.lane.b32.xlu1 %v6097_v27, %s6513_s25 }
0x1082   : > { %2481 = vrot.lane.b32.xlu0 %v2377_v31, %s6512_s19 }
0x1084   : > { %5128 = vmatmul.mubr.msk.f32.vlgmr.msra.gmra.mrb[24].mxu1 %vm612_vm2, %v2377_v31  ;;  %2483 = vrot.lane.b32.xlu1 %v2377_v31, %s6503_s22 }
0x1085   : > { %5141 = vmatprep.mubr.msk.f32.mxu1 %vm5670_vm1, %v5671_v13 }
0x1086   : > { %2485 = vrot.lane.b32.xlu0 %v2377_v31, %s6513_s25 }
0x1088   : > { %2809 = vrot.lane.b32.xlu1 %v5864_v36, %s6503_s22  ;;  %s6517_s22 = smov 112  }
0x10ee   : > { %v6122_v33 = vpop.permute.xlu0 %5509  ;;  %v6124_v34 = vpop.permute.xlu1 %5504 }
0x10ef   : > { %v5512_v35 = vunpack.i.h.bf16 %v6122_v33  ;;  %v5511_v37 = vunpack.i.l.bf16 %v6122_v33  ;;  %v5507_v38 = vunpack.i.h.bf16 %v6124_v34  ;;  %v5506_v39 = vunpack.i.l.bf16 %v6124_v34 }
0x10f1   : > { %v5367_v40 = vpack.c.bf16 %v5512_v35, %v5511_v37  ;;  %v5363_v41 = vpack.c.bf16 %v5507_v38, %v5506_v39 }
0x10f2   : > { %v6130_v42 = vpop.permute.xlu1 %5514 }
0x10f3   : > { %v5517_v43 = vunpack.i.h.bf16 %v6130_v42  ;;  %v5516_v36 = vunpack.i.l.bf16 %v6130_v42  ;;  %5365 = vmatpush3.bf16.xpose.msk.msra.mxu0 %vm6101_vm5, %v5363_v41  ;;  %5369 = vmatpush3.bf16.xpose.msk.msra.mxu1 %vm6101_vm5, %v5367_v40 }
0x10f4   : > { %5370 = vmatprep.subr.bf16.mxu0 %v5669_v10  ;;  %5374 = vmatprep.subr.bf16.mxu1 %v5669_v10  ;;  %v2482_v45 = vpop.permute.xlu0 %2481 }
0x10f5   : > { %v5371_v44 = vpack.c.bf16 %v5517_v43, %v5516_v36 }
0x10f6   : > { %v2484_v46 = vpop.permute.xlu1 %2483 }
0x10f8   : > { %v2486_v47 = vpop.permute.xlu0 %2485 }
0x10fa   : > { %5135 = vmatmul.mubr.msk.f32.vlgmr.msra.gmra.mrb[20].mxu0 %vm612_vm2, %v2482_v45  ;;  %5142 = vmatmul.mubr.msk.f32.vlgmr.msra.gmra.mrb[26].mxu1 %vm612_vm2, %v2484_v46  ;;  %v6152_v50 = vpop.permute.xlu1 %2809 }
0x10fb   : > { %5373 = vmatpush3.bf16.xpose.msk.msra.mxu0 %vm6101_vm5, %v5371_v44  ;;  %5148 = vmatprep.mubr.msk.f32.mxu0 %vm5670_vm1, %v5671_v13 }
0x10fc   : > { %5155 = vmatprep.mubr.msk.f32.mxu1 %vm5670_vm1, %v5671_v13  ;;  %5382 = vmatprep.subr.bf16.mxu0 %v5669_v10 }
0x1102   : > { %5149 = vmatmul.mubr.msk.f32.vlgmr.msra.gmra.mrb[22].mxu0 %vm612_vm2, %v2486_v47 }
0x1103   : > { %5169 = vmatprep.mubr.msk.f32.mxu0 %vm5670_vm1, %v5671_v13 }
0x1157   : > { %v2573_v48 = vpop.f32.mrb[24].mxu1 }
0x1158   : > { %v2805_v51 = vmul.f32 0.35355338, %v2573_v48  ;;  %v5129_v52 = vpop.f32.mrb[25].mxu1 }
0x115a   : > { %v2812_v53 = vadd.f32 %v6152_v50, %v2805_v51 }
0x115c   : > { %v2817_v54 = vsel %vm2816_vm6, %v2812_v53, -inf }
0x115d   : > { %2818 = vmax.xlane.f32.xlu0 %v2817_v54 }
0x11cd   : > { %v2649_v55 = vpop.f32.mrb[20].mxu0  ;;  %v2725_v56 = vpop.f32.mrb[26].mxu1 }
0x11ce   : > { %v2806_v57 = vmul.f32 0.35355338, %v2649_v55  ;;  %v2807_v58 = vmul.f32 0.35355338, %v2725_v56  ;;  %v5136_v59 = vpop.f32.mrb[21].mxu0  ;;  %v5143_v60 = vpop.f32.mrb[27].mxu1 }
0x11d0   : > { %v2813_v61 = vadd.f32 %v6152_v50, %v2806_v57  ;;  %v2814_v62 = vadd.f32 %v6152_v50, %v2807_v58 }
0x11d2   : > { %v2820_v63 = vsel %vm2816_vm6, %v2813_v61, -inf  ;;  %v2823_v0 = vsel %vm2816_vm6, %v2814_v62, -inf }
0x11d3   : > { %2821 = vmax.xlane.f32.xlu1 %v2820_v63  ;;  %2824 = vmax.xlane.f32.xlu0 %v2823_v0  ;;  %v4766_v63 = vld [vmem:[%s6483_s6 + $0x40] sm:$0xff]  ;;  %v4767_v0 = vld [vmem:[%s6483_s6 + $0x48] sm:$0xff] }
0x11d5   : > { %v2801_v1 = vpop.f32.mrb[22].mxu0 }
0x11d6   : > { %v2808_v2 = vmul.f32 0.35355338, %v2801_v1  ;;  %v5150_v3 = vpop.f32.mrb[23].mxu0  ;;  %v5391_v1 = vpack.c.bf16 %v4767_v0, %v4766_v63 }
0x11d7   : > { %v4769_v3 = vld [vmem:[%s6483_s6 + $0x58] sm:$0xff] }
0x11d8   : > { %v2815_v4 = vadd.f32 %v6152_v50, %v2808_v2  ;;  %v4768_v2 = vld [vmem:[%s6483_s6 + $0x50] sm:$0xff] }
0x11da   : > { %v2826_v5 = vsel %vm2816_vm6, %v2815_v4, -inf }
0x11db   : > { %2827 = vmax.xlane.f32.xlu0 %v2826_v5 }
0x11e4   : > { %5519 = vrot.lane.b32.xlu1 %v6097_v27, %s6505_s23 }
0x11ea   : > { %v2819_v6 = vpop.xlane.xlu0 %2818 }
0x11eb   : > { %v2829_v7 = vsub.f32 %v2812_v53, %v2819_v6 }
0x11ed   : > { %v2833_v8 = vmul.f32 1.442695, %v2829_v7 }
0x11ef   : > { %5621 = vpow2.f32 %v2833_v8 }
0x11f9   : > { %v5622_v9 = vpop.eup %5621 }
0x11fa   : > { %v2841_v11 = vsel %vm2816_vm6, %v5622_v9, 0.0 }
0x1208   : > { %2842 = vadd.xlane.f32.xlu1 %v2841_v11 }
0x1260   : > { %v2822_v12 = vpop.xlane.xlu1 %2821  ;;  %v2825_v14 = vpop.xlane.xlu0 %2824 }
0x1261   : > { %v2830_v16 = vsub.f32 %v2813_v61, %v2822_v12  ;;  %v2831_v17 = vsub.f32 %v2814_v62, %v2825_v14 }
0x1263   : > { %v2835_v18 = vmul.f32 1.442695, %v2830_v16  ;;  %v2837_v19 = vmul.f32 1.442695, %v2831_v17 }
0x1264   : > { %v5520_v20 = vpop.permute.xlu1 %5519 }
0x1265   : > { %5623 = vpow2.f32 %v2835_v18  ;;  %v5522_v21 = vunpack.i.h.bf16 %v5520_v20  ;;  %v5521_v22 = vunpack.i.l.bf16 %v5520_v20  ;;  %v4771_v20 = vld [vmem:[%s6484_s7 + $0x2] ss:$0 sm:$0xff] }
0x1266   : > { %5625 = vpow2.f32 %v2837_v19 }
0x1267   : > { %v5375_v24 = vpack.c.bf16 %v5522_v21, %v5521_v22 }
0x1268   : > { %v2828_v25 = vpop.xlane.xlu0 %2827 }
0x1269   : > { %v2832_v26 = vsub.f32 %v2815_v4, %v2828_v25  ;;  %5377 = vmatpush3.bf16.msk.msra.mxu1 %vm6165_vm9, %v5375_v24  ;;  %v5394_v4 = vpack.c.bf16 %v4769_v3, %v4768_v2 }
0x126a   : > { %5378 = vmatprep.subr.bf16.mxu1 %v5669_v10 }
0x126b   : > { %v2839_v27 = vmul.f32 1.442695, %v2832_v26 }
0x126d   : > { %5627 = vpow2.f32 %v2839_v27  ;;  %v4777_v27 = vld [vmem:[%s6481_s4 + $0x60] sm:$0xff] }
0x126f   : > { %v5624_v28 = vpop.eup %5623 }
0x1270   : > { %v5626_v30 = vpop.eup %5625  ;;  %v2844_v31 = vsel %vm2816_vm6, %v5624_v28, 0.0 }
0x1271   : > { %2845 = vadd.xlane.f32.xlu0 %v2844_v31  ;;  %v2847_v32 = vsel %vm2816_vm6, %v5626_v30, 0.0 }
0x1272   : > { %2848 = vadd.xlane.f32.xlu1 %v2847_v32  ;;  %v4780_v32 = vld [vmem:[%s6481_s4 + $0x78] sm:$0xff] }
0x1277   : > { %v5628_v35 = vpop.eup %5627 }
0x1278   : > { %v2850_v37 = vsel %vm2816_vm6, %v5628_v35, 0.0 }
0x1279   : > { %2851 = vadd.xlane.f32.xlu0 %v2850_v37 }
0x1283   : > { %5529 = vrot.lane.b32.xlu1 %v6122_v33, %s6505_s23 }
0x1287   : > { %5534 = vrot.lane.b32.xlu1 %v6130_v42, %s6505_s23 }
0x128f   : > { %5524 = vrot.lane.b32.xlu0 %v6124_v34, %s6505_s23 }
0x1295   : > { %v2843_v38 = vpop.xlane.xlu1 %2842 }
0x1296   : > { %5629 = vrcp.f32 %v2843_v38 }
0x12a0   : > { %v5630_v39 = vpop.eup %5629 }
0x12a1   : > { %v2857_v40 = vmul.f32 %v5630_v39, %v5622_v9 }
0x12a3   : > { %5156 = vmatmul.mubr.msk.f32.vlgmr.msra.gmra.mrb[28].mxu1 %vm2816_vm6, %v2857_v40 }
0x12a4   : > { %5162 = vmatprep.mubr.msk.f32.mxu1 %vm5670_vm1, %v5671_v13 }
0x12fe   : > { %v2846_v43 = vpop.xlane.xlu0 %2845 }
0x12ff   : > { %v2849_v41 = vpop.xlane.xlu1 %2848 }
0x1300   : > { %5631 = vrcp.f32 %v2849_v41 }
0x1301   : > { %5633 = vrcp.f32 %v2846_v43 }
0x1303   : > { %v5530_v33 = vpop.permute.xlu1 %5529 }
0x1304   : > { %v5532_v36 = vunpack.i.h.bf16 %v5530_v33  ;;  %v5531_v44 = vunpack.i.l.bf16 %v5530_v33  ;;  %v3403_v33 = vrot.slane %v6081_v15, 2 }
0x1306   : > { %v5383_v42 = vpack.c.bf16 %v5532_v36, %v5531_v44  ;;  %v2852_v45 = vpop.xlane.xlu0 %2851  ;;  %v486_v36 = vld [vmem:[%s5771_s18 + $0x18] sm:$0xf] }
0x1307   : > { %5635 = vrcp.f32 %v2852_v45  ;;  %v5535_v46 = vpop.permute.xlu1 %5534  ;;  %v3404_v44 = vrot.slane %v486_v36, 2  ;;  %v4782_v45 = vld [vmem:[%s6482_s5 + $0x3] ss:$0 sm:$0xff] }
0x1308   : > { %5385 = vmatpush3.bf16.msk.msra.mxu0 %vm6165_vm9, %v5383_v42  ;;  %v5537_v54 = vunpack.i.h.bf16 %v5535_v46  ;;  %v5536_v55 = vunpack.i.l.bf16 %v5535_v46 }
0x1309   : > { %5390 = vmatprep.subr.bf16.mxu0 %v5669_v10  ;;  %v3405_v42 = vsel %vm3402_vm10, %v3403_v33, %v3404_v44 }
0x130a   : > { %v5632_v34 = vpop.eup %5631  ;;  %v5525_v47 = vpop.permute.xlu0 %5524  ;;  %v5387_v59 = vpack.c.bf16 %v5537_v54, %v5536_v55 }
0x130b   : > { %v2859_v48 = vmul.f32 %v5632_v34, %v5626_v30  ;;  %v5527_v51 = vunpack.i.h.bf16 %v5525_v47  ;;  %v5526_v52 = vunpack.i.l.bf16 %v5525_v47  ;;  %v5634_v53 = vpop.eup %5633 }
0x130c   : > { %v2858_v57 = vmul.f32 %v5634_v53, %v5624_v28  ;;  %v4778_v28 = vld [vmem:[%s6481_s4 + $0x68] sm:$0xff] }
0x130d   : > { %v5379_v56 = vpack.c.bf16 %v5527_v51, %v5526_v52  ;;  %5170 = vmatmul.mubr.msk.f32.vlgmr.msra.gmra.mrb[24].mxu0 %vm2816_vm6, %v2859_v48  ;;  %v5538_v30 = vpack.i.bf16 %v4778_v28, %v4777_v27  ;;  %v5397_v31 = vpack.c.bf16 %v4778_v28, %v4777_v27 }
0x130e   : > { %5187 = vmatprep.mubr.msk.f32.mxu0 %vm5670_vm1, %v5671_v13  ;;  %5392 = vmatpush3.bf16.msra.mxu0 %v5391_v1 }
0x130f   : > { %5381 = vmatpush3.bf16.msk.msra.mxu1 %vm6165_vm9, %v5379_v56  ;;  %5393 = vmatprep.subr.bf16.mxu0 %v5669_v10 }
0x1310   : > { %5386 = vmatprep.subr.bf16.mxu1 %v5669_v10 }
0x1311   : > { %v5636_v58 = vpop.eup %5635 }
0x1312   : > { %5163 = vmatmul.mubr.msk.f32.vlgmr.msra.gmra.mrb[30].mxu1 %vm2816_vm6, %v2858_v57  ;;  %v2860_v60 = vmul.f32 %v5636_v58, %v5628_v35  ;;  %5395 = vmatpush3.bf16.msra.mxu0 %v5394_v4  ;;  %v4774_v58 = vld [vmem:[%s6479_s2 + $0x3] ss:$0 sm:$0xff] }
0x1313   : > { %5389 = vmatpush3.bf16.msk.msra.mxu1 %vm6165_vm9, %v5387_v59  ;;  %5176 = vmatprep.mubr.msk.f32.mxu1 %vm5670_vm1, %v5671_v13 }
0x1314   : > { %5396 = vmatprep.subr.bf16.mxu1 %v5669_v10 }
0x1316   : > { %5177 = vmatmul.mubr.msk.f32.vlgmr.msra.gmra.mrb[32].mxu1 %vm2816_vm6, %v2860_v60  ;;  %v4776_v60 = vld [vmem:[%s6480_s3 + $0x3] ss:$0 sm:$0xff] }
0x1317   : > { %5198 = vmatprep.mubr.msk.f32.mxu1 %vm5670_vm1, %v5671_v13  ;;  %5398 = vmatpush3.bf16.msra.mxu1 %v5397_v31 }
0x1318   : > { %5399 = vmatprep.subr.bf16.mxu1 %v5669_v10 }
0x1376   : > { %v2938_v61 = vpop.f32.mrb[28].mxu1 }
0x1377   : > { %v5157_v62 = vpop.f32.mrb[29].mxu1 }
0x13e0   : > { %v3098_v5 = vpop.f32.mrb[24].mxu0 }
0x13e1   : > { %3187 = vrot.lane.b32.xlu1 %v3098_v5, %s6509_s24  ;;  %v5171_v6 = vpop.f32.mrb[25].mxu0 }
0x13e5   : > { %v3018_v7 = vpop.f32.mrb[30].mxu1 }
0x13e6   : > { %3183 = vrot.lane.b32.xlu0 %v3018_v7, %s6507_s17  ;;  %v5164_v8 = vpop.f32.mrb[31].mxu1 }
0x13e9   : > { %v3178_v9 = vpop.f32.mrb[32].mxu1 }
0x13ea   : > { %3191 = vrot.lane.b32.xlu0 %v3178_v9, %s6508_s28  ;;  %v5178_v11 = vpop.f32.mrb[33].mxu1 }
0x1453   : > { %v3188_v16 = vpop.permute.xlu1 %3187 }
0x1458   : > { %v3184_v12 = vpop.permute.xlu0 %3183 }
0x1459   : > { %v3194_v14 = vsel %vm612_vm2, %v2938_v61, %v3184_v12 }
0x145a   : > { %v3195_v17 = vsel %vm1284_vm3, %v3194_v14, %v3188_v16 }
0x145c   : > { %v3192_v18 = vpop.permute.xlu0 %3191 }
0x145d   : > { %v3196_v19 = vsel %vm1286_vm4, %v3195_v17, %v3192_v18 }
0x145e   : > { %5188 = vmatmul.mubr.msk.f32.vlgmr.msra.gmra.mrb[26].mxu0 %vm488_vm0, %v3196_v19 }
0x145f   : > { %5209 = vmatprep.mubr.msk.f32.mxu0 %vm488_vm0, %v3405_v42 }
0x1531   : > { %v3279_v21 = vpop.f32.mrb[26].mxu0 }
0x1532   : > { %v3280_v22 = vadd.f32 %v4771_v20, %v3279_v21  ;;  %v5189_v24 = vpop.f32.mrb[27].mxu0 }
0x1534   : > { %v6226_v25 = vadd.f32 %v3280_v22, %v6052_v49  ;;  %v4779_v49 = vld [vmem:[%s6481_s4 + $0x70] sm:$0xff] }
0x1535   : > { %v5543_v35 = vpack.i.bf16 %v4780_v32, %v4779_v49  ;;  %v5400_v37 = vpack.c.bf16 %v4780_v32, %v4779_v49 }
0x1536   : > { %v3284_v26 = vsel %vm488_vm0, %v6226_v25, 0.0 }
0x1537   : > { %3285 = vadd.xlane.f32.xlu1 %v3284_v26  ;;  %5401 = vmatpush3.bf16.msra.mxu1 %v5400_v37 }
0x1538   : > { %5410 = vmatprep.subr.bf16.mxu1 %v5669_v10 }
0x1548   : > { %5544 = vrot.lane.b32.xlu1 %v5543_v35, %s6516_s20 }
0x154c   : > { %3422 = vrot.lane.b32.xlu1 %v4782_v45, %s6516_s20 }
0x15c4   : > { %v3286_v38 = vpop.xlane.xlu1 %3285 }
0x15c5   : > { %v3287_v39 = vmul.f32 0.03125, %v3286_v38 }
0x15c7   : > { %v3288_v40 = vsub.f32 %v6226_v25, %v3287_v39 }
0x15c8   : > { %v5545_v46 = vpop.permute.xlu1 %5544 }
0x15c9   : > { %v3289_v41 = vmul.f32 %v3288_v40, %v3288_v40  ;;  %v5547_v51 = vunpack.i.h.bf16 %v5545_v46  ;;  %v5546_v52 = vunpack.i.l.bf16 %v5545_v46 }
0x15cb   : > { %v3290_v43 = vsel %vm488_vm0, %v3289_v41, 0.0  ;;  %v5406_v56 = vpack.c.bf16 %v5547_v51, %v5546_v52 }
0x15cc   : > { %3291 = vadd.xlane.f32.xlu0 %v3290_v43  ;;  %v3423_v63 = vpop.permute.xlu1 %3422 }
0x15e2   : > { %5539 = vrot.lane.b32.xlu0 %v5538_v30, %s6516_s20 }
0x1659   : > { %v3292_v34 = vpop.xlane.xlu0 %3291 }
0x165a   : > { %v3293_v47 = vmul.f32 0.03125, %v3292_v34 }
0x165c   : > { %v3294_v48 = vadd.f32 1e-05, %v3293_v47 }
0x165d   : > { %v5540_v53 = vpop.permute.xlu0 %5539 }
0x165e   : > { %5637 = vrsqrt.f32 %v3294_v48  ;;  %v5542_v15 = vunpack.i.h.bf16 %v5540_v53  ;;  %v5541_v54 = vunpack.i.l.bf16 %v5540_v53 }
0x1660   : > { %v5402_v55 = vpack.c.bf16 %v5542_v15, %v5541_v54 }
0x1662   : > { %5403 = vmatprep.subr.bf16.mxu0 %v5402_v55 }
0x1663   : > { %5405 = vmatpush3.bf16.msra.mxu0 %v5402_v55 }
0x1664   : > { %5407 = vmatprep.subr.bf16.mxu0 %v5406_v56 }
0x1667   : > { %5409 = vmatpush3.bf16.msra.mxu0 %v5406_v56 }
0x1668   : > { %v5638_v57 = vpop.eup %5637  ;;  %5414 = vmatprep.subr.bf16.mxu0 %v5669_v10 }
0x1669   : > { %v3296_v59 = vmul.f32 %v5638_v57, %v3288_v40 }
0x166a   : > { %5210 = vmatmul.mubr.msk.f32.vlgmr.msra.gmra.mrb[28].mxu0 %vm488_vm0, %v3404_v44 }
0x166b   : > { %v3305_v61 = vmul.f32 %v4774_v58, %v3296_v59  ;;  %5223 = vmatprep.mubr.msk.f32.mxu0 %vm5670_vm1, %v5671_v13 }
0x166d   : > { %v3314_v62 = vadd.f32 %v4776_v60, %v3305_v61 }
0x166f   : > { %5199 = vmatmul.mubr.msk.f32.vlgmr.msra.gmra.mrb[34].mxu1 %vm488_vm0, %v3314_v62 }
0x1670   : > { %5216 = vmatprep.mubr.msk.f32.mxu1 %vm5670_vm1, %v5671_v13 }
0x173d   : > { %v5211_v0 = vpop.f32.mrb[28].mxu0 }
0x173e   : > { %v3501_v1 = vadd.f32 %v5211_v0, %v3423_v63  ;;  %v3495_v2 = vpop.f32.mrb[29].mxu0 }
0x173f   : > { %v3496_v3 = vadd.f32 %v3495_v2, %v3423_v63 }
0x1741   : > { %v6268_v4 = vpack.i.bf16 %v3501_v1, %v3496_v3  ;;  %v5411_v5 = vpack.c.bf16 %v3501_v1, %v3496_v3 }
0x1742   : > { %v3397_v6 = vpop.f32.mrb[34].mxu1 }
0x1743   : > { %5554 = vrot.lane.b32.xlu1 %v6268_v4, %s6517_s22  ;;  %5549 = vrot.lane.b32.xlu0 %v6268_v4, %s6512_s19  ;;  %v5200_v7 = vpop.f32.mrb[35].mxu1  ;;  %v3398_v8 = vadd.f32 %v4782_v45, %v3397_v6 }
0x1744   : > { %5413 = vmatpush3.bf16.xpose.msk.msra.mxu1 %vm6101_vm5, %v5411_v5 }
0x1745   : > { %5418 = vmatprep.subr.bf16.mxu1 %v5669_v10 }
0x1747   : > { %5559 = vrot.lane.b32.xlu0 %v6268_v4, %s6513_s25  ;;  %3505 = vrot.lane.b32.xlu1 %v3398_v8, %s6512_s19  ;;  %s482_s19 = scalar_lea.vmem %s6491_s14, %s6518_s27 }
0x174b   : > { %5217 = vmatmul.mubr.msk.f32.vlgmr.msra.gmra.mrb[36].mxu1 %vm612_vm2, %v3398_v8  ;;  %3507 = vrot.lane.b32.xlu0 %v3398_v8, %s6517_s22 }
0x174c   : > { %3509 = vrot.lane.b32.xlu1 %v3398_v8, %s6513_s25  ;;  %5230 = vmatprep.mubr.msk.f32.mxu1 %vm5670_vm1, %v5671_v13 }
0x17b5   : > { %v6285_v9 = vpop.permute.xlu1 %5554  ;;  %v6287_v11 = vpop.permute.xlu0 %5549 }
0x17b6   : > { %v5557_v12 = vunpack.i.h.bf16 %v6285_v9  ;;  %v5556_v14 = vunpack.i.l.bf16 %v6285_v9  ;;  %v5552_v16 = vunpack.i.h.bf16 %v6287_v11  ;;  %v5551_v17 = vunpack.i.l.bf16 %v6287_v11 }
0x17b8   : > { %v5419_v18 = vpack.c.bf16 %v5557_v12, %v5556_v14  ;;  %v5415_v19 = vpack.c.bf16 %v5552_v16, %v5551_v17 }
0x17b9   : > { %v6293_v20 = vpop.permute.xlu0 %5559  ;;  %v3506_v26 = vpop.permute.xlu1 %3505 }
0x17ba   : > { %v5562_v21 = vunpack.i.h.bf16 %v6293_v20  ;;  %v5561_v22 = vunpack.i.l.bf16 %v6293_v20  ;;  %5417 = vmatpush3.bf16.xpose.msk.msra.mxu0 %vm6101_vm5, %v5415_v19  ;;  %5421 = vmatpush3.bf16.xpose.msk.msra.mxu1 %vm6101_vm5, %v5419_v18 }
0x17bb   : > { %5422 = vmatprep.subr.bf16.mxu0 %v5669_v10  ;;  %5426 = vmatprep.subr.bf16.mxu1 %v5669_v10 }
0x17bc   : > { %v5423_v24 = vpack.c.bf16 %v5562_v21, %v5561_v22 }
0x17bd   : > { %v3508_v27 = vpop.permute.xlu0 %3507 }
0x17be   : > { %v3510_v28 = vpop.permute.xlu1 %3509 }
0x17c1   : > { %5224 = vmatmul.mubr.msk.f32.vlgmr.msra.gmra.mrb[30].mxu0 %vm612_vm2, %v3506_v26  ;;  %5231 = vmatmul.mubr.msk.f32.vlgmr.msra.gmra.mrb[38].mxu1 %vm612_vm2, %v3508_v27 }
0x17c2   : > { %5425 = vmatpush3.bf16.xpose.msk.msra.mxu0 %vm6101_vm5, %v5423_v24  ;;  %5237 = vmatprep.mubr.msk.f32.mxu0 %vm5670_vm1, %v5671_v13 }
0x17c3   : > { %5244 = vmatprep.mubr.msk.f32.mxu1 %vm5670_vm1, %v5671_v13  ;;  %5434 = vmatprep.subr.bf16.mxu0 %v5669_v10 }
0x17c9   : > { %5238 = vmatmul.mubr.msk.f32.vlgmr.msra.gmra.mrb[32].mxu0 %vm612_vm2, %v3510_v28 }
0x17ca   : > { %5258 = vmatprep.mubr.msk.f32.mxu0 %vm5670_vm1, %v5671_v13 }
0x181e   : > { %v3597_v30 = vpop.f32.mrb[36].mxu1 }
0x181f   : > { %v3829_v31 = vmul.f32 0.35355338, %v3597_v30  ;;  %v5218_v49 = vpop.f32.mrb[37].mxu1 }
0x1821   : > { %v3833_v29 = vadd.f32 %v3829_v31, %v6152_v50 }
0x1823   : > { %v3837_v32 = vsel %vm2816_vm6, %v3833_v29, -inf }
0x1824   : > { %3838 = vmax.xlane.f32.xlu0 %v3837_v32 }
0x1894   : > { %v3673_v35 = vpop.f32.mrb[30].mxu0  ;;  %v3749_v37 = vpop.f32.mrb[38].mxu1 }
0x1895   : > { %v3830_v38 = vmul.f32 0.35355338, %v3673_v35  ;;  %v3831_v39 = vmul.f32 0.35355338, %v3749_v37  ;;  %v5225_v40 = vpop.f32.mrb[31].mxu0  ;;  %v5232_v41 = vpop.f32.mrb[39].mxu1 }
0x1896   : > { %v4806_v41 = vld [vmem:[%s6483_s6 + $0x60] sm:$0xff] }
0x1897   : > { %v3834_v43 = vadd.f32 %v3830_v38, %v6152_v50  ;;  %v3835_v33 = vadd.f32 %v3831_v39, %v6152_v50 }
0x1899   : > { %v3840_v36 = vsel %vm2816_vm6, %v3834_v43, -inf  ;;  %v3843_v44 = vsel %vm2816_vm6, %v3835_v33, -inf }
0x189a   : > { %3841 = vmax.xlane.f32.xlu1 %v3840_v36  ;;  %3844 = vmax.xlane.f32.xlu0 %v3843_v44  ;;  %v4809_v36 = vld [vmem:[%s6483_s6 + $0x78] sm:$0xff] }
0x189c   : > { %v3825_v42 = vpop.f32.mrb[32].mxu0 }
0x189d   : > { %v3832_v45 = vmul.f32 0.35355338, %v3825_v42  ;;  %v5239_v34 = vpop.f32.mrb[33].mxu0 }
0x189f   : > { %v3836_v46 = vadd.f32 %v3832_v45, %v6152_v50 }
0x18a1   : > { %v3846_v47 = vsel %vm2816_vm6, %v3836_v46, -inf }
0x18a2   : > { %3847 = vmax.xlane.f32.xlu0 %v3846_v47 }
0x18ab   : > { %5564 = vrot.lane.b32.xlu1 %v6268_v4, %s6516_s20 }
0x18b1   : > { %v3839_v48 = vpop.xlane.xlu0 %3838 }
0x18b2   : > { %v3849_v51 = vsub.f32 %v3833_v29, %v3839_v48 }
0x18b4   : > { %v3853_v52 = vmul.f32 1.442695, %v3849_v51 }
0x18b6   : > { %5639 = vpow2.f32 %v3853_v52 }
0x18c0   : > { %v5640_v53 = vpop.eup %5639 }
0x18c1   : > { %v3861_v15 = vsel %vm2816_vm6, %v5640_v53, 0.0 }
0x18cf   : > { %3862 = vadd.xlane.f32.xlu1 %v3861_v15 }
0x1927   : > { %v3842_v54 = vpop.xlane.xlu1 %3841  ;;  %v3845_v55 = vpop.xlane.xlu0 %3844 }
0x1928   : > { %v3850_v56 = vsub.f32 %v3834_v43, %v3842_v54  ;;  %v3851_v57 = vsub.f32 %v3835_v33, %v3845_v55  ;;  %v5443_v43 = vpack.c.bf16 %v4807_v23, %v4806_v41  ;;  %v4808_v33 = vld [vmem:[%s6483_s6 + $0x70] sm:$0xff] }
0x1929   : > { %v5446_v44 = vpack.c.bf16 %v4809_v36, %v4808_v33  ;;  %v4511_v23 = vld [vmem:[%s6489_s12 + $0x10] sm:$0xff] }
0x192a   : > { %v3855_v58 = vmul.f32 1.442695, %v3850_v56  ;;  %v3857_v50 = vmul.f32 1.442695, %v3851_v57  ;;  %v4811_v56 = vld [vmem:[%s6484_s7 + $0x3] ss:$0 sm:$0xff] }
0x192b   : > { %v5565_v59 = vpop.permute.xlu1 %5564 }
0x192c   : > { %5641 = vpow2.f32 %v3855_v58  ;;  %v5567_v60 = vunpack.i.h.bf16 %v5565_v59  ;;  %v5566_v61 = vunpack.i.l.bf16 %v5565_v59 }
0x192d   : > { %5643 = vpow2.f32 %v3857_v50 }
0x192e   : > { %v5427_v62 = vpack.c.bf16 %v5567_v60, %v5566_v61 }
0x192f   : > { %v3848_v63 = vpop.xlane.xlu0 %3847 }
0x1930   : > { %v3852_v0 = vsub.f32 %v3836_v46, %v3848_v63  ;;  %5429 = vmatpush3.bf16.msk.msra.mxu1 %vm6165_vm9, %v5427_v62 }
0x1931   : > { %5430 = vmatprep.subr.bf16.mxu1 %v5669_v10 }
0x1932   : > { %v3859_v1 = vmul.f32 1.442695, %v3852_v0 }
0x1934   : > { %5645 = vpow2.f32 %v3859_v1 }
0x1936   : > { %v5642_v2 = vpop.eup %5641 }
0x1937   : > { %v5644_v3 = vpop.eup %5643  ;;  %v3864_v4 = vsel %vm2816_vm6, %v5642_v2, 0.0 }
0x1938   : > { %3865 = vadd.xlane.f32.xlu0 %v3864_v4  ;;  %v3867_v5 = vsel %vm2816_vm6, %v5644_v3, 0.0  ;;  %v4336_v4 = vld [vmem:[%s6485_s8 + $0x10] sm:$0xff] }
0x1939   : > { %3868 = vadd.xlane.f32.xlu1 %v3867_v5  ;;  %v4337_v5 = vld [vmem:[%s6485_s8 + $0x18] sm:$0xff] }
0x193e   : > { %v5646_v6 = vpop.eup %5645 }
0x193f   : > { %v3870_v7 = vsel %vm2816_vm6, %v5646_v6, 0.0 }
0x1940   : > { %3871 = vadd.xlane.f32.xlu0 %v3870_v7  ;;  %v4419_v7 = vld [vmem:[%s6487_s10] sm:$0xff] }
0x194a   : > { %5574 = vrot.lane.b32.xlu1 %v6285_v9, %s6516_s20 }
0x194e   : > { %5579 = vrot.lane.b32.xlu1 %v6293_v20, %s6516_s20 }
0x1956   : > { %5569 = vrot.lane.b32.xlu0 %v6287_v11, %s6516_s20 }
0x195c   : > { %v3863_v8 = vpop.xlane.xlu1 %3862 }
0x195d   : > { %5647 = vrcp.f32 %v3863_v8  ;;  %v4420_v8 = vld [vmem:[%s6487_s10 + $0x8] sm:$0xff] }
0x1967   : > { %v5648_v12 = vpop.eup %5647 }
0x1968   : > { %v3877_v14 = vmul.f32 %v5648_v12, %v5640_v53  ;;  %v4421_v12 = vld [vmem:[%s6487_s10 + $0x10] sm:$0xff] }
0x196a   : > { %5245 = vmatmul.mubr.msk.f32.vlgmr.msra.gmra.mrb[40].mxu1 %vm2816_vm6, %v3877_v14  ;;  %v5455_v14 = vpack.c.bf16 %v4420_v8, %v4419_v7 }
0x196b   : > { %5251 = vmatprep.mubr.msk.f32.mxu1 %vm5670_vm1, %v5671_v13 }
0x19c5   : > { %v3866_v17 = vpop.xlane.xlu0 %3865 }
0x19c6   : > { %v3869_v16 = vpop.xlane.xlu1 %3868 }
0x19c7   : > { %5649 = vrcp.f32 %v3869_v16  ;;  %v4422_v16 = vld [vmem:[%s6487_s10 + $0x18] sm:$0xff] }
0x19c8   : > { %5651 = vrcp.f32 %v3866_v17  ;;  %v5458_v17 = vpack.c.bf16 %v4422_v16, %v4421_v12 }
0x19ca   : > { %v5575_v9 = vpop.permute.xlu1 %5574 }
0x19cb   : > { %v5577_v18 = vunpack.i.h.bf16 %v5575_v9  ;;  %v5576_v19 = vunpack.i.l.bf16 %v5575_v9  ;;  %v4423_v9 = vld [vmem:[%s6487_s10 + $0x20] sm:$0xff] }
0x19cd   : > { %v5435_v20 = vpack.c.bf16 %v5577_v18, %v5576_v19  ;;  %v3872_v21 = vpop.xlane.xlu0 %3871  ;;  %v4424_v18 = vld [vmem:[%s6487_s10 + $0x28] sm:$0xff] }
0x19ce   : > { %5653 = vrcp.f32 %v3872_v21  ;;  %v5580_v22 = vpop.permute.xlu1 %5579  ;;  %v5461_v19 = vpack.c.bf16 %v4424_v18, %v4423_v9 }
0x19cf   : > { %5437 = vmatpush3.bf16.msk.msra.mxu0 %vm6165_vm9, %v5435_v20  ;;  %v5582_v31 = vunpack.i.h.bf16 %v5580_v22  ;;  %v5581_v49 = vunpack.i.l.bf16 %v5580_v22 }
0x19d0   : > { %5442 = vmatprep.subr.bf16.mxu0 %v5669_v10 }
0x19d1   : > { %v5650_v11 = vpop.eup %5649  ;;  %v5570_v24 = vpop.permute.xlu0 %5569  ;;  %v5439_v37 = vpack.c.bf16 %v5582_v31, %v5581_v49  ;;  %v4425_v31 = vld [vmem:[%s6487_s10 + $0x30] sm:$0xff]  ;;  %v4426_v49 = vld [vmem:[%s6487_s10 + $0x38] sm:$0xff] }
0x19d2   : > { %v3879_v26 = vmul.f32 %v5650_v11, %v5644_v3  ;;  %v5572_v27 = vunpack.i.h.bf16 %v5570_v24  ;;  %v5571_v28 = vunpack.i.l.bf16 %v5570_v24  ;;  %v5652_v30 = vpop.eup %5651  ;;  %v4814_v24 = vld [vmem:[%s6479_s2 + $0x4] ss:$0 sm:$0xff] }
0x19d3   : > { %v3878_v32 = vmul.f32 %v5652_v30, %v5642_v2  ;;  %v4334_v2 = vld [vmem:[%s6485_s8] sm:$0xff] }
0x19d4   : > { %v5431_v29 = vpack.c.bf16 %v5572_v27, %v5571_v28  ;;  %5259 = vmatmul.mubr.msk.f32.vlgmr.msra.gmra.mrb[34].mxu0 %vm2816_vm6, %v3879_v26  ;;  %v4816_v27 = vld [vmem:[%s6480_s3 + $0x4] ss:$0 sm:$0xff] }
0x19d5   : > { %5276 = vmatprep.mubr.msk.f32.mxu0 %vm5670_vm1, %v5671_v13  ;;  %5444 = vmatpush3.bf16.msra.mxu0 %v5443_v43  ;;  %v4512_v43 = vld [vmem:[%s6489_s12 + $0x18] sm:$0xff] }
0x19d6   : > { %5433 = vmatpush3.bf16.msk.msra.mxu1 %vm6165_vm9, %v5431_v29  ;;  %5445 = vmatprep.subr.bf16.mxu0 %v5669_v10  ;;  %v5464_v29 = vpack.c.bf16 %v4426_v49, %v4425_v31  ;;  %v5470_v33 = vpack.c.bf16 %v4512_v43, %v4511_v23 }
0x19d7   : > { %5438 = vmatprep.subr.bf16.mxu1 %v5669_v10 }
0x19d8   : > { %v5654_v35 = vpop.eup %5653 }
0x19d9   : > { %5252 = vmatmul.mubr.msk.f32.vlgmr.msra.gmra.mrb[42].mxu1 %vm2816_vm6, %v3878_v32  ;;  %v3880_v38 = vmul.f32 %v5654_v35, %v5646_v6  ;;  %5447 = vmatpush3.bf16.msra.mxu0 %v5446_v44  ;;  %v5452_v6 = vpack.c.bf16 %v4337_v5, %v4336_v4  ;;  %v4509_v32 = vld [vmem:[%s6489_s12] sm:$0xff]  ;;  %v4510_v35 = vld [vmem:[%s6489_s12 + $0x8] sm:$0xff] }
0x19da   : > { %5441 = vmatpush3.bf16.msk.msra.mxu1 %vm6165_vm9, %v5439_v37  ;;  %5265 = vmatprep.mubr.msk.f32.mxu1 %vm5670_vm1, %v5671_v13  ;;  %v5467_v37 = vpack.c.bf16 %v4510_v35, %v4509_v32 }
0x19db   : > { %5448 = vmatprep.subr.bf16.mxu1 %v5669_v10  ;;  %5454 = vmatprep.subr.bf16.mxu0 %v5669_v10 }
0x19dd   : > { %5266 = vmatmul.mubr.msk.f32.vlgmr.msra.gmra.mrb[44].mxu1 %vm2816_vm6, %v3880_v38 }
0x19de   : > { %5287 = vmatprep.mubr.msk.f32.mxu1 %vm5670_vm1, %v5671_v13 }
0x1a3d   : > { %v3957_v39 = vpop.f32.mrb[40].mxu1 }
0x1a3e   : > { %v5246_v40 = vpop.f32.mrb[41].mxu1 }
0x1aa7   : > { %v4117_v42 = vpop.f32.mrb[34].mxu0 }
0x1aa8   : > { %4206 = vrot.lane.b32.xlu1 %v4117_v42, %s6509_s24  ;;  %v5260_v45 = vpop.f32.mrb[35].mxu0 }
0x1aac   : > { %v4037_v34 = vpop.f32.mrb[42].mxu1 }
0x1aad   : > { %4202 = vrot.lane.b32.xlu0 %v4037_v34, %s6507_s17  ;;  %v5253_v46 = vpop.f32.mrb[43].mxu1  ;;  %v4821_v34 = vld [vmem:[%s6490_s13] ss:$0 sm:$0xff] }
0x1ab0   : > { %v4197_v47 = vpop.f32.mrb[44].mxu1 }
0x1ab1   : > { %4210 = vrot.lane.b32.xlu0 %v4197_v47, %s6508_s28  ;;  %v5267_v48 = vpop.f32.mrb[45].mxu1  ;;  %s5681_s28 = smov 32  }
0x1b1a   : > { %v4207_v53 = vpop.permute.xlu1 %4206 }
0x1b1f   : > { %v4203_v51 = vpop.permute.xlu0 %4202 }
0x1b20   : > { %v4213_v52 = vsel %vm612_vm2, %v3957_v39, %v4203_v51 }
0x1b21   : > { %v4214_v15 = vsel %vm1284_vm3, %v4213_v52, %v4207_v53 }
0x1b23   : > { %v4211_v54 = vpop.permute.xlu0 %4210 }
0x1b24   : > { %v4215_v55 = vsel %vm1286_vm4, %v4214_v15, %v4211_v54 }
0x1b25   : > { %5277 = vmatmul.mubr.msk.f32.vlgmr.msra.gmra.mrb[36].mxu0 %vm488_vm0, %v4215_v55 }
0x1b26   : > { %5306 = vmatprep.mubr.msk.f32.mxu0 %vm5670_vm1, %v5671_v13  ;;  %5456 = vmatpush3.bf16.msra.mxu0 %v5455_v14 }
0x1b27   : > { %5457 = vmatprep.subr.bf16.mxu0 %v5669_v10 }
0x1b2a   : > { %5459 = vmatpush3.bf16.msra.mxu0 %v5458_v17 }
0x1b2b   : > { %5460 = vmatprep.subr.bf16.mxu0 %v5669_v10 }
0x1b2e   : > { %5462 = vmatpush3.bf16.msra.mxu0 %v5461_v19 }
0x1b2f   : > { %5463 = vmatprep.subr.bf16.mxu0 %v5669_v10 }
0x1b32   : > { %5465 = vmatpush3.bf16.msra.mxu0 %v5464_v29 }
0x1bf8   : > { %v4298_v57 = vpop.f32.mrb[36].mxu0 }
0x1bf9   : > { %v4299_v58 = vadd.f32 %v4811_v56, %v4298_v57  ;;  %v5278_v50 = vpop.f32.mrb[37].mxu0 }
0x1bfb   : > { %v6386_v59 = vadd.f32 %v4299_v58, %v6226_v25  ;;  %v4335_v25 = vld [vmem:[%s6485_s8 + $0x8] sm:$0xff] }
0x1bfc   : > { %v5449_v3 = vpack.c.bf16 %v4335_v25, %v4334_v2 }
0x1bfd   : > { %v4303_v60 = vsel %vm488_vm0, %v6386_v59, 0.0 }
0x1bfe   : > { %4304 = vadd.xlane.f32.xlu1 %v4303_v60  ;;  %5450 = vmatpush3.bf16.msra.mxu1 %v5449_v3 }
0x1bff   : > { %5451 = vmatprep.subr.bf16.mxu1 %v5669_v10 }
0x1c02   : > { %5453 = vmatpush3.bf16.msra.mxu1 %v5452_v6 }
0x1c03   : > { %5466 = vmatprep.subr.bf16.mxu1 %v5669_v10 }
0x1c8b   : > { %v4305_v61 = vpop.xlane.xlu1 %4304 }
0x1c8c   : > { %v4306_v62 = vmul.f32 0.03125, %v4305_v61 }
0x1c8e   : > { %v4307_v63 = vsub.f32 %v6386_v59, %v4306_v62 }
0x1c90   : > { %v4308_v0 = vmul.f32 %v4307_v63, %v4307_v63 }
0x1c92   : > { %v4309_v1 = vsel %vm488_vm0, %v4308_v0, 0.0 }
0x1c93   : > { %4310 = vadd.xlane.f32.xlu0 %v4309_v1 }
0x1d20   : > { %v4311_v20 = vpop.xlane.xlu0 %4310 }
0x1d21   : > { %v4312_v21 = vmul.f32 0.03125, %v4311_v20 }
0x1d23   : > { %v4313_v11 = vadd.f32 1e-05, %v4312_v21 }
0x1d25   : > { %5655 = vrsqrt.f32 %v4313_v11 }
0x1d2f   : > { %v5656_v22 = vpop.eup %5655 }
0x1d30   : > { %v4315_v26 = vmul.f32 %v5656_v22, %v4307_v63 }
0x1d32   : > { %v4324_v28 = vmul.f32 %v4814_v24, %v4315_v26 }
0x1d34   : > { %v4333_v30 = vadd.f32 %v4816_v27, %v4324_v28 }
0x1d36   : > { %5288 = vmatmul.mubr.msk.f32.vlgmr.msra.gmra.mrb[46].mxu1 %vm488_vm0, %v4333_v30 }
0x1d37   : > { %5317 = vmatprep.mubr.msk.f32.mxu1 %vm5670_vm1, %v5671_v13  ;;  %5468 = vmatpush3.bf16.msra.mxu1 %v5467_v37  ;;  %v4817_v13 = vld [vmem:[%s6486_s9] ss:$0 sm:$0xff] }
0x1d38   : > { %5469 = vmatprep.subr.bf16.mxu1 %v5669_v10  ;;  %v4819_v10 = vld [vmem:[%s6488_s11] ss:$0 sm:$0xff] }
0x1d3b   : > { %5471 = vmatpush3.bf16.msra.mxu1 %v5470_v33 }
0x1e09   : > { %v4414_v38 = vpop.f32.mrb[46].mxu1 }
0x1e0a   : > { %v4415_v39 = vadd.f32 %v4817_v13, %v4414_v38  ;;  %v5289_v40 = vpop.f32.mrb[47].mxu1 }
0x1e0c   : > { %v4418_v41 = vmax.f32 %v4415_v39, 0.0 }
0x1e0e   : > { %5307 = vmatmul.mubr.msk.f32.vlgmr.msra.gmra.mrb[38].mxu0 %vm4434_vm11, %v4418_v41 }
0x1ee1   : > { %v4504_v36 = vpop.f32.mrb[38].mxu0 }
0x1ee2   : > { %v4505_v44 = vadd.f32 %v4819_v10, %v4504_v36  ;;  %v5308_v42 = vpop.f32.mrb[39].mxu0 }
0x1ee4   : > { %v4508_v45 = vadd.f32 %v4505_v44, %v6386_v59 }
0x1ee6   : > { %5318 = vmatmul.mubr.msk.f32.vlgmr.msra.gmra.mrb[48].mxu1 %vm488_vm0, %v4508_v45 }
0x1fb9   : > { %v4589_v46 = vpop.f32.mrb[48].mxu1 }
0x1fba   : > { %v4590_v47 = vadd.f32 %v4821_v34, %v4589_v46  ;;  %v5319_v48 = vpop.f32.mrb[49].mxu1 }
0x1fbc   : > { %v4593_v51 = vsel %vm2816_vm6, %v4590_v47, -inf }
0x1fbd   : > { %4594 = vmax.xlane.f32.xlu0 %v4593_v51 }
0x204a   : > { %v4595_v52 = vpop.xlane.xlu0 %4594 }
0x204b   : > { %v4596_v53 = vsub.f32 %v4590_v47, %v4595_v52 }
0x204d   : > { %v4597_v15 = vmul.f32 1.442695, %v4596_v53 }
0x204f   : > { %5657 = vpow2.f32 %v4597_v15 }
0x2059   : > { %v5658_v54 = vpop.eup %5657 }
0x205a   : > { %v4599_v55 = vsel %vm2816_vm6, %v5658_v54, 0.0 }
0x205b   : > { %4600 = vadd.xlane.f32.xlu1 %v4599_v55 }
0x20e8   : > { %v4601_v56 = vpop.xlane.xlu1 %4600 }
0x20e9   : > { %5659 = vrcp.f32 %v4601_v56 }
0x20f3   : > { %v5660_v57 = vpop.eup %5659 }
0x20f4   : > { %v4603_v58 = vmul.f32 %v5660_v57, %v5658_v54 }
0x20f6   : > { %4605 = vrot.lane.b32.xlu0 %v4603_v58, %s5681_s28 }
0x2168   : > { %v4606_v50 = vpop.permute.xlu0 %4605 }
0x2169   : > { %v4608_v59 = vsel %vm488_vm0, %v4508_v45, %v4606_v50 }
0x216a   : > { %4610 = vst.msk [vmem:[%s482_s19] sm:$0xff] %vm4609_vm12, %v4608_v59 }
0x216b PF: > { %s24_s29 = sadd.s32 1, %s5667_s29  }
0x216c   : > { %p21_p4 = scmp.ge.s32.totalorder %s24_s29, 4  }
0x216e   :  { %23 = sbr.rel (!%p21_p4) target bundleno = 1 (0x1), region = 129 }

// kernel: graph_transformer_decoder.5
= control target key start
LH: loop header
LB: loop body
LE: loop exit
PB: predicated region body
PF: predicated region fallthrough
CT: control target
= control target key end

     0   :  { %s6130_s26 = smov 0   ;;  %s6884_s0 = inlined_call_operand.vmem [shape: f32[2,28,32], index: 0, kind: input, shape index: {}]   ;;  %s6885_s1 = inlined_call_operand.vmem [shape: f32[2,8,26], index: 1, kind: input, shape index: {}]   ;;  %s6886_s2 = inlined_call_operand.vmem [shape: f32[2,10,20], index: 2, kind: input, shape index: {}]   ;;  %s6887_s3 = inlined_call_operand.vmem [shape: f32[5,1,32], index: 3, kind: input, shape index: {}]   ;;  %s6888_s4 = inlined_call_operand.vmem [shape: f32[5,1,32], index: 4, kind: input, shape index: {}]   ;;  %s6889_s5 = inlined_call_operand.vmem [shape: f32[4,32,96], index: 5, kind: input, shape index: {}]   ;;  %s6890_s6 = inlined_call_operand.vmem [shape: f32[4,1,96], index: 6, kind: input, shape index: {}]   ;;  %s6891_s7 = inlined_call_operand.vmem [shape: f32[4,32,32], index: 7, kind: input, shape index: {}]   ;;  %s6892_s8 = inlined_call_operand.vmem [shape: f32[4,1,32], index: 8, kind: input, shape index: {}]   ;;  %s6893_s9 = inlined_call_operand.vmem [shape: f32[32,64], index: 9, kind: input, shape index: {}]   ;;  %s6894_s10 = inlined_call_operand.vmem [shape: f32[1,64], index: 10, kind: input, shape index: {}]   ;;  %s6895_s11 = inlined_call_operand.vmem [shape: f32[64,32], index: 11, kind: input, shape index: {}]   ;;  %s6896_s12 = inlined_call_operand.vmem [shape: f32[1,32], index: 12, kind: input, shape index: {}]   ;;  %s6897_s13 = inlined_call_operand.vmem [shape: f32[32,20], index: 13, kind: input, shape index: {}]   ;;  %s6898_s14 = inlined_call_operand.vmem [shape: f32[1,20], index: 14, kind: input, shape index: {}]   ;;  %s6899_s15 = inlined_call_operand.vmem [shape: f32[32,1], index: 15, kind: input, shape index: {}]   ;;  %s6900_s16 = inlined_call_operand.<no memory space> [shape: f32[1,1], index: 16, kind: input, shape index: {}]   ;;  %s6901_s17 = inlined_call_operand.vmem [shape: f32[2,8,52], index: 17, kind: output, shape index: {}]  }
   0x1   :  { %6917 = sst [smem:[#allocation3_spill]] %s6884_s0  ;;  %v22_v0 = vstv %s6900_s16 }
   0x2   :  { %6918 = sst [smem:[#allocation4_spill]] %s6885_s1  ;;  %23 = vst [vmem:[#allocation2] sm:$0x1] %v22_v0 }
   0x3 LB: > { %s4980_s27 = sadd.s32 4294967295, %s6021_s26   ;;  %p4984_p0 = scmp.ge.s32.totalorder %s6021_s26, 1  ;;  %s6021_s26 = sphi %s6130_s26, %s29_s26  }
   0x4   : > { %p508_p1 = scmp.lt.s32.totalorder %s6021_s26, 3 }
   0x6   : > { %p509_p2 = pnand %p4984_p0, %p508_p1 }
   0x7   : > { %p568_p3 = scmp.lt.s32.totalorder (!%p509_p2), %s4980_s27, 1  ;;  %vm591_vm0 = vcmask (!%p509_p2), 261120   ;;  %s6919_s0 = sld [smem:[#allocation3_spill]] (!%p509_p2)  ;;  %v622_v8 = vld [vmem:[%s6889_s5] sm:$0xff] (!%p509_p2)  ;;  %v623_v9 = vld [vmem:[%s6889_s5 + $0x8] sm:$0xff] (!%p509_p2)  ;;  %v624_v10 = vld [vmem:[%s6889_s5 + $0x10] sm:$0xff] (!%p509_p2) }
   0x8   : > { %512 = sbr.rel (%p509_p2) target bundleno = 8561 (0x2171), region = 88  ;;  %v6023_v11 = vmov (!%p509_p2), 0.0|0.0   ;;  %v5658_v12 = vpack.c.bf16 (!%p509_p2), %v623_v9, %v622_v8  ;;  %v625_v13 = vld [vmem:[%s6889_s5 + $0x18] sm:$0xff] (!%p509_p2)  ;;  %vm6024_vm1 = vmmov (!%p509_p2), 0   ;;  %v6025_v14 = vmov (!%p509_p2), 0.0   ;;  %s6909_s19 = smov (!%p509_p2), 104  }
   0x9   : > { %5657 = vmatprep.subr.bf16.mxu0 (!%p509_p2), %v6023_v11  ;;  %5304 = vmatprep.mubr.msk.f32.mxu0 (!%p509_p2), %vm6024_vm1, %v6025_v14  ;;  %v5661_v15 = vpack.c.bf16 (!%p509_p2), %v625_v13, %v624_v10  ;;  %v4991_v20 = vld [vmem:[%s6887_s3] ss:$0 sm:$0xff] (!%p509_p2)  ;;  %s6911_s1 = smov (!%p509_p2), 120   ;;  %s6913_s20 = smov (!%p509_p2), 112   ;;  %vm715_vm2 = vcmask (!%p509_p2), 64512   ;;  %vm1387_vm3 = vcmask (!%p509_p2), 130048  }
   0xa   : > { %5307 = vmatprep.subr.mxu1 (!%p509_p2), %v6025_v14  ;;  %5309 = vmatprep.mubr.msk.f32.mxu1 (!%p509_p2), %vm6024_vm1, %v6025_v14  ;;  %v4992_v22 = vld [vmem:[%s6888_s4] ss:$0 sm:$0xff] (!%p509_p2)  ;;  %s6915_s21 = smov (!%p509_p2), 96   ;;  %s6920_s25 = sld [smem:[#allocation4_spill]] (!%p509_p2)  ;;  %vm1389_vm4 = vcmask (!%p509_p2), 195584   ;;  %vm6474_vm5 = vmpackc.low (!%p509_p2), %vm715_vm2, %vm715_vm2  ;;  %vm2919_vm6 = vcmask (!%p509_p2), 80896  }
   0xb   : > { %5659 = vmatpush3.bf16.msra.mxu0 (!%p509_p2), %v5658_v12  ;;  %v4993_v25 = vld [vmem:[%s6890_s6] ss:$0 sm:$0xff] (!%p509_p2)  ;;  %s6030_s28 = smov (!%p509_p2), 64   ;;  %s6907_s29 = smov (!%p509_p2), 8   ;;  %vm2972_vm7 = vcmask (!%p509_p2), 1041408   ;;  %vm6034_vm8 = vmmov (!%p509_p2), 1  }
   0xc   : > { %5660 = vmatprep.subr.bf16.mxu0 (!%p509_p2), %v6023_v11  ;;  %s6905_s18 = smov (!%p509_p2), 24   ;;  %s6926_s23 = smov (!%p509_p2), 120   ;;  %vm6538_vm9 = vmpackc.low (!%p509_p2), %vm2972_vm7, %vm6034_vm8  ;;  %vm3514_vm10 = vcmask (!%p509_p2), 1045504   ;;  %vm4546_vm11 = vcmask (!%p509_p2), 523264   ;;  %vm4705_vm12 = vcmask (!%p509_p2), 162816   ;;  %vm4901_vm13 = vcmask (!%p509_p2), 424960  }
   0xd   : > { %s6927_s24 = smov (!%p509_p2), 104  }
   0xf   : > { %s6934_s27 = smov (!%p568_p3, %s4980_s27), 1  ;;  %5662 = vmatpush3.bf16.msra.mxu0 %v5661_v15 }
  0x10   : > { %s5135_s16 = sshll.u32 %s6934_s27, 5  ;;  %5317 = vmatprep.subr.mxu0 %v6025_v14  ;;  %s6902_s22 = sshll.u32 %s6934_s27, 3 }
  0x11   : > { %s6144_s30 = scalar_lea.vmem %s6919_s0, %s5135_s16  ;;  %s576_s16 = scalar_lea.vmem %s6920_s25, %s6902_s22 }
  0x12   : > { %v6147_v1 = vld [vmem:[%s6144_s30] sm:$0xff]  ;;  %s6903_s0 = smov 16   ;;  %s6923_s22 = smov 16  }
  0x13   : > { %v592_v2 = vsel %vm591_vm0, %v6147_v1, 0.0  ;;  %v6237_v37 = vld [vmem:[%s576_s16] sm:$0xff] }
  0x14   : > { %593 = vadd.xlane.f32.xlu0 %v592_v2 }
  0xa1   : > { %v594_v3 = vpop.xlane.xlu0 %593 }
  0xa2   : > { %v596_v4 = vmul.f32 0.03125, %v594_v3 }
  0xa4   : > { %v597_v5 = vsub.f32 %v6147_v1, %v596_v4 }
  0xa6   : > { %v598_v6 = vmul.f32 %v597_v5, %v597_v5 }
  0xa8   : > { %v599_v7 = vsel %vm591_vm0, %v598_v6, 0.0 }
  0xa9   : > { %600 = vadd.xlane.f32.xlu0 %v599_v7 }
 0x136   : > { %v601_v16 = vpop.xlane.xlu0 %600 }
 0x137   : > { %v602_v17 = vmul.f32 0.03125, %v601_v16 }
 0x139   : > { %v603_v18 = vadd.f32 1e-05, %v602_v17 }
 0x13b   : > { %5933 = vrsqrt.f32 %v603_v18 }
 0x145   : > { %v5934_v19 = vpop.eup %5933 }
 0x146   : > { %v605_v21 = vmul.f32 %v5934_v19, %v597_v5 }
 0x148   : > { %v613_v23 = vmul.f32 %v4991_v20, %v605_v21 }
 0x14a   : > { %v621_v24 = vadd.f32 %v4992_v22, %v613_v23 }
 0x14c   : > { %5305 = vmatmul.mubr.msk.f32.vlgmr.msra.gmra.mrb[0].mxu0 %vm591_vm0, %v621_v24 }
 0x14d   : > { %5319 = vmatprep.mubr.msk.f32.mxu0 %vm6024_vm1, %v6025_v14 }
 0x21f   : > { %v702_v26 = vpop.f32.mrb[0].mxu0 }
 0x220   : > { %v6185_v27 = vadd.f32 %v4993_v25, %v702_v26  ;;  %v5306_v28 = vpop.f32.mrb[1].mxu0 }
 0x222   : > { %711 = vrot.lane.b32.xlu0 %v6185_v27, %s6909_s19  ;;  %707 = vrot.lane.b32.xlu1 %v6185_v27, %s6911_s1 }
 0x226   : > { %709 = vrot.lane.b32.xlu1 %v6185_v27, %s6913_s20 }
 0x22a   : > { %713 = vrot.lane.b32.xlu1 %v6185_v27, %s6915_s21 }
 0x294   : > { %v6195_v29 = vpop.permute.xlu1 %707  ;;  %v6203_v31 = vpop.permute.xlu0 %711 }
 0x295   : > { %790 = vrot.lane.b32.xlu1 %v6195_v29, %s6915_s21 }
 0x298   : > { %v6199_v30 = vpop.permute.xlu1 %709 }
 0x299   : > { %866 = vrot.lane.b32.xlu1 %v6199_v30, %s6915_s21 }
 0x29c   : > { %v714_v32 = vpop.permute.xlu1 %713 }
 0x29d   : > { %942 = vrot.lane.b32.xlu1 %v6203_v31, %s6915_s21  ;;  %5308 = vmatpush3.xpose.msk.msra.mxu1 %vm715_vm2, %v714_v32 }
 0x29e   : > { %5312 = vmatprep.subr.mxu1 %v6025_v14 }
 0x2a0   : > { %5310 = vmatmul.mubr.msk.f32.vlgmr.msra.gmra.mrb[0].mxu1 %vm715_vm2, %v6185_v27 }
 0x2a1   : > { %5314 = vmatprep.mubr.msk.f32.mxu1 %vm6024_vm1, %v6025_v14 }
 0x307   : > { %v791_v33 = vpop.permute.xlu1 %790 }
 0x308   : > { %5313 = vmatpush3.xpose.msk.msra.mxu1 %vm715_vm2, %v791_v33 }
 0x309   : > { %5322 = vmatprep.subr.mxu1 %v6025_v14 }
 0x30b   : > { %5315 = vmatmul.mubr.msk.f32.vlgmr.msra.gmra.mrb[2].mxu1 %vm715_vm2, %v6195_v29  ;;  %v867_v34 = vpop.permute.xlu1 %866 }
 0x30c   : > { %5318 = vmatpush3.xpose.msk.msra.mxu0 %vm715_vm2, %v867_v34  ;;  %5324 = vmatprep.mubr.msk.f32.mxu1 %vm6024_vm1, %v6025_v14  ;;  %v1391_v34 = vld [vmem:[%s6891_s7] sm:$0xff] }
 0x30d   : > { %5327 = vmatprep.subr.mxu0 %v6025_v14 }
 0x30f   : > { %5320 = vmatmul.mubr.msk.f32.vlgmr.msra.gmra.mrb[2].mxu0 %vm715_vm2, %v6199_v30  ;;  %v943_v35 = vpop.permute.xlu1 %942 }
 0x310   : > { %5323 = vmatpush3.xpose.msk.msra.mxu1 %vm715_vm2, %v943_v35  ;;  %5329 = vmatprep.mubr.msk.f32.mxu0 %vm6024_vm1, %v6025_v14  ;;  %v1392_v35 = vld [vmem:[%s6891_s7 + $0x8] sm:$0xff] }
 0x311   : > { %5332 = vmatprep.subr.mxu1 %v6025_v14 }
 0x313   : > { %5325 = vmatmul.mubr.msk.f32.vlgmr.msra.gmra.mrb[4].mxu1 %vm715_vm2, %v6203_v31 }
 0x314   : > { %5334 = vmatprep.mubr.msk.f32.mxu1 %vm6024_vm1, %v6025_v14 }
 0x373   : > { %v786_v36 = vpop.f32.mrb[0].mxu1 }
 0x374   : > { %v1018_v38 = vmul.f32 0.35355338, %v786_v36  ;;  %v5311_v39 = vpop.f32.mrb[1].mxu1  ;;  %v5664_v36 = vpack.c.bf16 %v1392_v35, %v1391_v34 }
 0x375   : > { %v1394_v39 = vld [vmem:[%s6891_s7 + $0x18] sm:$0xff] }
 0x376   : > { %v1022_v40 = vadd.f32 %v1018_v38, %v6237_v37  ;;  %v1393_v38 = vld [vmem:[%s6891_s7 + $0x10] sm:$0xff] }
 0x378   : > { %v1026_v41 = vsel %vm715_vm2, %v1022_v40, -inf }
 0x379   : > { %1027 = vmax.xlane.f32.xlu1 %v1026_v41 }
 0x3de   : > { %v862_v42 = vpop.f32.mrb[2].mxu1 }
 0x3df   : > { %v1019_v43 = vmul.f32 0.35355338, %v862_v42  ;;  %v5316_v44 = vpop.f32.mrb[3].mxu1 }
 0x3e1   : > { %v1023_v45 = vadd.f32 %v1019_v43, %v6237_v37 }
 0x3e2   : > { %v938_v46 = vpop.f32.mrb[2].mxu0 }
 0x3e3   : > { %v1020_v47 = vmul.f32 0.35355338, %v938_v46  ;;  %v5321_v48 = vpop.f32.mrb[3].mxu0  ;;  %v1029_v49 = vsel %vm715_vm2, %v1023_v45, -inf }
 0x3e4   : > { %1030 = vmax.xlane.f32.xlu0 %v1029_v49 }
 0x3e5   : > { %v1024_v50 = vadd.f32 %v1020_v47, %v6237_v37 }
 0x3e6   : > { %v1014_v51 = vpop.f32.mrb[4].mxu1 }
 0x3e7   : > { %v1021_v52 = vmul.f32 0.35355338, %v1014_v51  ;;  %v5326_v53 = vpop.f32.mrb[5].mxu1  ;;  %v1032_v54 = vsel %vm715_vm2, %v1024_v50, -inf }
 0x3e8   : > { %1033 = vmax.xlane.f32.xlu1 %v1032_v54  ;;  %v5007_v53 = vld [vmem:[%s6892_s8] ss:$0 sm:$0xff] }
 0x3e9   : > { %v1025_v55 = vadd.f32 %v1021_v52, %v6237_v37 }
 0x3eb   : > { %v1035_v56 = vsel %vm715_vm2, %v1025_v55, -inf }
 0x3ec   : > { %1036 = vmax.xlane.f32.xlu0 %v1035_v56 }
 0x3f9   : > { %1070 = vrot.lane.b32.xlu1 %v6185_v27, %s6030_s28 }
 0x406   : > { %v1028_v57 = vpop.xlane.xlu1 %1027 }
 0x407   : > { %v1038_v58 = vsub.f32 %v1022_v40, %v1028_v57  ;;  %v5667_v40 = vpack.c.bf16 %v1394_v39, %v1393_v38 }
 0x409   : > { %v1042_v59 = vmul.f32 1.442695, %v1038_v58 }
 0x40b   : > { %5935 = vpow2.f32 %v1042_v59 }
 0x415   : > { %v5936_v60 = vpop.eup %5935 }
 0x416   : > { %v1050_v61 = vsel %vm715_vm2, %v5936_v60, 0.0 }
 0x41d   : > { %1051 = vadd.xlane.f32.xlu1 %v1050_v61 }
 0x471   : > { %v1031_v62 = vpop.xlane.xlu0 %1030 }
 0x472   : > { %v1039_v63 = vsub.f32 %v1023_v45, %v1031_v62 }
 0x474   : > { %v1044_v0 = vmul.f32 1.442695, %v1039_v63 }
 0x475   : > { %v1034_v2 = vpop.xlane.xlu1 %1033 }
 0x476   : > { %5937 = vpow2.f32 %v1044_v0  ;;  %v1040_v3 = vsub.f32 %v1024_v50, %v1034_v2  ;;  %v5013_v0 = vld [vmem:[%s6889_s5 + $0x20] sm:$0xff] }
 0x478   : > { %v1046_v4 = vmul.f32 1.442695, %v1040_v3  ;;  %v5015_v3 = vld [vmem:[%s6889_s5 + $0x30] sm:$0xff] }
 0x479   : > { %v1037_v5 = vpop.xlane.xlu0 %1036  ;;  %v1071_v6 = vpop.permute.xlu1 %1070 }
 0x47a   : > { %5939 = vpow2.f32 %v1046_v4  ;;  %v1041_v7 = vsub.f32 %v1025_v55, %v1037_v5  ;;  %5328 = vmatpush3.msra.mxu0 %v1071_v6  ;;  %v5016_v4 = vld [vmem:[%s6889_s5 + $0x38] sm:$0xff] }
 0x47b   : > { %5337 = vmatprep.subr.mxu0 %v6025_v14  ;;  %v5673_v5 = vpack.c.bf16 %v5016_v4, %v5015_v3 }
 0x47c   : > { %v1048_v8 = vmul.f32 1.442695, %v1041_v7 }
 0x47e   : > { %5941 = vpow2.f32 %v1048_v8 }
 0x480   : > { %v5938_v9 = vpop.eup %5937 }
 0x481   : > { %v1053_v10 = vsel %vm715_vm2, %v5938_v9, 0.0 }
 0x482   : > { %1054 = vadd.xlane.f32.xlu0 %v1053_v10  ;;  %v5010_v10 = vld [vmem:[%s6887_s3 + $0x1] ss:$0 sm:$0xff] }
 0x484   : > { %v5940_v12 = vpop.eup %5939 }
 0x485   : > { %v1056_v13 = vsel %vm715_vm2, %v5940_v12, 0.0 }
 0x486   : > { %1057 = vadd.xlane.f32.xlu1 %v1056_v13  ;;  %v5012_v13 = vld [vmem:[%s6888_s4 + $0x1] ss:$0 sm:$0xff] }
 0x488   : > { %v5942_v15 = vpop.eup %5941 }
 0x489   : > { %v1059_v16 = vsel %vm715_vm2, %v5942_v15, 0.0 }
 0x48a   : > { %1060 = vadd.xlane.f32.xlu0 %v1059_v16 }
 0x497   : > { %1222 = vrot.lane.b32.xlu1 %v6199_v30, %s6030_s28 }
 0x49b   : > { %1298 = vrot.lane.b32.xlu1 %v6203_v31, %s6030_s28 }
 0x4a0   : > { %1146 = vrot.lane.b32.xlu0 %v6195_v29, %s6030_s28 }
 0x4aa   : > { %v1052_v17 = vpop.xlane.xlu1 %1051 }
 0x4ab   : > { %5943 = vrcp.f32 %v1052_v17  ;;  %v5018_v17 = vld [vmem:[%s6890_s6 + $0x1] ss:$0 sm:$0xff] }
 0x4b5   : > { %v5944_v18 = vpop.eup %5943 }
 0x4b6   : > { %v1066_v19 = vmul.f32 %v5944_v18, %v5936_v60 }
 0x4b8   : > { %5330 = vmatmul.mubr.msk.f32.vlgmr.msra.gmra.mrb[4].mxu0 %vm715_vm2, %v1066_v19 }
 0x4b9   : > { %5339 = vmatprep.mubr.msk.f32.mxu0 %vm6024_vm1, %v6025_v14 }
 0x50f   : > { %v1055_v20 = vpop.xlane.xlu0 %1054 }
 0x510   : > { %5945 = vrcp.f32 %v1055_v20 }
 0x513   : > { %v1058_v21 = vpop.xlane.xlu1 %1057 }
 0x514   : > { %5947 = vrcp.f32 %v1058_v21 }
 0x517   : > { %v1061_v22 = vpop.xlane.xlu0 %1060  ;;  %v1223_v23 = vpop.permute.xlu1 %1222 }
 0x518   : > { %5949 = vrcp.f32 %v1061_v22  ;;  %5338 = vmatpush3.msra.mxu0 %v1223_v23 }
 0x519   : > { %5663 = vmatprep.subr.bf16.mxu0 %v6023_v11 }
 0x51a   : > { %v5946_v24 = vpop.eup %5945 }
 0x51b   : > { %v1067_v25 = vmul.f32 %v5946_v24, %v5938_v9  ;;  %v1147_v26 = vpop.permute.xlu0 %1146  ;;  %v1299_v27 = vpop.permute.xlu1 %1298 }
 0x51c   : > { %5333 = vmatpush3.msra.mxu1 %v1147_v26 }
 0x51d   : > { %5335 = vmatmul.mubr.msk.f32.vlgmr.msra.gmra.mrb[6].mxu1 %vm715_vm2, %v1067_v25  ;;  %5342 = vmatprep.subr.mxu1 %v6025_v14 }
 0x51e   : > { %v5948_v28 = vpop.eup %5947  ;;  %5343 = vmatpush3.msra.mxu1 %v1299_v27  ;;  %5344 = vmatprep.mubr.msk.f32.mxu1 %vm6024_vm1, %v6025_v14 }
 0x51f   : > { %v1068_v29 = vmul.f32 %v5948_v28, %v5940_v12  ;;  %5669 = vmatprep.subr.bf16.mxu1 %v6023_v11 }
 0x521   : > { %5340 = vmatmul.mubr.msk.f32.vlgmr.msra.gmra.mrb[6].mxu0 %vm715_vm2, %v1068_v29 }
 0x522   : > { %v5950_v30 = vpop.eup %5949  ;;  %5355 = vmatprep.mubr.msk.f32.mxu0 %vm6024_vm1, %v6025_v14  ;;  %5665 = vmatpush3.bf16.msra.mxu0 %v5664_v36 }
 0x523   : > { %v1069_v31 = vmul.f32 %v5950_v30, %v5942_v15  ;;  %5666 = vmatprep.subr.bf16.mxu0 %v6023_v11 }
 0x525   : > { %5345 = vmatmul.mubr.msk.f32.vlgmr.msra.gmra.mrb[8].mxu1 %vm715_vm2, %v1069_v31 }
 0x526   : > { %5366 = vmatprep.mubr.msk.f32.mxu1 %vm6024_vm1, %v6025_v14  ;;  %5668 = vmatpush3.bf16.msra.mxu0 %v5667_v40 }
 0x527   : > { %5369 = vmatprep.subr.mxu0 %v6025_v14 }
 0x58b   : > { %v1142_v32 = vpop.f32.mrb[4].mxu0 }
 0x58c   : > { %v5331_v33 = vpop.f32.mrb[5].mxu0 }
 0x5f0   : > { %v1218_v41 = vpop.f32.mrb[6].mxu1 }
 0x5f1   : > { %1375 = vrot.lane.b32.xlu0 %v1218_v41, %s6907_s29  ;;  %v5336_v42 = vpop.f32.mrb[7].mxu1 }
 0x5f4   : > { %v1294_v43 = vpop.f32.mrb[6].mxu0 }
 0x5f5   : > { %1379 = vrot.lane.b32.xlu1 %v1294_v43, %s6903_s0  ;;  %v5341_v44 = vpop.f32.mrb[7].mxu0 }
 0x5f8   : > { %v1370_v45 = vpop.f32.mrb[8].mxu1 }
 0x5f9   : > { %1383 = vrot.lane.b32.xlu0 %v1370_v45, %s6905_s18  ;;  %v5346_v46 = vpop.f32.mrb[9].mxu1  ;;  %s6921_s18 = smov 8  }
 0x663   : > { %v1376_v47 = vpop.permute.xlu0 %1375 }
 0x664   : > { %v1386_v49 = vsel %vm715_vm2, %v1142_v32, %v1376_v47 }
 0x667   : > { %v1380_v48 = vpop.permute.xlu1 %1379 }
 0x668   : > { %v1388_v50 = vsel %vm1387_vm3, %v1386_v49, %v1380_v48 }
 0x66b   : > { %v1384_v51 = vpop.permute.xlu0 %1383 }
 0x66c   : > { %v1390_v52 = vsel %vm1389_vm4, %v1388_v50, %v1384_v51 }
 0x66d   : > { %5356 = vmatmul.mubr.msk.f32.vlgmr.msra.gmra.mrb[8].mxu0 %vm591_vm0, %v1390_v52 }
 0x66e   : > { %5371 = vmatprep.mubr.msk.f32.mxu0 %vm6024_vm1, %v6025_v14 }
 0x740   : > { %v1471_v54 = vpop.f32.mrb[8].mxu0 }
 0x741   : > { %v1472_v55 = vadd.f32 %v5007_v53, %v1471_v54  ;;  %v5357_v56 = vpop.f32.mrb[9].mxu0 }
 0x743   : > { %v6302_v57 = vadd.f32 %v1472_v55, %v6147_v1  ;;  %v5014_v1 = vld [vmem:[%s6889_s5 + $0x28] sm:$0xff] }
 0x744   : > { %v5670_v2 = vpack.c.bf16 %v5014_v1, %v5013_v0 }
 0x745   : > { %v1476_v58 = vsel %vm591_vm0, %v6302_v57, 0.0 }
 0x746   : > { %1477 = vadd.xlane.f32.xlu1 %v1476_v58  ;;  %5671 = vmatpush3.bf16.msra.mxu1 %v5670_v2 }
 0x747   : > { %5672 = vmatprep.subr.bf16.mxu1 %v6023_v11 }
 0x74a   : > { %5674 = vmatpush3.bf16.msra.mxu1 %v5673_v5 }
 0x74b   : > { %5374 = vmatprep.subr.mxu1 %v6025_v14 }
 0x7d3   : > { %v1478_v59 = vpop.xlane.xlu1 %1477 }
 0x7d4   : > { %v1479_v60 = vmul.f32 0.03125, %v1478_v59 }
 0x7d6   : > { %v1480_v61 = vsub.f32 %v6302_v57, %v1479_v60 }
 0x7d8   : > { %v1481_v62 = vmul.f32 %v1480_v61, %v1480_v61 }
 0x7da   : > { %v1482_v63 = vsel %vm591_vm0, %v1481_v62, 0.0 }
 0x7db   : > { %1483 = vadd.xlane.f32.xlu0 %v1482_v63 }
 0x868   : > { %v1484_v6 = vpop.xlane.xlu0 %1483 }
 0x869   : > { %v1485_v7 = vmul.f32 0.03125, %v1484_v6 }
 0x86b   : > { %v1486_v8 = vadd.f32 1e-05, %v1485_v7 }
 0x86d   : > { %5951 = vrsqrt.f32 %v1486_v8 }
 0x877   : > { %v5952_v9 = vpop.eup %5951 }
 0x878   : > { %v1488_v12 = vmul.f32 %v5952_v9, %v1480_v61 }
 0x87a   : > { %v1497_v15 = vmul.f32 %v5010_v10, %v1488_v12 }
 0x87c   : > { %v1506_v16 = vadd.f32 %v5012_v13, %v1497_v15 }
 0x87e   : > { %5367 = vmatmul.mubr.msk.f32.vlgmr.msra.gmra.mrb[10].mxu1 %vm591_vm0, %v1506_v16 }
 0x87f   : > { %5376 = vmatprep.mubr.msk.f32.mxu1 %vm6024_vm1, %v6025_v14 }
 0x951   : > { %v1589_v18 = vpop.f32.mrb[10].mxu1 }
 0x952   : > { %v1590_v19 = vadd.f32 %v5018_v17, %v1589_v18  ;;  %v5368_v20 = vpop.f32.mrb[11].mxu1 }
 0x954   : > { %1596 = vrot.lane.b32.xlu1 %v1590_v19, %s6913_s20  ;;  %1594 = vrot.lane.b32.xlu0 %v1590_v19, %s6911_s1 }
 0x958   : > { %1598 = vrot.lane.b32.xlu1 %v1590_v19, %s6909_s19  ;;  %1600 = vrot.lane.b32.xlu0 %v1590_v19, %s6915_s21  ;;  %s6930_s19 = smov 96  }
 0x9c6   : > { %v6338_v21 = vpop.permute.xlu1 %1596  ;;  %v1595_v22 = vpop.permute.xlu0 %1594 }
 0x9c7   : > { %1752 = vrot.lane.b32.xlu0 %v6338_v21, %s6915_s21  ;;  %1676 = vrot.lane.b32.xlu1 %v1595_v22, %s6915_s21 }
 0x9ca   : > { %v6343_v23 = vpop.permute.xlu1 %1598  ;;  %v1601_v24 = vpop.permute.xlu0 %1600 }
 0x9cb   : > { %1828 = vrot.lane.b32.xlu1 %v6343_v23, %s6915_s21  ;;  %5370 = vmatpush3.xpose.msk.msra.mxu0 %vm715_vm2, %v1601_v24 }
 0x9cc   : > { %1909 = vrot.lane.b32.xlu0 %v6237_v37, %s6911_s1  ;;  %5379 = vmatprep.subr.mxu0 %v6025_v14 }
 0x9ce   : > { %5372 = vmatmul.mubr.msk.f32.vlgmr.msra.gmra.mrb[10].mxu0 %vm715_vm2, %v1590_v19 }
 0x9cf   : > { %5381 = vmatprep.mubr.msk.f32.mxu0 %vm6024_vm1, %v6025_v14 }
 0xa39   : > { %v1677_v25 = vpop.permute.xlu1 %1676  ;;  %v1753_v26 = vpop.permute.xlu0 %1752 }
 0xa3a   : > { %5375 = vmatpush3.xpose.msk.msra.mxu1 %vm715_vm2, %v1677_v25  ;;  %5380 = vmatpush3.xpose.msk.msra.mxu0 %vm715_vm2, %v1753_v26 }
 0xa3b   : > { %5384 = vmatprep.subr.mxu1 %v6025_v14  ;;  %5389 = vmatprep.subr.mxu0 %v6025_v14 }
 0xa3d   : > { %5377 = vmatmul.mubr.msk.f32.vlgmr.msra.gmra.mrb[12].mxu1 %vm715_vm2, %v1595_v22  ;;  %v1829_v27 = vpop.permute.xlu1 %1828  ;;  %5382 = vmatmul.mubr.msk.f32.vlgmr.msra.gmra.mrb[12].mxu0 %vm715_vm2, %v6338_v21 }
 0xa3e   : > { %5385 = vmatpush3.xpose.msk.msra.mxu1 %vm715_vm2, %v1829_v27  ;;  %5386 = vmatprep.mubr.msk.f32.mxu1 %vm6024_vm1, %v6025_v14  ;;  %v1910_v29 = vpop.permute.xlu0 %1909  ;;  %v5032_v27 = vld [vmem:[%s6891_s7 + $0x20] sm:$0xff] }
 0xa3f   : > { %5394 = vmatprep.subr.mxu1 %v6025_v14  ;;  %5391 = vmatprep.mubr.msk.f32.mxu0 %vm6024_vm1, %v6025_v14 }
 0xa41   : > { %5387 = vmatmul.mubr.msk.f32.vlgmr.msra.gmra.mrb[14].mxu1 %vm715_vm2, %v6343_v23 }
 0xa42   : > { %5396 = vmatprep.mubr.msk.f32.mxu1 %vm6024_vm1, %v6025_v14 }
 0xaa1   : > { %v1672_v28 = vpop.f32.mrb[10].mxu0 }
 0xaa2   : > { %v1904_v30 = vmul.f32 0.35355338, %v1672_v28  ;;  %v5373_v31 = vpop.f32.mrb[11].mxu0  ;;  %v5033_v28 = vld [vmem:[%s6891_s7 + $0x28] sm:$0xff] }
 0xaa3   : > { %v5035_v31 = vld [vmem:[%s6891_s7 + $0x38] sm:$0xff] }
 0xaa4   : > { %v1912_v32 = vadd.f32 %v1910_v29, %v1904_v30  ;;  %v5034_v30 = vld [vmem:[%s6891_s7 + $0x30] sm:$0xff] }
 0xaa6   : > { %v1916_v33 = vsel %vm715_vm2, %v1912_v32, -inf }
 0xaa7   : > { %1917 = vmax.xlane.f32.xlu1 %v1916_v33 }
 0xb10   : > { %v1748_v34 = vpop.f32.mrb[12].mxu1  ;;  %v1824_v35 = vpop.f32.mrb[12].mxu0 }
 0xb11   : > { %v1905_v36 = vmul.f32 0.35355338, %v1748_v34  ;;  %v1906_v38 = vmul.f32 0.35355338, %v1824_v35  ;;  %v5378_v39 = vpop.f32.mrb[13].mxu1  ;;  %v5383_v40 = vpop.f32.mrb[13].mxu0 }
 0xb13   : > { %v1913_v41 = vadd.f32 %v1910_v29, %v1905_v36  ;;  %v1914_v46 = vadd.f32 %v1910_v29, %v1906_v38 }
 0xb14   : > { %v1900_v42 = vpop.f32.mrb[14].mxu1 }
 0xb15   : > { %v1907_v43 = vmul.f32 0.35355338, %v1900_v42  ;;  %v5388_v44 = vpop.f32.mrb[15].mxu1  ;;  %v1919_v45 = vsel %vm715_vm2, %v1913_v41, -inf  ;;  %v1922_v49 = vsel %vm715_vm2, %v1914_v46, -inf }
 0xb16   : > { %1920 = vmax.xlane.f32.xlu0 %v1919_v45 }
 0xb17   : > { %v1915_v47 = vadd.f32 %v1910_v29, %v1907_v43  ;;  %v5676_v29 = vpack.c.bf16 %v5033_v28, %v5032_v27 }
 0xb19   : > { %v1925_v48 = vsel %vm715_vm2, %v1915_v47, -inf }
 0xb1a   : > { %1926 = vmax.xlane.f32.xlu1 %v1925_v48  ;;  %1923 = vmax.xlane.f32.xlu0 %v1922_v49 }
 0xb2b   : > { %2036 = vrot.lane.b32.xlu1 %v1595_v22, %s6030_s28 }
 0xb30   : > { %1960 = vrot.lane.b32.xlu0 %v1590_v19, %s6030_s28 }
 0xb34   : > { %v1918_v50 = vpop.xlane.xlu1 %1917 }
 0xb35   : > { %v1928_v51 = vsub.f32 %v1912_v32, %v1918_v50  ;;  %v5679_v32 = vpack.c.bf16 %v5035_v31, %v5034_v30 }
 0xb37   : > { %v1932_v52 = vmul.f32 1.442695, %v1928_v51 }
 0xb39   : > { %5953 = vpow2.f32 %v1932_v52  ;;  %v5043_v52 = vld [vmem:[%s6889_s5 + $0x40] sm:$0xff] }
 0xb43   : > { %v5954_v53 = vpop.eup %5953 }
 0xb44   : > { %v1940_v54 = vsel %vm715_vm2, %v5954_v53, 0.0 }
 0xb4f   : > { %1941 = vadd.xlane.f32.xlu0 %v1940_v54  ;;  %v5045_v54 = vld [vmem:[%s6889_s5 + $0x50] sm:$0xff] }
 0xba3   : > { %v1921_v55 = vpop.xlane.xlu0 %1920 }
 0xba4   : > { %v1929_v56 = vsub.f32 %v1913_v41, %v1921_v55 }
 0xba6   : > { %v1934_v58 = vmul.f32 1.442695, %v1929_v56 }
 0xba7   : > { %v1927_v59 = vpop.xlane.xlu1 %1926  ;;  %v1924_v60 = vpop.xlane.xlu0 %1923 }
 0xba8   : > { %5955 = vpow2.f32 %v1934_v58  ;;  %v1931_v61 = vsub.f32 %v1915_v47, %v1927_v59  ;;  %v1930_v62 = vsub.f32 %v1914_v46, %v1924_v60  ;;  %v5037_v46 = vld [vmem:[%s6892_s8 + $0x1] ss:$0 sm:$0xff] }
 0xbaa   : > { %v1938_v63 = vmul.f32 1.442695, %v1931_v61  ;;  %v1936_v0 = vmul.f32 1.442695, %v1930_v62 }
 0xbab   : > { %v2037_v1 = vpop.permute.xlu1 %2036  ;;  %v1961_v2 = vpop.permute.xlu0 %1960 }
 0xbac   : > { %5957 = vpow2.f32 %v1938_v63  ;;  %5390 = vmatpush3.msra.mxu0 %v1961_v2  ;;  %5395 = vmatpush3.msra.mxu1 %v2037_v1 }
 0xbad   : > { %5959 = vpow2.f32 %v1936_v0  ;;  %5399 = vmatprep.subr.mxu0 %v6025_v14  ;;  %5404 = vmatprep.subr.mxu1 %v6025_v14 }
 0xbb2   : > { %v5956_v3 = vpop.eup %5955 }
 0xbb3   : > { %v1943_v4 = vsel %vm715_vm2, %v5956_v3, 0.0 }
 0xbb4   : > { %1944 = vadd.xlane.f32.xlu1 %v1943_v4 }
 0xbb6   : > { %v5958_v5 = vpop.eup %5957 }
 0xbb7   : > { %v5960_v6 = vpop.eup %5959  ;;  %v1949_v7 = vsel %vm715_vm2, %v5958_v5, 0.0 }
 0xbb8   : > { %1950 = vadd.xlane.f32.xlu1 %v1949_v7  ;;  %v1946_v8 = vsel %vm715_vm2, %v5960_v6, 0.0 }
 0xbb9   : > { %1947 = vadd.xlane.f32.xlu0 %v1946_v8 }
 0xbc9   : > { %2112 = vrot.lane.b32.xlu1 %v6338_v21, %s6030_s28 }
 0xbcf   : > { %2188 = vrot.lane.b32.xlu0 %v6343_v23, %s6030_s28  ;;  %s6922_s28 = smov 24  }
 0xbdc   : > { %v1942_v9 = vpop.xlane.xlu0 %1941 }
 0xbdd   : > { %5961 = vrcp.f32 %v1942_v9 }
 0xbe7   : > { %v5962_v10 = vpop.eup %5961 }
 0xbe8   : > { %v1956_v12 = vmul.f32 %v5962_v10, %v5954_v53  ;;  %v5044_v53 = vld [vmem:[%s6889_s5 + $0x48] sm:$0xff] }
 0xbe9   : > { %v5841_v55 = vpack.i.bf16 %v5044_v53, %v5043_v52  ;;  %v5682_v56 = vpack.c.bf16 %v5044_v53, %v5043_v52 }
 0xbea   : > { %5392 = vmatmul.mubr.msk.f32.vlgmr.msra.gmra.mrb[14].mxu0 %vm715_vm2, %v1956_v12 }
 0xbeb   : > { %5401 = vmatprep.mubr.msk.f32.mxu0 %vm6024_vm1, %v6025_v14 }
 0xc41   : > { %v1945_v13 = vpop.xlane.xlu1 %1944 }
 0xc42   : > { %5963 = vrcp.f32 %v1945_v13 }
 0xc45   : > { %v1951_v15 = vpop.xlane.xlu1 %1950 }
 0xc46   : > { %5965 = vrcp.f32 %v1951_v15  ;;  %v1948_v16 = vpop.xlane.xlu0 %1947 }
 0xc47   : > { %5967 = vrcp.f32 %v1948_v16  ;;  %v6454_v16 = vld [vmem:[%s6144_s30 + $0x10] sm:$0xff] }
 0xc49   : > { %v2113_v17 = vpop.permute.xlu1 %2112 }
 0xc4a   : > { %5400 = vmatpush3.msra.mxu0 %v2113_v17  ;;  %v2189_v20 = vpop.permute.xlu0 %2188 }
 0xc4b   : > { %5675 = vmatprep.subr.bf16.mxu0 %v6023_v11 }
 0xc4c   : > { %v5964_v18 = vpop.eup %5963 }
 0xc4d   : > { %v1957_v19 = vmul.f32 %v5964_v18, %v5956_v3  ;;  %v5040_v18 = vld [vmem:[%s6887_s3 + $0x2] ss:$0 sm:$0xff] }
 0xc4f   : > { %5397 = vmatmul.mubr.msk.f32.vlgmr.msra.gmra.mrb[16].mxu1 %vm715_vm2, %v1957_v19 }
 0xc50   : > { %v5966_v21 = vpop.eup %5965  ;;  %5405 = vmatpush3.msra.mxu1 %v2189_v20  ;;  %5406 = vmatprep.mubr.msk.f32.mxu1 %vm6024_vm1, %v6025_v14  ;;  %v5042_v20 = vld [vmem:[%s6888_s4 + $0x2] ss:$0 sm:$0xff] }
 0xc51   : > { %v5968_v22 = vpop.eup %5967  ;;  %v1959_v23 = vmul.f32 %v5966_v21, %v5958_v5  ;;  %5681 = vmatprep.subr.bf16.mxu1 %v6023_v11  ;;  %v587_v5 = vld [vmem:[%s6144_s30 + $0x8] sm:$0xff] }
 0xc52   : > { %v1958_v24 = vmul.f32 %v5968_v22, %v5960_v6  ;;  %v5048_v6 = vld [vmem:[%s6890_s6 + $0x2] ss:$0 sm:$0xff] }
 0xc53   : > { %5407 = vmatmul.mubr.msk.f32.vlgmr.msra.gmra.mrb[18].mxu1 %vm715_vm2, %v1959_v23 }
 0xc54   : > { %5402 = vmatmul.mubr.msk.f32.vlgmr.msra.gmra.mrb[16].mxu0 %vm715_vm2, %v1958_v24  ;;  %5428 = vmatprep.mubr.msk.f32.mxu1 %vm6024_vm1, %v6025_v14 }
 0xc55   : > { %5417 = vmatprep.mubr.msk.f32.mxu0 %vm6024_vm1, %v6025_v14  ;;  %5677 = vmatpush3.bf16.msra.mxu0 %v5676_v29 }
 0xc56   : > { %5678 = vmatprep.subr.bf16.mxu0 %v6023_v11  ;;  %5683 = vmatpush3.bf16.msra.mxu1 %v5682_v56 }
 0xc57   : > { %5684 = vmatprep.subr.bf16.mxu1 %v6023_v11 }
 0xc59   : > { %5680 = vmatpush3.bf16.msra.mxu0 %v5679_v32 }
 0xcbd   : > { %v2032_v25 = vpop.f32.mrb[14].mxu0 }
 0xcbe   : > { %v5393_v26 = vpop.f32.mrb[15].mxu0 }
 0xd22   : > { %v2108_v33 = vpop.f32.mrb[16].mxu1 }
 0xd23   : > { %2265 = vrot.lane.b32.xlu1 %v2108_v33, %s6921_s18  ;;  %v5398_v34 = vpop.f32.mrb[17].mxu1 }
 0xd26   : > { %v2260_v35 = vpop.f32.mrb[18].mxu1 }
 0xd27   : > { %v2184_v36 = vpop.f32.mrb[16].mxu0  ;;  %2273 = vrot.lane.b32.xlu1 %v2260_v35, %s6922_s28  ;;  %v5408_v38 = vpop.f32.mrb[19].mxu1 }
 0xd28   : > { %2269 = vrot.lane.b32.xlu0 %v2184_v36, %s6923_s22  ;;  %v5403_v39 = vpop.f32.mrb[17].mxu0 }
 0xd95   : > { %v2266_v40 = vpop.permute.xlu1 %2265 }
 0xd96   : > { %v2276_v42 = vsel %vm715_vm2, %v2032_v25, %v2266_v40 }
 0xd99   : > { %v2274_v41 = vpop.permute.xlu1 %2273 }
 0xd9a   : > { %v2270_v43 = vpop.permute.xlu0 %2269 }
 0xd9b   : > { %v2277_v44 = vsel %vm1387_vm3, %v2276_v42, %v2270_v43 }
 0xd9c   : > { %v2278_v45 = vsel %vm1389_vm4, %v2277_v44, %v2274_v41 }
 0xd9d   : > { %5418 = vmatmul.mubr.msk.f32.vlgmr.msra.gmra.mrb[18].mxu0 %vm591_vm0, %v2278_v45 }
 0xd9e   : > { %5439 = vmatprep.mubr.msk.f32.mxu0 %vm591_vm0, %v587_v5 }
 0xe70   : > { %v2361_v47 = vpop.f32.mrb[18].mxu0 }
 0xe71   : > { %v2362_v48 = vadd.f32 %v5037_v46, %v2361_v47  ;;  %v5419_v49 = vpop.f32.mrb[19].mxu0 }
 0xe73   : > { %v6425_v50 = vadd.f32 %v2362_v48, %v6302_v57  ;;  %v5046_v57 = vld [vmem:[%s6889_s5 + $0x58] sm:$0xff] }
 0xe74   : > { %v5846_v58 = vpack.i.bf16 %v5046_v57, %v5045_v54  ;;  %v5685_v59 = vpack.c.bf16 %v5046_v57, %v5045_v54 }
 0xe75   : > { %v2366_v51 = vsel %vm591_vm0, %v6425_v50, 0.0 }
 0xe76   : > { %2367 = vadd.xlane.f32.xlu0 %v2366_v51  ;;  %5686 = vmatpush3.bf16.msra.mxu1 %v5685_v59 }
 0xe77   : > { %5695 = vmatprep.subr.bf16.mxu1 %v6023_v11 }
 0xe8c   : > { %5842 = vrot.lane.b32.xlu0 %v5841_v55, %s6915_s21 }
 0xe90   : > { %2499 = vrot.lane.b32.xlu0 %v5048_v6, %s6915_s21 }
 0xf03   : > { %v2368_v60 = vpop.xlane.xlu0 %2367 }
 0xf04   : > { %v2369_v61 = vmul.f32 0.03125, %v2368_v60 }
 0xf06   : > { %v2370_v62 = vsub.f32 %v6425_v50, %v2369_v61 }
 0xf07   : > { %v5843_v63 = vpop.permute.xlu0 %5842 }
 0xf08   : > { %v2371_v0 = vmul.f32 %v2370_v62, %v2370_v62  ;;  %v5845_v1 = vunpack.i.h.bf16 %v5843_v63  ;;  %v5844_v2 = vunpack.i.l.bf16 %v5843_v63 }
 0xf0a   : > { %v2372_v3 = vsel %vm591_vm0, %v2371_v0, 0.0  ;;  %v5687_v4 = vpack.c.bf16 %v5845_v1, %v5844_v2 }
 0xf0b   : > { %2373 = vadd.xlane.f32.xlu1 %v2372_v3  ;;  %v2500_v23 = vpop.permute.xlu0 %2499 }
 0xf0c   : > { %5688 = vmatprep.subr.bf16.mxu0 %v5687_v4 }
 0xf0d   : > { %5690 = vmatpush3.bf16.msra.mxu0 %v5687_v4 }
 0xf1c   : > { %5847 = vrot.lane.b32.xlu1 %v5846_v58, %s6915_s21 }
 0xf98   : > { %v2374_v7 = vpop.xlane.xlu1 %2373 }
 0xf99   : > { %v2375_v8 = vmul.f32 0.03125, %v2374_v7 }
 0xf9b   : > { %v2376_v9 = vadd.f32 1e-05, %v2375_v8 }
 0xf9c   : > { %v5848_v10 = vpop.permute.xlu1 %5847 }
 0xf9d   : > { %5969 = vrsqrt.f32 %v2376_v9  ;;  %v5850_v12 = vunpack.i.h.bf16 %v5848_v10  ;;  %v5849_v13 = vunpack.i.l.bf16 %v5848_v10 }
 0xf9f   : > { %v5691_v15 = vpack.c.bf16 %v5850_v12, %v5849_v13 }
 0xfa1   : > { %5692 = vmatprep.subr.bf16.mxu0 %v5691_v15 }
 0xfa2   : > { %5694 = vmatpush3.bf16.msra.mxu0 %v5691_v15 }
 0xfa3   : > { %5699 = vmatprep.subr.bf16.mxu0 %v6023_v11 }
 0xfa5   : > { %5440 = vmatmul.mubr.msk.f32.vlgmr.msra.gmra.mrb[20].mxu0 %vm591_vm0, %v6454_v16 }
 0xfa6   : > { %5453 = vmatprep.mubr.msk.f32.mxu0 %vm6024_vm1, %v6025_v14 }
 0xfa7   : > { %v5970_v17 = vpop.eup %5969 }
 0xfa8   : > { %v2378_v19 = vmul.f32 %v5970_v17, %v2370_v62 }
 0xfaa   : > { %v2387_v21 = vmul.f32 %v5040_v18, %v2378_v19 }
 0xfac   : > { %v2396_v22 = vadd.f32 %v5042_v20, %v2387_v21 }
 0xfae   : > { %5429 = vmatmul.mubr.msk.f32.vlgmr.msra.gmra.mrb[20].mxu1 %vm591_vm0, %v2396_v22 }
 0xfaf   : > { %5446 = vmatprep.mubr.msk.f32.mxu1 %vm6024_vm1, %v6025_v14 }
0x1078   : > { %v5441_v24 = vpop.f32.mrb[20].mxu0 }
0x1079   : > { %v2580_v25 = vadd.f32 %v5441_v24, %v2500_v23  ;;  %v2574_v26 = vpop.f32.mrb[21].mxu0  ;;  %v5125_v24 = vld [vmem:[%s6896_s12] ss:$0 sm:$0xff] }
0x107a   : > { %v2575_v27 = vadd.f32 %v2574_v26, %v2500_v23 }
0x107c   : > { %v6470_v28 = vpack.i.bf16 %v2580_v25, %v2575_v27  ;;  %v5696_v29 = vpack.c.bf16 %v2580_v25, %v2575_v27 }
0x107e   : > { %5857 = vrot.lane.b32.xlu0 %v6470_v28, %s6913_s20  ;;  %5852 = vrot.lane.b32.xlu1 %v6470_v28, %s6926_s23 }
0x107f   : > { %5698 = vmatpush3.bf16.xpose.msk.msra.mxu1 %vm6474_vm5, %v5696_v29 }
0x1080   : > { %5703 = vmatprep.subr.bf16.mxu1 %v6023_v11 }
0x1081   : > { %v2479_v31 = vpop.f32.mrb[20].mxu1 }
0x1082   : > { %v2480_v32 = vadd.f32 %v5048_v6, %v2479_v31  ;;  %v5430_v33 = vpop.f32.mrb[21].mxu1  ;;  %5862 = vrot.lane.b32.xlu1 %v6470_v28, %s6927_s24 }
0x1084   : > { %2584 = vrot.lane.b32.xlu0 %v2480_v32, %s6926_s23 }
0x1086   : > { %5447 = vmatmul.mubr.msk.f32.vlgmr.msra.gmra.mrb[22].mxu1 %vm715_vm2, %v2480_v32  ;;  %2586 = vrot.lane.b32.xlu1 %v2480_v32, %s6913_s20 }
0x1087   : > { %5460 = vmatprep.mubr.msk.f32.mxu1 %vm6024_vm1, %v6025_v14 }
0x1088   : > { %2588 = vrot.lane.b32.xlu0 %v2480_v32, %s6927_s24 }
0x108a   : > { %2912 = vrot.lane.b32.xlu1 %v6237_v37, %s6913_s20  ;;  %s6931_s20 = smov 112  }
0x10f0   : > { %v6495_v34 = vpop.permute.xlu0 %5857  ;;  %v6497_v35 = vpop.permute.xlu1 %5852 }
0x10f1   : > { %v5860_v36 = vunpack.i.h.bf16 %v6495_v34  ;;  %v5859_v38 = vunpack.i.l.bf16 %v6495_v34  ;;  %v5855_v39 = vunpack.i.h.bf16 %v6497_v35  ;;  %v5854_v40 = vunpack.i.l.bf16 %v6497_v35 }
0x10f3   : > { %v5704_v41 = vpack.c.bf16 %v5860_v36, %v5859_v38  ;;  %v5700_v42 = vpack.c.bf16 %v5855_v39, %v5854_v40 }
0x10f4   : > { %v6503_v43 = vpop.permute.xlu1 %5862 }
0x10f5   : > { %v5865_v44 = vunpack.i.h.bf16 %v6503_v43  ;;  %v5864_v37 = vunpack.i.l.bf16 %v6503_v43  ;;  %5702 = vmatpush3.bf16.xpose.msk.msra.mxu0 %vm6474_vm5, %v5700_v42  ;;  %5706 = vmatpush3.bf16.xpose.msk.msra.mxu1 %vm6474_vm5, %v5704_v41 }
0x10f6   : > { %5707 = vmatprep.subr.bf16.mxu0 %v6023_v11  ;;  %5711 = vmatprep.subr.bf16.mxu1 %v6023_v11  ;;  %v2585_v46 = vpop.permute.xlu0 %2584 }
0x10f7   : > { %v5708_v45 = vpack.c.bf16 %v5865_v44, %v5864_v37 }
0x10f8   : > { %v2587_v47 = vpop.permute.xlu1 %2586 }
0x10fa   : > { %v2589_v48 = vpop.permute.xlu0 %2588 }
0x10fc   : > { %5454 = vmatmul.mubr.msk.f32.vlgmr.msra.gmra.mrb[22].mxu0 %vm715_vm2, %v2585_v46  ;;  %5461 = vmatmul.mubr.msk.f32.vlgmr.msra.gmra.mrb[24].mxu1 %vm715_vm2, %v2587_v47  ;;  %v6525_v51 = vpop.permute.xlu1 %2912 }
0x10fd   : > { %5710 = vmatpush3.bf16.xpose.msk.msra.mxu0 %vm6474_vm5, %v5708_v45  ;;  %5467 = vmatprep.mubr.msk.f32.mxu0 %vm6024_vm1, %v6025_v14 }
0x10fe   : > { %5474 = vmatprep.mubr.msk.f32.mxu1 %vm6024_vm1, %v6025_v14  ;;  %5719 = vmatprep.subr.bf16.mxu0 %v6023_v11 }
0x1104   : > { %5468 = vmatmul.mubr.msk.f32.vlgmr.msra.gmra.mrb[24].mxu0 %vm715_vm2, %v2589_v48 }
0x1105   : > { %5488 = vmatprep.mubr.msk.f32.mxu0 %vm6024_vm1, %v6025_v14 }
0x1159   : > { %v2676_v49 = vpop.f32.mrb[22].mxu1 }
0x115a   : > { %v2908_v52 = vmul.f32 0.35355338, %v2676_v49  ;;  %v5448_v53 = vpop.f32.mrb[23].mxu1 }
0x115c   : > { %v2915_v54 = vadd.f32 %v6525_v51, %v2908_v52 }
0x115e   : > { %v2920_v55 = vsel %vm2919_vm6, %v2915_v54, -inf }
0x115f   : > { %2921 = vmax.xlane.f32.xlu0 %v2920_v55 }
0x11cf   : > { %v2752_v56 = vpop.f32.mrb[22].mxu0  ;;  %v2828_v57 = vpop.f32.mrb[24].mxu1 }
0x11d0   : > { %v2909_v58 = vmul.f32 0.35355338, %v2752_v56  ;;  %v2910_v59 = vmul.f32 0.35355338, %v2828_v57  ;;  %v5455_v60 = vpop.f32.mrb[23].mxu0  ;;  %v5462_v61 = vpop.f32.mrb[25].mxu1 }
0x11d2   : > { %v2916_v62 = vadd.f32 %v6525_v51, %v2909_v58  ;;  %v2917_v63 = vadd.f32 %v6525_v51, %v2910_v59 }
0x11d4   : > { %v2923_v0 = vsel %vm2919_vm6, %v2916_v62, -inf  ;;  %v2926_v1 = vsel %vm2919_vm6, %v2917_v63, -inf }
0x11d5   : > { %2924 = vmax.xlane.f32.xlu1 %v2923_v0  ;;  %2927 = vmax.xlane.f32.xlu0 %v2926_v1 }
0x11d7   : > { %v2904_v2 = vpop.f32.mrb[24].mxu0 }
0x11d8   : > { %v2911_v3 = vmul.f32 0.35355338, %v2904_v2  ;;  %v5469_v4 = vpop.f32.mrb[25].mxu0 }
0x11da   : > { %v2918_v5 = vadd.f32 %v6525_v51, %v2911_v3 }
0x11dc   : > { %v2929_v6 = vsel %vm2919_vm6, %v2918_v5, -inf }
0x11dd   : > { %2930 = vmax.xlane.f32.xlu0 %v2929_v6 }
0x11e6   : > { %5867 = vrot.lane.b32.xlu1 %v6470_v28, %s6915_s21 }
0x11ec   : > { %v2922_v7 = vpop.xlane.xlu0 %2921 }
0x11ed   : > { %v2932_v8 = vsub.f32 %v2915_v54, %v2922_v7  ;;  %v5072_v7 = vld [vmem:[%s6891_s7 + $0x40] sm:$0xff] }
0x11ef   : > { %v2936_v9 = vmul.f32 1.442695, %v2932_v8  ;;  %v5073_v8 = vld [vmem:[%s6891_s7 + $0x48] sm:$0xff] }
0x11f1   : > { %5971 = vpow2.f32 %v2936_v9  ;;  %v5728_v9 = vpack.c.bf16 %v5073_v8, %v5072_v7 }
0x11fb   : > { %v5972_v10 = vpop.eup %5971 }
0x11fc   : > { %v2944_v12 = vsel %vm2919_vm6, %v5972_v10, 0.0 }
0x120a   : > { %2945 = vadd.xlane.f32.xlu1 %v2944_v12  ;;  %v5075_v12 = vld [vmem:[%s6891_s7 + $0x58] sm:$0xff] }
0x1262   : > { %v2925_v13 = vpop.xlane.xlu1 %2924  ;;  %v2928_v15 = vpop.xlane.xlu0 %2927 }
0x1263   : > { %v2933_v17 = vsub.f32 %v2916_v62, %v2925_v13  ;;  %v2934_v18 = vsub.f32 %v2917_v63, %v2928_v15 }
0x1265   : > { %v2938_v19 = vmul.f32 1.442695, %v2933_v17  ;;  %v2940_v20 = vmul.f32 1.442695, %v2934_v18 }
0x1266   : > { %v5868_v21 = vpop.permute.xlu1 %5867 }
0x1267   : > { %5973 = vpow2.f32 %v2938_v19  ;;  %v5870_v22 = vunpack.i.h.bf16 %v5868_v21  ;;  %v5869_v23 = vunpack.i.l.bf16 %v5868_v21 }
0x1268   : > { %5975 = vpow2.f32 %v2940_v20 }
0x1269   : > { %v5712_v25 = vpack.c.bf16 %v5870_v22, %v5869_v23 }
0x126a   : > { %v2931_v26 = vpop.xlane.xlu0 %2930 }
0x126b   : > { %v2935_v27 = vsub.f32 %v2918_v5, %v2931_v26  ;;  %5714 = vmatpush3.bf16.msk.msra.mxu1 %vm6538_vm9, %v5712_v25 }
0x126c   : > { %5715 = vmatprep.subr.bf16.mxu1 %v6023_v11 }
0x126d   : > { %v2942_v28 = vmul.f32 1.442695, %v2935_v27 }
0x126f   : > { %5977 = vpow2.f32 %v2942_v28 }
0x1271   : > { %v5974_v29 = vpop.eup %5973 }
0x1272   : > { %v5976_v31 = vpop.eup %5975  ;;  %v2947_v32 = vsel %vm2919_vm6, %v5974_v29, 0.0 }
0x1273   : > { %2948 = vadd.xlane.f32.xlu0 %v2947_v32  ;;  %v2950_v33 = vsel %vm2919_vm6, %v5976_v31, 0.0 }
0x1274   : > { %2951 = vadd.xlane.f32.xlu1 %v2950_v33 }
0x1279   : > { %v5978_v36 = vpop.eup %5977 }
0x127a   : > { %v2953_v38 = vsel %vm2919_vm6, %v5978_v36, 0.0 }
0x127b   : > { %2954 = vadd.xlane.f32.xlu0 %v2953_v38 }
0x1285   : > { %5877 = vrot.lane.b32.xlu1 %v6495_v34, %s6915_s21 }
0x1289   : > { %5882 = vrot.lane.b32.xlu1 %v6503_v43, %s6915_s21 }
0x1291   : > { %5872 = vrot.lane.b32.xlu0 %v6497_v35, %s6915_s21 }
0x1297   : > { %v2946_v39 = vpop.xlane.xlu1 %2945 }
0x1298   : > { %5979 = vrcp.f32 %v2946_v39  ;;  %v5083_v39 = vld [vmem:[%s6889_s5 + $0x60] sm:$0xff] }
0x12a2   : > { %v5980_v40 = vpop.eup %5979 }
0x12a3   : > { %v2960_v41 = vmul.f32 %v5980_v40, %v5972_v10  ;;  %v5074_v10 = vld [vmem:[%s6891_s7 + $0x50] sm:$0xff]  ;;  %v5084_v40 = vld [vmem:[%s6889_s5 + $0x68] sm:$0xff] }
0x12a4   : > { %v5731_v13 = vpack.c.bf16 %v5075_v12, %v5074_v10 }
0x12a5   : > { %5475 = vmatmul.mubr.msk.f32.vlgmr.msra.gmra.mrb[26].mxu1 %vm2919_vm6, %v2960_v41  ;;  %v3386_v56 = vsel %vm2919_vm6, %v2960_v41, 0.0  ;;  %v5886_v41 = vpack.i.bf16 %v5084_v40, %v5083_v39 }
0x12a6   : > { %5481 = vmatprep.mubr.msk.f32.mxu1 %vm6024_vm1, %v6025_v14 }
0x1300   : > { %v2949_v42 = vpop.xlane.xlu0 %2948 }
0x1301   : > { %v2952_v44 = vpop.xlane.xlu1 %2951  ;;  %5981 = vrcp.f32 %v2949_v42  ;;  %v5734_v42 = vpack.c.bf16 %v5084_v40, %v5083_v39 }
0x1302   : > { %5983 = vrcp.f32 %v2952_v44  ;;  %v5086_v44 = vld [vmem:[%s6889_s5 + $0x78] sm:$0xff] }
0x1305   : > { %v5878_v34 = vpop.permute.xlu1 %5877 }
0x1306   : > { %v5880_v37 = vunpack.i.h.bf16 %v5878_v34  ;;  %v5879_v45 = vunpack.i.l.bf16 %v5878_v34 }
0x1308   : > { %v5720_v43 = vpack.c.bf16 %v5880_v37, %v5879_v45  ;;  %v2955_v46 = vpop.xlane.xlu0 %2954 }
0x1309   : > { %5985 = vrcp.f32 %v2955_v46  ;;  %v5883_v49 = vpop.permute.xlu1 %5882 }
0x130a   : > { %5722 = vmatpush3.bf16.msk.msra.mxu0 %vm6538_vm9, %v5720_v43  ;;  %v5885_v59 = vunpack.i.h.bf16 %v5883_v49  ;;  %v5884_v60 = vunpack.i.l.bf16 %v5883_v49  ;;  %v589_v49 = vld [vmem:[%s6144_s30 + $0x18] sm:$0xf] }
0x130b   : > { %v5982_v35 = vpop.eup %5981  ;;  %5727 = vmatprep.subr.bf16.mxu0 %v6023_v11 }
0x130c   : > { %v5984_v47 = vpop.eup %5983  ;;  %v2961_v48 = vmul.f32 %v5982_v35, %v5974_v29  ;;  %v5873_v52 = vpop.permute.xlu0 %5872  ;;  %v5724_v1 = vpack.c.bf16 %v5885_v59, %v5884_v60  ;;  %v5077_v29 = vld [vmem:[%s6892_s8 + $0x2] ss:$0 sm:$0xff] }
0x130d   : > { %v2962_v53 = vmul.f32 %v5984_v47, %v5976_v31  ;;  %v5875_v54 = vunpack.i.h.bf16 %v5873_v52  ;;  %v5874_v55 = vunpack.i.l.bf16 %v5873_v52  ;;  %v3516_v52 = vrot.slane %v589_v49, 2 }
0x130e   : > { %v3387_v57 = vsel %vm2919_vm6, %v2961_v48, 0.0 }
0x130f   : > { %v3388_v58 = vadd.f32 %v3387_v57, %v3386_v56  ;;  %v5716_v61 = vpack.c.bf16 %v5875_v54, %v5874_v55  ;;  %5489 = vmatmul.mubr.msk.f32.vlgmr.msra.gmra.mrb[26].mxu0 %vm2919_vm6, %v2962_v53  ;;  %v3389_v62 = vsel %vm2919_vm6, %v2962_v53, 0.0  ;;  %v5088_v54 = vld [vmem:[%s6890_s6 + $0x3] ss:$0 sm:$0xff] }
0x1310   : > { %5506 = vmatprep.mubr.msk.f32.mxu0 %vm6024_vm1, %v6025_v14  ;;  %5729 = vmatpush3.bf16.msra.mxu0 %v5728_v9 }
0x1311   : > { %5718 = vmatpush3.bf16.msk.msra.mxu1 %vm6538_vm9, %v5716_v61  ;;  %v3390_v63 = vadd.f32 %v3389_v62, %v3388_v58  ;;  %5730 = vmatprep.subr.bf16.mxu0 %v6023_v11 }
0x1312   : > { %5723 = vmatprep.subr.bf16.mxu1 %v6023_v11 }
0x1313   : > { %v5986_v0 = vpop.eup %5985 }
0x1314   : > { %v2963_v2 = vmul.f32 %v5986_v0, %v5978_v36  ;;  %5482 = vmatmul.mubr.msk.f32.vlgmr.msra.gmra.mrb[28].mxu1 %vm2919_vm6, %v2961_v48  ;;  %5732 = vmatpush3.bf16.msra.mxu0 %v5731_v13  ;;  %v3515_v48 = vrot.slane %v6454_v16, 2 }
0x1315   : > { %5726 = vmatpush3.bf16.msk.msra.mxu1 %vm6538_vm9, %v5724_v1  ;;  %5495 = vmatprep.mubr.msk.f32.mxu1 %vm6024_vm1, %v6025_v14 }
0x1316   : > { %5733 = vmatprep.subr.bf16.mxu1 %v6023_v11  ;;  %v3391_v3 = vsel %vm2919_vm6, %v2963_v2, 0.0  ;;  %v3517_v53 = vsel %vm3514_vm10, %v3515_v48, %v3516_v52 }
0x1317   : > { %v6576_v4 = vadd.f32 %v3391_v3, %v3390_v63 }
0x1318   : > { %5496 = vmatmul.mubr.msk.f32.vlgmr.msra.gmra.mrb[30].mxu1 %vm2919_vm6, %v2963_v2  ;;  %v5080_v2 = vld [vmem:[%s6887_s3 + $0x3] ss:$0 sm:$0xff] }
0x1319   : > { %5517 = vmatprep.mubr.msk.f32.mxu1 %vm6024_vm1, %v6025_v14  ;;  %5735 = vmatpush3.bf16.msra.mxu1 %v5734_v42 }
0x131a   : > { %5736 = vmatprep.subr.bf16.mxu1 %v6023_v11 }
0x1378   : > { %v3041_v5 = vpop.f32.mrb[26].mxu1 }
0x1379   : > { %v5476_v6 = vpop.f32.mrb[27].mxu1 }
0x13e2   : > { %v3201_v15 = vpop.f32.mrb[26].mxu0 }
0x13e3   : > { %3290 = vrot.lane.b32.xlu1 %v3201_v15, %s6923_s22  ;;  %v5490_v17 = vpop.f32.mrb[27].mxu0 }
0x13e7   : > { %v3121_v18 = vpop.f32.mrb[28].mxu1 }
0x13e8   : > { %3286 = vrot.lane.b32.xlu0 %v3121_v18, %s6921_s18  ;;  %v5483_v19 = vpop.f32.mrb[29].mxu1 }
0x13eb   : > { %v3281_v20 = vpop.f32.mrb[30].mxu1 }
0x13ec   : > { %3294 = vrot.lane.b32.xlu0 %v3281_v20, %s6922_s28  ;;  %v5497_v21 = vpop.f32.mrb[31].mxu1 }
0x1455   : > { %v3291_v25 = vpop.permute.xlu1 %3290 }
0x145a   : > { %v3287_v22 = vpop.permute.xlu0 %3286 }
0x145b   : > { %v3297_v23 = vsel %vm715_vm2, %v3041_v5, %v3287_v22  ;;  %v5082_v5 = vld [vmem:[%s6888_s4 + $0x3] ss:$0 sm:$0xff] }
0x145c   : > { %v3298_v26 = vsel %vm1387_vm3, %v3297_v23, %v3291_v25 }
0x145e   : > { %v3295_v27 = vpop.permute.xlu0 %3294 }
0x145f   : > { %v3299_v28 = vsel %vm1389_vm4, %v3298_v26, %v3295_v27 }
0x1460   : > { %5507 = vmatmul.mubr.msk.f32.vlgmr.msra.gmra.mrb[28].mxu0 %vm591_vm0, %v3299_v28 }
0x1461   : > { %5528 = vmatprep.mubr.msk.f32.mxu0 %vm591_vm0, %v3517_v53 }
0x1533   : > { %v3382_v31 = vpop.f32.mrb[28].mxu0 }
0x1534   : > { %v3383_v32 = vadd.f32 %v5077_v29, %v3382_v31  ;;  %v5508_v33 = vpop.f32.mrb[29].mxu0 }
0x1536   : > { %v6605_v36 = vadd.f32 %v3383_v32, %v6425_v50  ;;  %v5085_v50 = vld [vmem:[%s6889_s5 + $0x70] sm:$0xff] }
0x1537   : > { %v5891_v34 = vpack.i.bf16 %v5086_v44, %v5085_v50  ;;  %v5737_v37 = vpack.c.bf16 %v5086_v44, %v5085_v50 }
0x1538   : > { %v3396_v38 = vsel %vm591_vm0, %v6605_v36, 0.0 }
0x1539   : > { %3397 = vadd.xlane.f32.xlu1 %v3396_v38  ;;  %5738 = vmatpush3.bf16.msra.mxu1 %v5737_v37 }
0x153a   : > { %5747 = vmatprep.subr.bf16.mxu1 %v6023_v11 }
0x154a   : > { %5892 = vrot.lane.b32.xlu1 %v5891_v34, %s6930_s19 }
0x154e   : > { %3534 = vrot.lane.b32.xlu1 %v5088_v54, %s6930_s19 }
0x15c6   : > { %v3398_v45 = vpop.xlane.xlu1 %3397 }
0x15c7   : > { %v3399_v43 = vmul.f32 0.03125, %v3398_v45 }
0x15c9   : > { %v3400_v46 = vsub.f32 %v6605_v36, %v3399_v43 }
0x15ca   : > { %v5893_v56 = vpop.permute.xlu1 %5892 }
0x15cb   : > { %v3401_v35 = vmul.f32 %v3400_v46, %v3400_v46  ;;  %v5895_v59 = vunpack.i.h.bf16 %v5893_v56  ;;  %v5894_v60 = vunpack.i.l.bf16 %v5893_v56 }
0x15cd   : > { %v3402_v47 = vsel %vm591_vm0, %v3401_v35, 0.0  ;;  %v5743_v0 = vpack.c.bf16 %v5895_v59, %v5894_v60 }
0x15ce   : > { %3403 = vadd.xlane.f32.xlu0 %v3402_v47  ;;  %v3535_v8 = vpop.permute.xlu1 %3534 }
0x15e4   : > { %5887 = vrot.lane.b32.xlu0 %v5886_v41, %s6930_s19 }
0x165b   : > { %v3404_v55 = vpop.xlane.xlu0 %3403 }
0x165c   : > { %v3405_v57 = vmul.f32 0.03125, %v3404_v55 }
0x165e   : > { %v3406_v58 = vadd.f32 1e-05, %v3405_v57 }
0x165f   : > { %v5888_v61 = vpop.permute.xlu0 %5887 }
0x1660   : > { %5987 = vrsqrt.f32 %v3406_v58  ;;  %v5890_v16 = vunpack.i.h.bf16 %v5888_v61  ;;  %v5889_v62 = vunpack.i.l.bf16 %v5888_v61 }
0x1662   : > { %v5739_v63 = vpack.c.bf16 %v5890_v16, %v5889_v62 }
0x1664   : > { %5740 = vmatprep.subr.bf16.mxu0 %v5739_v63 }
0x1665   : > { %5742 = vmatpush3.bf16.msra.mxu0 %v5739_v63 }
0x1666   : > { %5744 = vmatprep.subr.bf16.mxu0 %v5743_v0 }
0x1669   : > { %5746 = vmatpush3.bf16.msra.mxu0 %v5743_v0 }
0x166a   : > { %v5988_v1 = vpop.eup %5987  ;;  %5751 = vmatprep.subr.bf16.mxu0 %v6023_v11 }
0x166b   : > { %v3408_v3 = vmul.f32 %v5988_v1, %v3400_v46 }
0x166c   : > { %5529 = vmatmul.mubr.msk.f32.vlgmr.msra.gmra.mrb[30].mxu0 %vm591_vm0, %v3516_v52 }
0x166d   : > { %v3417_v6 = vmul.f32 %v5080_v2, %v3408_v3  ;;  %5542 = vmatprep.mubr.msk.f32.mxu0 %vm6024_vm1, %v6025_v14 }
0x166f   : > { %v3426_v7 = vadd.f32 %v5082_v5, %v3417_v6 }
0x1671   : > { %5518 = vmatmul.mubr.msk.f32.vlgmr.msra.gmra.mrb[32].mxu1 %vm591_vm0, %v3426_v7 }
0x1672   : > { %5535 = vmatprep.mubr.msk.f32.mxu1 %vm6024_vm1, %v6025_v14 }
0x173f   : > { %v5530_v9 = vpop.f32.mrb[30].mxu0 }
0x1740   : > { %v3613_v10 = vadd.f32 %v5530_v9, %v3535_v8  ;;  %v3607_v12 = vpop.f32.mrb[31].mxu0 }
0x1741   : > { %v3608_v13 = vadd.f32 %v3607_v12, %v3535_v8 }
0x1743   : > { %v6647_v15 = vpack.i.bf16 %v3613_v10, %v3608_v13  ;;  %v5748_v17 = vpack.c.bf16 %v3613_v10, %v3608_v13 }
0x1744   : > { %v3509_v18 = vpop.f32.mrb[32].mxu1 }
0x1745   : > { %5902 = vrot.lane.b32.xlu1 %v6647_v15, %s6931_s20  ;;  %5897 = vrot.lane.b32.xlu0 %v6647_v15, %s6926_s23  ;;  %v5519_v19 = vpop.f32.mrb[33].mxu1  ;;  %v3510_v20 = vadd.f32 %v5088_v54, %v3509_v18 }
0x1746   : > { %5750 = vmatpush3.bf16.xpose.msk.msra.mxu1 %vm6474_vm5, %v5748_v17 }
0x1747   : > { %5755 = vmatprep.subr.bf16.mxu1 %v6023_v11 }
0x1749   : > { %5907 = vrot.lane.b32.xlu0 %v6647_v15, %s6927_s24  ;;  %3617 = vrot.lane.b32.xlu1 %v3510_v20, %s6926_s23  ;;  %s5136_s23 = sshll.u32 %s6934_s27, 4 }
0x174d   : > { %5536 = vmatmul.mubr.msk.f32.vlgmr.msra.gmra.mrb[34].mxu1 %vm715_vm2, %v3510_v20  ;;  %3619 = vrot.lane.b32.xlu0 %v3510_v20, %s6931_s20 }
0x174e   : > { %3621 = vrot.lane.b32.xlu1 %v3510_v20, %s6927_s24  ;;  %5549 = vmatprep.mubr.msk.f32.mxu1 %vm6024_vm1, %v6025_v14 }
0x17b7   : > { %v6664_v21 = vpop.permute.xlu1 %5902  ;;  %v6666_v22 = vpop.permute.xlu0 %5897 }
0x17b8   : > { %v5905_v23 = vunpack.i.h.bf16 %v6664_v21  ;;  %v5904_v25 = vunpack.i.l.bf16 %v6664_v21  ;;  %v5900_v26 = vunpack.i.h.bf16 %v6666_v22  ;;  %v5899_v27 = vunpack.i.l.bf16 %v6666_v22 }
0x17ba   : > { %v5756_v28 = vpack.c.bf16 %v5905_v23, %v5904_v25  ;;  %v5752_v29 = vpack.c.bf16 %v5900_v26, %v5899_v27 }
0x17bb   : > { %v6672_v31 = vpop.permute.xlu0 %5907  ;;  %v3618_v39 = vpop.permute.xlu1 %3617 }
0x17bc   : > { %v5910_v32 = vunpack.i.h.bf16 %v6672_v31  ;;  %v5909_v33 = vunpack.i.l.bf16 %v6672_v31  ;;  %5754 = vmatpush3.bf16.xpose.msk.msra.mxu0 %vm6474_vm5, %v5752_v29  ;;  %5758 = vmatpush3.bf16.xpose.msk.msra.mxu1 %vm6474_vm5, %v5756_v28 }
0x17bd   : > { %5759 = vmatprep.subr.bf16.mxu0 %v6023_v11  ;;  %5763 = vmatprep.subr.bf16.mxu1 %v6023_v11 }
0x17be   : > { %v5760_v38 = vpack.c.bf16 %v5910_v32, %v5909_v33 }
0x17bf   : > { %v3620_v40 = vpop.permute.xlu0 %3619 }
0x17c0   : > { %v3622_v41 = vpop.permute.xlu1 %3621 }
0x17c3   : > { %5543 = vmatmul.mubr.msk.f32.vlgmr.msra.gmra.mrb[32].mxu0 %vm715_vm2, %v3618_v39  ;;  %5550 = vmatmul.mubr.msk.f32.vlgmr.msra.gmra.mrb[36].mxu1 %vm715_vm2, %v3620_v40 }
0x17c4   : > { %5762 = vmatpush3.bf16.xpose.msk.msra.mxu0 %vm6474_vm5, %v5760_v38  ;;  %5556 = vmatprep.mubr.msk.f32.mxu0 %vm6024_vm1, %v6025_v14 }
0x17c5   : > { %5563 = vmatprep.mubr.msk.f32.mxu1 %vm6024_vm1, %v6025_v14  ;;  %5771 = vmatprep.subr.bf16.mxu0 %v6023_v11 }
0x17cb   : > { %5557 = vmatmul.mubr.msk.f32.vlgmr.msra.gmra.mrb[34].mxu0 %vm715_vm2, %v3622_v41 }
0x17cc   : > { %5577 = vmatprep.mubr.msk.f32.mxu0 %vm6024_vm1, %v6025_v14 }
0x1820   : > { %v3709_v42 = vpop.f32.mrb[34].mxu1 }
0x1821   : > { %v3941_v50 = vmul.f32 0.35355338, %v3709_v42  ;;  %v5537_v44 = vpop.f32.mrb[35].mxu1 }
0x1823   : > { %v3945_v30 = vadd.f32 %v3941_v50, %v6525_v51 }
0x1825   : > { %v3949_v34 = vsel %vm2919_vm6, %v3945_v30, -inf }
0x1826   : > { %3950 = vmax.xlane.f32.xlu0 %v3949_v34 }
0x1896   : > { %v3785_v37 = vpop.f32.mrb[32].mxu0  ;;  %v3861_v45 = vpop.f32.mrb[36].mxu1 }
0x1897   : > { %v3942_v43 = vmul.f32 0.35355338, %v3785_v37  ;;  %v3943_v46 = vmul.f32 0.35355338, %v3861_v45  ;;  %v5544_v35 = vpop.f32.mrb[33].mxu0  ;;  %v5551_v47 = vpop.f32.mrb[37].mxu1 }
0x1899   : > { %v3946_v48 = vadd.f32 %v3942_v43, %v6525_v51  ;;  %v3947_v49 = vadd.f32 %v3943_v46, %v6525_v51 }
0x189b   : > { %v3952_v52 = vsel %vm2919_vm6, %v3946_v48, -inf  ;;  %v3955_v53 = vsel %vm2919_vm6, %v3947_v49, -inf }
0x189c   : > { %3953 = vmax.xlane.f32.xlu1 %v3952_v52  ;;  %3956 = vmax.xlane.f32.xlu0 %v3955_v53  ;;  %v5114_v53 = vld [vmem:[%s6891_s7 + $0x70] sm:$0xff] }
0x189e   : > { %v3937_v54 = vpop.f32.mrb[34].mxu0 }
0x189f   : > { %v3944_v55 = vmul.f32 0.35355338, %v3937_v54  ;;  %v5558_v56 = vpop.f32.mrb[35].mxu0  ;;  %v5115_v54 = vld [vmem:[%s6891_s7 + $0x78] sm:$0xff] }
0x18a1   : > { %v3948_v57 = vadd.f32 %v3944_v55, %v6525_v51  ;;  %v5783_v55 = vpack.c.bf16 %v5115_v54, %v5114_v53 }
0x18a3   : > { %v3958_v58 = vsel %vm2919_vm6, %v3948_v57, -inf }
0x18a4   : > { %3959 = vmax.xlane.f32.xlu0 %v3958_v58 }
0x18ad   : > { %5912 = vrot.lane.b32.xlu1 %v6647_v15, %s6930_s19 }
0x18b3   : > { %v3951_v59 = vpop.xlane.xlu0 %3950 }
0x18b4   : > { %v3961_v60 = vsub.f32 %v3945_v30, %v3951_v59 }
0x18b6   : > { %v3965_v61 = vmul.f32 1.442695, %v3961_v60 }
0x18b8   : > { %5989 = vpow2.f32 %v3965_v61 }
0x18c2   : > { %v5990_v16 = vpop.eup %5989 }
0x18c3   : > { %v3973_v62 = vsel %vm2919_vm6, %v5990_v16, 0.0 }
0x18d1   : > { %3974 = vadd.xlane.f32.xlu1 %v3973_v62 }
0x1929   : > { %v3954_v63 = vpop.xlane.xlu1 %3953  ;;  %v3957_v0 = vpop.xlane.xlu0 %3956 }
0x192a   : > { %v3962_v1 = vsub.f32 %v3946_v48, %v3954_v63  ;;  %v3963_v2 = vsub.f32 %v3947_v49, %v3957_v0  ;;  %v5112_v48 = vld [vmem:[%s6891_s7 + $0x60] sm:$0xff]  ;;  %v5113_v49 = vld [vmem:[%s6891_s7 + $0x68] sm:$0xff] }
0x192b   : > { %v5780_v52 = vpack.c.bf16 %v5113_v49, %v5112_v48 }
0x192c   : > { %v3967_v3 = vmul.f32 1.442695, %v3962_v1  ;;  %v3969_v51 = vmul.f32 1.442695, %v3963_v2 }
0x192d   : > { %v5913_v5 = vpop.permute.xlu1 %5912 }
0x192e   : > { %5991 = vpow2.f32 %v3967_v3  ;;  %v5915_v6 = vunpack.i.h.bf16 %v5913_v5  ;;  %v5914_v7 = vunpack.i.l.bf16 %v5913_v5  ;;  %v5117_v3 = vld [vmem:[%s6892_s8 + $0x3] ss:$0 sm:$0xff] }
0x192f   : > { %5993 = vpow2.f32 %v3969_v51 }
0x1930   : > { %v5764_v8 = vpack.c.bf16 %v5915_v6, %v5914_v7 }
0x1931   : > { %v3960_v9 = vpop.xlane.xlu0 %3959 }
0x1932   : > { %v3964_v10 = vsub.f32 %v3948_v57, %v3960_v9  ;;  %5766 = vmatpush3.bf16.msk.msra.mxu1 %vm6538_vm9, %v5764_v8 }
0x1933   : > { %5767 = vmatprep.subr.bf16.mxu1 %v6023_v11 }
0x1934   : > { %v3971_v12 = vmul.f32 1.442695, %v3964_v10 }
0x1936   : > { %5995 = vpow2.f32 %v3971_v12 }
0x1938   : > { %v5992_v13 = vpop.eup %5991 }
0x1939   : > { %v5994_v15 = vpop.eup %5993  ;;  %v3976_v17 = vsel %vm2919_vm6, %v5992_v13, 0.0 }
0x193a   : > { %3977 = vadd.xlane.f32.xlu0 %v3976_v17  ;;  %v3979_v18 = vsel %vm2919_vm6, %v5994_v15, 0.0  ;;  %v4446_v17 = vld [vmem:[%s6893_s9] sm:$0xff] }
0x193b   : > { %3980 = vadd.xlane.f32.xlu1 %v3979_v18 }
0x1940   : > { %v5996_v19 = vpop.eup %5995 }
0x1941   : > { %v3982_v20 = vsel %vm2919_vm6, %v5996_v19, 0.0 }
0x1942   : > { %3983 = vadd.xlane.f32.xlu0 %v3982_v20  ;;  %v4449_v20 = vld [vmem:[%s6893_s9 + $0x18] sm:$0xff] }
0x194c   : > { %5922 = vrot.lane.b32.xlu1 %v6664_v21, %s6930_s19 }
0x1950   : > { %5927 = vrot.lane.b32.xlu1 %v6672_v31, %s6930_s19 }
0x1958   : > { %5917 = vrot.lane.b32.xlu0 %v6666_v22, %s6930_s19  ;;  %s581_s19 = scalar_lea.vmem %s6886_s2, %s5136_s23 }
0x1959   : > { %v4804_v48 = vld [vmem:[%s581_s19] sm:$0xff]  ;;  %v4805_v49 = vld [vmem:[%s581_s19 + $0x8] sm:$0x3] }
0x195e   : > { %v3975_v23 = vpop.xlane.xlu1 %3974 }
0x195f   : > { %5997 = vrcp.f32 %v3975_v23 }
0x1969   : > { %v5998_v25 = vpop.eup %5997 }
0x196a   : > { %v3989_v26 = vmul.f32 %v5998_v25, %v5990_v16  ;;  %v4531_v25 = vld [vmem:[%s6895_s11] sm:$0xff] }
0x196c   : > { %5564 = vmatmul.mubr.msk.f32.vlgmr.msra.gmra.mrb[38].mxu1 %vm2919_vm6, %v3989_v26  ;;  %v4532_v26 = vld [vmem:[%s6895_s11 + $0x8] sm:$0xff] }
0x196d   : > { %5570 = vmatprep.mubr.msk.f32.mxu1 %vm6024_vm1, %v6025_v14 }
0x19c7   : > { %v3978_v28 = vpop.xlane.xlu0 %3977 }
0x19c8   : > { %v3981_v27 = vpop.xlane.xlu1 %3980 }
0x19c9   : > { %5999 = vrcp.f32 %v3981_v27  ;;  %v4533_v27 = vld [vmem:[%s6895_s11 + $0x10] sm:$0xff] }
0x19ca   : > { %6001 = vrcp.f32 %v3978_v28  ;;  %v5792_v28 = vpack.c.bf16 %v4532_v26, %v4531_v25 }
0x19cc   : > { %v5923_v21 = vpop.permute.xlu1 %5922 }
0x19cd   : > { %v5925_v29 = vunpack.i.h.bf16 %v5923_v21  ;;  %v5924_v32 = vunpack.i.l.bf16 %v5923_v21  ;;  %v4534_v21 = vld [vmem:[%s6895_s11 + $0x18] sm:$0xff] }
0x19cf   : > { %v5772_v31 = vpack.c.bf16 %v5925_v29, %v5924_v32  ;;  %v3984_v33 = vpop.xlane.xlu0 %3983  ;;  %v5795_v29 = vpack.c.bf16 %v4534_v21, %v4533_v27  ;;  %v4535_v32 = vld [vmem:[%s6895_s11 + $0x20] sm:$0xff] }
0x19d0   : > { %6003 = vrcp.f32 %v3984_v33  ;;  %v5928_v38 = vpop.permute.xlu1 %5927 }
0x19d1   : > { %5774 = vmatpush3.bf16.msk.msra.mxu0 %vm6538_vm9, %v5772_v31  ;;  %v5930_v44 = vunpack.i.h.bf16 %v5928_v38  ;;  %v5929_v30 = vunpack.i.l.bf16 %v5928_v38  ;;  %v4536_v31 = vld [vmem:[%s6895_s11 + $0x28] sm:$0xff] }
0x19d2   : > { %5779 = vmatprep.subr.bf16.mxu0 %v6023_v11  ;;  %v5798_v33 = vpack.c.bf16 %v4536_v31, %v4535_v32 }
0x19d3   : > { %v6000_v22 = vpop.eup %5999  ;;  %v5918_v39 = vpop.permute.xlu0 %5917  ;;  %v5776_v43 = vpack.c.bf16 %v5930_v44, %v5929_v30 }
0x19d4   : > { %v3991_v40 = vmul.f32 %v6000_v22, %v5994_v15  ;;  %v5920_v41 = vunpack.i.h.bf16 %v5918_v39  ;;  %v5919_v42 = vunpack.i.l.bf16 %v5918_v39  ;;  %v6002_v50 = vpop.eup %6001 }
0x19d5   : > { %v3990_v37 = vmul.f32 %v6002_v50, %v5992_v13  ;;  %v5122_v50 = vld [vmem:[%s6888_s4 + $0x4] ss:$0 sm:$0xff] }
0x19d6   : > { %v5768_v34 = vpack.c.bf16 %v5920_v41, %v5919_v42  ;;  %5578 = vmatmul.mubr.msk.f32.vlgmr.msra.gmra.mrb[36].mxu0 %vm2919_vm6, %v3991_v40  ;;  %v5120_v41 = vld [vmem:[%s6887_s3 + $0x4] ss:$0 sm:$0xff] }
0x19d7   : > { %5595 = vmatprep.mubr.msk.f32.mxu0 %vm6024_vm1, %v6025_v14  ;;  %5781 = vmatpush3.bf16.msra.mxu0 %v5780_v52 }
0x19d8   : > { %5770 = vmatpush3.bf16.msk.msra.mxu1 %vm6538_vm9, %v5768_v34  ;;  %5782 = vmatprep.subr.bf16.mxu0 %v6023_v11  ;;  %v4537_v34 = vld [vmem:[%s6895_s11 + $0x30] sm:$0xff] }
0x19d9   : > { %5775 = vmatprep.subr.bf16.mxu1 %v6023_v11 }
0x19da   : > { %v6004_v45 = vpop.eup %6003 }
0x19db   : > { %5571 = vmatmul.mubr.msk.f32.vlgmr.msra.gmra.mrb[40].mxu1 %vm2919_vm6, %v3990_v37  ;;  %v3992_v46 = vmul.f32 %v6004_v45, %v5996_v19  ;;  %5784 = vmatpush3.bf16.msra.mxu0 %v5783_v55  ;;  %v4448_v19 = vld [vmem:[%s6893_s9 + $0x10] sm:$0xff]  ;;  %v4538_v37 = vld [vmem:[%s6895_s11 + $0x38] sm:$0xff]  ;;  %v5816_v55 = vpack.c.bf16 %v4805_v49, %v4804_v48 }
0x19dc   : > { %5778 = vmatpush3.bf16.msk.msra.mxu1 %vm6538_vm9, %v5776_v43  ;;  %5584 = vmatprep.mubr.msk.f32.mxu1 %vm6024_vm1, %v6025_v14  ;;  %v5789_v23 = vpack.c.bf16 %v4449_v20, %v4448_v19  ;;  %v5801_v45 = vpack.c.bf16 %v4538_v37, %v4537_v34  ;;  %v4621_v43 = vld [vmem:[%s6897_s13] sm:$0xff] }
0x19dd   : > { %5785 = vmatprep.subr.bf16.mxu1 %v6023_v11  ;;  %5791 = vmatprep.subr.bf16.mxu0 %v6023_v11 }
0x19df   : > { %5585 = vmatmul.mubr.msk.f32.vlgmr.msra.gmra.mrb[42].mxu1 %vm2919_vm6, %v3992_v46  ;;  %v4622_v46 = vld [vmem:[%s6897_s13 + $0x8] sm:$0xff] }
0x19e0   : > { %5606 = vmatprep.mubr.msk.f32.mxu1 %vm6024_vm1, %v6025_v14 }
0x1a3f   : > { %v4069_v35 = vpop.f32.mrb[38].mxu1 }
0x1a40   : > { %v5565_v47 = vpop.f32.mrb[39].mxu1 }
0x1a41   : > { %v5123_v47 = vld [vmem:[%s6894_s10] ss:$0 sm:$0xff] }
0x1aa9   : > { %v4229_v56 = vpop.f32.mrb[36].mxu0 }
0x1aaa   : > { %4318 = vrot.lane.b32.xlu1 %v4229_v56, %s6923_s22  ;;  %v5579_v57 = vpop.f32.mrb[37].mxu0  ;;  %s6932_s22 = sshll.u32 %s6934_s27, 3 }
0x1aab   : > { %v3394_v57 = vmul.f32 0.25, %v6576_v4  ;;  %v4717_v4 = vld [vmem:[%s6899_s15] sm:$0xff]  ;;  %s585_s29 = scalar_lea.vmem %s6901_s17, %s6932_s22 }
0x1aae   : > { %v4149_v58 = vpop.f32.mrb[40].mxu1 }
0x1aaf   : > { %4314 = vrot.lane.b32.xlu0 %v4149_v58, %s6921_s18  ;;  %v5572_v59 = vpop.f32.mrb[41].mxu1  ;;  %v4623_v58 = vld [vmem:[%s6897_s13 + $0x10] sm:$0xff]  ;;  %s6036_s18 = smov 32  }
0x1ab0   : > { %v4624_v59 = vld [vmem:[%s6897_s13 + $0x18] sm:$0xff] }
0x1ab2   : > { %v4309_v60 = vpop.f32.mrb[42].mxu1 }
0x1ab3   : > { %4322 = vrot.lane.b32.xlu0 %v4309_v60, %s6922_s28  ;;  %v5586_v61 = vpop.f32.mrb[43].mxu1  ;;  %v5807_v60 = vpack.c.bf16 %v4624_v59, %v4623_v58 }
0x1ab4   : > { %v4718_v61 = vld [vmem:[%s6899_s15 + $0x8] sm:$0xff] }
0x1b1c   : > { %v4319_v63 = vpop.permute.xlu1 %4318 }
0x1b21   : > { %v4315_v16 = vpop.permute.xlu0 %4314 }
0x1b22   : > { %v4325_v62 = vsel %vm715_vm2, %v4069_v35, %v4315_v16  ;;  %v5804_v35 = vpack.c.bf16 %v4622_v46, %v4621_v43 }
0x1b23   : > { %v4326_v0 = vsel %vm1387_vm3, %v4325_v62, %v4319_v63 }
0x1b25   : > { %v4323_v1 = vpop.permute.xlu0 %4322 }
0x1b26   : > { %v4327_v2 = vsel %vm1389_vm4, %v4326_v0, %v4323_v1  ;;  %v5810_v0 = vpack.c.bf16 %v4718_v61, %v4717_v4 }
0x1b27   : > { %5596 = vmatmul.mubr.msk.f32.vlgmr.msra.gmra.mrb[38].mxu0 %vm591_vm0, %v4327_v2  ;;  %v4719_v2 = vld [vmem:[%s6899_s15 + $0x10] sm:$0xff] }
0x1b28   : > { %5625 = vmatprep.mubr.msk.f32.mxu0 %vm6024_vm1, %v6025_v14  ;;  %5793 = vmatpush3.bf16.msra.mxu0 %v5792_v28 }
0x1b29   : > { %5794 = vmatprep.subr.bf16.mxu0 %v6023_v11 }
0x1b2c   : > { %5796 = vmatpush3.bf16.msra.mxu0 %v5795_v29 }
0x1b2d   : > { %5797 = vmatprep.subr.bf16.mxu0 %v6023_v11 }
0x1b30   : > { %5799 = vmatpush3.bf16.msra.mxu0 %v5798_v33 }
0x1b31   : > { %5800 = vmatprep.subr.bf16.mxu0 %v6023_v11 }
0x1b34   : > { %5802 = vmatpush3.bf16.msra.mxu0 %v5801_v45 }
0x1b35   : > { %5815 = vmatprep.subr.bf16.mxu0 %v6023_v11 }
0x1bfa   : > { %v4410_v51 = vpop.f32.mrb[38].mxu0 }
0x1bfb   : > { %v4411_v5 = vadd.f32 %v5117_v3, %v4410_v51  ;;  %v5597_v6 = vpop.f32.mrb[39].mxu0  ;;  %v4720_v3 = vld [vmem:[%s6899_s15 + $0x18] sm:$0xff] }
0x1bfc   : > { %v5813_v6 = vpack.c.bf16 %v4720_v3, %v4719_v2 }
0x1bfd   : > { %v6765_v7 = vadd.f32 %v4411_v5, %v6605_v36  ;;  %v4447_v36 = vld [vmem:[%s6893_s9 + $0x8] sm:$0xff] }
0x1bfe   : > { %v5786_v18 = vpack.c.bf16 %v4447_v36, %v4446_v17 }
0x1bff   : > { %v4415_v8 = vsel %vm591_vm0, %v6765_v7, 0.0 }
0x1c00   : > { %4416 = vadd.xlane.f32.xlu1 %v4415_v8  ;;  %5787 = vmatpush3.bf16.msra.mxu1 %v5786_v18  ;;  %v5127_v8 = vld [vmem:[%s6898_s14] ss:$0 sm:$0xff] }
0x1c01   : > { %5788 = vmatprep.subr.bf16.mxu1 %v6023_v11 }
0x1c04   : > { %5790 = vmatpush3.bf16.msra.mxu1 %v5789_v23 }
0x1c05   : > { %5803 = vmatprep.subr.bf16.mxu1 %v6023_v11 }
0x1c8d   : > { %v4417_v9 = vpop.xlane.xlu1 %4416 }
0x1c8e   : > { %v4418_v10 = vmul.f32 0.03125, %v4417_v9 }
0x1c90   : > { %v4419_v12 = vsub.f32 %v6765_v7, %v4418_v10 }
0x1c92   : > { %v4420_v13 = vmul.f32 %v4419_v12, %v4419_v12 }
0x1c94   : > { %v4421_v15 = vsel %vm591_vm0, %v4420_v13, 0.0 }
0x1c95   : > { %4422 = vadd.xlane.f32.xlu0 %v4421_v15 }
0x1d22   : > { %v4423_v22 = vpop.xlane.xlu0 %4422 }
0x1d23   : > { %v4424_v38 = vmul.f32 0.03125, %v4423_v22 }
0x1d25   : > { %v4425_v39 = vadd.f32 1e-05, %v4424_v38 }
0x1d27   : > { %6005 = vrsqrt.f32 %v4425_v39 }
0x1d31   : > { %v6006_v40 = vpop.eup %6005 }
0x1d32   : > { %v4427_v42 = vmul.f32 %v6006_v40, %v4419_v12 }
0x1d34   : > { %v4436_v44 = vmul.f32 %v5120_v41, %v4427_v42 }
0x1d36   : > { %v4445_v30 = vadd.f32 %v5122_v50, %v4436_v44 }
0x1d38   : > { %5607 = vmatmul.mubr.msk.f32.vlgmr.msra.gmra.mrb[44].mxu1 %vm591_vm0, %v4445_v30 }
0x1d39   : > { %5636 = vmatprep.mubr.msk.f32.mxu1 %vm6024_vm1, %v6025_v14  ;;  %5805 = vmatpush3.bf16.msra.mxu1 %v5804_v35 }
0x1d3a   : > { %5806 = vmatprep.subr.bf16.mxu1 %v6023_v11 }
0x1d3d   : > { %5808 = vmatpush3.bf16.msra.mxu1 %v5807_v60 }
0x1d3e   : > { %5809 = vmatprep.subr.bf16.mxu1 %v6023_v11 }
0x1e0b   : > { %v4526_v52 = vpop.f32.mrb[44].mxu1 }
0x1e0c   : > { %v4527_v53 = vadd.f32 %v5123_v47, %v4526_v52  ;;  %v5608_v54 = vpop.f32.mrb[45].mxu1 }
0x1e0e   : > { %v4530_v56 = vmax.f32 %v4527_v53, 0.0 }
0x1e10   : > { %5626 = vmatmul.mubr.msk.f32.vlgmr.msra.gmra.mrb[40].mxu0 %vm4546_vm11, %v4530_v56 }
0x1e11   : > { %5818 = vmatpush3.bf16.msk.msra.mxu0 %vm6538_vm9, %v5816_v55  ;;  %5654 = vmatprep.mubr.msk.f32.mxu0 %vm6024_vm1, %v6025_v14 }
0x1e14   : > { %5655 = vmatmul.mubr.msk.f32.vlgmr.msra.gmra.mrb[42].mxu0 %vm2919_vm6, %v3394_v57 }
0x1ee3   : > { %v4616_v16 = vpop.f32.mrb[40].mxu0 }
0x1ee4   : > { %v4617_v62 = vadd.f32 %v5125_v24, %v4616_v16  ;;  %v5627_v63 = vpop.f32.mrb[41].mxu0 }
0x1ee6   : > { %v4620_v1 = vadd.f32 %v4617_v62, %v6765_v7  ;;  %v6035_v7 = vmov 0  }
0x1ee7   : > { %v4878_v51 = vpop.f32.mrb[42].mxu0  ;;  %5931 = vset.pattern.permute.xlu0 %v6035_v7  ;;  %5932 = vset.pattern.permute.xlu1 %v6035_v7 }
0x1ee8   : > { %5637 = vmatmul.mubr.msk.f32.vlgmr.msra.gmra.mrb[46].mxu1 %vm591_vm0, %v4620_v1  ;;  %v5656_v5 = vpop.f32.mrb[43].mxu0 }
0x1ee9   : > { %5811 = vmatpush3.bf16.msra.mxu1 %v5810_v0  ;;  %5647 = vmatprep.mubr.msk.f32.mxu1 %vm6024_vm1, %v6025_v14  ;;  %v5129_v14 = vld [vmem:[#allocation2] ss:$0 sm:$0xff] }
0x1eea   : > { %5812 = vmatprep.subr.bf16.mxu1 %v6023_v11 }
0x1eed   : > { %5814 = vmatpush3.bf16.msra.mxu1 %v5813_v6 }
0x1ef0   : > { %5648 = vmatmul.mubr.msk.f32.vlgmr.msra.gmra.mrb[48].mxu1 %vm591_vm0, %v4620_v1 }
0x1fbb   : > { %v4701_v9 = vpop.f32.mrb[46].mxu1 }
0x1fbc   : > { %v4702_v10 = vadd.f32 %v5127_v8, %v4701_v9  ;;  %v5638_v12 = vpop.f32.mrb[47].mxu1 }
0x1fbe   : > { %v4706_v13 = vsel %vm4705_vm12, %v4702_v10, -inf }
0x1fbf   : > { %4707 = vmax.xlane.f32.xlu0 %v4706_v13 }
0x1fc3   : > { %v4794_v15 = vpop.f32.mrb[48].mxu1 }
0x1fc4   : > { %v4795_v11 = vadd.f32 %v5129_v14, %v4794_v15  ;;  %v5649_v17 = vpop.f32.mrb[49].mxu1 }
0x1fc6   : > { %v4798_v36 = vsub.f32 0.0, %v4795_v11 }
0x1fc8   : > { %v4799_v18 = vmul.f32 1.442695, %v4798_v36 }
0x1fca   : > { %6007 = vpow2.f32 %v4799_v18 }
0x1fd4   : > { %v6008_v19 = vpop.eup %6007 }
0x1fd5   : > { %v4801_v20 = vadd.f32 1.0, %v6008_v19 }
0x1fd7   : > { %6009 = vrcp.f32 %v4801_v20 }
0x1fe1   : > { %v6010_v23 = vpop.eup %6009 }
0x1fe2   : > { %4884 = vperm.xlu0 %5931, %v6010_v23   ;;  %v4888_v29 = vsub.f32 1.0, %v6010_v23 }
0x204c   : > { %v4708_v25 = vpop.xlane.xlu0 %4707 }
0x204d   : > { %v4709_v26 = vsub.f32 %v4702_v10, %v4708_v25 }
0x204f   : > { %v4710_v27 = vmul.f32 1.442695, %v4709_v26 }
0x2051   : > { %6011 = vpow2.f32 %v4710_v27 }
0x205b   : > { %v6012_v28 = vpop.eup %6011 }
0x205c   : > { %v4712_v21 = vsel %vm4705_vm12, %v6012_v28, 0.0 }
0x205d   : > { %4713 = vadd.xlane.f32.xlu1 %v4712_v21 }
0x2061   : > { %v4885_v38 = vpop.permute.xlu0 %4884 }
0x206e   : > { %4891 = vperm.xlu1 %5932, %v4888_v29  }
0x20ea   : > { %v4714_v32 = vpop.xlane.xlu1 %4713 }
0x20eb   : > { %6013 = vrcp.f32 %v4714_v32 }
0x20ee   : > { %v4892_v33 = vpop.permute.xlu1 %4891 }
0x20ef   : > { %v4894_v40 = vmul.f32 %v4892_v33, %v4878_v51 }
0x20f5   : > { %v6014_v31 = vpop.eup %6013 }
0x20f6   : > { %v4716_v22 = vmul.f32 %v6014_v31, %v6012_v28 }
0x20f8   : > { %v4887_v39 = vmul.f32 %v4885_v38, %v4716_v22 }
0x20fa   : > { %v4895_v41 = vadd.f32 %v4894_v40, %v4887_v39 }
0x20fc   : > { %4897 = vrot.lane.b32.xlu1 %v4895_v41, %s6036_s18 }
0x216e   : > { %v4898_v42 = vpop.permute.xlu1 %4897 }
0x216f   : > { %v4900_v50 = vsel %vm591_vm0, %v4620_v1, %v4898_v42 }
0x2170   : > { %4902 = vst.msk [vmem:[%s585_s29] sm:$0xff] %vm4901_vm13, %v4900_v50 }
0x2171 PF: > { %s29_s26 = sadd.s32 1, %s6021_s26  }
0x2172   : > { %p26_p4 = scmp.ge.s32.totalorder %s29_s26, 4  }
0x2174   :  { %28 = sbr.rel (!%p26_p4) target bundleno = 3 (0x3), region = 144 }

</bundles_post_ra>
